<compile_context>
chip_gen: v5e
topology: v5e:2x2
jax: 0.10.0
libtpu: 0.0.40
codegen_flags: <defaults>
</compile_context>

<pallas_src>
import jax
import jax.numpy as jnp
from jax.experimental import pallas as pl
from jax.experimental.pallas import tpu as pltpu

BN_EPS = 1e-5
_LANE = 128


def _round_up(x, m):
    return (x + m - 1) // m * m


def _vmem_limit(streamed_bytes, scratch_bytes=0):
    # Derived request: double-buffered streamed blocks + resident scratch +
    # compiler margin.  Real need here is <16 MiB (fits v7x's 64 MiB/TC).
    return int(min(2 * int(streamed_bytes) + int(scratch_bytes) + (8 << 20),
                   64 << 20))


# ----------------------------------------------------------------------------
# Pallas kernels
# ----------------------------------------------------------------------------
def _make_fused_matmul_bn_relu_kernel(mp, count, pad_rows):
    """Matmul + training-mode BatchNorm + ReLU, fused in one kernel.

    Grid (n_c, P): c is 'parallel' (per-channel BN stats are independent per
    128-lane C-block), p (phases) is 'arbitrary'.  The f32 result slab for the
    current C-block lives in VMEM scratch across the p steps; the epilogue on
    the last p step normalizes and writes bf16.
    """
    inv_n = 1.0 / float(count)
    n_pad = float(pad_rows)

    def kernel(a_ref, w_ref, g_ref, b_ref, o_ref, y_scr):
        p = pl.program_id(1)
        y = jnp.dot(a_ref[0], w_ref[0], preferred_element_type=jnp.float32)
        row0 = pl.multiple_of(p * mp, 16)
        y_scr[pl.ds(row0, mp), :] = y

        @pl.when(p == pl.num_programs(1) - 1)
        def _():
            yf = y_scr[...]                                   # (P*Mp, tc) f32
            mean = jnp.sum(yf, axis=0, keepdims=True) * inv_n
            d = yf - mean
            # Padding rows are all-zero conv outputs; subtract their
            # (0 - mean)^2 contribution so the variance is exact.
            ssq = jnp.sum(d * d, axis=0, keepdims=True) - n_pad * mean * mean
            inv_std = jax.lax.rsqrt(jnp.maximum(ssq * inv_n, 0.0) + BN_EPS)
            scale = g_ref[...] * inv_std
            shift = b_ref[...] - mean * scale
            o_ref[...] = jnp.maximum(yf * scale + shift, 0.0).astype(o_ref.dtype)

    return kernel


def _matmul_tanh_kernel(a_ref, w_ref, o_ref):
    o_ref[0] = jnp.tanh(jnp.dot(a_ref[0], w_ref[0],
                                preferred_element_type=jnp.float32))


# ----------------------------------------------------------------------------
# pallas_call wrappers
# ----------------------------------------------------------------------------
def _fused_matmul_bn_relu(a, w, gamma, beta, *, count, tc=_LANE):
    """(P, Mp, K) @ (P, K, C) with fused BN(train)+ReLU -> bf16 (P*Mp, C)."""
    P, Mp, K = a.shape
    C = w.shape[-1]
    tc = min(tc, C)
    n_c = C // tc
    R = P * Mp
    kern = _make_fused_matmul_bn_relu_kernel(Mp, count, R - count)
    streamed = Mp * K * 2 + K * tc * 2 + R * tc * 2 + 2 * tc * 4
    cost = pl.CostEstimate(
        flops=2 * P * Mp * K * C + 8 * R * C,
        transcendentals=C,
        bytes_accessed=int(a.size * 2 + w.size * 2 + R * C * 2 + 2 * C * 4))
    return pl.pallas_call(
        kern,
        out_shape=jax.ShapeDtypeStruct((R, C), jnp.bfloat16),
        grid=(n_c, P),
        in_specs=[pl.BlockSpec((1, Mp, K), lambda c, p: (p, 0, 0)),
                  pl.BlockSpec((1, K, tc), lambda c, p: (p, 0, c)),
                  pl.BlockSpec((1, tc), lambda c, p: (0, c)),
                  pl.BlockSpec((1, tc), lambda c, p: (0, c))],
        out_specs=pl.BlockSpec((R, tc), lambda c, p: (0, c)),
        scratch_shapes=[pltpu.VMEM((R, tc), jnp.float32)],
        compiler_params=pltpu.CompilerParams(
            dimension_semantics=("parallel", "arbitrary"),
            vmem_limit_bytes=_vmem_limit(streamed, R * tc * 4)),
        cost_estimate=cost,
    )(a, w,
      gamma.reshape(1, C).astype(jnp.float32),
      beta.reshape(1, C).astype(jnp.float32))


def _matmul_tanh(a, w):
    P, Mp, K = a.shape
    C = w.shape[-1]
    streamed = Mp * K * 2 + K * C * 2 + Mp * C * 4
    cost = pl.CostEstimate(
        flops=2 * P * Mp * K * C, transcendentals=P * Mp * C,
        bytes_accessed=int(a.size * 2 + w.size * 2 + P * Mp * C * 4))
    return pl.pallas_call(
        _matmul_tanh_kernel,
        out_shape=jax.ShapeDtypeStruct((P, Mp, C), jnp.float32),
        grid=(P,),
        in_specs=[pl.BlockSpec((1, Mp, K), lambda p: (p, 0, 0)),
                  pl.BlockSpec((1, K, C), lambda p: (p, 0, 0))],
        out_specs=pl.BlockSpec((1, Mp, C), lambda p: (p, 0, 0)),
        compiler_params=pltpu.CompilerParams(
            dimension_semantics=("parallel",),
            vmem_limit_bytes=_vmem_limit(streamed)),
        cost_estimate=cost,
    )(a, w)


# ----------------------------------------------------------------------------
# Plain-JAX glue: spectral norm, ConvT -> matmul layout preparation
# ----------------------------------------------------------------------------
def _l2normalize(v, eps=1e-12):
    return v / (jnp.linalg.norm(v) + eps)


def _spectral_norm(w, u):
    # Matches the SpectralNorm wrapper: w (Cin, Cout, kH, kW), height = dim 0,
    # one power iteration, w / sigma.
    height = w.shape[0]
    w2 = w.reshape(height, -1)
    v = _l2normalize(w2.T @ u)
    u = _l2normalize(w2 @ v)
    sigma = u @ (w2 @ v)
    return w / sigma


def _dilated_patches(x_nhwc, w_t, stride, padding):
    """Generic ConvT == stride-1 conv on zero-dilated, padded input with the
    spatially-flipped, channel-swapped kernel.  Returns (1, M, K), (1, K, C)."""
    N, H, W, Cin = x_nhwc.shape
    _, Cout, kH, kW = w_t.shape
    if stride > 1:
        Hd, Wd = (H - 1) * stride + 1, (W - 1) * stride + 1
        xd = jnp.zeros((N, Hd, Wd, Cin), x_nhwc.dtype)
        xd = xd.at[:, ::stride, ::stride, :].set(x_nhwc)
    else:
        xd = x_nhwc
    ph, pw = kH - 1 - padding, kW - 1 - padding
    xp = jnp.pad(xd, ((0, 0), (ph, ph), (pw, pw), (0, 0)))
    Ho = (H - 1) * stride - 2 * padding + kH
    Wo = (W - 1) * stride - 2 * padding + kW
    patches = jnp.stack(
        [xp[:, i:i + Ho, j:j + Wo, :] for i in range(kH) for j in range(kW)],
        axis=3,
    ).reshape(N * Ho * Wo, kH * kW * Cin)
    w_flip = jnp.flip(w_t, axis=(2, 3))
    w_mat = jnp.transpose(w_flip, (2, 3, 0, 1)).reshape(kH * kW * Cin, Cout)
    return patches[None], w_mat[None], (Ho, Wo)


# Sub-pixel taps for k=4, s=2, p=1: kernel-tap indices used by each output
# parity phase, listed in patch-offset (dh=0,1) order.
_K4S2P1_TAPS = ((3, 1), (2, 0))


def _subpixel_patches(x_nhwc, w_t):
    """k=4/s=2/p=1 ConvT decomposed into 4 output-parity phases, each a
    stride-1 conv with 2x2 taps -> drops the structurally-zero 3/4 of K."""
    N, H, W, Cin = x_nhwc.shape
    _, Cout, _, _ = w_t.shape
    xp = jnp.pad(x_nhwc, ((0, 0), (1, 1), (1, 1), (0, 0)))
    patches, wmats = [], []
    for a in (0, 1):
        for b in (0, 1):
            p_ab = jnp.stack(
                [xp[:, a + dh:a + dh + H, b + dw:b + dw + W, :]
                 for dh in range(2) for dw in range(2)],
                axis=3,
            ).reshape(N * H * W, 4 * Cin)
            patches.append(p_ab)
            th = jnp.array(_K4S2P1_TAPS[a])
            tw = jnp.array(_K4S2P1_TAPS[b])
            w_ab = w_t[:, :, th, :][:, :, :, tw]             # (Cin, Cout, 2, 2)
            wmats.append(jnp.transpose(w_ab, (2, 3, 0, 1)).reshape(4 * Cin, Cout))
    return jnp.stack(patches), jnp.stack(wmats), (2 * H, 2 * W)


# ----------------------------------------------------------------------------
# Generator forward
# ----------------------------------------------------------------------------
_LAYER_CFG = [  # (Cout, k, stride, pad, spectral_norm, batchnorm)
    (512, 3, 1, 0, True, True),
    (256, 3, 2, 0, True, True),
    (128, 4, 2, 1, True, True),
    (1, 4, 2, 1, False, False),
]


def _convt_layer(x, w_t, stride, padding, gamma, beta, last):
    N, H, W, Cin = x.shape
    _, Cout, kH, kW = w_t.shape

    if H == 1 and W == 1 and padding == 0:
        # Layer 0: 1x1 spatial input => out[n,c,i,j] = sum_k z[n,k] * W[k,c,i,j].
        # A single (k*k*N, k*k*Cin) @ (k*k*Cin, Cout) matmul whose rows are
        # already NHWC output pixels (BN-fusable, one grid step per C-block);
        # replaces the dilate/pad/slice/stack im2col glue entirely.
        Ho, Wo = kH, kW
        kk = kH * kW
        sel = jnp.flip(jnp.eye(kk, dtype=x.dtype), axis=0)    # tap = kk-1 - pixel
        z2 = x.reshape(N, Cin)
        a = (sel[None, :, :, None] * z2[:, None, None, :]).reshape(
            1, N * kk, kk * Cin)
        w_flip = jnp.flip(w_t, axis=(2, 3))
        w_mat = jnp.transpose(w_flip, (2, 3, 0, 1)).reshape(1, kk * Cin, Cout)
    elif stride == 2 and kH == 4 and padding == 1:
        a, w_mat, (Ho, Wo) = _subpixel_patches(x, w_t)
    else:
        # TODO(synk): the k=3/s=2/p=0 layer still contracts over the
        # zero-dilated K axis.  A ragged per-parity decomposition is a net DMA
        # loss once phases are padded to a common K (weight bytes ~4.2 MB vs
        # 2.4 MB), so the dilated form is kept; the C-block grid pipelines its
        # weight DMA instead.
        a, w_mat, (Ho, Wo) = _dilated_patches(x, w_t, stride, padding)

    P, M, K = a.shape
    a = a.astype(jnp.bfloat16)
    w_mat = w_mat.astype(jnp.bfloat16)
    Mp = _round_up(M, 16)                 # bf16 packs 16 sublanes per vreg
    if Mp != M:
        a = jnp.pad(a, ((0, 0), (0, Mp - M), (0, 0)))

    if last:
        # Lane-dense final output: pad Cout 1 -> 128, slice column 0 outside.
        w_mat = jnp.pad(w_mat, ((0, 0), (0, 0), (0, _LANE - Cout)))
        y = _matmul_tanh(a, w_mat)[:, :M, :Cout]              # (P, M, 1) f32
    else:
        y = _fused_matmul_bn_relu(a, w_mat, gamma, beta, count=P * M)
        y = y.reshape(P, Mp, Cout)[:, :M, :]                  # (P, M, C) bf16

    c_eff = y.shape[-1]
    if P == 1:
        return y.reshape(N, Ho, Wo, c_eff)
    h, w = Ho // 2, Wo // 2
    return jnp.transpose(y.reshape(2, 2, N, h, w, c_eff),
                         (2, 3, 0, 4, 1, 5)).reshape(N, Ho, Wo, c_eff)


def generator_forward(z, params):
    """z: (N, z_dim) -> images (N, 1, 28, 28), NCHW like the PyTorch module."""
    N = z.shape[0]
    x = z.reshape(N, 1, 1, z.shape[1]).astype(jnp.bfloat16)   # NHWC, 1x1 spatial
    for i, (_, k, s, p, sn, bn) in enumerate(_LAYER_CFG):
        w = params[f"w{i}"]
        if sn:
            # TODO(synk): PyTorch's SpectralNorm also updates the `u` buffer in
            # place each training forward; this forward-only path does not
            # persist the updated u.
            w = _spectral_norm(w, params[f"u{i}"])
        x = _convt_layer(x, w, s, p,
                         params.get(f"gamma{i}"), params.get(f"beta{i}"),
                         last=not bn)
    return jnp.transpose(x, (0, 3, 1, 2)).astype(jnp.float32)  # NHWC -> NCHW


def init_generator_params(key, z_dim):
    params = {}
    cins = [z_dim, 512, 256, 128]
    for i, (cout, k, _, _, sn, bn) in enumerate(_LAYER_CFG):
        cin = cins[i]
        key, kw, ku = jax.random.split(key, 3)
        fan = cout * k * k
        params[f"w{i}"] = jax.random.normal(kw, (cin, cout, k, k), jnp.float32) / jnp.sqrt(fan)
        if sn:
            params[f"u{i}"] = _l2normalize(jax.random.normal(ku, (cin,), jnp.float32))
        if bn:
            params[f"gamma{i}"] = jnp.ones((cout,), jnp.float32)
            params[f"beta{i}"] = jnp.zeros((cout,), jnp.float32)
    return params


# ----------------------------------------------------------------------------
# Plain-JAX/XLA reference (f32) for numerical validation of the kernels
# ----------------------------------------------------------------------------
def _reference_forward(z, params):
    N = z.shape[0]
    x = z.reshape(N, 1, 1, z.shape[1])
    for i, (_, k, s, p, sn, bn) in enumerate(_LAYER_CFG):
        w = params[f"w{i}"]
        if sn:
            w = _spectral_norm(w, params[f"u{i}"])
        w_hwio = jnp.transpose(jnp.flip(w, axis=(2, 3)), (2, 3, 0, 1))
        pad = k - 1 - p
        y = jax.lax.conv_general_dilated(
            x, w_hwio, window_strides=(1, 1), padding=[(pad, pad), (pad, pad)],
            lhs_dilation=(s, s), dimension_numbers=("NHWC", "HWIO", "NHWC"))
        if bn:
            mean = jnp.mean(y, axis=(0, 1, 2), keepdims=True)
            var = jnp.mean(jnp.square(y - mean), axis=(0, 1, 2), keepdims=True)
            y = (y - mean) * jax.lax.rsqrt(var + BN_EPS)
            y = jnp.maximum(y * params[f"gamma{i}"] + params[f"beta{i}"], 0.0)
        else:
            y = jnp.tanh(y)
        x = y
    return jnp.transpose(x, (0, 3, 1, 2))


if __name__ == "__main__":
    key = jax.random.PRNGKey(0)
    z_dim, batch = 32, 2
    kp, kz = jax.random.split(key)
    params = init_generator_params(kp, z_dim)
    z = jax.random.normal(kz, (batch, z_dim), jnp.float32)

    out = jax.block_until_ready(jax.jit(generator_forward)(z, params))
    assert out.shape == (batch, 1, 28, 28), out.shape
    assert bool(jnp.all(jnp.isfinite(out)))
    assert bool(jnp.all(jnp.abs(out) <= 1.0 + 1e-6))   # tanh output range

    ref = jax.block_until_ready(jax.jit(_reference_forward)(z, params))
    max_diff = float(jnp.max(jnp.abs(out - ref)))
    assert max_diff < 0.2, f"kernel vs reference max|diff| = {max_diff}"
    print("KERNEL_OK")
</pallas_src>

<mosaic_0001>
module attributes {stable_mosaic.version = 11 : i64} {
  func.func @kernel(%arg0: i32, %arg1: i32, %arg2: memref<1x32x288xbf16, #tpu.memory_space<vmem>>, %arg3: memref<1x288x128xbf16, #tpu.memory_space<vmem>>, %arg4: memref<1x128xf32, #tpu.memory_space<vmem>>, %arg5: memref<1x128xf32, #tpu.memory_space<vmem>>, %arg6: memref<32x128xbf16, #tpu.memory_space<vmem>>, %arg7: memref<32x128xf32, #tpu.memory_space<vmem>>) attributes {dimension_semantics = [#tpu.dimension_semantics<parallel>, #tpu.dimension_semantics<arbitrary>], iteration_bounds = array<i64: 4, 1>, scalar_prefetch = 0 : i64, scratch_operands = 1 : i64, tpu.core_type = #tpu.core_type<tc>, window_params = [{transform_indices = @transform_0, window_bounds = array<i64: 1, 32, 288>}, {transform_indices = @transform_1, window_bounds = array<i64: 1, 288, 128>}, {transform_indices = @transform_2, window_bounds = array<i64: 1, 128>}, {transform_indices = @transform_3, window_bounds = array<i64: 1, 128>}, {transform_indices = @transform_4, window_bounds = array<i64: 32, 128>}]} {
    %c0 = arith.constant 0 : index
    %c0_0 = arith.constant 0 : index
    %c0_1 = arith.constant 0 : index
    %0 = vector.load %arg2[%c0, %c0_0, %c0_1] : memref<1x32x288xbf16, #tpu.memory_space<vmem>>, vector<1x32x288xbf16>
    %1 = vector.shape_cast %0 : vector<1x32x288xbf16> to vector<32x288xbf16>
    %c0_2 = arith.constant 0 : index
    %c0_3 = arith.constant 0 : index
    %c0_4 = arith.constant 0 : index
    %2 = vector.load %arg3[%c0_2, %c0_3, %c0_4] : memref<1x288x128xbf16, #tpu.memory_space<vmem>>, vector<1x288x128xbf16>
    %3 = vector.shape_cast %2 : vector<1x288x128xbf16> to vector<288x128xbf16>
    %cst = arith.constant dense<0.000000e+00> : vector<32x128xf32>
    %4 = tpu.matmul %1, %3, %cst {dimension_numbers = #tpu.dot_dimension_numbers<[1], [0], [0], [1], [0, 0, 1, 1], [], []>} : vector<32x288xbf16>, vector<288x128xbf16>, vector<32x128xf32> -> vector<32x128xf32>
    %c32_i32 = arith.constant 32 : i32
    %5 = arith.muli %arg1, %c32_i32 : i32
    %6 = tpu.assume_multiple %5, 16 : i32
    %7 = arith.index_cast %6 : i32 to index
    %c0_5 = arith.constant 0 : index
    %8 = vector.load %arg7[%7, %c0_5] : memref<32x128xf32, #tpu.memory_space<vmem>>, vector<32x128xf32>
    tpu.vector_store %arg7[%7, %c0_5], %4 {strides = array<i32>} : memref<32x128xf32, #tpu.memory_space<vmem>>, vector<32x128xf32>,
    %c0_i32 = arith.constant 0 : i32
    %9 = arith.cmpi eq, %arg1, %c0_i32 : i32
    %10 = arith.extui %9 : i1 to i32
    %c0_i32_6 = arith.constant 0 : i32
    %11 = arith.cmpi ne, %10, %c0_i32_6 : i32
    scf.if %11 {
      %c0_7 = arith.constant 0 : index
      %c0_8 = arith.constant 0 : index
      %12 = vector.load %arg7[%c0_7, %c0_8] : memref<32x128xf32, #tpu.memory_space<vmem>>, vector<32x128xf32>
      %cst_9 = arith.constant dense<0.000000e+00> : vector<128xf32>
      %13 = vector.multi_reduction <add>, %12, %cst_9 [0] : vector<32x128xf32> to vector<128xf32>
      %14 = vector.shape_cast %13 : vector<128xf32> to vector<1x128xf32>
      %cst_10 = arith.constant 0.055555556 : f32
      %15 = vector.broadcast %cst_10 : f32 to vector<1x128xf32>
      %16 = arith.mulf %14, %15 : vector<1x128xf32>
      %17 = vector.broadcast %16 : vector<1x128xf32> to vector<32x128xf32>
      %18 = arith.subf %12, %17 : vector<32x128xf32>
      %19 = arith.mulf %18, %18 : vector<32x128xf32>
      %cst_11 = arith.constant dense<0.000000e+00> : vector<128xf32>
      %20 = vector.multi_reduction <add>, %19, %cst_11 [0] : vector<32x128xf32> to vector<128xf32>
      %21 = vector.shape_cast %20 : vector<128xf32> to vector<1x128xf32>
      %cst_12 = arith.constant 1.400000e+01 : f32
      %22 = vector.broadcast %cst_12 : f32 to vector<1x128xf32>
      %23 = arith.mulf %22, %16 : vector<1x128xf32>
      %24 = arith.mulf %23, %16 : vector<1x128xf32>
      %25 = arith.subf %21, %24 : vector<1x128xf32>
      %cst_13 = arith.constant 0.055555556 : f32
      %26 = vector.broadcast %cst_13 : f32 to vector<1x128xf32>
      %27 = arith.mulf %25, %26 : vector<1x128xf32>
      %cst_14 = arith.constant 0.000000e+00 : f32
      %28 = vector.broadcast %cst_14 : f32 to vector<1x128xf32>
      %29 = arith.maximumf %27, %28 : vector<1x128xf32>
      %cst_15 = arith.constant 9.99999974E-6 : f32
      %30 = vector.broadcast %cst_15 : f32 to vector<1x128xf32>
      %31 = arith.addf %29, %30 : vector<1x128xf32>
      %32 = math.rsqrt %31 : vector<1x128xf32>
      %c0_16 = arith.constant 0 : index
      %c0_17 = arith.constant 0 : index
      %33 = vector.load %arg4[%c0_16, %c0_17] : memref<1x128xf32, #tpu.memory_space<vmem>>, vector<1x128xf32>
      %34 = arith.mulf %33, %32 : vector<1x128xf32>
      %c0_18 = arith.constant 0 : index
      %c0_19 = arith.constant 0 : index
      %35 = vector.load %arg5[%c0_18, %c0_19] : memref<1x128xf32, #tpu.memory_space<vmem>>, vector<1x128xf32>
      %36 = arith.mulf %16, %34 : vector<1x128xf32>
      %37 = arith.subf %35, %36 : vector<1x128xf32>
      %38 = vector.broadcast %34 : vector<1x128xf32> to vector<32x128xf32>
      %39 = arith.mulf %12, %38 : vector<32x128xf32>
      %40 = vector.broadcast %37 : vector<1x128xf32> to vector<32x128xf32>
      %41 = arith.addf %39, %40 : vector<32x128xf32>
      %cst_20 = arith.constant 0.000000e+00 : f32
      %42 = vector.broadcast %cst_20 : f32 to vector<32x128xf32>
      %43 = arith.maximumf %41, %42 : vector<32x128xf32>
      %44 = arith.truncf %43 : vector<32x128xf32> to vector<32x128xbf16>
      %c0_21 = arith.constant 0 : index
      %c0_22 = arith.constant 0 : index
      %45 = vector.load %arg6[%c0_21, %c0_22] : memref<32x128xbf16, #tpu.memory_space<vmem>>, vector<32x128xbf16>
      tpu.vector_store %arg6[%c0_21, %c0_22], %44 {strides = array<i32>} : memref<32x128xbf16, #tpu.memory_space<vmem>>, vector<32x128xbf16>,
    } else {
    }
    return
  }
  func.func @transform_0(%arg0: i32, %arg1: i32) -> (i32, i32, i32) {
    %c0_i32 = arith.constant 0 : i32
    %c0_i32_0 = arith.constant 0 : i32
    %c0_i32_1 = arith.constant 0 : i32
    return %arg1, %c0_i32, %c0_i32_0 : i32, i32, i32
  }
  func.func @transform_1(%arg0: i32, %arg1: i32) -> (i32, i32, i32) {
    %c0_i32 = arith.constant 0 : i32
    %c0_i32_0 = arith.constant 0 : i32
    return %arg1, %c0_i32, %arg0 : i32, i32, i32
  }
  func.func @transform_2(%arg0: i32, %arg1: i32) -> (i32, i32) {
    %c0_i32 = arith.constant 0 : i32
    %c0_i32_0 = arith.constant 0 : i32
    return %c0_i32, %arg0 : i32, i32
  }
  func.func @transform_3(%arg0: i32, %arg1: i32) -> (i32, i32) {
    %c0_i32 = arith.constant 0 : i32
    %c0_i32_0 = arith.constant 0 : i32
    return %c0_i32, %arg0 : i32, i32
  }
  func.func @transform_4(%arg0: i32, %arg1: i32) -> (i32, i32) {
    %c0_i32 = arith.constant 0 : i32
    %c0_i32_0 = arith.constant 0 : i32
    return %c0_i32, %arg0 : i32, i32
  }
}

module attributes {stable_mosaic.version = 11 : i64} {
  func.func @kernel(%arg0: i32, %arg1: i32, %arg2: memref<1x112x4608xbf16, #tpu.memory_space<vmem>>, %arg3: memref<1x4608x128xbf16, #tpu.memory_space<vmem>>, %arg4: memref<1x128xf32, #tpu.memory_space<vmem>>, %arg5: memref<1x128xf32, #tpu.memory_space<vmem>>, %arg6: memref<112x128xbf16, #tpu.memory_space<vmem>>, %arg7: memref<112x128xf32, #tpu.memory_space<vmem>>) attributes {dimension_semantics = [#tpu.dimension_semantics<parallel>, #tpu.dimension_semantics<arbitrary>], iteration_bounds = array<i64: 2, 1>, scalar_prefetch = 0 : i64, scratch_operands = 1 : i64, tpu.core_type = #tpu.core_type<tc>, window_params = [{transform_indices = @transform_0, window_bounds = array<i64: 1, 112, 4608>}, {transform_indices = @transform_1, window_bounds = array<i64: 1, 4608, 128>}, {transform_indices = @transform_2, window_bounds = array<i64: 1, 128>}, {transform_indices = @transform_3, window_bounds = array<i64: 1, 128>}, {transform_indices = @transform_4, window_bounds = array<i64: 112, 128>}]} {
    %c0 = arith.constant 0 : index
    %c0_0 = arith.constant 0 : index
    %c0_1 = arith.constant 0 : index
    %0 = vector.load %arg2[%c0, %c0_0, %c0_1] : memref<1x112x4608xbf16, #tpu.memory_space<vmem>>, vector<1x112x4608xbf16>
    %1 = vector.shape_cast %0 : vector<1x112x4608xbf16> to vector<112x4608xbf16>
    %c0_2 = arith.constant 0 : index
    %c0_3 = arith.constant 0 : index
    %c0_4 = arith.constant 0 : index
    %2 = vector.load %arg3[%c0_2, %c0_3, %c0_4] : memref<1x4608x128xbf16, #tpu.memory_space<vmem>>, vector<1x4608x128xbf16>
    %3 = vector.shape_cast %2 : vector<1x4608x128xbf16> to vector<4608x128xbf16>
    %cst = arith.constant dense<0.000000e+00> : vector<112x128xf32>
    %4 = tpu.matmul %1, %3, %cst {dimension_numbers = #tpu.dot_dimension_numbers<[1], [0], [0], [1], [0, 0, 1, 1], [], []>} : vector<112x4608xbf16>, vector<4608x128xbf16>, vector<112x128xf32> -> vector<112x128xf32>
    %c112_i32 = arith.constant 112 : i32
    %5 = arith.muli %arg1, %c112_i32 : i32
    %6 = tpu.assume_multiple %5, 16 : i32
    %7 = arith.index_cast %6 : i32 to index
    %c0_5 = arith.constant 0 : index
    %8 = vector.load %arg7[%7, %c0_5] : memref<112x128xf32, #tpu.memory_space<vmem>>, vector<112x128xf32>
    tpu.vector_store %arg7[%7, %c0_5], %4 {strides = array<i32>} : memref<112x128xf32, #tpu.memory_space<vmem>>, vector<112x128xf32>,
    %c0_i32 = arith.constant 0 : i32
    %9 = arith.cmpi eq, %arg1, %c0_i32 : i32
    %10 = arith.extui %9 : i1 to i32
    %c0_i32_6 = arith.constant 0 : i32
    %11 = arith.cmpi ne, %10, %c0_i32_6 : i32
    scf.if %11 {
      %c0_7 = arith.constant 0 : index
      %c0_8 = arith.constant 0 : index
      %12 = vector.load %arg7[%c0_7, %c0_8] : memref<112x128xf32, #tpu.memory_space<vmem>>, vector<112x128xf32>
      %cst_9 = arith.constant dense<0.000000e+00> : vector<128xf32>
      %13 = vector.multi_reduction <add>, %12, %cst_9 [0] : vector<112x128xf32> to vector<128xf32>
      %14 = vector.shape_cast %13 : vector<128xf32> to vector<1x128xf32>
      %cst_10 = arith.constant 0.0102040814 : f32
      %15 = vector.broadcast %cst_10 : f32 to vector<1x128xf32>
      %16 = arith.mulf %14, %15 : vector<1x128xf32>
      %17 = vector.broadcast %16 : vector<1x128xf32> to vector<112x128xf32>
      %18 = arith.subf %12, %17 : vector<112x128xf32>
      %19 = arith.mulf %18, %18 : vector<112x128xf32>
      %cst_11 = arith.constant dense<0.000000e+00> : vector<128xf32>
      %20 = vector.multi_reduction <add>, %19, %cst_11 [0] : vector<112x128xf32> to vector<128xf32>
      %21 = vector.shape_cast %20 : vector<128xf32> to vector<1x128xf32>
      %cst_12 = arith.constant 1.400000e+01 : f32
      %22 = vector.broadcast %cst_12 : f32 to vector<1x128xf32>
      %23 = arith.mulf %22, %16 : vector<1x128xf32>
      %24 = arith.mulf %23, %16 : vector<1x128xf32>
      %25 = arith.subf %21, %24 : vector<1x128xf32>
      %cst_13 = arith.constant 0.0102040814 : f32
      %26 = vector.broadcast %cst_13 : f32 to vector<1x128xf32>
      %27 = arith.mulf %25, %26 : vector<1x128xf32>
      %cst_14 = arith.constant 0.000000e+00 : f32
      %28 = vector.broadcast %cst_14 : f32 to vector<1x128xf32>
      %29 = arith.maximumf %27, %28 : vector<1x128xf32>
      %cst_15 = arith.constant 9.99999974E-6 : f32
      %30 = vector.broadcast %cst_15 : f32 to vector<1x128xf32>
      %31 = arith.addf %29, %30 : vector<1x128xf32>
      %32 = math.rsqrt %31 : vector<1x128xf32>
      %c0_16 = arith.constant 0 : index
      %c0_17 = arith.constant 0 : index
      %33 = vector.load %arg4[%c0_16, %c0_17] : memref<1x128xf32, #tpu.memory_space<vmem>>, vector<1x128xf32>
      %34 = arith.mulf %33, %32 : vector<1x128xf32>
      %c0_18 = arith.constant 0 : index
      %c0_19 = arith.constant 0 : index
      %35 = vector.load %arg5[%c0_18, %c0_19] : memref<1x128xf32, #tpu.memory_space<vmem>>, vector<1x128xf32>
      %36 = arith.mulf %16, %34 : vector<1x128xf32>
      %37 = arith.subf %35, %36 : vector<1x128xf32>
      %38 = vector.broadcast %34 : vector<1x128xf32> to vector<112x128xf32>
      %39 = arith.mulf %12, %38 : vector<112x128xf32>
      %40 = vector.broadcast %37 : vector<1x128xf32> to vector<112x128xf32>
      %41 = arith.addf %39, %40 : vector<112x128xf32>
      %cst_20 = arith.constant 0.000000e+00 : f32
      %42 = vector.broadcast %cst_20 : f32 to vector<112x128xf32>
      %43 = arith.maximumf %41, %42 : vector<112x128xf32>
      %44 = arith.truncf %43 : vector<112x128xf32> to vector<112x128xbf16>
      %c0_21 = arith.constant 0 : index
      %c0_22 = arith.constant 0 : index
      %45 = vector.load %arg6[%c0_21, %c0_22] : memref<112x128xbf16, #tpu.memory_space<vmem>>, vector<112x128xbf16>
      tpu.vector_store %arg6[%c0_21, %c0_22], %44 {strides = array<i32>} : memref<112x128xbf16, #tpu.memory_space<vmem>>, vector<112x128xbf16>,
    } else {
    }
    return
  }
  func.func @transform_0(%arg0: i32, %arg1: i32) -> (i32, i32, i32) {
    %c0_i32 = arith.constant 0 : i32
    %c0_i32_0 = arith.constant 0 : i32
    %c0_i32_1 = arith.constant 0 : i32
    return %arg1, %c0_i32, %c0_i32_0 : i32, i32, i32
  }
  func.func @transform_1(%arg0: i32, %arg1: i32) -> (i32, i32, i32) {
    %c0_i32 = arith.constant 0 : i32
    %c0_i32_0 = arith.constant 0 : i32
    return %arg1, %c0_i32, %arg0 : i32, i32, i32
  }
  func.func @transform_2(%arg0: i32, %arg1: i32) -> (i32, i32) {
    %c0_i32 = arith.constant 0 : i32
    %c0_i32_0 = arith.constant 0 : i32
    return %c0_i32, %arg0 : i32, i32
  }
  func.func @transform_3(%arg0: i32, %arg1: i32) -> (i32, i32) {
    %c0_i32 = arith.constant 0 : i32
    %c0_i32_0 = arith.constant 0 : i32
    return %c0_i32, %arg0 : i32, i32
  }
  func.func @transform_4(%arg0: i32, %arg1: i32) -> (i32, i32) {
    %c0_i32 = arith.constant 0 : i32
    %c0_i32_0 = arith.constant 0 : i32
    return %c0_i32, %arg0 : i32, i32
  }
}

module attributes {stable_mosaic.version = 11 : i64} {
  func.func @kernel(%arg0: i32, %arg1: i32, %arg2: memref<1x112x1024xbf16, #tpu.memory_space<vmem>>, %arg3: memref<1x1024x128xbf16, #tpu.memory_space<vmem>>, %arg4: memref<1x128xf32, #tpu.memory_space<vmem>>, %arg5: memref<1x128xf32, #tpu.memory_space<vmem>>, %arg6: memref<448x128xbf16, #tpu.memory_space<vmem>>, %arg7: memref<448x128xf32, #tpu.memory_space<vmem>>) attributes {dimension_semantics = [#tpu.dimension_semantics<parallel>, #tpu.dimension_semantics<arbitrary>], iteration_bounds = array<i64: 1, 4>, scalar_prefetch = 0 : i64, scratch_operands = 1 : i64, tpu.core_type = #tpu.core_type<tc>, window_params = [{transform_indices = @transform_0, window_bounds = array<i64: 1, 112, 1024>}, {transform_indices = @transform_1, window_bounds = array<i64: 1, 1024, 128>}, {transform_indices = @transform_2, window_bounds = array<i64: 1, 128>}, {transform_indices = @transform_3, window_bounds = array<i64: 1, 128>}, {transform_indices = @transform_4, window_bounds = array<i64: 448, 128>}]} {
    %c0 = arith.constant 0 : index
    %c0_0 = arith.constant 0 : index
    %c0_1 = arith.constant 0 : index
    %0 = vector.load %arg2[%c0, %c0_0, %c0_1] : memref<1x112x1024xbf16, #tpu.memory_space<vmem>>, vector<1x112x1024xbf16>
    %1 = vector.shape_cast %0 : vector<1x112x1024xbf16> to vector<112x1024xbf16>
    %c0_2 = arith.constant 0 : index
    %c0_3 = arith.constant 0 : index
    %c0_4 = arith.constant 0 : index
    %2 = vector.load %arg3[%c0_2, %c0_3, %c0_4] : memref<1x1024x128xbf16, #tpu.memory_space<vmem>>, vector<1x1024x128xbf16>
    %3 = vector.shape_cast %2 : vector<1x1024x128xbf16> to vector<1024x128xbf16>
    %cst = arith.constant dense<0.000000e+00> : vector<112x128xf32>
    %4 = tpu.matmul %1, %3, %cst {dimension_numbers = #tpu.dot_dimension_numbers<[1], [0], [0], [1], [0, 0, 1, 1], [], []>} : vector<112x1024xbf16>, vector<1024x128xbf16>, vector<112x128xf32> -> vector<112x128xf32>
    %c112_i32 = arith.constant 112 : i32
    %5 = arith.muli %arg1, %c112_i32 : i32
    %6 = tpu.assume_multiple %5, 16 : i32
    %7 = arith.index_cast %6 : i32 to index
    %c0_5 = arith.constant 0 : index
    %8 = vector.load %arg7[%7, %c0_5] : memref<448x128xf32, #tpu.memory_space<vmem>>, vector<112x128xf32>
    tpu.vector_store %arg7[%7, %c0_5], %4 {strides = array<i32>} : memref<448x128xf32, #tpu.memory_space<vmem>>, vector<112x128xf32>,
    %c3_i32 = arith.constant 3 : i32
    %9 = arith.cmpi eq, %arg1, %c3_i32 : i32
    %10 = arith.extui %9 : i1 to i32
    %c0_i32 = arith.constant 0 : i32
    %11 = arith.cmpi ne, %10, %c0_i32 : i32
    scf.if %11 {
      %c0_6 = arith.constant 0 : index
      %c0_7 = arith.constant 0 : index
      %12 = vector.load %arg7[%c0_6, %c0_7] : memref<448x128xf32, #tpu.memory_space<vmem>>, vector<448x128xf32>
      %cst_8 = arith.constant dense<0.000000e+00> : vector<128xf32>
      %13 = vector.multi_reduction <add>, %12, %cst_8 [0] : vector<448x128xf32> to vector<128xf32>
      %14 = vector.shape_cast %13 : vector<128xf32> to vector<1x128xf32>
      %cst_9 = arith.constant 0.00255102036 : f32
      %15 = vector.broadcast %cst_9 : f32 to vector<1x128xf32>
      %16 = arith.mulf %14, %15 : vector<1x128xf32>
      %17 = vector.broadcast %16 : vector<1x128xf32> to vector<448x128xf32>
      %18 = arith.subf %12, %17 : vector<448x128xf32>
      %19 = arith.mulf %18, %18 : vector<448x128xf32>
      %cst_10 = arith.constant dense<0.000000e+00> : vector<128xf32>
      %20 = vector.multi_reduction <add>, %19, %cst_10 [0] : vector<448x128xf32> to vector<128xf32>
      %21 = vector.shape_cast %20 : vector<128xf32> to vector<1x128xf32>
      %cst_11 = arith.constant 5.600000e+01 : f32
      %22 = vector.broadcast %cst_11 : f32 to vector<1x128xf32>
      %23 = arith.mulf %22, %16 : vector<1x128xf32>
      %24 = arith.mulf %23, %16 : vector<1x128xf32>
      %25 = arith.subf %21, %24 : vector<1x128xf32>
      %cst_12 = arith.constant 0.00255102036 : f32
      %26 = vector.broadcast %cst_12 : f32 to vector<1x128xf32>
      %27 = arith.mulf %25, %26 : vector<1x128xf32>
      %cst_13 = arith.constant 0.000000e+00 : f32
      %28 = vector.broadcast %cst_13 : f32 to vector<1x128xf32>
      %29 = arith.maximumf %27, %28 : vector<1x128xf32>
      %cst_14 = arith.constant 9.99999974E-6 : f32
      %30 = vector.broadcast %cst_14 : f32 to vector<1x128xf32>
      %31 = arith.addf %29, %30 : vector<1x128xf32>
      %32 = math.rsqrt %31 : vector<1x128xf32>
      %c0_15 = arith.constant 0 : index
      %c0_16 = arith.constant 0 : index
      %33 = vector.load %arg4[%c0_15, %c0_16] : memref<1x128xf32, #tpu.memory_space<vmem>>, vector<1x128xf32>
      %34 = arith.mulf %33, %32 : vector<1x128xf32>
      %c0_17 = arith.constant 0 : index
      %c0_18 = arith.constant 0 : index
      %35 = vector.load %arg5[%c0_17, %c0_18] : memref<1x128xf32, #tpu.memory_space<vmem>>, vector<1x128xf32>
      %36 = arith.mulf %16, %34 : vector<1x128xf32>
      %37 = arith.subf %35, %36 : vector<1x128xf32>
      %38 = vector.broadcast %34 : vector<1x128xf32> to vector<448x128xf32>
      %39 = arith.mulf %12, %38 : vector<448x128xf32>
      %40 = vector.broadcast %37 : vector<1x128xf32> to vector<448x128xf32>
      %41 = arith.addf %39, %40 : vector<448x128xf32>
      %cst_19 = arith.constant 0.000000e+00 : f32
      %42 = vector.broadcast %cst_19 : f32 to vector<448x128xf32>
      %43 = arith.maximumf %41, %42 : vector<448x128xf32>
      %44 = arith.truncf %43 : vector<448x128xf32> to vector<448x128xbf16>
      %c0_20 = arith.constant 0 : index
      %c0_21 = arith.constant 0 : index
      %45 = vector.load %arg6[%c0_20, %c0_21] : memref<448x128xbf16, #tpu.memory_space<vmem>>, vector<448x128xbf16>
      tpu.vector_store %arg6[%c0_20, %c0_21], %44 {strides = array<i32>} : memref<448x128xbf16, #tpu.memory_space<vmem>>, vector<448x128xbf16>,
    } else {
    }
    return
  }
  func.func @transform_0(%arg0: i32, %arg1: i32) -> (i32, i32, i32) {
    %c0_i32 = arith.constant 0 : i32
    %c0_i32_0 = arith.constant 0 : i32
    %c0_i32_1 = arith.constant 0 : i32
    return %arg1, %c0_i32, %c0_i32_0 : i32, i32, i32
  }
  func.func @transform_1(%arg0: i32, %arg1: i32) -> (i32, i32, i32) {
    %c0_i32 = arith.constant 0 : i32
    %c0_i32_0 = arith.constant 0 : i32
    return %arg1, %c0_i32, %arg0 : i32, i32, i32
  }
  func.func @transform_2(%arg0: i32, %arg1: i32) -> (i32, i32) {
    %c0_i32 = arith.constant 0 : i32
    %c0_i32_0 = arith.constant 0 : i32
    return %c0_i32, %arg0 : i32, i32
  }
  func.func @transform_3(%arg0: i32, %arg1: i32) -> (i32, i32) {
    %c0_i32 = arith.constant 0 : i32
    %c0_i32_0 = arith.constant 0 : i32
    return %c0_i32, %arg0 : i32, i32
  }
  func.func @transform_4(%arg0: i32, %arg1: i32) -> (i32, i32) {
    %c0_i32 = arith.constant 0 : i32
    %c0_i32_0 = arith.constant 0 : i32
    return %c0_i32, %arg0 : i32, i32
  }
}

module attributes {stable_mosaic.version = 11 : i64} {
  func.func @_matmul_tanh_kernel(%arg0: i32, %arg1: memref<1x400x512xbf16, #tpu.memory_space<vmem>>, %arg2: memref<1x512x128xbf16, #tpu.memory_space<vmem>>, %arg3: memref<1x400x128xf32, #tpu.memory_space<vmem>>) attributes {dimension_semantics = [#tpu.dimension_semantics<parallel>], iteration_bounds = array<i64: 4>, scalar_prefetch = 0 : i64, scratch_operands = 0 : i64, tpu.core_type = #tpu.core_type<tc>, window_params = [{transform_indices = @transform_0, window_bounds = array<i64: 1, 400, 512>}, {transform_indices = @transform_1, window_bounds = array<i64: 1, 512, 128>}, {transform_indices = @transform_2, window_bounds = array<i64: 1, 400, 128>}]} {
    %c0 = arith.constant 0 : index
    %c0_0 = arith.constant 0 : index
    %c0_1 = arith.constant 0 : index
    %0 = vector.load %arg1[%c0, %c0_0, %c0_1] : memref<1x400x512xbf16, #tpu.memory_space<vmem>>, vector<1x400x512xbf16>
    %1 = vector.shape_cast %0 : vector<1x400x512xbf16> to vector<400x512xbf16>
    %c0_2 = arith.constant 0 : index
    %c0_3 = arith.constant 0 : index
    %c0_4 = arith.constant 0 : index
    %2 = vector.load %arg2[%c0_2, %c0_3, %c0_4] : memref<1x512x128xbf16, #tpu.memory_space<vmem>>, vector<1x512x128xbf16>
    %3 = vector.shape_cast %2 : vector<1x512x128xbf16> to vector<512x128xbf16>
    %cst = arith.constant dense<0.000000e+00> : vector<400x128xf32>
    %4 = tpu.matmul %1, %3, %cst {dimension_numbers = #tpu.dot_dimension_numbers<[1], [0], [0], [1], [0, 0, 1, 1], [], []>} : vector<400x512xbf16>, vector<512x128xbf16>, vector<400x128xf32> -> vector<400x128xf32>
    %5 = math.tanh %4 : vector<400x128xf32>
    %c0_5 = arith.constant 0 : index
    %c0_6 = arith.constant 0 : index
    %c0_7 = arith.constant 0 : index
    %6 = vector.load %arg3[%c0_5, %c0_6, %c0_7] : memref<1x400x128xf32, #tpu.memory_space<vmem>>, vector<1x400x128xf32>
    %7 = vector.shape_cast %6 : vector<1x400x128xf32> to vector<400x128xf32>
    %8 = vector.shape_cast %5 : vector<400x128xf32> to vector<1x400x128xf32>
    tpu.vector_store %arg3[%c0_5, %c0_6, %c0_7], %8 {strides = array<i32>} : memref<1x400x128xf32, #tpu.memory_space<vmem>>, vector<1x400x128xf32>,
    return
  }
  func.func @transform_0(%arg0: i32) -> (i32, i32, i32) {
    %c0_i32 = arith.constant 0 : i32
    %c0_i32_0 = arith.constant 0 : i32
    %c0_i32_1 = arith.constant 0 : i32
    return %arg0, %c0_i32, %c0_i32_0 : i32, i32, i32
  }
  func.func @transform_1(%arg0: i32) -> (i32, i32, i32) {
    %c0_i32 = arith.constant 0 : i32
    %c0_i32_0 = arith.constant 0 : i32
    %c0_i32_1 = arith.constant 0 : i32
    return %arg0, %c0_i32, %c0_i32_0 : i32, i32, i32
  }
  func.func @transform_2(%arg0: i32) -> (i32, i32, i32) {
    %c0_i32 = arith.constant 0 : i32
    %c0_i32_0 = arith.constant 0 : i32
    %c0_i32_1 = arith.constant 0 : i32
    return %arg0, %c0_i32, %c0_i32_0 : i32, i32, i32
  }
}

</mosaic_0001>

<bundles_post_ra>
// kernel: generator_forward.4
= control target key start
LH: loop header
LB: loop body
LE: loop exit
PB: predicated region body
PF: predicated region fallthrough
CT: control target
= control target key end

     0   :  { %s1200_s15 = smov 0   ;;  %s1202_s16 = smov 0   ;;  %s1423_s0 = inlined_call_operand.vmem [shape: bf16[1,32,288], index: 0, kind: input, shape index: {}]   ;;  %s1424_s1 = inlined_call_operand.vmem [shape: bf16[1,288,512], index: 1, kind: input, shape index: {}]   ;;  %s1425_s2 = inlined_call_operand.vmem [shape: f32[1,512], index: 2, kind: input, shape index: {}]   ;;  %s1426_s3 = inlined_call_operand.vmem [shape: f32[1,512], index: 3, kind: input, shape index: {}]   ;;  %s1427_s4 = inlined_call_operand.vmem [shape: bf16[32,512], index: 4, kind: output, shape index: {}]  }
   0x1   :  { %s1204_s17 = smov 0   ;;  %s1206_s18 = smov 0  }
   0x2   :  { %s1208_s19 = smov 0  }
   0x3 LB: > { %s26_s20 = sadd.s32 1, %s1169_s18  ;;  %s938_s21 = sadd.s32 4294967295, %s1173_s19   ;;  %s1173_s19 = sphi %s1208_s19, %s14_s19   ;;  %s1169_s18 = sphi %s1206_s18, %s1432_s18   ;;  %s1165_s17 = sphi %s1204_s17, %s1431_s17   ;;  %s1161_s16 = sphi %s1202_s16, %s1430_s16   ;;  %s1157_s15 = sphi %s1200_s15, %s1429_s15  }
   0x4   : > { %p28_p0 = scmp.ge.s32.totalorder %s26_s20, 4  ;;  %p68_p1 = scmp.ne.s32.totalorder %s1161_s16, %s1157_s15 }
   0x5   : > { %p69_p2 = scmp.eq.s32.totalorder %s1173_s19, 0  ;;  %p150_p4 = scmp.eq.s32.totalorder %s938_s21, 3 }
   0x6   : > { %s1434_s20 = smov (%p28_p0, %s26_s20), 0  ;;  %s61_s23 = sadd.s32 1, %s1161_s16 }
   0x7   : > { %p70_p3 = por %p69_p2, %p68_p1  ;;  %s57_s22 = ssub.s32 %s1169_s18, %s1434_s20 }
   0x8   : > { %p59_p5 = scmp.eq.s32.totalorder %s57_s22, 0  ;;  %p1235_p6 = por %p150_p4, %p68_p1 }
   0x9   : > { %p942_p7 = scmp.ge.s32.totalorder %s1173_s19, 4 }
   0xa   : > { %s1240_s25 = scalar_select %p59_p5, %s1161_s16, %s61_s23  }
   0xb   : > { %180 = sbr.rel (%p942_p7) target bundleno = 56 (0x38), region = 20 }
  0x10   : > { %183 = sbr.rel (!%p70_p3) target bundleno = 56 (0x38), region = 24  ;;  %s185_s26 = sand.u32 (%p70_p3), 1, %s1161_s16  }
  0x11   : > { %s943_s27 = sshll.u32 (%p70_p3), %s1169_s18, 2  ;;  %s1091_s28 = smul.u32 (%p70_p3), 144, %s185_s26 }
  0x12   : > { %s1248_s5 = scalar_lea.vmem (%p70_p3), %s1424_s1, %s943_s27 }
  0x13   : > { %v208_v0 = vld [vmem:[%s1248_s5] sm:$0xf] (%p70_p3)  ;;  %v210_v1 = vld [vmem:[%s1248_s5 + $0x10] sm:$0xf] (%p70_p3)  ;;  %s1253_s6 = scalar_lea.vmem (%p70_p3), [#allocation3], %s1091_s28 }
  0x14   : > { %v212_v2 = vld [vmem:[%s1248_s5 + $0x20] sm:$0xf] (%p70_p3)  ;;  %209 = vst [vmem:[%s1253_s6] sm:$0xf] (%p70_p3), %v208_v0  ;;  %v214_v3 = vld [vmem:[%s1248_s5 + $0x30] sm:$0xf] (%p70_p3) }
  0x15   : > { %211 = vst [vmem:[%s1253_s6 + $0x4] sm:$0xf] %v210_v1  ;;  %v216_v4 = vld [vmem:[%s1248_s5 + $0x40] sm:$0xf]  ;;  %v218_v5 = vld [vmem:[%s1248_s5 + $0x50] sm:$0xf] }
  0x16   : > { %213 = vst [vmem:[%s1253_s6 + $0x8] sm:$0xf] %v212_v2  ;;  %v220_v6 = vld [vmem:[%s1248_s5 + $0x60] sm:$0xf]  ;;  %v222_v7 = vld [vmem:[%s1248_s5 + $0x70] sm:$0xf] }
  0x17   : > { %215 = vst [vmem:[%s1253_s6 + $0xc] sm:$0xf] %v214_v3  ;;  %v224_v8 = vld [vmem:[%s1248_s5 + $0x80] sm:$0xf]  ;;  %v226_v9 = vld [vmem:[%s1248_s5 + $0x90] sm:$0xf] }
  0x18   : > { %217 = vst [vmem:[%s1253_s6 + $0x10] sm:$0xf] %v216_v4  ;;  %v228_v10 = vld [vmem:[%s1248_s5 + $0xa0] sm:$0xf]  ;;  %v230_v11 = vld [vmem:[%s1248_s5 + $0xb0] sm:$0xf] }
  0x19   : > { %219 = vst [vmem:[%s1253_s6 + $0x14] sm:$0xf] %v218_v5  ;;  %v232_v12 = vld [vmem:[%s1248_s5 + $0xc0] sm:$0xf]  ;;  %v234_v13 = vld [vmem:[%s1248_s5 + $0xd0] sm:$0xf] }
  0x1a   : > { %221 = vst [vmem:[%s1253_s6 + $0x18] sm:$0xf] %v220_v6  ;;  %v236_v14 = vld [vmem:[%s1248_s5 + $0xe0] sm:$0xf]  ;;  %v238_v15 = vld [vmem:[%s1248_s5 + $0xf0] sm:$0xf] }
  0x1b   : > { %223 = vst [vmem:[%s1253_s6 + $0x1c] sm:$0xf] %v222_v7  ;;  %v240_v16 = vld [vmem:[%s1248_s5 + $0x100] sm:$0xf]  ;;  %v242_v17 = vld [vmem:[%s1248_s5 + $0x110] sm:$0xf] }
  0x1c   : > { %225 = vst [vmem:[%s1253_s6 + $0x20] sm:$0xf] %v224_v8  ;;  %v244_v18 = vld [vmem:[%s1248_s5 + $0x120] sm:$0xf]  ;;  %v246_v19 = vld [vmem:[%s1248_s5 + $0x130] sm:$0xf] }
  0x1d   : > { %227 = vst [vmem:[%s1253_s6 + $0x24] sm:$0xf] %v226_v9  ;;  %v248_v20 = vld [vmem:[%s1248_s5 + $0x140] sm:$0xf]  ;;  %v250_v21 = vld [vmem:[%s1248_s5 + $0x150] sm:$0xf] }
  0x1e   : > { %229 = vst [vmem:[%s1253_s6 + $0x28] sm:$0xf] %v228_v10  ;;  %v252_v22 = vld [vmem:[%s1248_s5 + $0x160] sm:$0xf]  ;;  %v254_v23 = vld [vmem:[%s1248_s5 + $0x170] sm:$0xf] }
  0x1f   : > { %231 = vst [vmem:[%s1253_s6 + $0x2c] sm:$0xf] %v230_v11  ;;  %v256_v24 = vld [vmem:[%s1248_s5 + $0x180] sm:$0xf]  ;;  %v258_v25 = vld [vmem:[%s1248_s5 + $0x190] sm:$0xf] }
  0x20   : > { %233 = vst [vmem:[%s1253_s6 + $0x30] sm:$0xf] %v232_v12  ;;  %v260_v26 = vld [vmem:[%s1248_s5 + $0x1a0] sm:$0xf]  ;;  %v262_v27 = vld [vmem:[%s1248_s5 + $0x1b0] sm:$0xf] }
  0x21   : > { %235 = vst [vmem:[%s1253_s6 + $0x34] sm:$0xf] %v234_v13  ;;  %v264_v28 = vld [vmem:[%s1248_s5 + $0x1c0] sm:$0xf]  ;;  %v266_v29 = vld [vmem:[%s1248_s5 + $0x1d0] sm:$0xf] }
  0x22   : > { %237 = vst [vmem:[%s1253_s6 + $0x38] sm:$0xf] %v236_v14  ;;  %v268_v30 = vld [vmem:[%s1248_s5 + $0x1e0] sm:$0xf]  ;;  %v270_v31 = vld [vmem:[%s1248_s5 + $0x1f0] sm:$0xf] }
  0x23   : > { %239 = vst [vmem:[%s1253_s6 + $0x3c] sm:$0xf] %v238_v15  ;;  %v272_v32 = vld [vmem:[%s1248_s5 + $0x200] sm:$0xf]  ;;  %v274_v33 = vld [vmem:[%s1248_s5 + $0x210] sm:$0xf] }
  0x24   : > { %241 = vst [vmem:[%s1253_s6 + $0x40] sm:$0xf] %v240_v16  ;;  %v276_v34 = vld [vmem:[%s1248_s5 + $0x220] sm:$0xf]  ;;  %v278_v35 = vld [vmem:[%s1248_s5 + $0x230] sm:$0xf] }
  0x25   : > { %243 = vst [vmem:[%s1253_s6 + $0x44] sm:$0xf] %v242_v17 }
  0x26   : > { %245 = vst [vmem:[%s1253_s6 + $0x48] sm:$0xf] %v244_v18 }
  0x27   : > { %247 = vst [vmem:[%s1253_s6 + $0x4c] sm:$0xf] %v246_v19 }
  0x28   : > { %249 = vst [vmem:[%s1253_s6 + $0x50] sm:$0xf] %v248_v20 }
  0x29   : > { %251 = vst [vmem:[%s1253_s6 + $0x54] sm:$0xf] %v250_v21 }
  0x2a   : > { %253 = vst [vmem:[%s1253_s6 + $0x58] sm:$0xf] %v252_v22 }
  0x2b   : > { %255 = vst [vmem:[%s1253_s6 + $0x5c] sm:$0xf] %v254_v23 }
  0x2c   : > { %257 = vst [vmem:[%s1253_s6 + $0x60] sm:$0xf] %v256_v24 }
  0x2d   : > { %259 = vst [vmem:[%s1253_s6 + $0x64] sm:$0xf] %v258_v25 }
  0x2e   : > { %261 = vst [vmem:[%s1253_s6 + $0x68] sm:$0xf] %v260_v26 }
  0x2f   : > { %263 = vst [vmem:[%s1253_s6 + $0x6c] sm:$0xf] %v262_v27 }
  0x30   : > { %265 = vst [vmem:[%s1253_s6 + $0x70] sm:$0xf] %v264_v28 }
  0x31   : > { %267 = vst [vmem:[%s1253_s6 + $0x74] sm:$0xf] %v266_v29 }
  0x32   : > { %269 = vst [vmem:[%s1253_s6 + $0x78] sm:$0xf] %v268_v30 }
  0x33   : > { %271 = vst [vmem:[%s1253_s6 + $0x7c] sm:$0xf] %v270_v31 }
  0x34   : > { %273 = vst [vmem:[%s1253_s6 + $0x80] sm:$0xf] %v272_v32 }
  0x35   : > { %275 = vst [vmem:[%s1253_s6 + $0x84] sm:$0xf] %v274_v33 }
  0x36   : > { %277 = vst [vmem:[%s1253_s6 + $0x88] sm:$0xf] %v276_v34 }
  0x37   : > { %279 = vst [vmem:[%s1253_s6 + $0x8c] sm:$0xf] %v278_v35 }
  0x38 PF: > { %p944_p8 = scmp.ge.s32.totalorder %s1173_s19, 1  ;;  %p386_p9 = scmp.lt.s32.totalorder %s1173_s19, 5 }
  0x3a   : > { %p387_p10 = pnand %p944_p8, %p386_p9 }
  0x3b   : > { %s393_s7 = sand.u32 (!%p387_p10), 1, %s1157_s15   ;;  %p433_p11 = scmp.lt.s32.totalorder (!%p387_p10), %s1165_s17, 3 }
  0x3c   : > { %390 = sbr.rel (%p387_p10) target bundleno = 342 (0x156), region = 73  ;;  %s945_s6 = sshll.u32 (!%p387_p10), %s393_s7, 4 }
  0x3d   : > { %s1092_s8 = smul.u32 (!%p387_p10), 144, %s393_s7 }
  0x3f   : > { %s1329_s9 = scalar_lea.vmem (!%p387_p10), [#allocation3], %s1092_s8  ;;  %s427_s8 = scalar_lea.vmem (!%p387_p10), [#allocation4], %s945_s6 }
  0x41   : > { %v1061_v36 = vld [vmem:[%s1329_s9 + $0x38] sm:$0xff]  ;;  %v1060_v38 = vld [vmem:[%s1329_s9 + $0x30] sm:$0xff]  ;;  %v1071_v40 = vld [vmem:[%s1329_s9 + $0x88] sm:$0xff]  ;;  %vm622_vm0 = vcmask 261120   ;;  %s434_s23 = scalar_select %p433_p11, %s1165_s17, 3 }
  0x42   : > { %v1069_v37 = vld [vmem:[%s1329_s9 + $0x78] sm:$0xff]  ;;  %629 = vmatpush.bf16.msra.mxu0 %v1061_v36  ;;  %v1068_v39 = vld [vmem:[%s1329_s9 + $0x70] sm:$0xff]  ;;  %1083 = vmatpush.bf16.msra.mxu3 %v1061_v36  ;;  %v1070_v41 = vld [vmem:[%s1329_s9 + $0x80] sm:$0xff]  ;;  %s1045_s10 = sshll.u32 (%p1235_p6), %s1165_s17, 2 }
  0x43   : > { %648 = vmatpush.bf16.msra.mxu1 %v1069_v37  ;;  %673 = vmatpush.bf16.msra.mxu2 %v1071_v40  ;;  %v956_v42 = vld [vmem:[%s1423_s0 + $0x8] sm:$0xf]  ;;  %v1050_v43 = vld [vmem:[%s1423_s0 + $0x10] sm:$0xf0]  ;;  %v968_v53 = vld [vmem:[%s1423_s0 + $0x20] sm:$0xf]  ;;  %s435_s28 = scalar_lea.vmem %s1425_s2, %s434_s23  ;;  %s438_s5 = scalar_lea.vmem %s1426_s3, %s434_s23 }
  0x44   : > { %v1059_v44 = vld [vmem:[%s1329_s9 + $0x28] sm:$0xff]  ;;  %v957_v46 = vor.u32 %v1050_v43, %v956_v42  ;;  %v1058_v47 = vld [vmem:[%s1329_s9 + $0x20] sm:$0xff]  ;;  %v1057_v49 = vld [vmem:[%s1329_s9 + $0x18] sm:$0xff]  ;;  %s782_s11 = scalar_lea.vmem (%p1235_p6), %s1427_s4, %s1045_s10 }
  0x45   : > { %v1067_v45 = vld [vmem:[%s1329_s9 + $0x68] sm:$0xff]  ;;  %v1066_v48 = vld [vmem:[%s1329_s9 + $0x60] sm:$0xff]  ;;  %v1065_v50 = vld [vmem:[%s1329_s9 + $0x58] sm:$0xff] }
  0x46   : > { %630 = vmatpush.bf16.msra.mxu0 %v1060_v38  ;;  %1084 = vmatpush.bf16.msra.mxu3 %v1060_v38  ;;  %v1056_v51 = vld [vmem:[%s1329_s9 + $0x10] sm:$0xff]  ;;  %v1053_v54 = vld [vmem:[%s1423_s0 + $0x28] sm:$0xf0]  ;;  %v1054_v61 = vld [vmem:[%s1329_s9] sm:$0xff] }
  0x47   : > { %649 = vmatpush.bf16.msra.mxu1 %v1068_v39  ;;  %674 = vmatpush.bf16.msra.mxu2 %v1070_v41  ;;  %v1064_v52 = vld [vmem:[%s1329_s9 + $0x50] sm:$0xff]  ;;  %v1055_v55 = vld [vmem:[%s1329_s9 + $0x8] sm:$0xff]  ;;  %v969_v57 = vor.u32 %v1053_v54, %v968_v53  ;;  %v1062_v62 = vld [vmem:[%s1329_s9 + $0x40] sm:$0xff] }
  0x48   : > { %v1063_v56 = vld [vmem:[%s1329_s9 + $0x48] sm:$0xff]  ;;  %v948_v58 = vld [vmem:[%s1423_s0] sm:$0xf]  ;;  %v1048_v60 = vld [vmem:[%s1423_s0 + $0x4] sm:$0xf] }
  0x49   : > { %v1049_v59 = vld [vmem:[%s1423_s0 + $0x8] sm:$0xf0]  ;;  %v950_v63 = vld [vmem:[%s1423_s0 + $0xc] sm:$0xf0]  ;;  %v960_v0 = vld [vmem:[%s1423_s0 + $0x18] sm:$0xf] }
  0x4a   : > { %631 = vmatpush.bf16.msra.mxu0 %v1059_v44  ;;  %1085 = vmatpush.bf16.msra.mxu3 %v1059_v44  ;;  %v1052_v1 = vld [vmem:[%s1423_s0 + $0x20] sm:$0xf0]  ;;  %v949_v2 = vor.u32 %v1049_v59, %v948_v58  ;;  %v953_v3 = vor.u32 %v1048_v60, %v950_v63  ;;  %v1051_v5 = vld [vmem:[%s1423_s0 + $0x1c] sm:$0xf]  ;;  %v962_v6 = vld [vmem:[%s1423_s0 + $0x24] sm:$0xf0] }
  0x4b   : > { %650 = vmatpush.bf16.msra.mxu1 %v1067_v45  ;;  %1042 = vmatmul.msk.bf16.vlgmr.msra.gmra.mxu2 %vm622_vm0, %v957_v46  ;;  %v961_v4 = vor.u32 %v1052_v1, %v960_v0  ;;  %v965_v7 = vor.u32 %v1051_v5, %v962_v6  ;;  %v745_v6 = vld [vmem:[%s438_s5] sm:$0x1] }
  0x4e   : > { %632 = vmatpush.bf16.msra.mxu0 %v1058_v47  ;;  %1086 = vmatpush.bf16.msra.mxu3 %v1058_v47 }
  0x4f   : > { %651 = vmatpush.bf16.msra.mxu1 %v1066_v48 }
  0x52   : > { %633 = vmatpush.bf16.msra.mxu0 %v1057_v49  ;;  %1087 = vmatpush.bf16.msra.mxu3 %v1057_v49 }
  0x53   : > { %652 = vmatpush.bf16.msra.mxu1 %v1065_v50 }
  0x56   : > { %634 = vmatpush.bf16.msra.mxu0 %v1056_v51  ;;  %1088 = vmatpush.bf16.msra.mxu3 %v1056_v51 }
  0x57   : > { %653 = vmatpush.bf16.msra.mxu1 %v1064_v52 }
  0x5a   : > { %635 = vmatpush.bf16.msra.mxu0 %v1055_v55  ;;  %1089 = vmatpush.bf16.msra.mxu3 %v1055_v55 }
  0x5b   : > { %654 = vmatpush.bf16.msra.mxu1 %v1063_v56  ;;  %1043 = vmatmul.msk.bf16.gmra.mxu2 %vm622_vm0, %v969_v57 }
  0x5e   : > { %636 = vmatpush.bf16.msra.mxu0 %v1054_v61  ;;  %1090 = vmatpush.bf16.msra.mxu3 %v1054_v61 }
  0x5f   : > { %655 = vmatpush.bf16.msra.mxu1 %v1062_v62 }
  0x61   : > { %637 = vmatmul.bf16.vlgmr.msra.gmra.mxu0 %v949_v2  ;;  %642 = vmatmul.bf16.vlgmr.msra.gmra.mxu3 %v961_v4 }
  0x62   : > { %656 = vmatmul.bf16.vlgmr.msra.gmra.mxu1 %v953_v3  ;;  %v743_v3 = vld [vmem:[%s435_s28] sm:$0x1] }
  0x72   : > { %661 = vmatmul.bf16.gmra.mxu1 %v965_v7 }
  0xce   : > { %v676_v8 = vpop.f32.mrf.mxu2 }
  0xd6   : > { %v678_v11 = vpop.f32.mrf.mxu2 }
  0xde   : > { %v638_v10 = vpop.f32.mrf.mxu0  ;;  %v681_v15 = vpop.f32.mrf.mxu2 }
  0xdf   : > { %v657_v9 = vpop.f32.mrf.mxu1 }
  0xe0   : > { %v658_v18 = vadd.f32 %v657_v9, %v638_v10 }
  0xe2   : > { %v677_v21 = vadd.f32 %v676_v8, %v658_v18 }
  0xe4   : > { %v643_v14 = vpop.f32.mrf.mxu3 }
  0xe6   : > { %v640_v13 = vpop.f32.mrf.mxu0  ;;  %v683_v27 = vpop.f32.mrf.mxu2 }
  0xe7   : > { %v659_v12 = vpop.f32.mrf.mxu1 }
  0xe8   : > { %v660_v17 = vadd.f32 %v659_v12, %v640_v13 }
  0xea   : > { %v1387_v20 = vadd.f32 %v678_v11, %v660_v17 }
  0xec   : > { %v645_v23 = vpop.f32.mrf.mxu3  ;;  %v700_v25 = vadd.f32 %v1387_v20, %v677_v21 }
  0xef   : > { %v662_v16 = vpop.f32.mrf.mxu1 }
  0xf0   : > { %v663_v19 = vadd.f32 %v662_v16, %v643_v14 }
  0xf2   : > { %v682_v22 = vadd.f32 %v681_v15, %v663_v19 }
  0xf4   : > { %v701_v28 = vadd.f32 %v700_v25, %v682_v22 }
  0xf7   : > { %v664_v24 = vpop.f32.mrf.mxu1 }
  0xf8   : > { %v665_v26 = vadd.f32 %v664_v24, %v645_v23 }
  0xfa   : > { %v684_v29 = vadd.f32 %v683_v27, %v665_v26 }
  0xfc   : > { %v702_v30 = vadd.f32 %v701_v28, %v684_v29 }
  0xfe   : > { %v703_v31 = vrot.slane %v702_v30, 4 }
 0x100   : > { %v704_v32 = vadd.f32 %v703_v31, %v702_v30 }
 0x102   : > { %v705_v33 = vrot.slane %v704_v32, 2 }
 0x104   : > { %v706_v34 = vadd.f32 %v705_v33, %v704_v32 }
 0x106   : > { %v707_v35 = vrot.slane %v706_v34, 1 }
 0x108   : > { %v708_v36 = vadd.f32 %v707_v35, %v706_v34 }
 0x10a   : > { %v709_v37 = vmul.f32 0.055555556, %v708_v36 }
 0x10c   : > { %v710_v38 = vsub.f32 %v677_v21, %v709_v37  ;;  %v711_v39 = vsub.f32 %v1387_v20, %v709_v37  ;;  %v712_v40 = vsub.f32 %v682_v22, %v709_v37  ;;  %v713_v41 = vsub.f32 %v684_v29, %v709_v37 }
 0x10d   : > { %v727_v53 = vmul.f32 14.0, %v709_v37 }
 0x10e   : > { %v714_v42 = vmul.f32 %v710_v38, %v710_v38  ;;  %v715_v43 = vmul.f32 %v711_v39, %v711_v39  ;;  %v716_v44 = vmul.f32 %v712_v40, %v712_v40  ;;  %v717_v46 = vmul.f32 %v713_v41, %v713_v41 }
 0x10f   : > { %v728_v56 = vmul.f32 %v727_v53, %v709_v37 }
 0x110   : > { %v718_v45 = vadd.f32 %v715_v43, %v714_v42 }
 0x112   : > { %v719_v47 = vadd.f32 %v718_v45, %v716_v44 }
 0x114   : > { %v720_v48 = vadd.f32 %v719_v47, %v717_v46 }
 0x116   : > { %v721_v49 = vrot.slane %v720_v48, 4 }
 0x118   : > { %v722_v50 = vadd.f32 %v721_v49, %v720_v48 }
 0x11a   : > { %v723_v51 = vrot.slane %v722_v50, 2 }
 0x11c   : > { %v724_v52 = vadd.f32 %v723_v51, %v722_v50 }
 0x11e   : > { %v725_v54 = vrot.slane %v724_v52, 1 }
 0x120   : > { %v726_v55 = vadd.f32 %v725_v54, %v724_v52 }
 0x122   : > { %v729_v57 = vsub.f32 %v726_v55, %v728_v56 }
 0x124   : > { %v730_v58 = vmul.f32 0.055555556, %v729_v57 }
 0x126   : > { %v731_v59 = vmax.f32 %v730_v58, 0.0 }
 0x128   : > { %v732_v60 = vadd.f32 1e-05, %v731_v59 }
 0x12a   : > { %1133 = vrsqrt.f32 %v732_v60  ;;  %vm739_vm2 = vweird.f32 %v732_v60 }
 0x130   : > { %v1134_v61 = vpop.eup %1133 }
 0x131   : > { %v734_v62 = vmul.f32 %v1134_v61, %v732_v60  ;;  %vm740_vm1 = vweird.f32 %v1134_v61 }
 0x132   : > { %vm741_vm3 = vmor %vm739_vm2, %vm740_vm1 }
 0x133   : > { %v735_v63 = vmul.f32 %v1134_v61, %v734_v62 }
 0x135   : > { %v736_v0 = vmul.f32 0.5, %v735_v63 }
 0x137   : > { %v737_v1 = vsub.f32 1.5, %v736_v0 }
 0x139   : > { %v738_v2 = vmul.f32 %v1134_v61, %v737_v1 }
 0x13b   : > { %v742_v4 = vsel %vm741_vm3, %v1134_v61, %v738_v2 }
 0x13c   : > { %v744_v5 = vmul.f32 %v743_v3, %v742_v4 }
 0x13e   : > { %v746_v7 = vmul.f32 %v744_v5, %v709_v37  ;;  %v749_v8 = vperm.slane %v744_v5, 0 }
 0x140   : > { %v747_v9 = vsub.f32 %v745_v6, %v746_v7  ;;  %v751_v10 = vmul.f32 %v749_v8, %v677_v21  ;;  %v752_v11 = vmul.f32 %v749_v8, %v1387_v20  ;;  %v753_v12 = vmul.f32 %v749_v8, %v682_v22 }
 0x141   : > { %v754_v13 = vmul.f32 %v749_v8, %v684_v29 }
 0x142   : > { %v756_v14 = vperm.slane %v747_v9, 0 }
 0x144   : > { %v758_v15 = vadd.f32 %v756_v14, %v751_v10  ;;  %v759_v16 = vadd.f32 %v756_v14, %v752_v11  ;;  %v760_v17 = vadd.f32 %v756_v14, %v753_v12  ;;  %v761_v18 = vadd.f32 %v756_v14, %v754_v13 }
 0x146   : > { %v762_v19 = vmax.f32 %v758_v15, 0.0  ;;  %v763_v23 = vmax.f32 %v759_v16, 0.0  ;;  %v764_v24 = vmax.f32 %v760_v17, 0.0  ;;  %v765_v25 = vmax.f32 %v761_v18, 0.0 }
 0x147   : > { %780 = sbr.rel (!%p1235_p6) target bundleno = 342 (0x156), region = 85 }
 0x148   : > { %v1075_v26 = vpack.c.bf16 %v763_v23, %v762_v19  ;;  %v1080_v27 = vpack.c.bf16 %v765_v25, %v764_v24 }
 0x14a   : > { %1076 = vst [vmem:[%s427_s8] sm:$0xff] %v1075_v26  }
 0x14b   : > { %1082 = vst [vmem:[%s427_s8 + $0x8] sm:$0xff] %v1080_v27  }
 0x151   : > { %v799_v20 = vld [vmem:[%s427_s8] sm:$0xf]  ;;  %v801_v21 = vld [vmem:[%s427_s8 + $0x4] sm:$0xf] }
 0x152   : > { %v803_v22 = vld [vmem:[%s427_s8 + $0x8] sm:$0xf]  ;;  %800 = vst [vmem:[%s782_s11] sm:$0xf] %v799_v20  ;;  %v805_v28 = vld [vmem:[%s427_s8 + $0xc] sm:$0xf] }
 0x153   : > { %802 = vst [vmem:[%s782_s11 + $0x10] sm:$0xf] %v801_v21 }
 0x154   : > { %804 = vst [vmem:[%s782_s11 + $0x20] sm:$0xf] %v803_v22 }
 0x155   : > { %806 = vst [vmem:[%s782_s11 + $0x30] sm:$0xf] %v805_v28 }
 0x156 PF: > { %s14_s19 = sadd.s32 1, %s1173_s19   ;;  %s1429_s15 = smov %s1161_s16 }
 0x157   : > { %p11_p12 = scmp.ge.s32.totalorder %s14_s19, 6   ;;  %s1430_s16 = smov %s1240_s25 }
 0x158   : > { %s1431_s17 = smov %s1169_s18  ;;  %s1432_s18 = smov %s1434_s20 }
 0x159   :  { %13 = sbr.rel (!%p11_p12) target bundleno = 3 (0x3), region = 167 }

// kernel: generator_forward.5
= control target key start
LH: loop header
LB: loop body
LE: loop exit
PB: predicated region body
PF: predicated region fallthrough
CT: control target
= control target key end

     0   :  { %s13600_s15 = smov 0   ;;  %s13602_s16 = smov 0   ;;  %s17090_s0 = inlined_call_operand.vmem [shape: bf16[1,112,4608], index: 0, kind: input, shape index: {}]   ;;  %s17091_s1 = inlined_call_operand.vmem [shape: bf16[1,4608,256], index: 1, kind: input, shape index: {}]   ;;  %s17092_s2 = inlined_call_operand.vmem [shape: f32[1,256], index: 2, kind: input, shape index: {}]   ;;  %s17093_s3 = inlined_call_operand.vmem [shape: f32[1,256], index: 3, kind: input, shape index: {}]   ;;  %s17094_s4 = inlined_call_operand.vmem [shape: bf16[112,256], index: 4, kind: output, shape index: {}]  }
   0x1   :  { %s13604_s17 = smov 0   ;;  %s13606_s18 = smov 0  }
   0x2   :  { %s13608_s19 = smov 0  }
   0x3 LB: > { %s26_s20 = sadd.s32 1, %s13569_s18  ;;  %s10739_s21 = sadd.s32 4294967295, %s13573_s19   ;;  %s13573_s19 = sphi %s13608_s19, %s14_s19   ;;  %s13569_s18 = sphi %s13606_s18, %s17099_s18   ;;  %s13565_s17 = sphi %s13604_s17, %s17098_s17   ;;  %s13561_s16 = sphi %s13602_s16, %s17097_s16   ;;  %s13557_s15 = sphi %s13600_s15, %s17096_s15  }
   0x4   : > { %p28_p0 = scmp.ge.s32.totalorder %s26_s20, 2  ;;  %p68_p1 = scmp.ne.s32.totalorder %s13561_s16, %s13557_s15 }
   0x5   : > { %p69_p2 = scmp.eq.s32.totalorder %s13573_s19, 0  ;;  %p150_p4 = scmp.eq.s32.totalorder %s10739_s21, 1 }
   0x6   : > { %s17101_s20 = smov (%p28_p0, %s26_s20), 0  ;;  %s61_s23 = sadd.s32 1, %s13561_s16 }
   0x7   : > { %p70_p3 = por %p69_p2, %p68_p1  ;;  %s57_s22 = ssub.s32 %s13569_s18, %s17101_s20 }
   0x8   : > { %p59_p5 = scmp.eq.s32.totalorder %s57_s22, 0  ;;  %p13635_p6 = por %p150_p4, %p68_p1 }
   0x9   : > { %p10743_p7 = scmp.ge.s32.totalorder %s13573_s19, 2 }
   0xa   : > { %s13640_s25 = scalar_select %p59_p5, %s13561_s16, %s61_s23  }
   0xb   : > { %180 = sbr.rel (%p10743_p7) target bundleno = 597 (0x255), region = 20 }
  0x10   : > { %183 = sbr.rel (!%p70_p3) target bundleno = 597 (0x255), region = 24  ;;  %s185_s26 = sand.u32 (%p70_p3), 1, %s13561_s16  }
  0x11   : > { %s10744_s27 = sshll.u32 (%p70_p3), %s13569_s18, 2  ;;  %s13490_s28 = smul.u32 (%p70_p3), 2304, %s185_s26 }
  0x12   : > { %s13648_s5 = scalar_lea.vmem (%p70_p3), %s17091_s1, %s10744_s27 }
  0x13   : > { %v208_v0 = vld [vmem:[%s13648_s5] sm:$0xf] (%p70_p3)  ;;  %v210_v1 = vld [vmem:[%s13648_s5 + $0x8] sm:$0xf] (%p70_p3)  ;;  %v212_v2 = vld [vmem:[%s13648_s5 + $0x10] sm:$0xf] (%p70_p3) }
  0x14   : > { %s13653_s6 = scalar_lea.vmem (%p70_p3), [#allocation3], %s13490_s28  ;;  %v214_v3 = vld [vmem:[%s13648_s5 + $0x18] sm:$0xf] (%p70_p3)  ;;  %v216_v4 = vld [vmem:[%s13648_s5 + $0x20] sm:$0xf] (%p70_p3) }
  0x15   : > { %209 = vst [vmem:[%s13653_s6] sm:$0xf] %v208_v0  ;;  %v218_v5 = vld [vmem:[%s13648_s5 + $0x28] sm:$0xf]  ;;  %v220_v6 = vld [vmem:[%s13648_s5 + $0x30] sm:$0xf] }
  0x16   : > { %211 = vst [vmem:[%s13653_s6 + $0x4] sm:$0xf] %v210_v1  ;;  %v222_v7 = vld [vmem:[%s13648_s5 + $0x38] sm:$0xf]  ;;  %v224_v8 = vld [vmem:[%s13648_s5 + $0x40] sm:$0xf] }
  0x17   : > { %213 = vst [vmem:[%s13653_s6 + $0x8] sm:$0xf] %v212_v2  ;;  %v226_v9 = vld [vmem:[%s13648_s5 + $0x48] sm:$0xf]  ;;  %v228_v10 = vld [vmem:[%s13648_s5 + $0x50] sm:$0xf] }
  0x18   : > { %215 = vst [vmem:[%s13653_s6 + $0xc] sm:$0xf] %v214_v3  ;;  %v230_v11 = vld [vmem:[%s13648_s5 + $0x58] sm:$0xf]  ;;  %v232_v12 = vld [vmem:[%s13648_s5 + $0x60] sm:$0xf] }
  0x19   : > { %217 = vst [vmem:[%s13653_s6 + $0x10] sm:$0xf] %v216_v4  ;;  %v234_v13 = vld [vmem:[%s13648_s5 + $0x68] sm:$0xf]  ;;  %v236_v14 = vld [vmem:[%s13648_s5 + $0x70] sm:$0xf] }
  0x1a   : > { %219 = vst [vmem:[%s13653_s6 + $0x14] sm:$0xf] %v218_v5  ;;  %v238_v15 = vld [vmem:[%s13648_s5 + $0x78] sm:$0xf]  ;;  %v240_v16 = vld [vmem:[%s13648_s5 + $0x80] sm:$0xf] }
  0x1b   : > { %221 = vst [vmem:[%s13653_s6 + $0x18] sm:$0xf] %v220_v6  ;;  %v242_v17 = vld [vmem:[%s13648_s5 + $0x88] sm:$0xf]  ;;  %v244_v18 = vld [vmem:[%s13648_s5 + $0x90] sm:$0xf] }
  0x1c   : > { %223 = vst [vmem:[%s13653_s6 + $0x1c] sm:$0xf] %v222_v7  ;;  %v246_v19 = vld [vmem:[%s13648_s5 + $0x98] sm:$0xf]  ;;  %v248_v20 = vld [vmem:[%s13648_s5 + $0xa0] sm:$0xf] }
  0x1d   : > { %225 = vst [vmem:[%s13653_s6 + $0x20] sm:$0xf] %v224_v8  ;;  %v250_v21 = vld [vmem:[%s13648_s5 + $0xa8] sm:$0xf]  ;;  %v252_v22 = vld [vmem:[%s13648_s5 + $0xb0] sm:$0xf] }
  0x1e   : > { %227 = vst [vmem:[%s13653_s6 + $0x24] sm:$0xf] %v226_v9  ;;  %v254_v23 = vld [vmem:[%s13648_s5 + $0xb8] sm:$0xf]  ;;  %v256_v24 = vld [vmem:[%s13648_s5 + $0xc0] sm:$0xf] }
  0x1f   : > { %229 = vst [vmem:[%s13653_s6 + $0x28] sm:$0xf] %v228_v10  ;;  %v258_v25 = vld [vmem:[%s13648_s5 + $0xc8] sm:$0xf]  ;;  %v260_v26 = vld [vmem:[%s13648_s5 + $0xd0] sm:$0xf] }
  0x20   : > { %231 = vst [vmem:[%s13653_s6 + $0x2c] sm:$0xf] %v230_v11  ;;  %v262_v27 = vld [vmem:[%s13648_s5 + $0xd8] sm:$0xf]  ;;  %v264_v28 = vld [vmem:[%s13648_s5 + $0xe0] sm:$0xf] }
  0x21   : > { %233 = vst [vmem:[%s13653_s6 + $0x30] sm:$0xf] %v232_v12  ;;  %v266_v29 = vld [vmem:[%s13648_s5 + $0xe8] sm:$0xf]  ;;  %v268_v30 = vld [vmem:[%s13648_s5 + $0xf0] sm:$0xf] }
  0x22   : > { %235 = vst [vmem:[%s13653_s6 + $0x34] sm:$0xf] %v234_v13  ;;  %v270_v31 = vld [vmem:[%s13648_s5 + $0xf8] sm:$0xf]  ;;  %v272_v32 = vld [vmem:[%s13648_s5 + $0x100] sm:$0xf] }
  0x23   : > { %237 = vst [vmem:[%s13653_s6 + $0x38] sm:$0xf] %v236_v14  ;;  %v274_v33 = vld [vmem:[%s13648_s5 + $0x108] sm:$0xf]  ;;  %v276_v34 = vld [vmem:[%s13648_s5 + $0x110] sm:$0xf] }
  0x24   : > { %239 = vst [vmem:[%s13653_s6 + $0x3c] sm:$0xf] %v238_v15  ;;  %v278_v35 = vld [vmem:[%s13648_s5 + $0x118] sm:$0xf]  ;;  %v280_v36 = vld [vmem:[%s13648_s5 + $0x120] sm:$0xf] }
  0x25   : > { %241 = vst [vmem:[%s13653_s6 + $0x40] sm:$0xf] %v240_v16  ;;  %v282_v37 = vld [vmem:[%s13648_s5 + $0x128] sm:$0xf]  ;;  %v284_v38 = vld [vmem:[%s13648_s5 + $0x130] sm:$0xf] }
  0x26   : > { %243 = vst [vmem:[%s13653_s6 + $0x44] sm:$0xf] %v242_v17  ;;  %v286_v39 = vld [vmem:[%s13648_s5 + $0x138] sm:$0xf]  ;;  %v288_v40 = vld [vmem:[%s13648_s5 + $0x140] sm:$0xf] }
  0x27   : > { %245 = vst [vmem:[%s13653_s6 + $0x48] sm:$0xf] %v244_v18  ;;  %v290_v41 = vld [vmem:[%s13648_s5 + $0x148] sm:$0xf]  ;;  %v292_v42 = vld [vmem:[%s13648_s5 + $0x150] sm:$0xf] }
  0x28   : > { %247 = vst [vmem:[%s13653_s6 + $0x4c] sm:$0xf] %v246_v19  ;;  %v294_v43 = vld [vmem:[%s13648_s5 + $0x158] sm:$0xf]  ;;  %v296_v44 = vld [vmem:[%s13648_s5 + $0x160] sm:$0xf] }
  0x29   : > { %249 = vst [vmem:[%s13653_s6 + $0x50] sm:$0xf] %v248_v20  ;;  %v298_v45 = vld [vmem:[%s13648_s5 + $0x168] sm:$0xf]  ;;  %v300_v46 = vld [vmem:[%s13648_s5 + $0x170] sm:$0xf] }
  0x2a   : > { %251 = vst [vmem:[%s13653_s6 + $0x54] sm:$0xf] %v250_v21  ;;  %v302_v47 = vld [vmem:[%s13648_s5 + $0x178] sm:$0xf]  ;;  %v304_v48 = vld [vmem:[%s13648_s5 + $0x180] sm:$0xf] }
  0x2b   : > { %253 = vst [vmem:[%s13653_s6 + $0x58] sm:$0xf] %v252_v22  ;;  %v306_v49 = vld [vmem:[%s13648_s5 + $0x188] sm:$0xf]  ;;  %v308_v50 = vld [vmem:[%s13648_s5 + $0x190] sm:$0xf] }
  0x2c   : > { %255 = vst [vmem:[%s13653_s6 + $0x5c] sm:$0xf] %v254_v23  ;;  %v310_v51 = vld [vmem:[%s13648_s5 + $0x198] sm:$0xf]  ;;  %v312_v52 = vld [vmem:[%s13648_s5 + $0x1a0] sm:$0xf] }
  0x2d   : > { %257 = vst [vmem:[%s13653_s6 + $0x60] sm:$0xf] %v256_v24  ;;  %v314_v53 = vld [vmem:[%s13648_s5 + $0x1a8] sm:$0xf]  ;;  %v316_v54 = vld [vmem:[%s13648_s5 + $0x1b0] sm:$0xf] }
  0x2e   : > { %259 = vst [vmem:[%s13653_s6 + $0x64] sm:$0xf] %v258_v25  ;;  %v318_v55 = vld [vmem:[%s13648_s5 + $0x1b8] sm:$0xf]  ;;  %v320_v56 = vld [vmem:[%s13648_s5 + $0x1c0] sm:$0xf] }
  0x2f   : > { %261 = vst [vmem:[%s13653_s6 + $0x68] sm:$0xf] %v260_v26  ;;  %v322_v57 = vld [vmem:[%s13648_s5 + $0x1c8] sm:$0xf]  ;;  %v324_v58 = vld [vmem:[%s13648_s5 + $0x1d0] sm:$0xf] }
  0x30   : > { %263 = vst [vmem:[%s13653_s6 + $0x6c] sm:$0xf] %v262_v27  ;;  %v326_v59 = vld [vmem:[%s13648_s5 + $0x1d8] sm:$0xf]  ;;  %v328_v60 = vld [vmem:[%s13648_s5 + $0x1e0] sm:$0xf] }
  0x31   : > { %265 = vst [vmem:[%s13653_s6 + $0x70] sm:$0xf] %v264_v28  ;;  %v330_v61 = vld [vmem:[%s13648_s5 + $0x1e8] sm:$0xf]  ;;  %v332_v62 = vld [vmem:[%s13648_s5 + $0x1f0] sm:$0xf] }
  0x32   : > { %267 = vst [vmem:[%s13653_s6 + $0x74] sm:$0xf] %v266_v29  ;;  %v334_v63 = vld [vmem:[%s13648_s5 + $0x1f8] sm:$0xf]  ;;  %v336_v0 = vld [vmem:[%s13648_s5 + $0x200] sm:$0xf] }
  0x33   : > { %269 = vst [vmem:[%s13653_s6 + $0x78] sm:$0xf] %v268_v30  ;;  %v338_v1 = vld [vmem:[%s13648_s5 + $0x208] sm:$0xf]  ;;  %v340_v2 = vld [vmem:[%s13648_s5 + $0x210] sm:$0xf] }
  0x34   : > { %271 = vst [vmem:[%s13653_s6 + $0x7c] sm:$0xf] %v270_v31  ;;  %v342_v3 = vld [vmem:[%s13648_s5 + $0x218] sm:$0xf]  ;;  %v344_v4 = vld [vmem:[%s13648_s5 + $0x220] sm:$0xf] }
  0x35   : > { %273 = vst [vmem:[%s13653_s6 + $0x80] sm:$0xf] %v272_v32  ;;  %v346_v5 = vld [vmem:[%s13648_s5 + $0x228] sm:$0xf]  ;;  %v348_v6 = vld [vmem:[%s13648_s5 + $0x230] sm:$0xf] }
  0x36   : > { %275 = vst [vmem:[%s13653_s6 + $0x84] sm:$0xf] %v274_v33  ;;  %v350_v7 = vld [vmem:[%s13648_s5 + $0x238] sm:$0xf]  ;;  %v352_v8 = vld [vmem:[%s13648_s5 + $0x240] sm:$0xf] }
  0x37   : > { %277 = vst [vmem:[%s13653_s6 + $0x88] sm:$0xf] %v276_v34  ;;  %v354_v9 = vld [vmem:[%s13648_s5 + $0x248] sm:$0xf]  ;;  %v356_v10 = vld [vmem:[%s13648_s5 + $0x250] sm:$0xf] }
  0x38   : > { %279 = vst [vmem:[%s13653_s6 + $0x8c] sm:$0xf] %v278_v35  ;;  %v358_v11 = vld [vmem:[%s13648_s5 + $0x258] sm:$0xf]  ;;  %v360_v12 = vld [vmem:[%s13648_s5 + $0x260] sm:$0xf] }
  0x39   : > { %281 = vst [vmem:[%s13653_s6 + $0x90] sm:$0xf] %v280_v36  ;;  %v362_v13 = vld [vmem:[%s13648_s5 + $0x268] sm:$0xf]  ;;  %v364_v14 = vld [vmem:[%s13648_s5 + $0x270] sm:$0xf] }
  0x3a   : > { %283 = vst [vmem:[%s13653_s6 + $0x94] sm:$0xf] %v282_v37  ;;  %v366_v15 = vld [vmem:[%s13648_s5 + $0x278] sm:$0xf]  ;;  %v368_v16 = vld [vmem:[%s13648_s5 + $0x280] sm:$0xf] }
  0x3b   : > { %285 = vst [vmem:[%s13653_s6 + $0x98] sm:$0xf] %v284_v38  ;;  %v370_v17 = vld [vmem:[%s13648_s5 + $0x288] sm:$0xf]  ;;  %v372_v18 = vld [vmem:[%s13648_s5 + $0x290] sm:$0xf] }
  0x3c   : > { %287 = vst [vmem:[%s13653_s6 + $0x9c] sm:$0xf] %v286_v39  ;;  %v374_v19 = vld [vmem:[%s13648_s5 + $0x298] sm:$0xf]  ;;  %v376_v20 = vld [vmem:[%s13648_s5 + $0x2a0] sm:$0xf] }
  0x3d   : > { %289 = vst [vmem:[%s13653_s6 + $0xa0] sm:$0xf] %v288_v40  ;;  %v378_v21 = vld [vmem:[%s13648_s5 + $0x2a8] sm:$0xf]  ;;  %v380_v22 = vld [vmem:[%s13648_s5 + $0x2b0] sm:$0xf] }
  0x3e   : > { %291 = vst [vmem:[%s13653_s6 + $0xa4] sm:$0xf] %v290_v41  ;;  %v382_v23 = vld [vmem:[%s13648_s5 + $0x2b8] sm:$0xf]  ;;  %v384_v24 = vld [vmem:[%s13648_s5 + $0x2c0] sm:$0xf] }
  0x3f   : > { %293 = vst [vmem:[%s13653_s6 + $0xa8] sm:$0xf] %v292_v42  ;;  %v386_v25 = vld [vmem:[%s13648_s5 + $0x2c8] sm:$0xf]  ;;  %v388_v26 = vld [vmem:[%s13648_s5 + $0x2d0] sm:$0xf] }
  0x40   : > { %295 = vst [vmem:[%s13653_s6 + $0xac] sm:$0xf] %v294_v43  ;;  %v390_v27 = vld [vmem:[%s13648_s5 + $0x2d8] sm:$0xf]  ;;  %v392_v28 = vld [vmem:[%s13648_s5 + $0x2e0] sm:$0xf] }
  0x41   : > { %297 = vst [vmem:[%s13653_s6 + $0xb0] sm:$0xf] %v296_v44  ;;  %v394_v29 = vld [vmem:[%s13648_s5 + $0x2e8] sm:$0xf]  ;;  %v396_v30 = vld [vmem:[%s13648_s5 + $0x2f0] sm:$0xf] }
  0x42   : > { %299 = vst [vmem:[%s13653_s6 + $0xb4] sm:$0xf] %v298_v45  ;;  %v398_v31 = vld [vmem:[%s13648_s5 + $0x2f8] sm:$0xf]  ;;  %v400_v32 = vld [vmem:[%s13648_s5 + $0x300] sm:$0xf] }
  0x43   : > { %301 = vst [vmem:[%s13653_s6 + $0xb8] sm:$0xf] %v300_v46  ;;  %v402_v33 = vld [vmem:[%s13648_s5 + $0x308] sm:$0xf]  ;;  %v404_v34 = vld [vmem:[%s13648_s5 + $0x310] sm:$0xf] }
  0x44   : > { %303 = vst [vmem:[%s13653_s6 + $0xbc] sm:$0xf] %v302_v47  ;;  %v406_v35 = vld [vmem:[%s13648_s5 + $0x318] sm:$0xf]  ;;  %v408_v36 = vld [vmem:[%s13648_s5 + $0x320] sm:$0xf] }
  0x45   : > { %305 = vst [vmem:[%s13653_s6 + $0xc0] sm:$0xf] %v304_v48  ;;  %v410_v37 = vld [vmem:[%s13648_s5 + $0x328] sm:$0xf]  ;;  %v412_v38 = vld [vmem:[%s13648_s5 + $0x330] sm:$0xf] }
  0x46   : > { %307 = vst [vmem:[%s13653_s6 + $0xc4] sm:$0xf] %v306_v49  ;;  %v414_v39 = vld [vmem:[%s13648_s5 + $0x338] sm:$0xf]  ;;  %v416_v40 = vld [vmem:[%s13648_s5 + $0x340] sm:$0xf] }
  0x47   : > { %309 = vst [vmem:[%s13653_s6 + $0xc8] sm:$0xf] %v308_v50  ;;  %v418_v41 = vld [vmem:[%s13648_s5 + $0x348] sm:$0xf]  ;;  %v420_v42 = vld [vmem:[%s13648_s5 + $0x350] sm:$0xf] }
  0x48   : > { %311 = vst [vmem:[%s13653_s6 + $0xcc] sm:$0xf] %v310_v51  ;;  %v422_v43 = vld [vmem:[%s13648_s5 + $0x358] sm:$0xf]  ;;  %v424_v44 = vld [vmem:[%s13648_s5 + $0x360] sm:$0xf] }
  0x49   : > { %313 = vst [vmem:[%s13653_s6 + $0xd0] sm:$0xf] %v312_v52  ;;  %v426_v45 = vld [vmem:[%s13648_s5 + $0x368] sm:$0xf]  ;;  %v428_v46 = vld [vmem:[%s13648_s5 + $0x370] sm:$0xf] }
  0x4a   : > { %315 = vst [vmem:[%s13653_s6 + $0xd4] sm:$0xf] %v314_v53  ;;  %v430_v47 = vld [vmem:[%s13648_s5 + $0x378] sm:$0xf]  ;;  %v432_v48 = vld [vmem:[%s13648_s5 + $0x380] sm:$0xf] }
  0x4b   : > { %317 = vst [vmem:[%s13653_s6 + $0xd8] sm:$0xf] %v316_v54  ;;  %v434_v49 = vld [vmem:[%s13648_s5 + $0x388] sm:$0xf]  ;;  %v436_v50 = vld [vmem:[%s13648_s5 + $0x390] sm:$0xf] }
  0x4c   : > { %319 = vst [vmem:[%s13653_s6 + $0xdc] sm:$0xf] %v318_v55  ;;  %v438_v51 = vld [vmem:[%s13648_s5 + $0x398] sm:$0xf]  ;;  %v440_v52 = vld [vmem:[%s13648_s5 + $0x3a0] sm:$0xf] }
  0x4d   : > { %321 = vst [vmem:[%s13653_s6 + $0xe0] sm:$0xf] %v320_v56  ;;  %v442_v53 = vld [vmem:[%s13648_s5 + $0x3a8] sm:$0xf]  ;;  %v444_v54 = vld [vmem:[%s13648_s5 + $0x3b0] sm:$0xf] }
  0x4e   : > { %323 = vst [vmem:[%s13653_s6 + $0xe4] sm:$0xf] %v322_v57  ;;  %v446_v55 = vld [vmem:[%s13648_s5 + $0x3b8] sm:$0xf]  ;;  %v448_v56 = vld [vmem:[%s13648_s5 + $0x3c0] sm:$0xf] }
  0x4f   : > { %325 = vst [vmem:[%s13653_s6 + $0xe8] sm:$0xf] %v324_v58  ;;  %v450_v57 = vld [vmem:[%s13648_s5 + $0x3c8] sm:$0xf]  ;;  %v452_v58 = vld [vmem:[%s13648_s5 + $0x3d0] sm:$0xf] }
  0x50   : > { %327 = vst [vmem:[%s13653_s6 + $0xec] sm:$0xf] %v326_v59  ;;  %v454_v59 = vld [vmem:[%s13648_s5 + $0x3d8] sm:$0xf] }
  0x51   : > { %329 = vst [vmem:[%s13653_s6 + $0xf0] sm:$0xf] %v328_v60  ;;  %v456_v60 = vld [vmem:[%s13648_s5 + $0x3e0] sm:$0xf] }
  0x52   : > { %331 = vst [vmem:[%s13653_s6 + $0xf4] sm:$0xf] %v330_v61  ;;  %v458_v61 = vld [vmem:[%s13648_s5 + $0x3e8] sm:$0xf] }
  0x53   : > { %333 = vst [vmem:[%s13653_s6 + $0xf8] sm:$0xf] %v332_v62  ;;  %v460_v62 = vld [vmem:[%s13648_s5 + $0x3f0] sm:$0xf] }
  0x54   : > { %335 = vst [vmem:[%s13653_s6 + $0xfc] sm:$0xf] %v334_v63  ;;  %v462_v63 = vld [vmem:[%s13648_s5 + $0x3f8] sm:$0xf] }
  0x55   : > { %337 = vst [vmem:[%s13653_s6 + $0x100] sm:$0xf] %v336_v0  ;;  %v464_v0 = vld [vmem:[%s13648_s5 + $0x400] sm:$0xf] }
  0x56   : > { %339 = vst [vmem:[%s13653_s6 + $0x104] sm:$0xf] %v338_v1  ;;  %v466_v1 = vld [vmem:[%s13648_s5 + $0x408] sm:$0xf] }
  0x57   : > { %341 = vst [vmem:[%s13653_s6 + $0x108] sm:$0xf] %v340_v2  ;;  %v468_v2 = vld [vmem:[%s13648_s5 + $0x410] sm:$0xf] }
  0x58   : > { %343 = vst [vmem:[%s13653_s6 + $0x10c] sm:$0xf] %v342_v3  ;;  %v470_v3 = vld [vmem:[%s13648_s5 + $0x418] sm:$0xf] }
  0x59   : > { %345 = vst [vmem:[%s13653_s6 + $0x110] sm:$0xf] %v344_v4  ;;  %v472_v4 = vld [vmem:[%s13648_s5 + $0x420] sm:$0xf] }
  0x5a   : > { %347 = vst [vmem:[%s13653_s6 + $0x114] sm:$0xf] %v346_v5  ;;  %v474_v5 = vld [vmem:[%s13648_s5 + $0x428] sm:$0xf] }
  0x5b   : > { %349 = vst [vmem:[%s13653_s6 + $0x118] sm:$0xf] %v348_v6  ;;  %v476_v6 = vld [vmem:[%s13648_s5 + $0x430] sm:$0xf] }
  0x5c   : > { %351 = vst [vmem:[%s13653_s6 + $0x11c] sm:$0xf] %v350_v7  ;;  %v478_v7 = vld [vmem:[%s13648_s5 + $0x438] sm:$0xf] }
  0x5d   : > { %353 = vst [vmem:[%s13653_s6 + $0x120] sm:$0xf] %v352_v8  ;;  %v480_v8 = vld [vmem:[%s13648_s5 + $0x440] sm:$0xf] }
  0x5e   : > { %355 = vst [vmem:[%s13653_s6 + $0x124] sm:$0xf] %v354_v9  ;;  %v482_v9 = vld [vmem:[%s13648_s5 + $0x448] sm:$0xf] }
  0x5f   : > { %357 = vst [vmem:[%s13653_s6 + $0x128] sm:$0xf] %v356_v10  ;;  %v484_v10 = vld [vmem:[%s13648_s5 + $0x450] sm:$0xf] }
  0x60   : > { %359 = vst [vmem:[%s13653_s6 + $0x12c] sm:$0xf] %v358_v11  ;;  %v486_v11 = vld [vmem:[%s13648_s5 + $0x458] sm:$0xf] }
  0x61   : > { %361 = vst [vmem:[%s13653_s6 + $0x130] sm:$0xf] %v360_v12  ;;  %v488_v12 = vld [vmem:[%s13648_s5 + $0x460] sm:$0xf] }
  0x62   : > { %363 = vst [vmem:[%s13653_s6 + $0x134] sm:$0xf] %v362_v13  ;;  %v490_v13 = vld [vmem:[%s13648_s5 + $0x468] sm:$0xf] }
  0x63   : > { %365 = vst [vmem:[%s13653_s6 + $0x138] sm:$0xf] %v364_v14  ;;  %v492_v14 = vld [vmem:[%s13648_s5 + $0x470] sm:$0xf] }
  0x64   : > { %367 = vst [vmem:[%s13653_s6 + $0x13c] sm:$0xf] %v366_v15  ;;  %v494_v15 = vld [vmem:[%s13648_s5 + $0x478] sm:$0xf] }
  0x65   : > { %369 = vst [vmem:[%s13653_s6 + $0x140] sm:$0xf] %v368_v16  ;;  %v496_v16 = vld [vmem:[%s13648_s5 + $0x480] sm:$0xf] }
  0x66   : > { %371 = vst [vmem:[%s13653_s6 + $0x144] sm:$0xf] %v370_v17  ;;  %v498_v17 = vld [vmem:[%s13648_s5 + $0x488] sm:$0xf] }
  0x67   : > { %373 = vst [vmem:[%s13653_s6 + $0x148] sm:$0xf] %v372_v18  ;;  %v500_v18 = vld [vmem:[%s13648_s5 + $0x490] sm:$0xf] }
  0x68   : > { %375 = vst [vmem:[%s13653_s6 + $0x14c] sm:$0xf] %v374_v19  ;;  %v502_v19 = vld [vmem:[%s13648_s5 + $0x498] sm:$0xf] }
  0x69   : > { %377 = vst [vmem:[%s13653_s6 + $0x150] sm:$0xf] %v376_v20  ;;  %v504_v20 = vld [vmem:[%s13648_s5 + $0x4a0] sm:$0xf] }
  0x6a   : > { %379 = vst [vmem:[%s13653_s6 + $0x154] sm:$0xf] %v378_v21  ;;  %v506_v21 = vld [vmem:[%s13648_s5 + $0x4a8] sm:$0xf] }
  0x6b   : > { %381 = vst [vmem:[%s13653_s6 + $0x158] sm:$0xf] %v380_v22  ;;  %v508_v22 = vld [vmem:[%s13648_s5 + $0x4b0] sm:$0xf] }
  0x6c   : > { %383 = vst [vmem:[%s13653_s6 + $0x15c] sm:$0xf] %v382_v23  ;;  %v510_v23 = vld [vmem:[%s13648_s5 + $0x4b8] sm:$0xf] }
  0x6d   : > { %385 = vst [vmem:[%s13653_s6 + $0x160] sm:$0xf] %v384_v24  ;;  %v512_v24 = vld [vmem:[%s13648_s5 + $0x4c0] sm:$0xf] }
  0x6e   : > { %387 = vst [vmem:[%s13653_s6 + $0x164] sm:$0xf] %v386_v25  ;;  %v514_v25 = vld [vmem:[%s13648_s5 + $0x4c8] sm:$0xf] }
  0x6f   : > { %389 = vst [vmem:[%s13653_s6 + $0x168] sm:$0xf] %v388_v26  ;;  %v516_v26 = vld [vmem:[%s13648_s5 + $0x4d0] sm:$0xf] }
  0x70   : > { %391 = vst [vmem:[%s13653_s6 + $0x16c] sm:$0xf] %v390_v27  ;;  %v518_v27 = vld [vmem:[%s13648_s5 + $0x4d8] sm:$0xf] }
  0x71   : > { %393 = vst [vmem:[%s13653_s6 + $0x170] sm:$0xf] %v392_v28  ;;  %v520_v28 = vld [vmem:[%s13648_s5 + $0x4e0] sm:$0xf] }
  0x72   : > { %395 = vst [vmem:[%s13653_s6 + $0x174] sm:$0xf] %v394_v29  ;;  %v522_v29 = vld [vmem:[%s13648_s5 + $0x4e8] sm:$0xf] }
  0x73   : > { %397 = vst [vmem:[%s13653_s6 + $0x178] sm:$0xf] %v396_v30  ;;  %v524_v30 = vld [vmem:[%s13648_s5 + $0x4f0] sm:$0xf] }
  0x74   : > { %399 = vst [vmem:[%s13653_s6 + $0x17c] sm:$0xf] %v398_v31  ;;  %v526_v31 = vld [vmem:[%s13648_s5 + $0x4f8] sm:$0xf] }
  0x75   : > { %401 = vst [vmem:[%s13653_s6 + $0x180] sm:$0xf] %v400_v32  ;;  %v528_v32 = vld [vmem:[%s13648_s5 + $0x500] sm:$0xf] }
  0x76   : > { %403 = vst [vmem:[%s13653_s6 + $0x184] sm:$0xf] %v402_v33  ;;  %v530_v33 = vld [vmem:[%s13648_s5 + $0x508] sm:$0xf] }
  0x77   : > { %405 = vst [vmem:[%s13653_s6 + $0x188] sm:$0xf] %v404_v34  ;;  %v532_v34 = vld [vmem:[%s13648_s5 + $0x510] sm:$0xf] }
  0x78   : > { %407 = vst [vmem:[%s13653_s6 + $0x18c] sm:$0xf] %v406_v35  ;;  %v534_v35 = vld [vmem:[%s13648_s5 + $0x518] sm:$0xf] }
  0x79   : > { %409 = vst [vmem:[%s13653_s6 + $0x190] sm:$0xf] %v408_v36  ;;  %v536_v36 = vld [vmem:[%s13648_s5 + $0x520] sm:$0xf] }
  0x7a   : > { %411 = vst [vmem:[%s13653_s6 + $0x194] sm:$0xf] %v410_v37  ;;  %v538_v37 = vld [vmem:[%s13648_s5 + $0x528] sm:$0xf] }
  0x7b   : > { %413 = vst [vmem:[%s13653_s6 + $0x198] sm:$0xf] %v412_v38  ;;  %v540_v38 = vld [vmem:[%s13648_s5 + $0x530] sm:$0xf] }
  0x7c   : > { %415 = vst [vmem:[%s13653_s6 + $0x19c] sm:$0xf] %v414_v39  ;;  %v542_v39 = vld [vmem:[%s13648_s5 + $0x538] sm:$0xf] }
  0x7d   : > { %417 = vst [vmem:[%s13653_s6 + $0x1a0] sm:$0xf] %v416_v40  ;;  %v544_v40 = vld [vmem:[%s13648_s5 + $0x540] sm:$0xf] }
  0x7e   : > { %419 = vst [vmem:[%s13653_s6 + $0x1a4] sm:$0xf] %v418_v41  ;;  %v546_v41 = vld [vmem:[%s13648_s5 + $0x548] sm:$0xf] }
  0x7f   : > { %421 = vst [vmem:[%s13653_s6 + $0x1a8] sm:$0xf] %v420_v42  ;;  %v548_v42 = vld [vmem:[%s13648_s5 + $0x550] sm:$0xf] }
  0x80   : > { %423 = vst [vmem:[%s13653_s6 + $0x1ac] sm:$0xf] %v422_v43  ;;  %v550_v43 = vld [vmem:[%s13648_s5 + $0x558] sm:$0xf] }
  0x81   : > { %425 = vst [vmem:[%s13653_s6 + $0x1b0] sm:$0xf] %v424_v44  ;;  %v552_v44 = vld [vmem:[%s13648_s5 + $0x560] sm:$0xf] }
  0x82   : > { %427 = vst [vmem:[%s13653_s6 + $0x1b4] sm:$0xf] %v426_v45  ;;  %v554_v45 = vld [vmem:[%s13648_s5 + $0x568] sm:$0xf] }
  0x83   : > { %429 = vst [vmem:[%s13653_s6 + $0x1b8] sm:$0xf] %v428_v46  ;;  %v556_v46 = vld [vmem:[%s13648_s5 + $0x570] sm:$0xf] }
  0x84   : > { %431 = vst [vmem:[%s13653_s6 + $0x1bc] sm:$0xf] %v430_v47  ;;  %v558_v47 = vld [vmem:[%s13648_s5 + $0x578] sm:$0xf] }
  0x85   : > { %433 = vst [vmem:[%s13653_s6 + $0x1c0] sm:$0xf] %v432_v48  ;;  %v560_v48 = vld [vmem:[%s13648_s5 + $0x580] sm:$0xf] }
  0x86   : > { %435 = vst [vmem:[%s13653_s6 + $0x1c4] sm:$0xf] %v434_v49  ;;  %v562_v49 = vld [vmem:[%s13648_s5 + $0x588] sm:$0xf] }
  0x87   : > { %437 = vst [vmem:[%s13653_s6 + $0x1c8] sm:$0xf] %v436_v50  ;;  %v564_v50 = vld [vmem:[%s13648_s5 + $0x590] sm:$0xf] }
  0x88   : > { %439 = vst [vmem:[%s13653_s6 + $0x1cc] sm:$0xf] %v438_v51  ;;  %v566_v51 = vld [vmem:[%s13648_s5 + $0x598] sm:$0xf] }
  0x89   : > { %441 = vst [vmem:[%s13653_s6 + $0x1d0] sm:$0xf] %v440_v52  ;;  %v568_v52 = vld [vmem:[%s13648_s5 + $0x5a0] sm:$0xf] }
  0x8a   : > { %443 = vst [vmem:[%s13653_s6 + $0x1d4] sm:$0xf] %v442_v53  ;;  %v570_v53 = vld [vmem:[%s13648_s5 + $0x5a8] sm:$0xf] }
  0x8b   : > { %445 = vst [vmem:[%s13653_s6 + $0x1d8] sm:$0xf] %v444_v54  ;;  %v572_v54 = vld [vmem:[%s13648_s5 + $0x5b0] sm:$0xf] }
  0x8c   : > { %447 = vst [vmem:[%s13653_s6 + $0x1dc] sm:$0xf] %v446_v55  ;;  %v574_v55 = vld [vmem:[%s13648_s5 + $0x5b8] sm:$0xf] }
  0x8d   : > { %449 = vst [vmem:[%s13653_s6 + $0x1e0] sm:$0xf] %v448_v56  ;;  %v576_v56 = vld [vmem:[%s13648_s5 + $0x5c0] sm:$0xf] }
  0x8e   : > { %451 = vst [vmem:[%s13653_s6 + $0x1e4] sm:$0xf] %v450_v57  ;;  %v578_v57 = vld [vmem:[%s13648_s5 + $0x5c8] sm:$0xf] }
  0x8f   : > { %453 = vst [vmem:[%s13653_s6 + $0x1e8] sm:$0xf] %v452_v58  ;;  %v580_v58 = vld [vmem:[%s13648_s5 + $0x5d0] sm:$0xf] }
  0x90   : > { %455 = vst [vmem:[%s13653_s6 + $0x1ec] sm:$0xf] %v454_v59  ;;  %v582_v59 = vld [vmem:[%s13648_s5 + $0x5d8] sm:$0xf] }
  0x91   : > { %457 = vst [vmem:[%s13653_s6 + $0x1f0] sm:$0xf] %v456_v60  ;;  %v584_v60 = vld [vmem:[%s13648_s5 + $0x5e0] sm:$0xf] }
  0x92   : > { %459 = vst [vmem:[%s13653_s6 + $0x1f4] sm:$0xf] %v458_v61  ;;  %v586_v61 = vld [vmem:[%s13648_s5 + $0x5e8] sm:$0xf] }
  0x93   : > { %461 = vst [vmem:[%s13653_s6 + $0x1f8] sm:$0xf] %v460_v62  ;;  %v588_v62 = vld [vmem:[%s13648_s5 + $0x5f0] sm:$0xf] }
  0x94   : > { %463 = vst [vmem:[%s13653_s6 + $0x1fc] sm:$0xf] %v462_v63  ;;  %v590_v63 = vld [vmem:[%s13648_s5 + $0x5f8] sm:$0xf] }
  0x95   : > { %465 = vst [vmem:[%s13653_s6 + $0x200] sm:$0xf] %v464_v0  ;;  %v592_v0 = vld [vmem:[%s13648_s5 + $0x600] sm:$0xf] }
  0x96   : > { %467 = vst [vmem:[%s13653_s6 + $0x204] sm:$0xf] %v466_v1  ;;  %v594_v1 = vld [vmem:[%s13648_s5 + $0x608] sm:$0xf] }
  0x97   : > { %469 = vst [vmem:[%s13653_s6 + $0x208] sm:$0xf] %v468_v2  ;;  %v596_v2 = vld [vmem:[%s13648_s5 + $0x610] sm:$0xf] }
  0x98   : > { %471 = vst [vmem:[%s13653_s6 + $0x20c] sm:$0xf] %v470_v3  ;;  %v598_v3 = vld [vmem:[%s13648_s5 + $0x618] sm:$0xf] }
  0x99   : > { %473 = vst [vmem:[%s13653_s6 + $0x210] sm:$0xf] %v472_v4  ;;  %v600_v4 = vld [vmem:[%s13648_s5 + $0x620] sm:$0xf] }
  0x9a   : > { %475 = vst [vmem:[%s13653_s6 + $0x214] sm:$0xf] %v474_v5  ;;  %v602_v5 = vld [vmem:[%s13648_s5 + $0x628] sm:$0xf] }
  0x9b   : > { %477 = vst [vmem:[%s13653_s6 + $0x218] sm:$0xf] %v476_v6  ;;  %v604_v6 = vld [vmem:[%s13648_s5 + $0x630] sm:$0xf] }
  0x9c   : > { %479 = vst [vmem:[%s13653_s6 + $0x21c] sm:$0xf] %v478_v7  ;;  %v606_v7 = vld [vmem:[%s13648_s5 + $0x638] sm:$0xf] }
  0x9d   : > { %481 = vst [vmem:[%s13653_s6 + $0x220] sm:$0xf] %v480_v8  ;;  %v608_v8 = vld [vmem:[%s13648_s5 + $0x640] sm:$0xf] }
  0x9e   : > { %483 = vst [vmem:[%s13653_s6 + $0x224] sm:$0xf] %v482_v9  ;;  %v610_v9 = vld [vmem:[%s13648_s5 + $0x648] sm:$0xf] }
  0x9f   : > { %485 = vst [vmem:[%s13653_s6 + $0x228] sm:$0xf] %v484_v10  ;;  %v612_v10 = vld [vmem:[%s13648_s5 + $0x650] sm:$0xf] }
  0xa0   : > { %487 = vst [vmem:[%s13653_s6 + $0x22c] sm:$0xf] %v486_v11  ;;  %v614_v11 = vld [vmem:[%s13648_s5 + $0x658] sm:$0xf] }
  0xa1   : > { %489 = vst [vmem:[%s13653_s6 + $0x230] sm:$0xf] %v488_v12  ;;  %v616_v12 = vld [vmem:[%s13648_s5 + $0x660] sm:$0xf] }
  0xa2   : > { %491 = vst [vmem:[%s13653_s6 + $0x234] sm:$0xf] %v490_v13  ;;  %v618_v13 = vld [vmem:[%s13648_s5 + $0x668] sm:$0xf] }
  0xa3   : > { %493 = vst [vmem:[%s13653_s6 + $0x238] sm:$0xf] %v492_v14  ;;  %v620_v14 = vld [vmem:[%s13648_s5 + $0x670] sm:$0xf] }
  0xa4   : > { %495 = vst [vmem:[%s13653_s6 + $0x23c] sm:$0xf] %v494_v15  ;;  %v622_v15 = vld [vmem:[%s13648_s5 + $0x678] sm:$0xf] }
  0xa5   : > { %497 = vst [vmem:[%s13653_s6 + $0x240] sm:$0xf] %v496_v16  ;;  %v624_v16 = vld [vmem:[%s13648_s5 + $0x680] sm:$0xf] }
  0xa6   : > { %499 = vst [vmem:[%s13653_s6 + $0x244] sm:$0xf] %v498_v17  ;;  %v626_v17 = vld [vmem:[%s13648_s5 + $0x688] sm:$0xf] }
  0xa7   : > { %501 = vst [vmem:[%s13653_s6 + $0x248] sm:$0xf] %v500_v18  ;;  %v628_v18 = vld [vmem:[%s13648_s5 + $0x690] sm:$0xf] }
  0xa8   : > { %503 = vst [vmem:[%s13653_s6 + $0x24c] sm:$0xf] %v502_v19  ;;  %v630_v19 = vld [vmem:[%s13648_s5 + $0x698] sm:$0xf] }
  0xa9   : > { %505 = vst [vmem:[%s13653_s6 + $0x250] sm:$0xf] %v504_v20  ;;  %v632_v20 = vld [vmem:[%s13648_s5 + $0x6a0] sm:$0xf] }
  0xaa   : > { %507 = vst [vmem:[%s13653_s6 + $0x254] sm:$0xf] %v506_v21  ;;  %v634_v21 = vld [vmem:[%s13648_s5 + $0x6a8] sm:$0xf] }
  0xab   : > { %509 = vst [vmem:[%s13653_s6 + $0x258] sm:$0xf] %v508_v22  ;;  %v636_v22 = vld [vmem:[%s13648_s5 + $0x6b0] sm:$0xf] }
  0xac   : > { %511 = vst [vmem:[%s13653_s6 + $0x25c] sm:$0xf] %v510_v23  ;;  %v638_v23 = vld [vmem:[%s13648_s5 + $0x6b8] sm:$0xf] }
  0xad   : > { %513 = vst [vmem:[%s13653_s6 + $0x260] sm:$0xf] %v512_v24  ;;  %v640_v24 = vld [vmem:[%s13648_s5 + $0x6c0] sm:$0xf] }
  0xae   : > { %515 = vst [vmem:[%s13653_s6 + $0x264] sm:$0xf] %v514_v25  ;;  %v642_v25 = vld [vmem:[%s13648_s5 + $0x6c8] sm:$0xf] }
  0xaf   : > { %517 = vst [vmem:[%s13653_s6 + $0x268] sm:$0xf] %v516_v26  ;;  %v644_v26 = vld [vmem:[%s13648_s5 + $0x6d0] sm:$0xf] }
  0xb0   : > { %519 = vst [vmem:[%s13653_s6 + $0x26c] sm:$0xf] %v518_v27  ;;  %v646_v27 = vld [vmem:[%s13648_s5 + $0x6d8] sm:$0xf] }
  0xb1   : > { %521 = vst [vmem:[%s13653_s6 + $0x270] sm:$0xf] %v520_v28  ;;  %v648_v28 = vld [vmem:[%s13648_s5 + $0x6e0] sm:$0xf] }
  0xb2   : > { %523 = vst [vmem:[%s13653_s6 + $0x274] sm:$0xf] %v522_v29  ;;  %v650_v29 = vld [vmem:[%s13648_s5 + $0x6e8] sm:$0xf] }
  0xb3   : > { %525 = vst [vmem:[%s13653_s6 + $0x278] sm:$0xf] %v524_v30  ;;  %v652_v30 = vld [vmem:[%s13648_s5 + $0x6f0] sm:$0xf] }
  0xb4   : > { %527 = vst [vmem:[%s13653_s6 + $0x27c] sm:$0xf] %v526_v31  ;;  %v654_v31 = vld [vmem:[%s13648_s5 + $0x6f8] sm:$0xf] }
  0xb5   : > { %529 = vst [vmem:[%s13653_s6 + $0x280] sm:$0xf] %v528_v32  ;;  %v656_v32 = vld [vmem:[%s13648_s5 + $0x700] sm:$0xf] }
  0xb6   : > { %531 = vst [vmem:[%s13653_s6 + $0x284] sm:$0xf] %v530_v33  ;;  %v658_v33 = vld [vmem:[%s13648_s5 + $0x708] sm:$0xf] }
  0xb7   : > { %533 = vst [vmem:[%s13653_s6 + $0x288] sm:$0xf] %v532_v34  ;;  %v660_v34 = vld [vmem:[%s13648_s5 + $0x710] sm:$0xf] }
  0xb8   : > { %535 = vst [vmem:[%s13653_s6 + $0x28c] sm:$0xf] %v534_v35  ;;  %v662_v35 = vld [vmem:[%s13648_s5 + $0x718] sm:$0xf] }
  0xb9   : > { %537 = vst [vmem:[%s13653_s6 + $0x290] sm:$0xf] %v536_v36  ;;  %v664_v36 = vld [vmem:[%s13648_s5 + $0x720] sm:$0xf] }
  0xba   : > { %539 = vst [vmem:[%s13653_s6 + $0x294] sm:$0xf] %v538_v37  ;;  %v666_v37 = vld [vmem:[%s13648_s5 + $0x728] sm:$0xf] }
  0xbb   : > { %541 = vst [vmem:[%s13653_s6 + $0x298] sm:$0xf] %v540_v38  ;;  %v668_v38 = vld [vmem:[%s13648_s5 + $0x730] sm:$0xf] }
  0xbc   : > { %543 = vst [vmem:[%s13653_s6 + $0x29c] sm:$0xf] %v542_v39  ;;  %v670_v39 = vld [vmem:[%s13648_s5 + $0x738] sm:$0xf] }
  0xbd   : > { %545 = vst [vmem:[%s13653_s6 + $0x2a0] sm:$0xf] %v544_v40  ;;  %v672_v40 = vld [vmem:[%s13648_s5 + $0x740] sm:$0xf] }
  0xbe   : > { %547 = vst [vmem:[%s13653_s6 + $0x2a4] sm:$0xf] %v546_v41  ;;  %v674_v41 = vld [vmem:[%s13648_s5 + $0x748] sm:$0xf] }
  0xbf   : > { %549 = vst [vmem:[%s13653_s6 + $0x2a8] sm:$0xf] %v548_v42  ;;  %v676_v42 = vld [vmem:[%s13648_s5 + $0x750] sm:$0xf] }
  0xc0   : > { %551 = vst [vmem:[%s13653_s6 + $0x2ac] sm:$0xf] %v550_v43  ;;  %v678_v43 = vld [vmem:[%s13648_s5 + $0x758] sm:$0xf] }
  0xc1   : > { %553 = vst [vmem:[%s13653_s6 + $0x2b0] sm:$0xf] %v552_v44  ;;  %v680_v44 = vld [vmem:[%s13648_s5 + $0x760] sm:$0xf] }
  0xc2   : > { %555 = vst [vmem:[%s13653_s6 + $0x2b4] sm:$0xf] %v554_v45  ;;  %v682_v45 = vld [vmem:[%s13648_s5 + $0x768] sm:$0xf] }
  0xc3   : > { %557 = vst [vmem:[%s13653_s6 + $0x2b8] sm:$0xf] %v556_v46  ;;  %v684_v46 = vld [vmem:[%s13648_s5 + $0x770] sm:$0xf] }
  0xc4   : > { %559 = vst [vmem:[%s13653_s6 + $0x2bc] sm:$0xf] %v558_v47  ;;  %v686_v47 = vld [vmem:[%s13648_s5 + $0x778] sm:$0xf] }
  0xc5   : > { %561 = vst [vmem:[%s13653_s6 + $0x2c0] sm:$0xf] %v560_v48  ;;  %v688_v48 = vld [vmem:[%s13648_s5 + $0x780] sm:$0xf] }
  0xc6   : > { %563 = vst [vmem:[%s13653_s6 + $0x2c4] sm:$0xf] %v562_v49  ;;  %v690_v49 = vld [vmem:[%s13648_s5 + $0x788] sm:$0xf] }
  0xc7   : > { %565 = vst [vmem:[%s13653_s6 + $0x2c8] sm:$0xf] %v564_v50  ;;  %v692_v50 = vld [vmem:[%s13648_s5 + $0x790] sm:$0xf] }
  0xc8   : > { %567 = vst [vmem:[%s13653_s6 + $0x2cc] sm:$0xf] %v566_v51  ;;  %v694_v51 = vld [vmem:[%s13648_s5 + $0x798] sm:$0xf] }
  0xc9   : > { %569 = vst [vmem:[%s13653_s6 + $0x2d0] sm:$0xf] %v568_v52  ;;  %v696_v52 = vld [vmem:[%s13648_s5 + $0x7a0] sm:$0xf] }
  0xca   : > { %571 = vst [vmem:[%s13653_s6 + $0x2d4] sm:$0xf] %v570_v53  ;;  %v698_v53 = vld [vmem:[%s13648_s5 + $0x7a8] sm:$0xf] }
  0xcb   : > { %573 = vst [vmem:[%s13653_s6 + $0x2d8] sm:$0xf] %v572_v54  ;;  %v700_v54 = vld [vmem:[%s13648_s5 + $0x7b0] sm:$0xf] }
  0xcc   : > { %575 = vst [vmem:[%s13653_s6 + $0x2dc] sm:$0xf] %v574_v55  ;;  %v702_v55 = vld [vmem:[%s13648_s5 + $0x7b8] sm:$0xf] }
  0xcd   : > { %577 = vst [vmem:[%s13653_s6 + $0x2e0] sm:$0xf] %v576_v56  ;;  %v704_v56 = vld [vmem:[%s13648_s5 + $0x7c0] sm:$0xf] }
  0xce   : > { %579 = vst [vmem:[%s13653_s6 + $0x2e4] sm:$0xf] %v578_v57  ;;  %v706_v57 = vld [vmem:[%s13648_s5 + $0x7c8] sm:$0xf] }
  0xcf   : > { %581 = vst [vmem:[%s13653_s6 + $0x2e8] sm:$0xf] %v580_v58  ;;  %v708_v58 = vld [vmem:[%s13648_s5 + $0x7d0] sm:$0xf] }
  0xd0   : > { %583 = vst [vmem:[%s13653_s6 + $0x2ec] sm:$0xf] %v582_v59  ;;  %v710_v59 = vld [vmem:[%s13648_s5 + $0x7d8] sm:$0xf] }
  0xd1   : > { %585 = vst [vmem:[%s13653_s6 + $0x2f0] sm:$0xf] %v584_v60  ;;  %v712_v60 = vld [vmem:[%s13648_s5 + $0x7e0] sm:$0xf] }
  0xd2   : > { %587 = vst [vmem:[%s13653_s6 + $0x2f4] sm:$0xf] %v586_v61  ;;  %v714_v61 = vld [vmem:[%s13648_s5 + $0x7e8] sm:$0xf] }
  0xd3   : > { %589 = vst [vmem:[%s13653_s6 + $0x2f8] sm:$0xf] %v588_v62  ;;  %v716_v62 = vld [vmem:[%s13648_s5 + $0x7f0] sm:$0xf] }
  0xd4   : > { %591 = vst [vmem:[%s13653_s6 + $0x2fc] sm:$0xf] %v590_v63  ;;  %v718_v63 = vld [vmem:[%s13648_s5 + $0x7f8] sm:$0xf] }
  0xd5   : > { %593 = vst [vmem:[%s13653_s6 + $0x300] sm:$0xf] %v592_v0  ;;  %v720_v0 = vld [vmem:[%s13648_s5 + $0x800] sm:$0xf] }
  0xd6   : > { %595 = vst [vmem:[%s13653_s6 + $0x304] sm:$0xf] %v594_v1  ;;  %v722_v1 = vld [vmem:[%s13648_s5 + $0x808] sm:$0xf] }
  0xd7   : > { %597 = vst [vmem:[%s13653_s6 + $0x308] sm:$0xf] %v596_v2  ;;  %v724_v2 = vld [vmem:[%s13648_s5 + $0x810] sm:$0xf] }
  0xd8   : > { %599 = vst [vmem:[%s13653_s6 + $0x30c] sm:$0xf] %v598_v3  ;;  %v726_v3 = vld [vmem:[%s13648_s5 + $0x818] sm:$0xf] }
  0xd9   : > { %601 = vst [vmem:[%s13653_s6 + $0x310] sm:$0xf] %v600_v4  ;;  %v728_v4 = vld [vmem:[%s13648_s5 + $0x820] sm:$0xf] }
  0xda   : > { %603 = vst [vmem:[%s13653_s6 + $0x314] sm:$0xf] %v602_v5  ;;  %v730_v5 = vld [vmem:[%s13648_s5 + $0x828] sm:$0xf] }
  0xdb   : > { %605 = vst [vmem:[%s13653_s6 + $0x318] sm:$0xf] %v604_v6  ;;  %v732_v6 = vld [vmem:[%s13648_s5 + $0x830] sm:$0xf] }
  0xdc   : > { %607 = vst [vmem:[%s13653_s6 + $0x31c] sm:$0xf] %v606_v7  ;;  %v734_v7 = vld [vmem:[%s13648_s5 + $0x838] sm:$0xf] }
  0xdd   : > { %609 = vst [vmem:[%s13653_s6 + $0x320] sm:$0xf] %v608_v8  ;;  %v736_v8 = vld [vmem:[%s13648_s5 + $0x840] sm:$0xf] }
  0xde   : > { %611 = vst [vmem:[%s13653_s6 + $0x324] sm:$0xf] %v610_v9  ;;  %v738_v9 = vld [vmem:[%s13648_s5 + $0x848] sm:$0xf] }
  0xdf   : > { %613 = vst [vmem:[%s13653_s6 + $0x328] sm:$0xf] %v612_v10  ;;  %v740_v10 = vld [vmem:[%s13648_s5 + $0x850] sm:$0xf] }
  0xe0   : > { %615 = vst [vmem:[%s13653_s6 + $0x32c] sm:$0xf] %v614_v11  ;;  %v742_v11 = vld [vmem:[%s13648_s5 + $0x858] sm:$0xf] }
  0xe1   : > { %617 = vst [vmem:[%s13653_s6 + $0x330] sm:$0xf] %v616_v12  ;;  %v744_v12 = vld [vmem:[%s13648_s5 + $0x860] sm:$0xf] }
  0xe2   : > { %619 = vst [vmem:[%s13653_s6 + $0x334] sm:$0xf] %v618_v13  ;;  %v746_v13 = vld [vmem:[%s13648_s5 + $0x868] sm:$0xf] }
  0xe3   : > { %621 = vst [vmem:[%s13653_s6 + $0x338] sm:$0xf] %v620_v14  ;;  %v748_v14 = vld [vmem:[%s13648_s5 + $0x870] sm:$0xf] }
  0xe4   : > { %623 = vst [vmem:[%s13653_s6 + $0x33c] sm:$0xf] %v622_v15  ;;  %v750_v15 = vld [vmem:[%s13648_s5 + $0x878] sm:$0xf] }
  0xe5   : > { %625 = vst [vmem:[%s13653_s6 + $0x340] sm:$0xf] %v624_v16  ;;  %v752_v16 = vld [vmem:[%s13648_s5 + $0x880] sm:$0xf] }
  0xe6   : > { %627 = vst [vmem:[%s13653_s6 + $0x344] sm:$0xf] %v626_v17  ;;  %v754_v17 = vld [vmem:[%s13648_s5 + $0x888] sm:$0xf] }
  0xe7   : > { %629 = vst [vmem:[%s13653_s6 + $0x348] sm:$0xf] %v628_v18  ;;  %v756_v18 = vld [vmem:[%s13648_s5 + $0x890] sm:$0xf] }
  0xe8   : > { %631 = vst [vmem:[%s13653_s6 + $0x34c] sm:$0xf] %v630_v19  ;;  %v758_v19 = vld [vmem:[%s13648_s5 + $0x898] sm:$0xf] }
  0xe9   : > { %633 = vst [vmem:[%s13653_s6 + $0x350] sm:$0xf] %v632_v20  ;;  %v760_v20 = vld [vmem:[%s13648_s5 + $0x8a0] sm:$0xf] }
  0xea   : > { %635 = vst [vmem:[%s13653_s6 + $0x354] sm:$0xf] %v634_v21  ;;  %v762_v21 = vld [vmem:[%s13648_s5 + $0x8a8] sm:$0xf] }
  0xeb   : > { %637 = vst [vmem:[%s13653_s6 + $0x358] sm:$0xf] %v636_v22  ;;  %v764_v22 = vld [vmem:[%s13648_s5 + $0x8b0] sm:$0xf] }
  0xec   : > { %639 = vst [vmem:[%s13653_s6 + $0x35c] sm:$0xf] %v638_v23  ;;  %v766_v23 = vld [vmem:[%s13648_s5 + $0x8b8] sm:$0xf] }
  0xed   : > { %641 = vst [vmem:[%s13653_s6 + $0x360] sm:$0xf] %v640_v24  ;;  %v768_v24 = vld [vmem:[%s13648_s5 + $0x8c0] sm:$0xf] }
  0xee   : > { %643 = vst [vmem:[%s13653_s6 + $0x364] sm:$0xf] %v642_v25  ;;  %v770_v25 = vld [vmem:[%s13648_s5 + $0x8c8] sm:$0xf] }
  0xef   : > { %645 = vst [vmem:[%s13653_s6 + $0x368] sm:$0xf] %v644_v26  ;;  %v772_v26 = vld [vmem:[%s13648_s5 + $0x8d0] sm:$0xf] }
  0xf0   : > { %647 = vst [vmem:[%s13653_s6 + $0x36c] sm:$0xf] %v646_v27  ;;  %v774_v27 = vld [vmem:[%s13648_s5 + $0x8d8] sm:$0xf] }
  0xf1   : > { %649 = vst [vmem:[%s13653_s6 + $0x370] sm:$0xf] %v648_v28  ;;  %v776_v28 = vld [vmem:[%s13648_s5 + $0x8e0] sm:$0xf] }
  0xf2   : > { %651 = vst [vmem:[%s13653_s6 + $0x374] sm:$0xf] %v650_v29  ;;  %v778_v29 = vld [vmem:[%s13648_s5 + $0x8e8] sm:$0xf] }
  0xf3   : > { %653 = vst [vmem:[%s13653_s6 + $0x378] sm:$0xf] %v652_v30  ;;  %v780_v30 = vld [vmem:[%s13648_s5 + $0x8f0] sm:$0xf] }
  0xf4   : > { %655 = vst [vmem:[%s13653_s6 + $0x37c] sm:$0xf] %v654_v31  ;;  %v782_v31 = vld [vmem:[%s13648_s5 + $0x8f8] sm:$0xf] }
  0xf5   : > { %657 = vst [vmem:[%s13653_s6 + $0x380] sm:$0xf] %v656_v32  ;;  %v784_v32 = vld [vmem:[%s13648_s5 + $0x900] sm:$0xf] }
  0xf6   : > { %659 = vst [vmem:[%s13653_s6 + $0x384] sm:$0xf] %v658_v33  ;;  %v786_v33 = vld [vmem:[%s13648_s5 + $0x908] sm:$0xf] }
  0xf7   : > { %661 = vst [vmem:[%s13653_s6 + $0x388] sm:$0xf] %v660_v34  ;;  %v788_v34 = vld [vmem:[%s13648_s5 + $0x910] sm:$0xf] }
  0xf8   : > { %663 = vst [vmem:[%s13653_s6 + $0x38c] sm:$0xf] %v662_v35  ;;  %v790_v35 = vld [vmem:[%s13648_s5 + $0x918] sm:$0xf] }
  0xf9   : > { %665 = vst [vmem:[%s13653_s6 + $0x390] sm:$0xf] %v664_v36  ;;  %v792_v36 = vld [vmem:[%s13648_s5 + $0x920] sm:$0xf] }
  0xfa   : > { %667 = vst [vmem:[%s13653_s6 + $0x394] sm:$0xf] %v666_v37  ;;  %v794_v37 = vld [vmem:[%s13648_s5 + $0x928] sm:$0xf] }
  0xfb   : > { %669 = vst [vmem:[%s13653_s6 + $0x398] sm:$0xf] %v668_v38  ;;  %v796_v38 = vld [vmem:[%s13648_s5 + $0x930] sm:$0xf] }
  0xfc   : > { %671 = vst [vmem:[%s13653_s6 + $0x39c] sm:$0xf] %v670_v39  ;;  %v798_v39 = vld [vmem:[%s13648_s5 + $0x938] sm:$0xf] }
  0xfd   : > { %673 = vst [vmem:[%s13653_s6 + $0x3a0] sm:$0xf] %v672_v40  ;;  %v800_v40 = vld [vmem:[%s13648_s5 + $0x940] sm:$0xf] }
  0xfe   : > { %675 = vst [vmem:[%s13653_s6 + $0x3a4] sm:$0xf] %v674_v41  ;;  %v802_v41 = vld [vmem:[%s13648_s5 + $0x948] sm:$0xf] }
  0xff   : > { %677 = vst [vmem:[%s13653_s6 + $0x3a8] sm:$0xf] %v676_v42  ;;  %v804_v42 = vld [vmem:[%s13648_s5 + $0x950] sm:$0xf] }
 0x100   : > { %679 = vst [vmem:[%s13653_s6 + $0x3ac] sm:$0xf] %v678_v43  ;;  %v806_v43 = vld [vmem:[%s13648_s5 + $0x958] sm:$0xf] }
 0x101   : > { %681 = vst [vmem:[%s13653_s6 + $0x3b0] sm:$0xf] %v680_v44  ;;  %v808_v44 = vld [vmem:[%s13648_s5 + $0x960] sm:$0xf] }
 0x102   : > { %683 = vst [vmem:[%s13653_s6 + $0x3b4] sm:$0xf] %v682_v45  ;;  %v810_v45 = vld [vmem:[%s13648_s5 + $0x968] sm:$0xf] }
 0x103   : > { %685 = vst [vmem:[%s13653_s6 + $0x3b8] sm:$0xf] %v684_v46  ;;  %v812_v46 = vld [vmem:[%s13648_s5 + $0x970] sm:$0xf] }
 0x104   : > { %687 = vst [vmem:[%s13653_s6 + $0x3bc] sm:$0xf] %v686_v47  ;;  %v814_v47 = vld [vmem:[%s13648_s5 + $0x978] sm:$0xf] }
 0x105   : > { %689 = vst [vmem:[%s13653_s6 + $0x3c0] sm:$0xf] %v688_v48  ;;  %v816_v48 = vld [vmem:[%s13648_s5 + $0x980] sm:$0xf] }
 0x106   : > { %691 = vst [vmem:[%s13653_s6 + $0x3c4] sm:$0xf] %v690_v49  ;;  %v818_v49 = vld [vmem:[%s13648_s5 + $0x988] sm:$0xf] }
 0x107   : > { %693 = vst [vmem:[%s13653_s6 + $0x3c8] sm:$0xf] %v692_v50  ;;  %v820_v50 = vld [vmem:[%s13648_s5 + $0x990] sm:$0xf] }
 0x108   : > { %695 = vst [vmem:[%s13653_s6 + $0x3cc] sm:$0xf] %v694_v51  ;;  %v822_v51 = vld [vmem:[%s13648_s5 + $0x998] sm:$0xf] }
 0x109   : > { %697 = vst [vmem:[%s13653_s6 + $0x3d0] sm:$0xf] %v696_v52  ;;  %v824_v52 = vld [vmem:[%s13648_s5 + $0x9a0] sm:$0xf] }
 0x10a   : > { %699 = vst [vmem:[%s13653_s6 + $0x3d4] sm:$0xf] %v698_v53  ;;  %v826_v53 = vld [vmem:[%s13648_s5 + $0x9a8] sm:$0xf] }
 0x10b   : > { %701 = vst [vmem:[%s13653_s6 + $0x3d8] sm:$0xf] %v700_v54  ;;  %v828_v54 = vld [vmem:[%s13648_s5 + $0x9b0] sm:$0xf] }
 0x10c   : > { %703 = vst [vmem:[%s13653_s6 + $0x3dc] sm:$0xf] %v702_v55  ;;  %v830_v55 = vld [vmem:[%s13648_s5 + $0x9b8] sm:$0xf] }
 0x10d   : > { %705 = vst [vmem:[%s13653_s6 + $0x3e0] sm:$0xf] %v704_v56  ;;  %v832_v56 = vld [vmem:[%s13648_s5 + $0x9c0] sm:$0xf] }
 0x10e   : > { %707 = vst [vmem:[%s13653_s6 + $0x3e4] sm:$0xf] %v706_v57  ;;  %v834_v57 = vld [vmem:[%s13648_s5 + $0x9c8] sm:$0xf] }
 0x10f   : > { %709 = vst [vmem:[%s13653_s6 + $0x3e8] sm:$0xf] %v708_v58  ;;  %v836_v58 = vld [vmem:[%s13648_s5 + $0x9d0] sm:$0xf] }
 0x110   : > { %711 = vst [vmem:[%s13653_s6 + $0x3ec] sm:$0xf] %v710_v59  ;;  %v838_v59 = vld [vmem:[%s13648_s5 + $0x9d8] sm:$0xf] }
 0x111   : > { %713 = vst [vmem:[%s13653_s6 + $0x3f0] sm:$0xf] %v712_v60  ;;  %v840_v60 = vld [vmem:[%s13648_s5 + $0x9e0] sm:$0xf] }
 0x112   : > { %715 = vst [vmem:[%s13653_s6 + $0x3f4] sm:$0xf] %v714_v61  ;;  %v842_v61 = vld [vmem:[%s13648_s5 + $0x9e8] sm:$0xf] }
 0x113   : > { %717 = vst [vmem:[%s13653_s6 + $0x3f8] sm:$0xf] %v716_v62  ;;  %v844_v62 = vld [vmem:[%s13648_s5 + $0x9f0] sm:$0xf] }
 0x114   : > { %719 = vst [vmem:[%s13653_s6 + $0x3fc] sm:$0xf] %v718_v63  ;;  %v846_v63 = vld [vmem:[%s13648_s5 + $0x9f8] sm:$0xf] }
 0x115   : > { %721 = vst [vmem:[%s13653_s6 + $0x400] sm:$0xf] %v720_v0  ;;  %v848_v0 = vld [vmem:[%s13648_s5 + $0xa00] sm:$0xf] }
 0x116   : > { %723 = vst [vmem:[%s13653_s6 + $0x404] sm:$0xf] %v722_v1  ;;  %v850_v1 = vld [vmem:[%s13648_s5 + $0xa08] sm:$0xf] }
 0x117   : > { %725 = vst [vmem:[%s13653_s6 + $0x408] sm:$0xf] %v724_v2  ;;  %v852_v2 = vld [vmem:[%s13648_s5 + $0xa10] sm:$0xf] }
 0x118   : > { %727 = vst [vmem:[%s13653_s6 + $0x40c] sm:$0xf] %v726_v3  ;;  %v854_v3 = vld [vmem:[%s13648_s5 + $0xa18] sm:$0xf] }
 0x119   : > { %729 = vst [vmem:[%s13653_s6 + $0x410] sm:$0xf] %v728_v4  ;;  %v856_v4 = vld [vmem:[%s13648_s5 + $0xa20] sm:$0xf] }
 0x11a   : > { %731 = vst [vmem:[%s13653_s6 + $0x414] sm:$0xf] %v730_v5  ;;  %v858_v5 = vld [vmem:[%s13648_s5 + $0xa28] sm:$0xf] }
 0x11b   : > { %733 = vst [vmem:[%s13653_s6 + $0x418] sm:$0xf] %v732_v6  ;;  %v860_v6 = vld [vmem:[%s13648_s5 + $0xa30] sm:$0xf] }
 0x11c   : > { %735 = vst [vmem:[%s13653_s6 + $0x41c] sm:$0xf] %v734_v7  ;;  %v862_v7 = vld [vmem:[%s13648_s5 + $0xa38] sm:$0xf] }
 0x11d   : > { %737 = vst [vmem:[%s13653_s6 + $0x420] sm:$0xf] %v736_v8  ;;  %v864_v8 = vld [vmem:[%s13648_s5 + $0xa40] sm:$0xf] }
 0x11e   : > { %739 = vst [vmem:[%s13653_s6 + $0x424] sm:$0xf] %v738_v9  ;;  %v866_v9 = vld [vmem:[%s13648_s5 + $0xa48] sm:$0xf] }
 0x11f   : > { %741 = vst [vmem:[%s13653_s6 + $0x428] sm:$0xf] %v740_v10  ;;  %v868_v10 = vld [vmem:[%s13648_s5 + $0xa50] sm:$0xf] }
 0x120   : > { %743 = vst [vmem:[%s13653_s6 + $0x42c] sm:$0xf] %v742_v11  ;;  %v870_v11 = vld [vmem:[%s13648_s5 + $0xa58] sm:$0xf] }
 0x121   : > { %745 = vst [vmem:[%s13653_s6 + $0x430] sm:$0xf] %v744_v12  ;;  %v872_v12 = vld [vmem:[%s13648_s5 + $0xa60] sm:$0xf] }
 0x122   : > { %747 = vst [vmem:[%s13653_s6 + $0x434] sm:$0xf] %v746_v13  ;;  %v874_v13 = vld [vmem:[%s13648_s5 + $0xa68] sm:$0xf] }
 0x123   : > { %749 = vst [vmem:[%s13653_s6 + $0x438] sm:$0xf] %v748_v14  ;;  %v876_v14 = vld [vmem:[%s13648_s5 + $0xa70] sm:$0xf] }
 0x124   : > { %751 = vst [vmem:[%s13653_s6 + $0x43c] sm:$0xf] %v750_v15  ;;  %v878_v15 = vld [vmem:[%s13648_s5 + $0xa78] sm:$0xf] }
 0x125   : > { %753 = vst [vmem:[%s13653_s6 + $0x440] sm:$0xf] %v752_v16  ;;  %v880_v16 = vld [vmem:[%s13648_s5 + $0xa80] sm:$0xf] }
 0x126   : > { %755 = vst [vmem:[%s13653_s6 + $0x444] sm:$0xf] %v754_v17  ;;  %v882_v17 = vld [vmem:[%s13648_s5 + $0xa88] sm:$0xf] }
 0x127   : > { %757 = vst [vmem:[%s13653_s6 + $0x448] sm:$0xf] %v756_v18  ;;  %v884_v18 = vld [vmem:[%s13648_s5 + $0xa90] sm:$0xf] }
 0x128   : > { %759 = vst [vmem:[%s13653_s6 + $0x44c] sm:$0xf] %v758_v19  ;;  %v886_v19 = vld [vmem:[%s13648_s5 + $0xa98] sm:$0xf] }
 0x129   : > { %761 = vst [vmem:[%s13653_s6 + $0x450] sm:$0xf] %v760_v20  ;;  %v888_v20 = vld [vmem:[%s13648_s5 + $0xaa0] sm:$0xf] }
 0x12a   : > { %763 = vst [vmem:[%s13653_s6 + $0x454] sm:$0xf] %v762_v21  ;;  %v890_v21 = vld [vmem:[%s13648_s5 + $0xaa8] sm:$0xf] }
 0x12b   : > { %765 = vst [vmem:[%s13653_s6 + $0x458] sm:$0xf] %v764_v22  ;;  %v892_v22 = vld [vmem:[%s13648_s5 + $0xab0] sm:$0xf] }
 0x12c   : > { %767 = vst [vmem:[%s13653_s6 + $0x45c] sm:$0xf] %v766_v23  ;;  %v894_v23 = vld [vmem:[%s13648_s5 + $0xab8] sm:$0xf] }
 0x12d   : > { %769 = vst [vmem:[%s13653_s6 + $0x460] sm:$0xf] %v768_v24  ;;  %v896_v24 = vld [vmem:[%s13648_s5 + $0xac0] sm:$0xf] }
 0x12e   : > { %771 = vst [vmem:[%s13653_s6 + $0x464] sm:$0xf] %v770_v25  ;;  %v898_v25 = vld [vmem:[%s13648_s5 + $0xac8] sm:$0xf] }
 0x12f   : > { %773 = vst [vmem:[%s13653_s6 + $0x468] sm:$0xf] %v772_v26  ;;  %v900_v26 = vld [vmem:[%s13648_s5 + $0xad0] sm:$0xf] }
 0x130   : > { %775 = vst [vmem:[%s13653_s6 + $0x46c] sm:$0xf] %v774_v27  ;;  %v902_v27 = vld [vmem:[%s13648_s5 + $0xad8] sm:$0xf] }
 0x131   : > { %777 = vst [vmem:[%s13653_s6 + $0x470] sm:$0xf] %v776_v28  ;;  %v904_v28 = vld [vmem:[%s13648_s5 + $0xae0] sm:$0xf] }
 0x132   : > { %779 = vst [vmem:[%s13653_s6 + $0x474] sm:$0xf] %v778_v29  ;;  %v906_v29 = vld [vmem:[%s13648_s5 + $0xae8] sm:$0xf] }
 0x133   : > { %781 = vst [vmem:[%s13653_s6 + $0x478] sm:$0xf] %v780_v30  ;;  %v908_v30 = vld [vmem:[%s13648_s5 + $0xaf0] sm:$0xf] }
 0x134   : > { %783 = vst [vmem:[%s13653_s6 + $0x47c] sm:$0xf] %v782_v31  ;;  %v910_v31 = vld [vmem:[%s13648_s5 + $0xaf8] sm:$0xf] }
 0x135   : > { %785 = vst [vmem:[%s13653_s6 + $0x480] sm:$0xf] %v784_v32  ;;  %v912_v32 = vld [vmem:[%s13648_s5 + $0xb00] sm:$0xf] }
 0x136   : > { %787 = vst [vmem:[%s13653_s6 + $0x484] sm:$0xf] %v786_v33  ;;  %v914_v33 = vld [vmem:[%s13648_s5 + $0xb08] sm:$0xf] }
 0x137   : > { %789 = vst [vmem:[%s13653_s6 + $0x488] sm:$0xf] %v788_v34  ;;  %v916_v34 = vld [vmem:[%s13648_s5 + $0xb10] sm:$0xf] }
 0x138   : > { %791 = vst [vmem:[%s13653_s6 + $0x48c] sm:$0xf] %v790_v35  ;;  %v918_v35 = vld [vmem:[%s13648_s5 + $0xb18] sm:$0xf] }
 0x139   : > { %793 = vst [vmem:[%s13653_s6 + $0x490] sm:$0xf] %v792_v36  ;;  %v920_v36 = vld [vmem:[%s13648_s5 + $0xb20] sm:$0xf] }
 0x13a   : > { %795 = vst [vmem:[%s13653_s6 + $0x494] sm:$0xf] %v794_v37  ;;  %v922_v37 = vld [vmem:[%s13648_s5 + $0xb28] sm:$0xf] }
 0x13b   : > { %797 = vst [vmem:[%s13653_s6 + $0x498] sm:$0xf] %v796_v38  ;;  %v924_v38 = vld [vmem:[%s13648_s5 + $0xb30] sm:$0xf] }
 0x13c   : > { %799 = vst [vmem:[%s13653_s6 + $0x49c] sm:$0xf] %v798_v39  ;;  %v926_v39 = vld [vmem:[%s13648_s5 + $0xb38] sm:$0xf] }
 0x13d   : > { %801 = vst [vmem:[%s13653_s6 + $0x4a0] sm:$0xf] %v800_v40  ;;  %v928_v40 = vld [vmem:[%s13648_s5 + $0xb40] sm:$0xf] }
 0x13e   : > { %803 = vst [vmem:[%s13653_s6 + $0x4a4] sm:$0xf] %v802_v41  ;;  %v930_v41 = vld [vmem:[%s13648_s5 + $0xb48] sm:$0xf] }
 0x13f   : > { %805 = vst [vmem:[%s13653_s6 + $0x4a8] sm:$0xf] %v804_v42  ;;  %v932_v42 = vld [vmem:[%s13648_s5 + $0xb50] sm:$0xf] }
 0x140   : > { %807 = vst [vmem:[%s13653_s6 + $0x4ac] sm:$0xf] %v806_v43  ;;  %v934_v43 = vld [vmem:[%s13648_s5 + $0xb58] sm:$0xf] }
 0x141   : > { %809 = vst [vmem:[%s13653_s6 + $0x4b0] sm:$0xf] %v808_v44  ;;  %v936_v44 = vld [vmem:[%s13648_s5 + $0xb60] sm:$0xf] }
 0x142   : > { %811 = vst [vmem:[%s13653_s6 + $0x4b4] sm:$0xf] %v810_v45  ;;  %v938_v45 = vld [vmem:[%s13648_s5 + $0xb68] sm:$0xf] }
 0x143   : > { %813 = vst [vmem:[%s13653_s6 + $0x4b8] sm:$0xf] %v812_v46  ;;  %v940_v46 = vld [vmem:[%s13648_s5 + $0xb70] sm:$0xf] }
 0x144   : > { %815 = vst [vmem:[%s13653_s6 + $0x4bc] sm:$0xf] %v814_v47  ;;  %v942_v47 = vld [vmem:[%s13648_s5 + $0xb78] sm:$0xf] }
 0x145   : > { %817 = vst [vmem:[%s13653_s6 + $0x4c0] sm:$0xf] %v816_v48  ;;  %v944_v48 = vld [vmem:[%s13648_s5 + $0xb80] sm:$0xf] }
 0x146   : > { %819 = vst [vmem:[%s13653_s6 + $0x4c4] sm:$0xf] %v818_v49  ;;  %v946_v49 = vld [vmem:[%s13648_s5 + $0xb88] sm:$0xf] }
 0x147   : > { %821 = vst [vmem:[%s13653_s6 + $0x4c8] sm:$0xf] %v820_v50  ;;  %v948_v50 = vld [vmem:[%s13648_s5 + $0xb90] sm:$0xf] }
 0x148   : > { %823 = vst [vmem:[%s13653_s6 + $0x4cc] sm:$0xf] %v822_v51  ;;  %v950_v51 = vld [vmem:[%s13648_s5 + $0xb98] sm:$0xf] }
 0x149   : > { %825 = vst [vmem:[%s13653_s6 + $0x4d0] sm:$0xf] %v824_v52  ;;  %v952_v52 = vld [vmem:[%s13648_s5 + $0xba0] sm:$0xf] }
 0x14a   : > { %827 = vst [vmem:[%s13653_s6 + $0x4d4] sm:$0xf] %v826_v53  ;;  %v954_v53 = vld [vmem:[%s13648_s5 + $0xba8] sm:$0xf] }
 0x14b   : > { %829 = vst [vmem:[%s13653_s6 + $0x4d8] sm:$0xf] %v828_v54  ;;  %v956_v54 = vld [vmem:[%s13648_s5 + $0xbb0] sm:$0xf] }
 0x14c   : > { %831 = vst [vmem:[%s13653_s6 + $0x4dc] sm:$0xf] %v830_v55  ;;  %v958_v55 = vld [vmem:[%s13648_s5 + $0xbb8] sm:$0xf] }
 0x14d   : > { %833 = vst [vmem:[%s13653_s6 + $0x4e0] sm:$0xf] %v832_v56  ;;  %v960_v56 = vld [vmem:[%s13648_s5 + $0xbc0] sm:$0xf] }
 0x14e   : > { %835 = vst [vmem:[%s13653_s6 + $0x4e4] sm:$0xf] %v834_v57  ;;  %v962_v57 = vld [vmem:[%s13648_s5 + $0xbc8] sm:$0xf] }
 0x14f   : > { %837 = vst [vmem:[%s13653_s6 + $0x4e8] sm:$0xf] %v836_v58  ;;  %v964_v58 = vld [vmem:[%s13648_s5 + $0xbd0] sm:$0xf] }
 0x150   : > { %839 = vst [vmem:[%s13653_s6 + $0x4ec] sm:$0xf] %v838_v59  ;;  %v966_v59 = vld [vmem:[%s13648_s5 + $0xbd8] sm:$0xf] }
 0x151   : > { %841 = vst [vmem:[%s13653_s6 + $0x4f0] sm:$0xf] %v840_v60  ;;  %v968_v60 = vld [vmem:[%s13648_s5 + $0xbe0] sm:$0xf] }
 0x152   : > { %843 = vst [vmem:[%s13653_s6 + $0x4f4] sm:$0xf] %v842_v61  ;;  %v970_v61 = vld [vmem:[%s13648_s5 + $0xbe8] sm:$0xf] }
 0x153   : > { %845 = vst [vmem:[%s13653_s6 + $0x4f8] sm:$0xf] %v844_v62  ;;  %v972_v62 = vld [vmem:[%s13648_s5 + $0xbf0] sm:$0xf] }
 0x154   : > { %847 = vst [vmem:[%s13653_s6 + $0x4fc] sm:$0xf] %v846_v63  ;;  %v974_v63 = vld [vmem:[%s13648_s5 + $0xbf8] sm:$0xf] }
 0x155   : > { %849 = vst [vmem:[%s13653_s6 + $0x500] sm:$0xf] %v848_v0  ;;  %v976_v0 = vld [vmem:[%s13648_s5 + $0xc00] sm:$0xf] }
 0x156   : > { %851 = vst [vmem:[%s13653_s6 + $0x504] sm:$0xf] %v850_v1  ;;  %v978_v1 = vld [vmem:[%s13648_s5 + $0xc08] sm:$0xf] }
 0x157   : > { %853 = vst [vmem:[%s13653_s6 + $0x508] sm:$0xf] %v852_v2  ;;  %v980_v2 = vld [vmem:[%s13648_s5 + $0xc10] sm:$0xf] }
 0x158   : > { %855 = vst [vmem:[%s13653_s6 + $0x50c] sm:$0xf] %v854_v3  ;;  %v982_v3 = vld [vmem:[%s13648_s5 + $0xc18] sm:$0xf] }
 0x159   : > { %857 = vst [vmem:[%s13653_s6 + $0x510] sm:$0xf] %v856_v4  ;;  %v984_v4 = vld [vmem:[%s13648_s5 + $0xc20] sm:$0xf] }
 0x15a   : > { %859 = vst [vmem:[%s13653_s6 + $0x514] sm:$0xf] %v858_v5  ;;  %v986_v5 = vld [vmem:[%s13648_s5 + $0xc28] sm:$0xf] }
 0x15b   : > { %861 = vst [vmem:[%s13653_s6 + $0x518] sm:$0xf] %v860_v6  ;;  %v988_v6 = vld [vmem:[%s13648_s5 + $0xc30] sm:$0xf] }
 0x15c   : > { %863 = vst [vmem:[%s13653_s6 + $0x51c] sm:$0xf] %v862_v7  ;;  %v990_v7 = vld [vmem:[%s13648_s5 + $0xc38] sm:$0xf] }
 0x15d   : > { %865 = vst [vmem:[%s13653_s6 + $0x520] sm:$0xf] %v864_v8  ;;  %v992_v8 = vld [vmem:[%s13648_s5 + $0xc40] sm:$0xf] }
 0x15e   : > { %867 = vst [vmem:[%s13653_s6 + $0x524] sm:$0xf] %v866_v9  ;;  %v994_v9 = vld [vmem:[%s13648_s5 + $0xc48] sm:$0xf] }
 0x15f   : > { %869 = vst [vmem:[%s13653_s6 + $0x528] sm:$0xf] %v868_v10  ;;  %v996_v10 = vld [vmem:[%s13648_s5 + $0xc50] sm:$0xf] }
 0x160   : > { %871 = vst [vmem:[%s13653_s6 + $0x52c] sm:$0xf] %v870_v11  ;;  %v998_v11 = vld [vmem:[%s13648_s5 + $0xc58] sm:$0xf] }
 0x161   : > { %873 = vst [vmem:[%s13653_s6 + $0x530] sm:$0xf] %v872_v12  ;;  %v1000_v12 = vld [vmem:[%s13648_s5 + $0xc60] sm:$0xf] }
 0x162   : > { %875 = vst [vmem:[%s13653_s6 + $0x534] sm:$0xf] %v874_v13  ;;  %v1002_v13 = vld [vmem:[%s13648_s5 + $0xc68] sm:$0xf] }
 0x163   : > { %877 = vst [vmem:[%s13653_s6 + $0x538] sm:$0xf] %v876_v14  ;;  %v1004_v14 = vld [vmem:[%s13648_s5 + $0xc70] sm:$0xf] }
 0x164   : > { %879 = vst [vmem:[%s13653_s6 + $0x53c] sm:$0xf] %v878_v15  ;;  %v1006_v15 = vld [vmem:[%s13648_s5 + $0xc78] sm:$0xf] }
 0x165   : > { %881 = vst [vmem:[%s13653_s6 + $0x540] sm:$0xf] %v880_v16  ;;  %v1008_v16 = vld [vmem:[%s13648_s5 + $0xc80] sm:$0xf] }
 0x166   : > { %883 = vst [vmem:[%s13653_s6 + $0x544] sm:$0xf] %v882_v17  ;;  %v1010_v17 = vld [vmem:[%s13648_s5 + $0xc88] sm:$0xf] }
 0x167   : > { %885 = vst [vmem:[%s13653_s6 + $0x548] sm:$0xf] %v884_v18  ;;  %v1012_v18 = vld [vmem:[%s13648_s5 + $0xc90] sm:$0xf] }
 0x168   : > { %887 = vst [vmem:[%s13653_s6 + $0x54c] sm:$0xf] %v886_v19  ;;  %v1014_v19 = vld [vmem:[%s13648_s5 + $0xc98] sm:$0xf] }
 0x169   : > { %889 = vst [vmem:[%s13653_s6 + $0x550] sm:$0xf] %v888_v20  ;;  %v1016_v20 = vld [vmem:[%s13648_s5 + $0xca0] sm:$0xf] }
 0x16a   : > { %891 = vst [vmem:[%s13653_s6 + $0x554] sm:$0xf] %v890_v21  ;;  %v1018_v21 = vld [vmem:[%s13648_s5 + $0xca8] sm:$0xf] }
 0x16b   : > { %893 = vst [vmem:[%s13653_s6 + $0x558] sm:$0xf] %v892_v22  ;;  %v1020_v22 = vld [vmem:[%s13648_s5 + $0xcb0] sm:$0xf] }
 0x16c   : > { %895 = vst [vmem:[%s13653_s6 + $0x55c] sm:$0xf] %v894_v23  ;;  %v1022_v23 = vld [vmem:[%s13648_s5 + $0xcb8] sm:$0xf] }
 0x16d   : > { %897 = vst [vmem:[%s13653_s6 + $0x560] sm:$0xf] %v896_v24  ;;  %v1024_v24 = vld [vmem:[%s13648_s5 + $0xcc0] sm:$0xf] }
 0x16e   : > { %899 = vst [vmem:[%s13653_s6 + $0x564] sm:$0xf] %v898_v25  ;;  %v1026_v25 = vld [vmem:[%s13648_s5 + $0xcc8] sm:$0xf] }
 0x16f   : > { %901 = vst [vmem:[%s13653_s6 + $0x568] sm:$0xf] %v900_v26  ;;  %v1028_v26 = vld [vmem:[%s13648_s5 + $0xcd0] sm:$0xf] }
 0x170   : > { %903 = vst [vmem:[%s13653_s6 + $0x56c] sm:$0xf] %v902_v27  ;;  %v1030_v27 = vld [vmem:[%s13648_s5 + $0xcd8] sm:$0xf] }
 0x171   : > { %905 = vst [vmem:[%s13653_s6 + $0x570] sm:$0xf] %v904_v28  ;;  %v1032_v28 = vld [vmem:[%s13648_s5 + $0xce0] sm:$0xf] }
 0x172   : > { %907 = vst [vmem:[%s13653_s6 + $0x574] sm:$0xf] %v906_v29  ;;  %v1034_v29 = vld [vmem:[%s13648_s5 + $0xce8] sm:$0xf] }
 0x173   : > { %909 = vst [vmem:[%s13653_s6 + $0x578] sm:$0xf] %v908_v30  ;;  %v1036_v30 = vld [vmem:[%s13648_s5 + $0xcf0] sm:$0xf] }
 0x174   : > { %911 = vst [vmem:[%s13653_s6 + $0x57c] sm:$0xf] %v910_v31  ;;  %v1038_v31 = vld [vmem:[%s13648_s5 + $0xcf8] sm:$0xf] }
 0x175   : > { %913 = vst [vmem:[%s13653_s6 + $0x580] sm:$0xf] %v912_v32  ;;  %v1040_v32 = vld [vmem:[%s13648_s5 + $0xd00] sm:$0xf] }
 0x176   : > { %915 = vst [vmem:[%s13653_s6 + $0x584] sm:$0xf] %v914_v33  ;;  %v1042_v33 = vld [vmem:[%s13648_s5 + $0xd08] sm:$0xf] }
 0x177   : > { %917 = vst [vmem:[%s13653_s6 + $0x588] sm:$0xf] %v916_v34  ;;  %v1044_v34 = vld [vmem:[%s13648_s5 + $0xd10] sm:$0xf] }
 0x178   : > { %919 = vst [vmem:[%s13653_s6 + $0x58c] sm:$0xf] %v918_v35  ;;  %v1046_v35 = vld [vmem:[%s13648_s5 + $0xd18] sm:$0xf] }
 0x179   : > { %921 = vst [vmem:[%s13653_s6 + $0x590] sm:$0xf] %v920_v36  ;;  %v1048_v36 = vld [vmem:[%s13648_s5 + $0xd20] sm:$0xf] }
 0x17a   : > { %923 = vst [vmem:[%s13653_s6 + $0x594] sm:$0xf] %v922_v37  ;;  %v1050_v37 = vld [vmem:[%s13648_s5 + $0xd28] sm:$0xf] }
 0x17b   : > { %925 = vst [vmem:[%s13653_s6 + $0x598] sm:$0xf] %v924_v38  ;;  %v1052_v38 = vld [vmem:[%s13648_s5 + $0xd30] sm:$0xf] }
 0x17c   : > { %927 = vst [vmem:[%s13653_s6 + $0x59c] sm:$0xf] %v926_v39  ;;  %v1054_v39 = vld [vmem:[%s13648_s5 + $0xd38] sm:$0xf] }
 0x17d   : > { %929 = vst [vmem:[%s13653_s6 + $0x5a0] sm:$0xf] %v928_v40  ;;  %v1056_v40 = vld [vmem:[%s13648_s5 + $0xd40] sm:$0xf] }
 0x17e   : > { %931 = vst [vmem:[%s13653_s6 + $0x5a4] sm:$0xf] %v930_v41  ;;  %v1058_v41 = vld [vmem:[%s13648_s5 + $0xd48] sm:$0xf] }
 0x17f   : > { %933 = vst [vmem:[%s13653_s6 + $0x5a8] sm:$0xf] %v932_v42  ;;  %v1060_v42 = vld [vmem:[%s13648_s5 + $0xd50] sm:$0xf] }
 0x180   : > { %935 = vst [vmem:[%s13653_s6 + $0x5ac] sm:$0xf] %v934_v43  ;;  %v1062_v43 = vld [vmem:[%s13648_s5 + $0xd58] sm:$0xf] }
 0x181   : > { %937 = vst [vmem:[%s13653_s6 + $0x5b0] sm:$0xf] %v936_v44  ;;  %v1064_v44 = vld [vmem:[%s13648_s5 + $0xd60] sm:$0xf] }
 0x182   : > { %939 = vst [vmem:[%s13653_s6 + $0x5b4] sm:$0xf] %v938_v45  ;;  %v1066_v45 = vld [vmem:[%s13648_s5 + $0xd68] sm:$0xf] }
 0x183   : > { %941 = vst [vmem:[%s13653_s6 + $0x5b8] sm:$0xf] %v940_v46  ;;  %v1068_v46 = vld [vmem:[%s13648_s5 + $0xd70] sm:$0xf] }
 0x184   : > { %943 = vst [vmem:[%s13653_s6 + $0x5bc] sm:$0xf] %v942_v47  ;;  %v1070_v47 = vld [vmem:[%s13648_s5 + $0xd78] sm:$0xf] }
 0x185   : > { %945 = vst [vmem:[%s13653_s6 + $0x5c0] sm:$0xf] %v944_v48  ;;  %v1072_v48 = vld [vmem:[%s13648_s5 + $0xd80] sm:$0xf] }
 0x186   : > { %947 = vst [vmem:[%s13653_s6 + $0x5c4] sm:$0xf] %v946_v49  ;;  %v1074_v49 = vld [vmem:[%s13648_s5 + $0xd88] sm:$0xf] }
 0x187   : > { %949 = vst [vmem:[%s13653_s6 + $0x5c8] sm:$0xf] %v948_v50  ;;  %v1076_v50 = vld [vmem:[%s13648_s5 + $0xd90] sm:$0xf] }
 0x188   : > { %951 = vst [vmem:[%s13653_s6 + $0x5cc] sm:$0xf] %v950_v51  ;;  %v1078_v51 = vld [vmem:[%s13648_s5 + $0xd98] sm:$0xf] }
 0x189   : > { %953 = vst [vmem:[%s13653_s6 + $0x5d0] sm:$0xf] %v952_v52  ;;  %v1080_v52 = vld [vmem:[%s13648_s5 + $0xda0] sm:$0xf] }
 0x18a   : > { %955 = vst [vmem:[%s13653_s6 + $0x5d4] sm:$0xf] %v954_v53  ;;  %v1082_v53 = vld [vmem:[%s13648_s5 + $0xda8] sm:$0xf] }
 0x18b   : > { %957 = vst [vmem:[%s13653_s6 + $0x5d8] sm:$0xf] %v956_v54  ;;  %v1084_v54 = vld [vmem:[%s13648_s5 + $0xdb0] sm:$0xf] }
 0x18c   : > { %959 = vst [vmem:[%s13653_s6 + $0x5dc] sm:$0xf] %v958_v55  ;;  %v1086_v55 = vld [vmem:[%s13648_s5 + $0xdb8] sm:$0xf] }
 0x18d   : > { %961 = vst [vmem:[%s13653_s6 + $0x5e0] sm:$0xf] %v960_v56  ;;  %v1088_v56 = vld [vmem:[%s13648_s5 + $0xdc0] sm:$0xf] }
 0x18e   : > { %963 = vst [vmem:[%s13653_s6 + $0x5e4] sm:$0xf] %v962_v57  ;;  %v1090_v57 = vld [vmem:[%s13648_s5 + $0xdc8] sm:$0xf] }
 0x18f   : > { %965 = vst [vmem:[%s13653_s6 + $0x5e8] sm:$0xf] %v964_v58  ;;  %v1092_v58 = vld [vmem:[%s13648_s5 + $0xdd0] sm:$0xf] }
 0x190   : > { %967 = vst [vmem:[%s13653_s6 + $0x5ec] sm:$0xf] %v966_v59  ;;  %v1094_v59 = vld [vmem:[%s13648_s5 + $0xdd8] sm:$0xf] }
 0x191   : > { %969 = vst [vmem:[%s13653_s6 + $0x5f0] sm:$0xf] %v968_v60  ;;  %v1096_v60 = vld [vmem:[%s13648_s5 + $0xde0] sm:$0xf] }
 0x192   : > { %971 = vst [vmem:[%s13653_s6 + $0x5f4] sm:$0xf] %v970_v61  ;;  %v1098_v61 = vld [vmem:[%s13648_s5 + $0xde8] sm:$0xf] }
 0x193   : > { %973 = vst [vmem:[%s13653_s6 + $0x5f8] sm:$0xf] %v972_v62  ;;  %v1100_v62 = vld [vmem:[%s13648_s5 + $0xdf0] sm:$0xf] }
 0x194   : > { %975 = vst [vmem:[%s13653_s6 + $0x5fc] sm:$0xf] %v974_v63  ;;  %v1102_v63 = vld [vmem:[%s13648_s5 + $0xdf8] sm:$0xf] }
 0x195   : > { %977 = vst [vmem:[%s13653_s6 + $0x600] sm:$0xf] %v976_v0  ;;  %v1104_v0 = vld [vmem:[%s13648_s5 + $0xe00] sm:$0xf] }
 0x196   : > { %979 = vst [vmem:[%s13653_s6 + $0x604] sm:$0xf] %v978_v1  ;;  %v1106_v1 = vld [vmem:[%s13648_s5 + $0xe08] sm:$0xf] }
 0x197   : > { %981 = vst [vmem:[%s13653_s6 + $0x608] sm:$0xf] %v980_v2  ;;  %v1108_v2 = vld [vmem:[%s13648_s5 + $0xe10] sm:$0xf] }
 0x198   : > { %983 = vst [vmem:[%s13653_s6 + $0x60c] sm:$0xf] %v982_v3  ;;  %v1110_v3 = vld [vmem:[%s13648_s5 + $0xe18] sm:$0xf] }
 0x199   : > { %985 = vst [vmem:[%s13653_s6 + $0x610] sm:$0xf] %v984_v4  ;;  %v1112_v4 = vld [vmem:[%s13648_s5 + $0xe20] sm:$0xf] }
 0x19a   : > { %987 = vst [vmem:[%s13653_s6 + $0x614] sm:$0xf] %v986_v5  ;;  %v1114_v5 = vld [vmem:[%s13648_s5 + $0xe28] sm:$0xf] }
 0x19b   : > { %989 = vst [vmem:[%s13653_s6 + $0x618] sm:$0xf] %v988_v6  ;;  %v1116_v6 = vld [vmem:[%s13648_s5 + $0xe30] sm:$0xf] }
 0x19c   : > { %991 = vst [vmem:[%s13653_s6 + $0x61c] sm:$0xf] %v990_v7  ;;  %v1118_v7 = vld [vmem:[%s13648_s5 + $0xe38] sm:$0xf] }
 0x19d   : > { %993 = vst [vmem:[%s13653_s6 + $0x620] sm:$0xf] %v992_v8  ;;  %v1120_v8 = vld [vmem:[%s13648_s5 + $0xe40] sm:$0xf] }
 0x19e   : > { %995 = vst [vmem:[%s13653_s6 + $0x624] sm:$0xf] %v994_v9  ;;  %v1122_v9 = vld [vmem:[%s13648_s5 + $0xe48] sm:$0xf] }
 0x19f   : > { %997 = vst [vmem:[%s13653_s6 + $0x628] sm:$0xf] %v996_v10  ;;  %v1124_v10 = vld [vmem:[%s13648_s5 + $0xe50] sm:$0xf] }
 0x1a0   : > { %999 = vst [vmem:[%s13653_s6 + $0x62c] sm:$0xf] %v998_v11  ;;  %v1126_v11 = vld [vmem:[%s13648_s5 + $0xe58] sm:$0xf] }
 0x1a1   : > { %1001 = vst [vmem:[%s13653_s6 + $0x630] sm:$0xf] %v1000_v12  ;;  %v1128_v12 = vld [vmem:[%s13648_s5 + $0xe60] sm:$0xf] }
 0x1a2   : > { %1003 = vst [vmem:[%s13653_s6 + $0x634] sm:$0xf] %v1002_v13  ;;  %v1130_v13 = vld [vmem:[%s13648_s5 + $0xe68] sm:$0xf] }
 0x1a3   : > { %1005 = vst [vmem:[%s13653_s6 + $0x638] sm:$0xf] %v1004_v14  ;;  %v1132_v14 = vld [vmem:[%s13648_s5 + $0xe70] sm:$0xf] }
 0x1a4   : > { %1007 = vst [vmem:[%s13653_s6 + $0x63c] sm:$0xf] %v1006_v15  ;;  %v1134_v15 = vld [vmem:[%s13648_s5 + $0xe78] sm:$0xf] }
 0x1a5   : > { %1009 = vst [vmem:[%s13653_s6 + $0x640] sm:$0xf] %v1008_v16  ;;  %v1136_v16 = vld [vmem:[%s13648_s5 + $0xe80] sm:$0xf] }
 0x1a6   : > { %1011 = vst [vmem:[%s13653_s6 + $0x644] sm:$0xf] %v1010_v17  ;;  %v1138_v17 = vld [vmem:[%s13648_s5 + $0xe88] sm:$0xf] }
 0x1a7   : > { %1013 = vst [vmem:[%s13653_s6 + $0x648] sm:$0xf] %v1012_v18  ;;  %v1140_v18 = vld [vmem:[%s13648_s5 + $0xe90] sm:$0xf] }
 0x1a8   : > { %1015 = vst [vmem:[%s13653_s6 + $0x64c] sm:$0xf] %v1014_v19  ;;  %v1142_v19 = vld [vmem:[%s13648_s5 + $0xe98] sm:$0xf] }
 0x1a9   : > { %1017 = vst [vmem:[%s13653_s6 + $0x650] sm:$0xf] %v1016_v20  ;;  %v1144_v20 = vld [vmem:[%s13648_s5 + $0xea0] sm:$0xf] }
 0x1aa   : > { %1019 = vst [vmem:[%s13653_s6 + $0x654] sm:$0xf] %v1018_v21  ;;  %v1146_v21 = vld [vmem:[%s13648_s5 + $0xea8] sm:$0xf] }
 0x1ab   : > { %1021 = vst [vmem:[%s13653_s6 + $0x658] sm:$0xf] %v1020_v22  ;;  %v1148_v22 = vld [vmem:[%s13648_s5 + $0xeb0] sm:$0xf] }
 0x1ac   : > { %1023 = vst [vmem:[%s13653_s6 + $0x65c] sm:$0xf] %v1022_v23  ;;  %v1150_v23 = vld [vmem:[%s13648_s5 + $0xeb8] sm:$0xf] }
 0x1ad   : > { %1025 = vst [vmem:[%s13653_s6 + $0x660] sm:$0xf] %v1024_v24  ;;  %v1152_v24 = vld [vmem:[%s13648_s5 + $0xec0] sm:$0xf] }
 0x1ae   : > { %1027 = vst [vmem:[%s13653_s6 + $0x664] sm:$0xf] %v1026_v25  ;;  %v1154_v25 = vld [vmem:[%s13648_s5 + $0xec8] sm:$0xf] }
 0x1af   : > { %1029 = vst [vmem:[%s13653_s6 + $0x668] sm:$0xf] %v1028_v26  ;;  %v1156_v26 = vld [vmem:[%s13648_s5 + $0xed0] sm:$0xf] }
 0x1b0   : > { %1031 = vst [vmem:[%s13653_s6 + $0x66c] sm:$0xf] %v1030_v27  ;;  %v1158_v27 = vld [vmem:[%s13648_s5 + $0xed8] sm:$0xf] }
 0x1b1   : > { %1033 = vst [vmem:[%s13653_s6 + $0x670] sm:$0xf] %v1032_v28  ;;  %v1160_v28 = vld [vmem:[%s13648_s5 + $0xee0] sm:$0xf] }
 0x1b2   : > { %1035 = vst [vmem:[%s13653_s6 + $0x674] sm:$0xf] %v1034_v29  ;;  %v1162_v29 = vld [vmem:[%s13648_s5 + $0xee8] sm:$0xf] }
 0x1b3   : > { %1037 = vst [vmem:[%s13653_s6 + $0x678] sm:$0xf] %v1036_v30  ;;  %v1164_v30 = vld [vmem:[%s13648_s5 + $0xef0] sm:$0xf] }
 0x1b4   : > { %1039 = vst [vmem:[%s13653_s6 + $0x67c] sm:$0xf] %v1038_v31  ;;  %v1166_v31 = vld [vmem:[%s13648_s5 + $0xef8] sm:$0xf] }
 0x1b5   : > { %1041 = vst [vmem:[%s13653_s6 + $0x680] sm:$0xf] %v1040_v32  ;;  %v1168_v32 = vld [vmem:[%s13648_s5 + $0xf00] sm:$0xf] }
 0x1b6   : > { %1043 = vst [vmem:[%s13653_s6 + $0x684] sm:$0xf] %v1042_v33  ;;  %v1170_v33 = vld [vmem:[%s13648_s5 + $0xf08] sm:$0xf] }
 0x1b7   : > { %1045 = vst [vmem:[%s13653_s6 + $0x688] sm:$0xf] %v1044_v34  ;;  %v1172_v34 = vld [vmem:[%s13648_s5 + $0xf10] sm:$0xf] }
 0x1b8   : > { %1047 = vst [vmem:[%s13653_s6 + $0x68c] sm:$0xf] %v1046_v35  ;;  %v1174_v35 = vld [vmem:[%s13648_s5 + $0xf18] sm:$0xf] }
 0x1b9   : > { %1049 = vst [vmem:[%s13653_s6 + $0x690] sm:$0xf] %v1048_v36  ;;  %v1176_v36 = vld [vmem:[%s13648_s5 + $0xf20] sm:$0xf] }
 0x1ba   : > { %1051 = vst [vmem:[%s13653_s6 + $0x694] sm:$0xf] %v1050_v37  ;;  %v1178_v37 = vld [vmem:[%s13648_s5 + $0xf28] sm:$0xf] }
 0x1bb   : > { %1053 = vst [vmem:[%s13653_s6 + $0x698] sm:$0xf] %v1052_v38  ;;  %v1180_v38 = vld [vmem:[%s13648_s5 + $0xf30] sm:$0xf] }
 0x1bc   : > { %1055 = vst [vmem:[%s13653_s6 + $0x69c] sm:$0xf] %v1054_v39  ;;  %v1182_v39 = vld [vmem:[%s13648_s5 + $0xf38] sm:$0xf] }
 0x1bd   : > { %1057 = vst [vmem:[%s13653_s6 + $0x6a0] sm:$0xf] %v1056_v40  ;;  %v1184_v40 = vld [vmem:[%s13648_s5 + $0xf40] sm:$0xf] }
 0x1be   : > { %1059 = vst [vmem:[%s13653_s6 + $0x6a4] sm:$0xf] %v1058_v41  ;;  %v1186_v41 = vld [vmem:[%s13648_s5 + $0xf48] sm:$0xf] }
 0x1bf   : > { %1061 = vst [vmem:[%s13653_s6 + $0x6a8] sm:$0xf] %v1060_v42  ;;  %v1188_v42 = vld [vmem:[%s13648_s5 + $0xf50] sm:$0xf] }
 0x1c0   : > { %1063 = vst [vmem:[%s13653_s6 + $0x6ac] sm:$0xf] %v1062_v43  ;;  %v1190_v43 = vld [vmem:[%s13648_s5 + $0xf58] sm:$0xf] }
 0x1c1   : > { %1065 = vst [vmem:[%s13653_s6 + $0x6b0] sm:$0xf] %v1064_v44  ;;  %v1192_v44 = vld [vmem:[%s13648_s5 + $0xf60] sm:$0xf] }
 0x1c2   : > { %1067 = vst [vmem:[%s13653_s6 + $0x6b4] sm:$0xf] %v1066_v45  ;;  %v1194_v45 = vld [vmem:[%s13648_s5 + $0xf68] sm:$0xf] }
 0x1c3   : > { %1069 = vst [vmem:[%s13653_s6 + $0x6b8] sm:$0xf] %v1068_v46  ;;  %v1196_v46 = vld [vmem:[%s13648_s5 + $0xf70] sm:$0xf] }
 0x1c4   : > { %1071 = vst [vmem:[%s13653_s6 + $0x6bc] sm:$0xf] %v1070_v47  ;;  %v1198_v47 = vld [vmem:[%s13648_s5 + $0xf78] sm:$0xf] }
 0x1c5   : > { %1073 = vst [vmem:[%s13653_s6 + $0x6c0] sm:$0xf] %v1072_v48  ;;  %v1200_v48 = vld [vmem:[%s13648_s5 + $0xf80] sm:$0xf] }
 0x1c6   : > { %1075 = vst [vmem:[%s13653_s6 + $0x6c4] sm:$0xf] %v1074_v49  ;;  %v1202_v49 = vld [vmem:[%s13648_s5 + $0xf88] sm:$0xf] }
 0x1c7   : > { %1077 = vst [vmem:[%s13653_s6 + $0x6c8] sm:$0xf] %v1076_v50  ;;  %v1204_v50 = vld [vmem:[%s13648_s5 + $0xf90] sm:$0xf] }
 0x1c8   : > { %1079 = vst [vmem:[%s13653_s6 + $0x6cc] sm:$0xf] %v1078_v51  ;;  %v1206_v51 = vld [vmem:[%s13648_s5 + $0xf98] sm:$0xf] }
 0x1c9   : > { %1081 = vst [vmem:[%s13653_s6 + $0x6d0] sm:$0xf] %v1080_v52  ;;  %v1208_v52 = vld [vmem:[%s13648_s5 + $0xfa0] sm:$0xf] }
 0x1ca   : > { %1083 = vst [vmem:[%s13653_s6 + $0x6d4] sm:$0xf] %v1082_v53  ;;  %v1210_v53 = vld [vmem:[%s13648_s5 + $0xfa8] sm:$0xf] }
 0x1cb   : > { %1085 = vst [vmem:[%s13653_s6 + $0x6d8] sm:$0xf] %v1084_v54  ;;  %v1212_v54 = vld [vmem:[%s13648_s5 + $0xfb0] sm:$0xf] }
 0x1cc   : > { %1087 = vst [vmem:[%s13653_s6 + $0x6dc] sm:$0xf] %v1086_v55  ;;  %v1214_v55 = vld [vmem:[%s13648_s5 + $0xfb8] sm:$0xf] }
 0x1cd   : > { %1089 = vst [vmem:[%s13653_s6 + $0x6e0] sm:$0xf] %v1088_v56  ;;  %v1216_v56 = vld [vmem:[%s13648_s5 + $0xfc0] sm:$0xf] }
 0x1ce   : > { %1091 = vst [vmem:[%s13653_s6 + $0x6e4] sm:$0xf] %v1090_v57  ;;  %v1218_v57 = vld [vmem:[%s13648_s5 + $0xfc8] sm:$0xf] }
 0x1cf   : > { %1093 = vst [vmem:[%s13653_s6 + $0x6e8] sm:$0xf] %v1092_v58  ;;  %v1220_v58 = vld [vmem:[%s13648_s5 + $0xfd0] sm:$0xf] }
 0x1d0   : > { %1095 = vst [vmem:[%s13653_s6 + $0x6ec] sm:$0xf] %v1094_v59  ;;  %v1222_v59 = vld [vmem:[%s13648_s5 + $0xfd8] sm:$0xf] }
 0x1d1   : > { %1097 = vst [vmem:[%s13653_s6 + $0x6f0] sm:$0xf] %v1096_v60  ;;  %v1224_v60 = vld [vmem:[%s13648_s5 + $0xfe0] sm:$0xf] }
 0x1d2   : > { %1099 = vst [vmem:[%s13653_s6 + $0x6f4] sm:$0xf] %v1098_v61  ;;  %v1226_v61 = vld [vmem:[%s13648_s5 + $0xfe8] sm:$0xf] }
 0x1d3   : > { %1101 = vst [vmem:[%s13653_s6 + $0x6f8] sm:$0xf] %v1100_v62  ;;  %v1228_v62 = vld [vmem:[%s13648_s5 + $0xff0] sm:$0xf] }
 0x1d4   : > { %1103 = vst [vmem:[%s13653_s6 + $0x6fc] sm:$0xf] %v1102_v63  ;;  %v1230_v63 = vld [vmem:[%s13648_s5 + $0xff8] sm:$0xf] }
 0x1d5   : > { %1105 = vst [vmem:[%s13653_s6 + $0x700] sm:$0xf] %v1104_v0  ;;  %v1232_v0 = vld [vmem:[%s13648_s5 + $0x1000] sm:$0xf] }
 0x1d6   : > { %1107 = vst [vmem:[%s13653_s6 + $0x704] sm:$0xf] %v1106_v1  ;;  %v1234_v1 = vld [vmem:[%s13648_s5 + $0x1008] sm:$0xf] }
 0x1d7   : > { %1109 = vst [vmem:[%s13653_s6 + $0x708] sm:$0xf] %v1108_v2  ;;  %v1236_v2 = vld [vmem:[%s13648_s5 + $0x1010] sm:$0xf] }
 0x1d8   : > { %1111 = vst [vmem:[%s13653_s6 + $0x70c] sm:$0xf] %v1110_v3  ;;  %v1238_v3 = vld [vmem:[%s13648_s5 + $0x1018] sm:$0xf] }
 0x1d9   : > { %1113 = vst [vmem:[%s13653_s6 + $0x710] sm:$0xf] %v1112_v4  ;;  %v1240_v4 = vld [vmem:[%s13648_s5 + $0x1020] sm:$0xf] }
 0x1da   : > { %1115 = vst [vmem:[%s13653_s6 + $0x714] sm:$0xf] %v1114_v5  ;;  %v1242_v5 = vld [vmem:[%s13648_s5 + $0x1028] sm:$0xf] }
 0x1db   : > { %1117 = vst [vmem:[%s13653_s6 + $0x718] sm:$0xf] %v1116_v6  ;;  %v1244_v6 = vld [vmem:[%s13648_s5 + $0x1030] sm:$0xf] }
 0x1dc   : > { %1119 = vst [vmem:[%s13653_s6 + $0x71c] sm:$0xf] %v1118_v7  ;;  %v1246_v7 = vld [vmem:[%s13648_s5 + $0x1038] sm:$0xf] }
 0x1dd   : > { %1121 = vst [vmem:[%s13653_s6 + $0x720] sm:$0xf] %v1120_v8  ;;  %v1248_v8 = vld [vmem:[%s13648_s5 + $0x1040] sm:$0xf] }
 0x1de   : > { %1123 = vst [vmem:[%s13653_s6 + $0x724] sm:$0xf] %v1122_v9  ;;  %v1250_v9 = vld [vmem:[%s13648_s5 + $0x1048] sm:$0xf] }
 0x1df   : > { %1125 = vst [vmem:[%s13653_s6 + $0x728] sm:$0xf] %v1124_v10  ;;  %v1252_v10 = vld [vmem:[%s13648_s5 + $0x1050] sm:$0xf] }
 0x1e0   : > { %1127 = vst [vmem:[%s13653_s6 + $0x72c] sm:$0xf] %v1126_v11  ;;  %v1254_v11 = vld [vmem:[%s13648_s5 + $0x1058] sm:$0xf] }
 0x1e1   : > { %1129 = vst [vmem:[%s13653_s6 + $0x730] sm:$0xf] %v1128_v12  ;;  %v1256_v12 = vld [vmem:[%s13648_s5 + $0x1060] sm:$0xf] }
 0x1e2   : > { %1131 = vst [vmem:[%s13653_s6 + $0x734] sm:$0xf] %v1130_v13  ;;  %v1258_v13 = vld [vmem:[%s13648_s5 + $0x1068] sm:$0xf] }
 0x1e3   : > { %1133 = vst [vmem:[%s13653_s6 + $0x738] sm:$0xf] %v1132_v14  ;;  %v1260_v14 = vld [vmem:[%s13648_s5 + $0x1070] sm:$0xf] }
 0x1e4   : > { %1135 = vst [vmem:[%s13653_s6 + $0x73c] sm:$0xf] %v1134_v15  ;;  %v1262_v15 = vld [vmem:[%s13648_s5 + $0x1078] sm:$0xf] }
 0x1e5   : > { %1137 = vst [vmem:[%s13653_s6 + $0x740] sm:$0xf] %v1136_v16  ;;  %v1264_v16 = vld [vmem:[%s13648_s5 + $0x1080] sm:$0xf] }
 0x1e6   : > { %1139 = vst [vmem:[%s13653_s6 + $0x744] sm:$0xf] %v1138_v17  ;;  %v1266_v17 = vld [vmem:[%s13648_s5 + $0x1088] sm:$0xf] }
 0x1e7   : > { %1141 = vst [vmem:[%s13653_s6 + $0x748] sm:$0xf] %v1140_v18  ;;  %v1268_v18 = vld [vmem:[%s13648_s5 + $0x1090] sm:$0xf] }
 0x1e8   : > { %1143 = vst [vmem:[%s13653_s6 + $0x74c] sm:$0xf] %v1142_v19  ;;  %v1270_v19 = vld [vmem:[%s13648_s5 + $0x1098] sm:$0xf] }
 0x1e9   : > { %1145 = vst [vmem:[%s13653_s6 + $0x750] sm:$0xf] %v1144_v20  ;;  %v1272_v20 = vld [vmem:[%s13648_s5 + $0x10a0] sm:$0xf] }
 0x1ea   : > { %1147 = vst [vmem:[%s13653_s6 + $0x754] sm:$0xf] %v1146_v21  ;;  %v1274_v21 = vld [vmem:[%s13648_s5 + $0x10a8] sm:$0xf] }
 0x1eb   : > { %1149 = vst [vmem:[%s13653_s6 + $0x758] sm:$0xf] %v1148_v22  ;;  %v1276_v22 = vld [vmem:[%s13648_s5 + $0x10b0] sm:$0xf] }
 0x1ec   : > { %1151 = vst [vmem:[%s13653_s6 + $0x75c] sm:$0xf] %v1150_v23  ;;  %v1278_v23 = vld [vmem:[%s13648_s5 + $0x10b8] sm:$0xf] }
 0x1ed   : > { %1153 = vst [vmem:[%s13653_s6 + $0x760] sm:$0xf] %v1152_v24  ;;  %v1280_v24 = vld [vmem:[%s13648_s5 + $0x10c0] sm:$0xf] }
 0x1ee   : > { %1155 = vst [vmem:[%s13653_s6 + $0x764] sm:$0xf] %v1154_v25  ;;  %v1282_v25 = vld [vmem:[%s13648_s5 + $0x10c8] sm:$0xf] }
 0x1ef   : > { %1157 = vst [vmem:[%s13653_s6 + $0x768] sm:$0xf] %v1156_v26  ;;  %v1284_v26 = vld [vmem:[%s13648_s5 + $0x10d0] sm:$0xf] }
 0x1f0   : > { %1159 = vst [vmem:[%s13653_s6 + $0x76c] sm:$0xf] %v1158_v27  ;;  %v1286_v27 = vld [vmem:[%s13648_s5 + $0x10d8] sm:$0xf] }
 0x1f1   : > { %1161 = vst [vmem:[%s13653_s6 + $0x770] sm:$0xf] %v1160_v28  ;;  %v1288_v28 = vld [vmem:[%s13648_s5 + $0x10e0] sm:$0xf] }
 0x1f2   : > { %1163 = vst [vmem:[%s13653_s6 + $0x774] sm:$0xf] %v1162_v29  ;;  %v1290_v29 = vld [vmem:[%s13648_s5 + $0x10e8] sm:$0xf] }
 0x1f3   : > { %1165 = vst [vmem:[%s13653_s6 + $0x778] sm:$0xf] %v1164_v30  ;;  %v1292_v30 = vld [vmem:[%s13648_s5 + $0x10f0] sm:$0xf] }
 0x1f4   : > { %1167 = vst [vmem:[%s13653_s6 + $0x77c] sm:$0xf] %v1166_v31  ;;  %v1294_v31 = vld [vmem:[%s13648_s5 + $0x10f8] sm:$0xf] }
 0x1f5   : > { %1169 = vst [vmem:[%s13653_s6 + $0x780] sm:$0xf] %v1168_v32  ;;  %v1296_v32 = vld [vmem:[%s13648_s5 + $0x1100] sm:$0xf] }
 0x1f6   : > { %1171 = vst [vmem:[%s13653_s6 + $0x784] sm:$0xf] %v1170_v33  ;;  %v1298_v33 = vld [vmem:[%s13648_s5 + $0x1108] sm:$0xf] }
 0x1f7   : > { %1173 = vst [vmem:[%s13653_s6 + $0x788] sm:$0xf] %v1172_v34  ;;  %v1300_v34 = vld [vmem:[%s13648_s5 + $0x1110] sm:$0xf] }
 0x1f8   : > { %1175 = vst [vmem:[%s13653_s6 + $0x78c] sm:$0xf] %v1174_v35  ;;  %v1302_v35 = vld [vmem:[%s13648_s5 + $0x1118] sm:$0xf] }
 0x1f9   : > { %1177 = vst [vmem:[%s13653_s6 + $0x790] sm:$0xf] %v1176_v36  ;;  %v1304_v36 = vld [vmem:[%s13648_s5 + $0x1120] sm:$0xf] }
 0x1fa   : > { %1179 = vst [vmem:[%s13653_s6 + $0x794] sm:$0xf] %v1178_v37  ;;  %v1306_v37 = vld [vmem:[%s13648_s5 + $0x1128] sm:$0xf] }
 0x1fb   : > { %1181 = vst [vmem:[%s13653_s6 + $0x798] sm:$0xf] %v1180_v38  ;;  %v1308_v38 = vld [vmem:[%s13648_s5 + $0x1130] sm:$0xf] }
 0x1fc   : > { %1183 = vst [vmem:[%s13653_s6 + $0x79c] sm:$0xf] %v1182_v39  ;;  %v1310_v39 = vld [vmem:[%s13648_s5 + $0x1138] sm:$0xf] }
 0x1fd   : > { %1185 = vst [vmem:[%s13653_s6 + $0x7a0] sm:$0xf] %v1184_v40  ;;  %v1312_v40 = vld [vmem:[%s13648_s5 + $0x1140] sm:$0xf] }
 0x1fe   : > { %1187 = vst [vmem:[%s13653_s6 + $0x7a4] sm:$0xf] %v1186_v41  ;;  %v1314_v41 = vld [vmem:[%s13648_s5 + $0x1148] sm:$0xf] }
 0x1ff   : > { %1189 = vst [vmem:[%s13653_s6 + $0x7a8] sm:$0xf] %v1188_v42  ;;  %v1316_v42 = vld [vmem:[%s13648_s5 + $0x1150] sm:$0xf] }
 0x200   : > { %1191 = vst [vmem:[%s13653_s6 + $0x7ac] sm:$0xf] %v1190_v43  ;;  %v1318_v43 = vld [vmem:[%s13648_s5 + $0x1158] sm:$0xf] }
 0x201   : > { %1193 = vst [vmem:[%s13653_s6 + $0x7b0] sm:$0xf] %v1192_v44  ;;  %v1320_v44 = vld [vmem:[%s13648_s5 + $0x1160] sm:$0xf] }
 0x202   : > { %1195 = vst [vmem:[%s13653_s6 + $0x7b4] sm:$0xf] %v1194_v45  ;;  %v1322_v45 = vld [vmem:[%s13648_s5 + $0x1168] sm:$0xf] }
 0x203   : > { %1197 = vst [vmem:[%s13653_s6 + $0x7b8] sm:$0xf] %v1196_v46  ;;  %v1324_v46 = vld [vmem:[%s13648_s5 + $0x1170] sm:$0xf] }
 0x204   : > { %1199 = vst [vmem:[%s13653_s6 + $0x7bc] sm:$0xf] %v1198_v47  ;;  %v1326_v47 = vld [vmem:[%s13648_s5 + $0x1178] sm:$0xf] }
 0x205   : > { %1201 = vst [vmem:[%s13653_s6 + $0x7c0] sm:$0xf] %v1200_v48  ;;  %v1328_v48 = vld [vmem:[%s13648_s5 + $0x1180] sm:$0xf] }
 0x206   : > { %1203 = vst [vmem:[%s13653_s6 + $0x7c4] sm:$0xf] %v1202_v49  ;;  %v1330_v49 = vld [vmem:[%s13648_s5 + $0x1188] sm:$0xf] }
 0x207   : > { %1205 = vst [vmem:[%s13653_s6 + $0x7c8] sm:$0xf] %v1204_v50  ;;  %v1332_v50 = vld [vmem:[%s13648_s5 + $0x1190] sm:$0xf] }
 0x208   : > { %1207 = vst [vmem:[%s13653_s6 + $0x7cc] sm:$0xf] %v1206_v51  ;;  %v1334_v51 = vld [vmem:[%s13648_s5 + $0x1198] sm:$0xf] }
 0x209   : > { %1209 = vst [vmem:[%s13653_s6 + $0x7d0] sm:$0xf] %v1208_v52  ;;  %v1336_v52 = vld [vmem:[%s13648_s5 + $0x11a0] sm:$0xf] }
 0x20a   : > { %1211 = vst [vmem:[%s13653_s6 + $0x7d4] sm:$0xf] %v1210_v53  ;;  %v1338_v53 = vld [vmem:[%s13648_s5 + $0x11a8] sm:$0xf] }
 0x20b   : > { %1213 = vst [vmem:[%s13653_s6 + $0x7d8] sm:$0xf] %v1212_v54  ;;  %v1340_v54 = vld [vmem:[%s13648_s5 + $0x11b0] sm:$0xf] }
 0x20c   : > { %1215 = vst [vmem:[%s13653_s6 + $0x7dc] sm:$0xf] %v1214_v55  ;;  %v1342_v55 = vld [vmem:[%s13648_s5 + $0x11b8] sm:$0xf] }
 0x20d   : > { %1217 = vst [vmem:[%s13653_s6 + $0x7e0] sm:$0xf] %v1216_v56  ;;  %v1344_v56 = vld [vmem:[%s13648_s5 + $0x11c0] sm:$0xf] }
 0x20e   : > { %1219 = vst [vmem:[%s13653_s6 + $0x7e4] sm:$0xf] %v1218_v57  ;;  %v1346_v57 = vld [vmem:[%s13648_s5 + $0x11c8] sm:$0xf] }
 0x20f   : > { %1221 = vst [vmem:[%s13653_s6 + $0x7e8] sm:$0xf] %v1220_v58  ;;  %v1348_v58 = vld [vmem:[%s13648_s5 + $0x11d0] sm:$0xf] }
 0x210   : > { %1223 = vst [vmem:[%s13653_s6 + $0x7ec] sm:$0xf] %v1222_v59  ;;  %v1350_v59 = vld [vmem:[%s13648_s5 + $0x11d8] sm:$0xf] }
 0x211   : > { %1225 = vst [vmem:[%s13653_s6 + $0x7f0] sm:$0xf] %v1224_v60  ;;  %v1352_v60 = vld [vmem:[%s13648_s5 + $0x11e0] sm:$0xf] }
 0x212   : > { %1227 = vst [vmem:[%s13653_s6 + $0x7f4] sm:$0xf] %v1226_v61  ;;  %v1354_v61 = vld [vmem:[%s13648_s5 + $0x11e8] sm:$0xf] }
 0x213   : > { %1229 = vst [vmem:[%s13653_s6 + $0x7f8] sm:$0xf] %v1228_v62  ;;  %v1356_v62 = vld [vmem:[%s13648_s5 + $0x11f0] sm:$0xf] }
 0x214   : > { %1231 = vst [vmem:[%s13653_s6 + $0x7fc] sm:$0xf] %v1230_v63  ;;  %v1358_v63 = vld [vmem:[%s13648_s5 + $0x11f8] sm:$0xf] }
 0x215   : > { %1233 = vst [vmem:[%s13653_s6 + $0x800] sm:$0xf] %v1232_v0 }
 0x216   : > { %1235 = vst [vmem:[%s13653_s6 + $0x804] sm:$0xf] %v1234_v1 }
 0x217   : > { %1237 = vst [vmem:[%s13653_s6 + $0x808] sm:$0xf] %v1236_v2 }
 0x218   : > { %1239 = vst [vmem:[%s13653_s6 + $0x80c] sm:$0xf] %v1238_v3 }
 0x219   : > { %1241 = vst [vmem:[%s13653_s6 + $0x810] sm:$0xf] %v1240_v4 }
 0x21a   : > { %1243 = vst [vmem:[%s13653_s6 + $0x814] sm:$0xf] %v1242_v5 }
 0x21b   : > { %1245 = vst [vmem:[%s13653_s6 + $0x818] sm:$0xf] %v1244_v6 }
 0x21c   : > { %1247 = vst [vmem:[%s13653_s6 + $0x81c] sm:$0xf] %v1246_v7 }
 0x21d   : > { %1249 = vst [vmem:[%s13653_s6 + $0x820] sm:$0xf] %v1248_v8 }
 0x21e   : > { %1251 = vst [vmem:[%s13653_s6 + $0x824] sm:$0xf] %v1250_v9 }
 0x21f   : > { %1253 = vst [vmem:[%s13653_s6 + $0x828] sm:$0xf] %v1252_v10 }
 0x220   : > { %1255 = vst [vmem:[%s13653_s6 + $0x82c] sm:$0xf] %v1254_v11 }
 0x221   : > { %1257 = vst [vmem:[%s13653_s6 + $0x830] sm:$0xf] %v1256_v12 }
 0x222   : > { %1259 = vst [vmem:[%s13653_s6 + $0x834] sm:$0xf] %v1258_v13 }
 0x223   : > { %1261 = vst [vmem:[%s13653_s6 + $0x838] sm:$0xf] %v1260_v14 }
 0x224   : > { %1263 = vst [vmem:[%s13653_s6 + $0x83c] sm:$0xf] %v1262_v15 }
 0x225   : > { %1265 = vst [vmem:[%s13653_s6 + $0x840] sm:$0xf] %v1264_v16 }
 0x226   : > { %1267 = vst [vmem:[%s13653_s6 + $0x844] sm:$0xf] %v1266_v17 }
 0x227   : > { %1269 = vst [vmem:[%s13653_s6 + $0x848] sm:$0xf] %v1268_v18 }
 0x228   : > { %1271 = vst [vmem:[%s13653_s6 + $0x84c] sm:$0xf] %v1270_v19 }
 0x229   : > { %1273 = vst [vmem:[%s13653_s6 + $0x850] sm:$0xf] %v1272_v20 }
 0x22a   : > { %1275 = vst [vmem:[%s13653_s6 + $0x854] sm:$0xf] %v1274_v21 }
 0x22b   : > { %1277 = vst [vmem:[%s13653_s6 + $0x858] sm:$0xf] %v1276_v22 }
 0x22c   : > { %1279 = vst [vmem:[%s13653_s6 + $0x85c] sm:$0xf] %v1278_v23 }
 0x22d   : > { %1281 = vst [vmem:[%s13653_s6 + $0x860] sm:$0xf] %v1280_v24 }
 0x22e   : > { %1283 = vst [vmem:[%s13653_s6 + $0x864] sm:$0xf] %v1282_v25 }
 0x22f   : > { %1285 = vst [vmem:[%s13653_s6 + $0x868] sm:$0xf] %v1284_v26 }
 0x230   : > { %1287 = vst [vmem:[%s13653_s6 + $0x86c] sm:$0xf] %v1286_v27 }
 0x231   : > { %1289 = vst [vmem:[%s13653_s6 + $0x870] sm:$0xf] %v1288_v28 }
 0x232   : > { %1291 = vst [vmem:[%s13653_s6 + $0x874] sm:$0xf] %v1290_v29 }
 0x233   : > { %1293 = vst [vmem:[%s13653_s6 + $0x878] sm:$0xf] %v1292_v30 }
 0x234   : > { %1295 = vst [vmem:[%s13653_s6 + $0x87c] sm:$0xf] %v1294_v31 }
 0x235   : > { %1297 = vst [vmem:[%s13653_s6 + $0x880] sm:$0xf] %v1296_v32 }
 0x236   : > { %1299 = vst [vmem:[%s13653_s6 + $0x884] sm:$0xf] %v1298_v33 }
 0x237   : > { %1301 = vst [vmem:[%s13653_s6 + $0x888] sm:$0xf] %v1300_v34 }
 0x238   : > { %1303 = vst [vmem:[%s13653_s6 + $0x88c] sm:$0xf] %v1302_v35 }
 0x239   : > { %1305 = vst [vmem:[%s13653_s6 + $0x890] sm:$0xf] %v1304_v36 }
 0x23a   : > { %1307 = vst [vmem:[%s13653_s6 + $0x894] sm:$0xf] %v1306_v37 }
 0x23b   : > { %1309 = vst [vmem:[%s13653_s6 + $0x898] sm:$0xf] %v1308_v38 }
 0x23c   : > { %1311 = vst [vmem:[%s13653_s6 + $0x89c] sm:$0xf] %v1310_v39 }
 0x23d   : > { %1313 = vst [vmem:[%s13653_s6 + $0x8a0] sm:$0xf] %v1312_v40 }
 0x23e   : > { %1315 = vst [vmem:[%s13653_s6 + $0x8a4] sm:$0xf] %v1314_v41 }
 0x23f   : > { %1317 = vst [vmem:[%s13653_s6 + $0x8a8] sm:$0xf] %v1316_v42 }
 0x240   : > { %1319 = vst [vmem:[%s13653_s6 + $0x8ac] sm:$0xf] %v1318_v43 }
 0x241   : > { %1321 = vst [vmem:[%s13653_s6 + $0x8b0] sm:$0xf] %v1320_v44 }
 0x242   : > { %1323 = vst [vmem:[%s13653_s6 + $0x8b4] sm:$0xf] %v1322_v45 }
 0x243   : > { %1325 = vst [vmem:[%s13653_s6 + $0x8b8] sm:$0xf] %v1324_v46 }
 0x244   : > { %1327 = vst [vmem:[%s13653_s6 + $0x8bc] sm:$0xf] %v1326_v47 }
 0x245   : > { %1329 = vst [vmem:[%s13653_s6 + $0x8c0] sm:$0xf] %v1328_v48 }
 0x246   : > { %1331 = vst [vmem:[%s13653_s6 + $0x8c4] sm:$0xf] %v1330_v49 }
 0x247   : > { %1333 = vst [vmem:[%s13653_s6 + $0x8c8] sm:$0xf] %v1332_v50 }
 0x248   : > { %1335 = vst [vmem:[%s13653_s6 + $0x8cc] sm:$0xf] %v1334_v51 }
 0x249   : > { %1337 = vst [vmem:[%s13653_s6 + $0x8d0] sm:$0xf] %v1336_v52 }
 0x24a   : > { %1339 = vst [vmem:[%s13653_s6 + $0x8d4] sm:$0xf] %v1338_v53 }
 0x24b   : > { %1341 = vst [vmem:[%s13653_s6 + $0x8d8] sm:$0xf] %v1340_v54 }
 0x24c   : > { %1343 = vst [vmem:[%s13653_s6 + $0x8dc] sm:$0xf] %v1342_v55 }
 0x24d   : > { %1345 = vst [vmem:[%s13653_s6 + $0x8e0] sm:$0xf] %v1344_v56 }
 0x24e   : > { %1347 = vst [vmem:[%s13653_s6 + $0x8e4] sm:$0xf] %v1346_v57 }
 0x24f   : > { %1349 = vst [vmem:[%s13653_s6 + $0x8e8] sm:$0xf] %v1348_v58 }
 0x250   : > { %1351 = vst [vmem:[%s13653_s6 + $0x8ec] sm:$0xf] %v1350_v59 }
 0x251   : > { %1353 = vst [vmem:[%s13653_s6 + $0x8f0] sm:$0xf] %v1352_v60 }
 0x252   : > { %1355 = vst [vmem:[%s13653_s6 + $0x8f4] sm:$0xf] %v1354_v61 }
 0x253   : > { %1357 = vst [vmem:[%s13653_s6 + $0x8f8] sm:$0xf] %v1356_v62 }
 0x254   : > { %1359 = vst [vmem:[%s13653_s6 + $0x8fc] sm:$0xf] %v1358_v63 }
 0x255 PF: > { %p10745_p8 = scmp.ge.s32.totalorder %s13573_s19, 1  ;;  %p4876_p9 = scmp.lt.s32.totalorder %s13573_s19, 3 }
 0x257   : > { %p4877_p10 = pnand %p10745_p8, %p4876_p9 }
 0x258   : > { %s4883_s7 = sand.u32 (!%p4877_p10), 1, %s13557_s15   ;;  %p4923_p11 = scmp.lt.s32.totalorder (!%p4877_p10), %s13565_s17, 1 }
 0x259   : > { %4880 = sbr.rel (%p4877_p10) target bundleno = 1899 (0x76b), region = 84 }
 0x25a   : > { %s13491_s8 = smul.u32 (!%p4877_p10), 2304, %s4883_s7 }
 0x25b   : > { %s13492_s6 = smul.u32 (!%p4877_p10), 56, %s4883_s7 }
 0x25c   : > { %s14809_s9 = scalar_lea.vmem (!%p4877_p10), [#allocation3], %s13491_s8 }
 0x25d   : > { %s17046_s15 = scalar_lea.vmem (!%p4877_p10), [#allocation4], %s13492_s6 }
 0x25e   : > { %v13168_v0 = vld [vmem:[%s14809_s9 + $0x38] sm:$0xff]  ;;  %v13167_v4 = vld [vmem:[%s14809_s9 + $0x30] sm:$0xff]  ;;  %v13166_v8 = vld [vmem:[%s14809_s9 + $0x28] sm:$0xff]  ;;  %s4924_s26 = scalar_select %p4923_p11, %s13565_s17, 1 }
 0x25f   : > { %v13176_v1 = vld [vmem:[%s14809_s9 + $0x78] sm:$0xff]  ;;  %8745 = vmatpush.bf16.msra.mxu0 %v13168_v0  ;;  %v13175_v5 = vld [vmem:[%s14809_s9 + $0x70] sm:$0xff]  ;;  %v13174_v9 = vld [vmem:[%s14809_s9 + $0x68] sm:$0xff]  ;;  %s12906_s7 = sshll.u32 (%p13635_p6), %s13565_s17, 2 }
 0x260   : > { %v13184_v2 = vld [vmem:[%s14809_s9 + $0xb8] sm:$0xff]  ;;  %8789 = vmatpush.bf16.msra.mxu1 %v13176_v1  ;;  %v13183_v6 = vld [vmem:[%s14809_s9 + $0xb0] sm:$0xff]  ;;  %v13182_v10 = vld [vmem:[%s14809_s9 + $0xa8] sm:$0xff]  ;;  %s4925_s29 = scalar_lea.vmem %s17092_s2, %s4924_s26  ;;  %s4928_s5 = scalar_lea.vmem %s17093_s3, %s4924_s26 }
 0x261   : > { %v13192_v3 = vld [vmem:[%s14809_s9 + $0xf8] sm:$0xff]  ;;  %8833 = vmatpush.bf16.msra.mxu2 %v13184_v2  ;;  %v13191_v7 = vld [vmem:[%s14809_s9 + $0xf0] sm:$0xff]  ;;  %v13190_v11 = vld [vmem:[%s14809_s9 + $0xe8] sm:$0xff]  ;;  %s10535_s11 = scalar_lea.vmem (%p13635_p6), %s17094_s4, %s12906_s7 }
 0x262   : > { %8877 = vmatpush.bf16.msra.mxu3 %v13192_v3  ;;  %v13165_v12 = vld [vmem:[%s14809_s9 + $0x20] sm:$0xff]  ;;  %v13164_v16 = vld [vmem:[%s14809_s9 + $0x18] sm:$0xff]  ;;  %v13163_v20 = vld [vmem:[%s14809_s9 + $0x10] sm:$0xff] }
 0x263   : > { %8746 = vmatpush.bf16.msra.mxu0 %v13167_v4  ;;  %v13173_v13 = vld [vmem:[%s14809_s9 + $0x60] sm:$0xff]  ;;  %v13172_v17 = vld [vmem:[%s14809_s9 + $0x58] sm:$0xff]  ;;  %v13171_v21 = vld [vmem:[%s14809_s9 + $0x50] sm:$0xff] }
 0x264   : > { %8790 = vmatpush.bf16.msra.mxu1 %v13175_v5  ;;  %v13181_v14 = vld [vmem:[%s14809_s9 + $0xa0] sm:$0xff]  ;;  %v13180_v18 = vld [vmem:[%s14809_s9 + $0x98] sm:$0xff]  ;;  %v13179_v22 = vld [vmem:[%s14809_s9 + $0x90] sm:$0xff] }
 0x265   : > { %8834 = vmatpush.bf16.msra.mxu2 %v13183_v6  ;;  %v13189_v15 = vld [vmem:[%s14809_s9 + $0xe0] sm:$0xff]  ;;  %v13188_v19 = vld [vmem:[%s14809_s9 + $0xd8] sm:$0xff]  ;;  %v13187_v23 = vld [vmem:[%s14809_s9 + $0xd0] sm:$0xff] }
 0x266   : > { %8878 = vmatpush.bf16.msra.mxu3 %v13191_v7  ;;  %v13162_v24 = vld [vmem:[%s14809_s9 + $0x8] sm:$0xff]  ;;  %v13161_v28 = vld [vmem:[%s14809_s9] sm:$0xff]  ;;  %v12927_v30 = vld [vmem:[%s17090_s0 + $0x8c] sm:$0xf0] }
 0x267   : > { %8747 = vmatpush.bf16.msra.mxu0 %v13166_v8  ;;  %v13170_v25 = vld [vmem:[%s14809_s9 + $0x48] sm:$0xff]  ;;  %v10748_v29 = vld [vmem:[%s17090_s0] sm:$0xf]  ;;  %v12909_v34 = vld [vmem:[%s17090_s0 + $0x4] sm:$0xf] }
 0x268   : > { %8791 = vmatpush.bf16.msra.mxu1 %v13174_v9  ;;  %v13178_v26 = vld [vmem:[%s14809_s9 + $0x88] sm:$0xff]  ;;  %v13169_v31 = vld [vmem:[%s14809_s9 + $0x40] sm:$0xff]  ;;  %v10750_v35 = vld [vmem:[%s17090_s0 + $0x90] sm:$0xf0]  ;;  %v10749_v42 = vor.u32 %v12927_v30, %v10748_v29 }
 0x269   : > { %8835 = vmatpush.bf16.msra.mxu2 %v13182_v10  ;;  %v13186_v27 = vld [vmem:[%s14809_s9 + $0xc8] sm:$0xff]  ;;  %v13177_v32 = vld [vmem:[%s14809_s9 + $0x80] sm:$0xff]  ;;  %v12928_v37 = vld [vmem:[%s17090_s0 + $0x94] sm:$0xf0]  ;;  %v10753_v43 = vor.u32 %v12909_v34, %v10750_v35 }
 0x26a   : > { %8879 = vmatpush.bf16.msra.mxu3 %v13190_v11  ;;  %v13185_v33 = vld [vmem:[%s14809_s9 + $0xc0] sm:$0xff]  ;;  %v10756_v36 = vld [vmem:[%s17090_s0 + $0x8] sm:$0xf]  ;;  %v12910_v38 = vld [vmem:[%s17090_s0 + $0xc] sm:$0xf] }
 0x26b   : > { %8748 = vmatpush.bf16.msra.mxu0 %v13165_v12  ;;  %v10758_v39 = vld [vmem:[%s17090_s0 + $0x98] sm:$0xf0]  ;;  %v10757_v44 = vor.u32 %v12928_v37, %v10756_v36  ;;  %v13215_v48 = vld [vmem:[%s14809_s9 + $0x1b0] sm:$0xff]  ;;  %v13214_v52 = vld [vmem:[%s14809_s9 + $0x1a8] sm:$0xff] }
 0x26c   : > { %8792 = vmatpush.bf16.msra.mxu1 %v13173_v13  ;;  %v13216_v40 = vld [vmem:[%s14809_s9 + $0x1b8] sm:$0xff]  ;;  %v10761_v45 = vor.u32 %v12910_v38, %v10758_v39  ;;  %v13199_v49 = vld [vmem:[%s14809_s9 + $0x130] sm:$0xff]  ;;  %v13198_v53 = vld [vmem:[%s14809_s9 + $0x128] sm:$0xff] }
 0x26d   : > { %8836 = vmatpush.bf16.msra.mxu2 %v13181_v14  ;;  %v13200_v41 = vld [vmem:[%s14809_s9 + $0x138] sm:$0xff]  ;;  %v13223_v50 = vld [vmem:[%s14809_s9 + $0x1f0] sm:$0xff]  ;;  %v13222_v54 = vld [vmem:[%s14809_s9 + $0x1e8] sm:$0xff] }
 0x26e   : > { %8880 = vmatpush.bf16.msra.mxu3 %v13189_v15  ;;  %v13224_v46 = vld [vmem:[%s14809_s9 + $0x1f8] sm:$0xff]  ;;  %v13207_v51 = vld [vmem:[%s14809_s9 + $0x170] sm:$0xff]  ;;  %v13206_v55 = vld [vmem:[%s14809_s9 + $0x168] sm:$0xff] }
 0x26f   : > { %8749 = vmatpush.bf16.msra.mxu0 %v13164_v16  ;;  %v13208_v47 = vld [vmem:[%s14809_s9 + $0x178] sm:$0xff]  ;;  %v10892_v56 = vld [vmem:[%s17090_s0 + $0x120] sm:$0xf]  ;;  %v12963_v59 = vld [vmem:[%s17090_s0 + $0x1ac] sm:$0xf0] }
 0x270   : > { %8793 = vmatpush.bf16.msra.mxu1 %v13172_v17  ;;  %v13213_v57 = vld [vmem:[%s14809_s9 + $0x1a0] sm:$0xff]  ;;  %v10894_v61 = vld [vmem:[%s17090_s0 + $0x1b0] sm:$0xf0]  ;;  %v10900_v62 = vld [vmem:[%s17090_s0 + $0x128] sm:$0xf]  ;;  %v10893_v4 = vor.u32 %v12963_v59, %v10892_v56 }
 0x271   : > { %8837 = vmatpush.bf16.msra.mxu2 %v13180_v18  ;;  %v13197_v58 = vld [vmem:[%s14809_s9 + $0x120] sm:$0xff]  ;;  %v12964_v63 = vld [vmem:[%s17090_s0 + $0x1b4] sm:$0xf0]  ;;  %v12946_v0 = vld [vmem:[%s17090_s0 + $0x12c] sm:$0xf] }
 0x272   : > { %8881 = vmatpush.bf16.msra.mxu3 %v13188_v19  ;;  %v12945_v60 = vld [vmem:[%s17090_s0 + $0x124] sm:$0xf]  ;;  %v10902_v1 = vld [vmem:[%s17090_s0 + $0x1b8] sm:$0xf0]  ;;  %v10901_v6 = vor.u32 %v12964_v63, %v10900_v62  ;;  %v11036_v12 = vld [vmem:[%s17090_s0 + $0x240] sm:$0xf] }
 0x273   : > { %8750 = vmatpush.bf16.msra.mxu0 %v13163_v20  ;;  %v13221_v2 = vld [vmem:[%s14809_s9 + $0x1e0] sm:$0xff]  ;;  %v10897_v5 = vor.u32 %v12945_v60, %v10894_v61  ;;  %v10905_v7 = vor.u32 %v12946_v0, %v10902_v1  ;;  %v13212_v8 = vld [vmem:[%s14809_s9 + $0x198] sm:$0xff]  ;;  %v12999_v13 = vld [vmem:[%s17090_s0 + $0x2cc] sm:$0xf0] }
 0x274   : > { %8794 = vmatpush.bf16.msra.mxu1 %v13171_v21  ;;  %v13205_v3 = vld [vmem:[%s14809_s9 + $0x160] sm:$0xff]  ;;  %v13196_v9 = vld [vmem:[%s14809_s9 + $0x118] sm:$0xff]  ;;  %v11038_v15 = vld [vmem:[%s17090_s0 + $0x2d0] sm:$0xf0]  ;;  %v11037_v20 = vor.u32 %v12999_v13, %v11036_v12 }
 0x275   : > { %8838 = vmatpush.bf16.msra.mxu2 %v13179_v22  ;;  %v13220_v10 = vld [vmem:[%s14809_s9 + $0x1d8] sm:$0xff]  ;;  %v12981_v14 = vld [vmem:[%s17090_s0 + $0x244] sm:$0xf]  ;;  %v11044_v16 = vld [vmem:[%s17090_s0 + $0x248] sm:$0xf] }
 0x276   : > { %8882 = vmatpush.bf16.msra.mxu3 %v13187_v23  ;;  %v13204_v11 = vld [vmem:[%s14809_s9 + $0x158] sm:$0xff]  ;;  %v12982_v18 = vld [vmem:[%s17090_s0 + $0x24c] sm:$0xf]  ;;  %v11041_v21 = vor.u32 %v12981_v14, %v11038_v15  ;;  %v13035_v29 = vld [vmem:[%s17090_s0 + $0x3ec] sm:$0xf0] }
 0x277   : > { %8751 = vmatpush.bf16.msra.mxu0 %v13162_v24  ;;  %v13000_v17 = vld [vmem:[%s17090_s0 + $0x2d4] sm:$0xf0]  ;;  %v11046_v19 = vld [vmem:[%s17090_s0 + $0x2d8] sm:$0xf0]  ;;  %v13211_v24 = vld [vmem:[%s14809_s9 + $0x190] sm:$0xff] }
 0x278   : > { %8795 = vmatpush.bf16.msra.mxu1 %v13170_v25  ;;  %v11045_v22 = vor.u32 %v13000_v17, %v11044_v16  ;;  %v11049_v23 = vor.u32 %v12982_v18, %v11046_v19  ;;  %v13195_v25 = vld [vmem:[%s14809_s9 + $0x110] sm:$0xff]  ;;  %v13017_v30 = vld [vmem:[%s17090_s0 + $0x364] sm:$0xf]  ;;  %v13018_v34 = vld [vmem:[%s17090_s0 + $0x36c] sm:$0xf] }
 0x279   : > { %8839 = vmatpush.bf16.msra.mxu2 %v13178_v26  ;;  %v13219_v26 = vld [vmem:[%s14809_s9 + $0x1d0] sm:$0xff]  ;;  %v11190_v35 = vld [vmem:[%s17090_s0 + $0x3f8] sm:$0xf0]  ;;  %v13209_v56 = vld [vmem:[%s14809_s9 + $0x180] sm:$0xff] }
 0x27a   : > { %8883 = vmatpush.bf16.msra.mxu3 %v13186_v27  ;;  %v13203_v27 = vld [vmem:[%s14809_s9 + $0x150] sm:$0xff]  ;;  %v11193_v39 = vor.u32 %v13018_v34, %v11190_v35  ;;  %v13201_v59 = vld [vmem:[%s14809_s9 + $0x140] sm:$0xff]  ;;  %v11476_v0 = vld [vmem:[%s17090_s0 + $0x5a8] sm:$0xf] }
 0x27b   : > { %8752 = vmatpush.bf16.msra.mxu0 %v13161_v28  ;;  %v11180_v28 = vld [vmem:[%s17090_s0 + $0x360] sm:$0xf]  ;;  %v13107_v61 = vld [vmem:[%s17090_s0 + $0x62c] sm:$0xf0]  ;;  %v13089_v62 = vld [vmem:[%s17090_s0 + $0x5a4] sm:$0xf] }
 0x27c   : > { %8796 = vmatpush.bf16.msra.mxu1 %v13169_v31  ;;  %v11182_v31 = vld [vmem:[%s17090_s0 + $0x3f0] sm:$0xf0]  ;;  %v11181_v36 = vor.u32 %v13035_v29, %v11180_v28  ;;  %v11468_v60 = vld [vmem:[%s17090_s0 + $0x5a0] sm:$0xf]  ;;  %v13108_v1 = vld [vmem:[%s17090_s0 + $0x634] sm:$0xf0] }
 0x27d   : > { %8840 = vmatpush.bf16.msra.mxu2 %v13177_v32  ;;  %v11188_v32 = vld [vmem:[%s17090_s0 + $0x368] sm:$0xf]  ;;  %v11185_v37 = vor.u32 %v13017_v30, %v11182_v31  ;;  %v11470_v63 = vld [vmem:[%s17090_s0 + $0x630] sm:$0xf0]  ;;  %v11612_v12 = vld [vmem:[%s17090_s0 + $0x6c0] sm:$0xf] }
 0x27e   : > { %8884 = vmatpush.bf16.msra.mxu3 %v13185_v33  ;;  %8753 = vmatmul.bf16.vlgmr.msra.gmra.mxu0 %v10749_v42  ;;  %v13036_v33 = vld [vmem:[%s17090_s0 + $0x3f4] sm:$0xf0]  ;;  %v13218_v42 = vld [vmem:[%s14809_s9 + $0x1c8] sm:$0xff]  ;;  %v13143_v13 = vld [vmem:[%s17090_s0 + $0x74c] sm:$0xf0] }
 0x27f   : > { %8921 = vmatpush.bf16.msrb.mxu0 %v13200_v41  ;;  %8797 = vmatmul.bf16.vlgmr.msra.gmra.mxu1 %v10753_v43  ;;  %v11189_v38 = vor.u32 %v13036_v33, %v11188_v32  ;;  %v13194_v41 = vld [vmem:[%s14809_s9 + $0x108] sm:$0xff]  ;;  %v13125_v14 = vld [vmem:[%s17090_s0 + $0x6c4] sm:$0xf]  ;;  %v11614_v15 = vld [vmem:[%s17090_s0 + $0x750] sm:$0xf0] }
 0x280   : > { %8841 = vmatmul.bf16.vlgmr.msra.gmra.mxu2 %v10757_v44  ;;  %8965 = vmatpush.bf16.msrb.mxu1 %v13208_v47  ;;  %v13202_v43 = vld [vmem:[%s14809_s9 + $0x148] sm:$0xff]  ;;  %v11324_v44 = vld [vmem:[%s17090_s0 + $0x480] sm:$0xf]  ;;  %v11326_v47 = vld [vmem:[%s17090_s0 + $0x510] sm:$0xf0] }
 0x281   : > { %9009 = vmatpush.bf16.msrb.mxu2 %v13216_v40  ;;  %8885 = vmatmul.bf16.vlgmr.msra.gmra.mxu3 %v10761_v45  ;;  %v13210_v40 = vld [vmem:[%s14809_s9 + $0x188] sm:$0xff]  ;;  %v13071_v45 = vld [vmem:[%s17090_s0 + $0x50c] sm:$0xf0]  ;;  %v13144_v17 = vld [vmem:[%s17090_s0 + $0x754] sm:$0xf0] }
 0x282   : > { %9053 = vmatpush.bf16.msrb.mxu3 %v13224_v46  ;;  %v13053_v46 = vld [vmem:[%s17090_s0 + $0x484] sm:$0xf]  ;;  %v11620_v16 = vld [vmem:[%s17090_s0 + $0x6c8] sm:$0xf]  ;;  %v13126_v18 = vld [vmem:[%s17090_s0 + $0x6cc] sm:$0xf] }
 0x283   : > { %8922 = vmatpush.bf16.msrb.mxu0 %v13199_v49  ;;  %v13072_v49 = vld [vmem:[%s17090_s0 + $0x514] sm:$0xf0]  ;;  %v11622_v19 = vld [vmem:[%s17090_s0 + $0x758] sm:$0xf0]  ;;  %v10764_v28 = vld [vmem:[%s17090_s0 + $0x10] sm:$0xf] }
 0x284   : > { %8966 = vmatpush.bf16.msrb.mxu1 %v13207_v51  ;;  %v11334_v51 = vld [vmem:[%s17090_s0 + $0x518] sm:$0xf0]  ;;  %v12929_v29 = vld [vmem:[%s17090_s0 + $0x9c] sm:$0xf0]  ;;  %v12911_v30 = vld [vmem:[%s17090_s0 + $0x14] sm:$0xf] }
 0x285   : > { %9010 = vmatpush.bf16.msrb.mxu2 %v13215_v48  ;;  %v11332_v48 = vld [vmem:[%s17090_s0 + $0x488] sm:$0xf]  ;;  %v10766_v31 = vld [vmem:[%s17090_s0 + $0xa0] sm:$0xf0]  ;;  %v10772_v32 = vld [vmem:[%s17090_s0 + $0x18] sm:$0xf] }
 0x286   : > { %9054 = vmatpush.bf16.msrb.mxu3 %v13223_v50  ;;  %v13054_v50 = vld [vmem:[%s17090_s0 + $0x48c] sm:$0xf]  ;;  %v12930_v33 = vld [vmem:[%s17090_s0 + $0xa4] sm:$0xf0]  ;;  %v12912_v34 = vld [vmem:[%s17090_s0 + $0x1c] sm:$0xf] }
 0x287   : > { %8923 = vmatpush.bf16.msrb.mxu0 %v13198_v53  ;;  %v11329_v53 = vor.u32 %v13053_v46, %v11326_v47  ;;  %v10774_v35 = vld [vmem:[%s17090_s0 + $0xa8] sm:$0xf0]  ;;  %v12965_v46 = vld [vmem:[%s17090_s0 + $0x1bc] sm:$0xf0]  ;;  %v12947_v47 = vld [vmem:[%s17090_s0 + $0x134] sm:$0xf] }
 0x288   : > { %8967 = vmatpush.bf16.msrb.mxu1 %v13206_v55  ;;  %v11337_v55 = vor.u32 %v13054_v50, %v11334_v51  ;;  %v12966_v50 = vld [vmem:[%s17090_s0 + $0x1c4] sm:$0xf0]  ;;  %v12948_v51 = vld [vmem:[%s17090_s0 + $0x13c] sm:$0xf] }
 0x289   : > { %9011 = vmatpush.bf16.msrb.mxu2 %v13214_v52  ;;  %v11325_v52 = vor.u32 %v13071_v45, %v11324_v44  ;;  %v13245_v44 = vld [vmem:[%s14809_s9 + $0x2a0] sm:$0xff]  ;;  %v10908_v45 = vld [vmem:[%s17090_s0 + $0x130] sm:$0xf] }
 0x28a   : > { %9055 = vmatpush.bf16.msrb.mxu3 %v13222_v54  ;;  %v11333_v54 = vor.u32 %v13072_v49, %v11332_v48  ;;  %v10910_v48 = vld [vmem:[%s17090_s0 + $0x1c0] sm:$0xf0]  ;;  %v10916_v49 = vld [vmem:[%s17090_s0 + $0x138] sm:$0xf] }
 0x28b   : > { %8924 = vmatpush.bf16.msrb.mxu0 %v13197_v58  ;;  %v13217_v58 = vld [vmem:[%s14809_s9 + $0x1c0] sm:$0xff] }
 0x28c   : > { %8968 = vmatpush.bf16.msrb.mxu1 %v13205_v3  ;;  %v11478_v3 = vld [vmem:[%s17090_s0 + $0x638] sm:$0xf0] }
 0x28d   : > { %9012 = vmatpush.bf16.msrb.mxu2 %v13213_v57  ;;  %v13193_v57 = vld [vmem:[%s14809_s9 + $0x100] sm:$0xff] }
 0x28e   : > { %9056 = vmatpush.bf16.msrb.mxu3 %v13221_v2  ;;  %8758 = vmatmul.bf16.gmra.mxu0 %v10893_v4  ;;  %v13090_v2 = vld [vmem:[%s17090_s0 + $0x5ac] sm:$0xf]  ;;  %v11469_v4 = vor.u32 %v13107_v61, %v11468_v60  ;;  %v13229_v60 = vld [vmem:[%s14809_s9 + $0x220] sm:$0xff] }
 0x28f   : > { %8802 = vmatmul.bf16.gmra.mxu1 %v10897_v5  ;;  %8925 = vmatpush.bf16.msrb.mxu0 %v13196_v9  ;;  %v11473_v5 = vor.u32 %v13089_v62, %v11470_v63  ;;  %v13232_v9 = vld [vmem:[%s14809_s9 + $0x238] sm:$0xff]  ;;  %v13253_v61 = vld [vmem:[%s14809_s9 + $0x2e0] sm:$0xff] }
 0x290   : > { %8846 = vmatmul.bf16.gmra.mxu2 %v10901_v6  ;;  %8969 = vmatpush.bf16.msrb.mxu1 %v13204_v11  ;;  %v11477_v6 = vor.u32 %v13108_v1, %v11476_v0  ;;  %v13240_v11 = vld [vmem:[%s14809_s9 + $0x278] sm:$0xff]  ;;  %v13237_v62 = vld [vmem:[%s14809_s9 + $0x260] sm:$0xff] }
 0x291   : > { %8890 = vmatmul.bf16.gmra.mxu3 %v10905_v7  ;;  %9013 = vmatpush.bf16.msrb.mxu2 %v13212_v8  ;;  %v11481_v7 = vor.u32 %v13090_v2, %v11478_v3  ;;  %v13248_v8 = vld [vmem:[%s14809_s9 + $0x2b8] sm:$0xff] }
 0x292   : > { %9057 = vmatpush.bf16.msrb.mxu3 %v13220_v10  ;;  %v13256_v10 = vld [vmem:[%s14809_s9 + $0x2f8] sm:$0xff] }
 0x293   : > { %8926 = vmatpush.bf16.msrb.mxu0 %v13195_v25  ;;  %v13231_v25 = vld [vmem:[%s14809_s9 + $0x230] sm:$0xff] }
 0x294   : > { %8970 = vmatpush.bf16.msrb.mxu1 %v13203_v27  ;;  %v13239_v27 = vld [vmem:[%s14809_s9 + $0x270] sm:$0xff] }
 0x295   : > { %9014 = vmatpush.bf16.msrb.mxu2 %v13211_v24  ;;  %v13247_v24 = vld [vmem:[%s14809_s9 + $0x2b0] sm:$0xff] }
 0x296   : > { %9058 = vmatpush.bf16.msrb.mxu3 %v13219_v26  ;;  %v13255_v26 = vld [vmem:[%s14809_s9 + $0x2f0] sm:$0xff] }
 0x297   : > { %8927 = vmatpush.bf16.msrb.mxu0 %v13194_v41  ;;  %v13230_v41 = vld [vmem:[%s14809_s9 + $0x228] sm:$0xff] }
 0x298   : > { %8971 = vmatpush.bf16.msrb.mxu1 %v13202_v43  ;;  %v13238_v43 = vld [vmem:[%s14809_s9 + $0x268] sm:$0xff] }
 0x299   : > { %9015 = vmatpush.bf16.msrb.mxu2 %v13210_v40  ;;  %v13246_v40 = vld [vmem:[%s14809_s9 + $0x2a8] sm:$0xff] }
 0x29a   : > { %9059 = vmatpush.bf16.msrb.mxu3 %v13218_v42  ;;  %v13254_v42 = vld [vmem:[%s14809_s9 + $0x2e8] sm:$0xff] }
 0x29b   : > { %8928 = vmatpush.bf16.msrb.mxu0 %v13193_v57  ;;  %v10917_v57 = vor.u32 %v12966_v50, %v10916_v49 }
 0x29c   : > { %8972 = vmatpush.bf16.msrb.mxu1 %v13201_v59 }
 0x29d   : > { %9016 = vmatpush.bf16.msrb.mxu2 %v13209_v56 }
 0x29e   : > { %8763 = vmatmul.bf16.gmra.mxu0 %v11037_v20  ;;  %9060 = vmatpush.bf16.msrb.mxu3 %v13217_v58  ;;  %v11613_v20 = vor.u32 %v13143_v13, %v11612_v12  ;;  %v11054_v12 = vld [vmem:[%s17090_s0 + $0x2e0] sm:$0xf0]  ;;  %v11060_v13 = vld [vmem:[%s17090_s0 + $0x258] sm:$0xf] }
 0x29f   : > { %8807 = vmatmul.bf16.gmra.mxu1 %v11041_v21  ;;  %9097 = vmatpush.bf16.msra.mxu0 %v13232_v9  ;;  %v11617_v21 = vor.u32 %v13125_v14, %v11614_v15  ;;  %v11052_v9 = vld [vmem:[%s17090_s0 + $0x250] sm:$0xf]  ;;  %v13002_v14 = vld [vmem:[%s17090_s0 + $0x2e4] sm:$0xf0]  ;;  %v12984_v15 = vld [vmem:[%s17090_s0 + $0x25c] sm:$0xf] }
 0x2a0   : > { %8851 = vmatmul.bf16.gmra.mxu2 %v11045_v22  ;;  %9141 = vmatpush.bf16.msra.mxu1 %v13240_v11  ;;  %v11621_v22 = vor.u32 %v13144_v17, %v11620_v16  ;;  %v12983_v11 = vld [vmem:[%s17090_s0 + $0x254] sm:$0xf]  ;;  %v11062_v16 = vld [vmem:[%s17090_s0 + $0x2e8] sm:$0xf0] }
 0x2a1   : > { %8895 = vmatmul.bf16.gmra.mxu3 %v11049_v23  ;;  %9185 = vmatpush.bf16.msra.mxu2 %v13248_v8  ;;  %v11625_v23 = vor.u32 %v13126_v18, %v11622_v19  ;;  %v13252_v8 = vld [vmem:[%s14809_s9 + $0x2d8] sm:$0xff] }
 0x2a2   : > { %9229 = vmatpush.bf16.msra.mxu3 %v13256_v10  ;;  %v13001_v10 = vld [vmem:[%s17090_s0 + $0x2dc] sm:$0xf0] }
 0x2a3   : > { %9098 = vmatpush.bf16.msra.mxu0 %v13231_v25  ;;  %v11053_v19 = vor.u32 %v13001_v10, %v11052_v9  ;;  %v11065_v25 = vor.u32 %v12984_v15, %v11062_v16  ;;  %v13055_v9 = vld [vmem:[%s17090_s0 + $0x494] sm:$0xf]  ;;  %v11342_v10 = vld [vmem:[%s17090_s0 + $0x520] sm:$0xf0] }
 0x2a4   : > { %9142 = vmatpush.bf16.msra.mxu1 %v13239_v27 }
 0x2a5   : > { %9186 = vmatpush.bf16.msra.mxu2 %v13247_v24  ;;  %v11061_v24 = vor.u32 %v13002_v14, %v11060_v13  ;;  %v13056_v13 = vld [vmem:[%s17090_s0 + $0x49c] sm:$0xf]  ;;  %v11350_v14 = vld [vmem:[%s17090_s0 + $0x528] sm:$0xf0] }
 0x2a6   : > { %9230 = vmatpush.bf16.msra.mxu3 %v13255_v26 }
 0x2a7   : > { %9099 = vmatpush.bf16.msra.mxu0 %v13230_v41  ;;  %v13235_v41 = vld [vmem:[%s14809_s9 + $0x250] sm:$0xff] }
 0x2a8   : > { %9143 = vmatpush.bf16.msra.mxu1 %v13238_v43  ;;  %v11198_v43 = vld [vmem:[%s17090_s0 + $0x400] sm:$0xf0] }
 0x2a9   : > { %9187 = vmatpush.bf16.msra.mxu2 %v13246_v40  ;;  %v13037_v40 = vld [vmem:[%s17090_s0 + $0x3fc] sm:$0xf0] }
 0x2aa   : > { %9231 = vmatpush.bf16.msra.mxu3 %v13254_v42  ;;  %v13019_v42 = vld [vmem:[%s17090_s0 + $0x374] sm:$0xf] }
 0x2ab   : > { %9100 = vmatpush.bf16.msra.mxu0 %v13229_v60 }
 0x2ac   : > { %9144 = vmatpush.bf16.msra.mxu1 %v13237_v62 }
 0x2ad   : > { %9188 = vmatpush.bf16.msra.mxu2 %v13245_v44  ;;  %v11204_v44 = vld [vmem:[%s17090_s0 + $0x378] sm:$0xf] }
 0x2ae   : > { %8768 = vmatmul.bf16.gmra.mxu0 %v11181_v36  ;;  %v10765_v36 = vor.u32 %v12929_v29, %v10764_v28  ;;  %9232 = vmatpush.bf16.msra.mxu3 %v13253_v61  ;;  %v13236_v28 = vld [vmem:[%s14809_s9 + $0x258] sm:$0xff] }
 0x2af   : > { %8812 = vmatmul.bf16.gmra.mxu1 %v11185_v37  ;;  %v10769_v37 = vor.u32 %v12911_v30, %v10766_v31 }
 0x2b0   : > { %8856 = vmatmul.bf16.gmra.mxu2 %v11189_v38  ;;  %v10773_v38 = vor.u32 %v12930_v33, %v10772_v32  ;;  %9145 = vmatpush.bf16.msra.mxu1 %v13236_v28 }
 0x2b1   : > { %8900 = vmatmul.bf16.gmra.mxu3 %v11193_v39  ;;  %v10777_v39 = vor.u32 %v12912_v34, %v10774_v35 }
 0x2b2   : > { %9233 = vmatpush.bf16.msra.mxu3 %v13252_v8  ;;  %v13234_v8 = vld [vmem:[%s14809_s9 + $0x248] sm:$0xff] }
 0x2b4   : > { %9146 = vmatpush.bf16.msra.mxu1 %v13235_v41  ;;  %v13091_v41 = vld [vmem:[%s17090_s0 + $0x5b4] sm:$0xf] }
 0x2b8   : > { %9147 = vmatpush.bf16.msra.mxu1 %v13234_v8  ;;  %v11628_v8 = vld [vmem:[%s17090_s0 + $0x6d0] sm:$0xf] }
 0x2be   : > { %8773 = vmatmul.bf16.gmra.mxu0 %v11325_v52  ;;  %v10918_v52 = vld [vmem:[%s17090_s0 + $0x1c8] sm:$0xf0] }
 0x2bf   : > { %8817 = vmatmul.bf16.gmra.mxu1 %v11329_v53  ;;  %v10909_v53 = vor.u32 %v12965_v46, %v10908_v45  ;;  %v10921_v58 = vor.u32 %v12948_v51, %v10918_v52  ;;  %v13038_v45 = vld [vmem:[%s17090_s0 + $0x404] sm:$0xf0]  ;;  %v13020_v46 = vld [vmem:[%s17090_s0 + $0x37c] sm:$0xf]  ;;  %v11201_v51 = vor.u32 %v13019_v42, %v11198_v43  ;;  %v11486_v42 = vld [vmem:[%s17090_s0 + $0x640] sm:$0xf0] }
 0x2c0   : > { %8861 = vmatmul.bf16.gmra.mxu2 %v11333_v54  ;;  %v10913_v54 = vor.u32 %v12947_v47, %v10910_v48  ;;  %v11206_v47 = vld [vmem:[%s17090_s0 + $0x408] sm:$0xf0]  ;;  %v11492_v43 = vld [vmem:[%s17090_s0 + $0x5b8] sm:$0xf] }
 0x2c1   : > { %8905 = vmatmul.bf16.gmra.mxu3 %v11337_v55 }
 0x2ce   : > { %8778 = vmatmul.bf16.gmra.mxu0 %v11469_v4 }
 0x2cf   : > { %8822 = vmatmul.bf16.gmra.mxu1 %v11473_v5 }
 0x2d0   : > { %8866 = vmatmul.bf16.gmra.mxu2 %v11477_v6  ;;  %v13244_v6 = vld [vmem:[%s14809_s9 + $0x298] sm:$0xff] }
 0x2d1   : > { %8910 = vmatmul.bf16.gmra.mxu3 %v11481_v7  ;;  %v13228_v7 = vld [vmem:[%s14809_s9 + $0x218] sm:$0xff]  ;;  %9189 = vmatpush.bf16.msra.mxu2 %v13244_v6  ;;  %v11340_v6 = vld [vmem:[%s17090_s0 + $0x490] sm:$0xf] }
 0x2d2   : > { %9101 = vmatpush.bf16.msra.mxu0 %v13228_v7  ;;  %v13073_v7 = vld [vmem:[%s17090_s0 + $0x51c] sm:$0xf0] }
 0x2de   : > { %8783 = vmatmul.bf16.gmra.mxu0 %v11613_v20  ;;  %v11057_v20 = vor.u32 %v12983_v11, %v11054_v12  ;;  %v11348_v11 = vld [vmem:[%s17090_s0 + $0x498] sm:$0xf]  ;;  %v13074_v12 = vld [vmem:[%s17090_s0 + $0x524] sm:$0xf0] }
 0x2df   : > { %8827 = vmatmul.bf16.gmra.mxu1 %v11617_v21 }
 0x2e0   : > { %8871 = vmatmul.bf16.gmra.mxu2 %v11621_v22 }
 0x2e1   : > { %8915 = vmatmul.bf16.gmra.mxu3 %v11625_v23 }
 0x2ee   : > { %8929 = vmatmul.bf16.vlgmr.msrb.gmra.mxu0 %v10765_v36  ;;  %v13243_v36 = vld [vmem:[%s14809_s9 + $0x290] sm:$0xff] }
 0x2ef   : > { %8973 = vmatmul.bf16.vlgmr.msrb.gmra.mxu1 %v10769_v37  ;;  %v13227_v37 = vld [vmem:[%s14809_s9 + $0x210] sm:$0xff]  ;;  %9190 = vmatpush.bf16.msra.mxu2 %v13243_v36  ;;  %v13225_v36 = vld [vmem:[%s14809_s9 + $0x200] sm:$0xff] }
 0x2f0   : > { %9017 = vmatmul.bf16.vlgmr.msrb.gmra.mxu2 %v10773_v38  ;;  %v13251_v38 = vld [vmem:[%s14809_s9 + $0x2d0] sm:$0xff]  ;;  %9102 = vmatpush.bf16.msra.mxu0 %v13227_v37  ;;  %v13249_v37 = vld [vmem:[%s14809_s9 + $0x2c0] sm:$0xff] }
 0x2f1   : > { %9061 = vmatmul.bf16.vlgmr.msrb.gmra.mxu3 %v10777_v39  ;;  %v11196_v39 = vld [vmem:[%s17090_s0 + $0x370] sm:$0xf] }
 0x2f2   : > { %9234 = vmatpush.bf16.msra.mxu3 %v13251_v38  ;;  %v11197_v50 = vor.u32 %v13037_v40, %v11196_v39  ;;  %v13233_v38 = vld [vmem:[%s14809_s9 + $0x240] sm:$0xff]  ;;  %v11484_v39 = vld [vmem:[%s17090_s0 + $0x5b0] sm:$0xf] }
 0x2f3   : > { %v13109_v40 = vld [vmem:[%s17090_s0 + $0x63c] sm:$0xf0]  ;;  %9148 = vmatpush.bf16.msra.mxu1 %v13233_v38 }
 0x2fb   : > { %v8754_v55 = vpop.f32.mrf.mxu0 }
 0x2fc   : > { %v8798_v56 = vpop.f32.mrf.mxu1 }
 0x2fd   : > { %v8799_v59 = vadd.f32 %v8798_v56, %v8754_v55  ;;  %v11205_v55 = vor.u32 %v13038_v45, %v11204_v44  ;;  %v11209_v56 = vor.u32 %v13020_v46, %v11206_v47  ;;  %v13110_v44 = vld [vmem:[%s17090_s0 + $0x644] sm:$0xf0]  ;;  %v13092_v45 = vld [vmem:[%s17090_s0 + $0x5bc] sm:$0xf]  ;;  %v11494_v46 = vld [vmem:[%s17090_s0 + $0x648] sm:$0xf0] }
 0x2fe   : > { %8934 = vmatmul.bf16.gmra.mxu0 %v10909_v53 }
 0x2ff   : > { %8978 = vmatmul.bf16.gmra.mxu1 %v10913_v54 }
 0x300   : > { %9022 = vmatmul.bf16.gmra.mxu2 %v10917_v57 }
 0x301   : > { %9066 = vmatmul.bf16.gmra.mxu3 %v10921_v58 }
 0x303   : > { %v8842_v63 = vpop.f32.mrf.mxu2  ;;  %v8756_v2 = vpop.f32.mrf.mxu0 }
 0x304   : > { %v8886_v0 = vpop.f32.mrf.mxu3  ;;  %v8843_v1 = vadd.f32 %v8842_v63, %v8799_v59  ;;  %v8800_v3 = vpop.f32.mrf.mxu1 }
 0x305   : > { %v8801_v4 = vadd.f32 %v8800_v3, %v8756_v2  ;;  %v13242_v2 = vld [vmem:[%s14809_s9 + $0x288] sm:$0xff] }
 0x306   : > { %v15107_v5 = vadd.f32 %v8886_v0, %v8843_v1  ;;  %v13226_v3 = vld [vmem:[%s14809_s9 + $0x208] sm:$0xff]  ;;  %9191 = vmatpush.bf16.msra.mxu2 %v13242_v2 }
 0x307   : > { %9103 = vmatpush.bf16.msra.mxu0 %v13226_v3 }
 0x30b   : > { %v8844_v17 = vpop.f32.mrf.mxu2  ;;  %v8759_v22 = vpop.f32.mrf.mxu0  ;;  %9104 = vmatpush.bf16.msra.mxu0 %v13225_v36 }
 0x30c   : > { %v8888_v18 = vpop.f32.mrf.mxu3  ;;  %v8845_v21 = vadd.f32 %v8844_v17, %v8801_v4  ;;  %v8803_v23 = vpop.f32.mrf.mxu1  ;;  %v13250_v4 = vld [vmem:[%s14809_s9 + $0x2c8] sm:$0xff]  ;;  %v11341_v17 = vor.u32 %v13073_v7, %v11340_v6  ;;  %v13272_v7 = vld [vmem:[%s14809_s9 + $0x378] sm:$0xff] }
 0x30d   : > { %v8804_v26 = vadd.f32 %v8803_v23, %v8759_v22  ;;  %9235 = vmatpush.bf16.msra.mxu3 %v13250_v4  ;;  %v11349_v22 = vor.u32 %v13074_v12, %v11348_v11  ;;  %v11353_v23 = vor.u32 %v13056_v13, %v11350_v14  ;;  %v11630_v11 = vld [vmem:[%s17090_s0 + $0x760] sm:$0xf0]  ;;  %v11636_v12 = vld [vmem:[%s17090_s0 + $0x6d8] sm:$0xf]  ;;  %9317 = vmatpush.bf16.msrb.mxu1 %v13272_v7  ;;  %v13146_v13 = vld [vmem:[%s17090_s0 + $0x764] sm:$0xf0] }
 0x30e   : > { %v15136_v27 = vadd.f32 %v8888_v18, %v8845_v21  ;;  %8939 = vmatmul.bf16.gmra.mxu0 %v11053_v19  ;;  %v11345_v18 = vor.u32 %v13055_v9, %v11342_v10  ;;  %v13145_v9 = vld [vmem:[%s17090_s0 + $0x75c] sm:$0xf0]  ;;  %v13127_v10 = vld [vmem:[%s17090_s0 + $0x6d4] sm:$0xf]  ;;  %v13128_v14 = vld [vmem:[%s17090_s0 + $0x6dc] sm:$0xf] }
 0x30f   : > { %8983 = vmatmul.bf16.gmra.mxu1 %v11057_v20 }
 0x310   : > { %9027 = vmatmul.bf16.gmra.mxu2 %v11061_v24 }
 0x311   : > { %9071 = vmatmul.bf16.gmra.mxu3 %v11065_v25 }
 0x312   : > { %9236 = vmatpush.bf16.msra.mxu3 %v13249_v37 }
 0x313   : > { %v8847_v29 = vpop.f32.mrf.mxu2  ;;  %v8761_v32 = vpop.f32.mrf.mxu0 }
 0x314   : > { %v8891_v30 = vpop.f32.mrf.mxu3  ;;  %v8848_v31 = vadd.f32 %v8847_v29, %v8804_v26  ;;  %v8805_v33 = vpop.f32.mrf.mxu1  ;;  %v13241_v26 = vld [vmem:[%s14809_s9 + $0x280] sm:$0xff] }
 0x315   : > { %v8806_v34 = vadd.f32 %v8805_v33, %v8761_v32  ;;  %9192 = vmatpush.bf16.msra.mxu2 %v13241_v26 }
 0x316   : > { %v15139_v35 = vadd.f32 %v8891_v30, %v8848_v31 }
 0x31b   : > { %v8849_v48 = vpop.f32.mrf.mxu2  ;;  %v8764_v53 = vpop.f32.mrf.mxu0 }
 0x31c   : > { %v8893_v49 = vpop.f32.mrf.mxu3  ;;  %v8850_v52 = vadd.f32 %v8849_v48, %v8806_v34  ;;  %v8808_v54 = vpop.f32.mrf.mxu1 }
 0x31d   : > { %v8809_v57 = vadd.f32 %v8808_v54, %v8764_v53  ;;  %v11493_v54 = vor.u32 %v13110_v44, %v11492_v43  ;;  %v12931_v43 = vld [vmem:[%s17090_s0 + $0xac] sm:$0xf0]  ;;  %v12913_v44 = vld [vmem:[%s17090_s0 + $0x24] sm:$0xf] }
 0x31e   : > { %v15169_v58 = vadd.f32 %v8893_v49, %v8850_v52  ;;  %8944 = vmatmul.bf16.gmra.mxu0 %v11197_v50  ;;  %v11485_v49 = vor.u32 %v13109_v40, %v11484_v39  ;;  %v11489_v50 = vor.u32 %v13091_v41, %v11486_v42  ;;  %v10780_v42 = vld [vmem:[%s17090_s0 + $0x20] sm:$0xf] }
 0x31f   : > { %8988 = vmatmul.bf16.gmra.mxu1 %v11201_v51 }
 0x320   : > { %9032 = vmatmul.bf16.gmra.mxu2 %v11205_v55  ;;  %v11497_v55 = vor.u32 %v13092_v45, %v11494_v46  ;;  %v10782_v45 = vld [vmem:[%s17090_s0 + $0xb0] sm:$0xf0]  ;;  %v10788_v46 = vld [vmem:[%s17090_s0 + $0x28] sm:$0xf] }
 0x321   : > { %9076 = vmatmul.bf16.gmra.mxu3 %v11209_v56 }
 0x323   : > { %v8852_v59 = vpop.f32.mrf.mxu2  ;;  %v8766_v62 = vpop.f32.mrf.mxu0 }
 0x324   : > { %v8896_v60 = vpop.f32.mrf.mxu3  ;;  %v8853_v61 = vadd.f32 %v8852_v59, %v8809_v57  ;;  %v8810_v63 = vpop.f32.mrf.mxu1  ;;  %v13280_v59 = vld [vmem:[%s14809_s9 + $0x3b8] sm:$0xff] }
 0x325   : > { %v8811_v0 = vadd.f32 %v8810_v63, %v8766_v62  ;;  %9361 = vmatpush.bf16.msrb.mxu2 %v13280_v59 }
 0x326   : > { %v15171_v1 = vadd.f32 %v8896_v60, %v8853_v61  ;;  %v13264_v60 = vld [vmem:[%s14809_s9 + $0x338] sm:$0xff] }
 0x327   : > { %v13288_v61 = vld [vmem:[%s14809_s9 + $0x3f8] sm:$0xff]  ;;  %9273 = vmatpush.bf16.msrb.mxu0 %v13264_v60 }
 0x328   : > { %9405 = vmatpush.bf16.msrb.mxu3 %v13288_v61 }
 0x32b   : > { %v8854_v15 = vpop.f32.mrf.mxu2  ;;  %v8769_v20 = vpop.f32.mrf.mxu0 }
 0x32c   : > { %v8898_v16 = vpop.f32.mrf.mxu3  ;;  %v8855_v19 = vadd.f32 %v8854_v15, %v8811_v0  ;;  %v8813_v21 = vpop.f32.mrf.mxu1  ;;  %v11638_v15 = vld [vmem:[%s17090_s0 + $0x768] sm:$0xf0] }
 0x32d   : > { %v8814_v24 = vadd.f32 %v8813_v21, %v8769_v20 }
 0x32e   : > { %v15201_v25 = vadd.f32 %v8898_v16, %v8855_v19  ;;  %8949 = vmatmul.bf16.gmra.mxu0 %v11341_v17  ;;  %v11633_v19 = vor.u32 %v13127_v10, %v11630_v11 }
 0x32f   : > { %8993 = vmatmul.bf16.gmra.mxu1 %v11345_v18  ;;  %v11629_v18 = vor.u32 %v13145_v9, %v11628_v8 }
 0x330   : > { %9037 = vmatmul.bf16.gmra.mxu2 %v11349_v22 }
 0x331   : > { %9081 = vmatmul.bf16.gmra.mxu3 %v11353_v23  ;;  %v11637_v23 = vor.u32 %v13146_v13, %v11636_v12  ;;  %v10924_v13 = vld [vmem:[%s17090_s0 + $0x140] sm:$0xf] }
 0x333   : > { %v8857_v28 = vpop.f32.mrf.mxu2  ;;  %v8771_v31 = vpop.f32.mrf.mxu0 }
 0x334   : > { %v8901_v29 = vpop.f32.mrf.mxu3  ;;  %v8858_v30 = vadd.f32 %v8857_v28, %v8814_v24  ;;  %v8815_v32 = vpop.f32.mrf.mxu1  ;;  %v11641_v24 = vor.u32 %v13128_v14, %v11638_v15  ;;  %v12967_v14 = vld [vmem:[%s17090_s0 + $0x1cc] sm:$0xf0]  ;;  %v13277_v15 = vld [vmem:[%s14809_s9 + $0x3a0] sm:$0xff] }
 0x335   : > { %v8816_v33 = vadd.f32 %v8815_v32, %v8771_v31  ;;  %v13287_v31 = vld [vmem:[%s14809_s9 + $0x3f0] sm:$0xff] }
 0x336   : > { %v15204_v34 = vadd.f32 %v8901_v29, %v8858_v30  ;;  %v13279_v29 = vld [vmem:[%s14809_s9 + $0x3b0] sm:$0xff]  ;;  %9406 = vmatpush.bf16.msrb.mxu3 %v13287_v31 }
 0x337   : > { %v13263_v30 = vld [vmem:[%s14809_s9 + $0x330] sm:$0xff]  ;;  %9362 = vmatpush.bf16.msrb.mxu2 %v13279_v29 }
 0x338   : > { %v13271_v32 = vld [vmem:[%s14809_s9 + $0x370] sm:$0xff]  ;;  %9274 = vmatpush.bf16.msrb.mxu0 %v13263_v30 }
 0x339   : > { %9318 = vmatpush.bf16.msrb.mxu1 %v13271_v32 }
 0x33b   : > { %v8859_v47 = vpop.f32.mrf.mxu2  ;;  %v8774_v52 = vpop.f32.mrf.mxu0 }
 0x33c   : > { %v8903_v48 = vpop.f32.mrf.mxu3  ;;  %v8860_v51 = vadd.f32 %v8859_v47, %v8816_v33  ;;  %v8818_v53 = vpop.f32.mrf.mxu1  ;;  %v12932_v47 = vld [vmem:[%s17090_s0 + $0xb4] sm:$0xf0] }
 0x33d   : > { %v8819_v56 = vadd.f32 %v8818_v53, %v8774_v52  ;;  %v10781_v52 = vor.u32 %v12931_v43, %v10780_v42  ;;  %v10785_v53 = vor.u32 %v12913_v44, %v10782_v45  ;;  %v10789_v59 = vor.u32 %v12932_v47, %v10788_v46  ;;  %v13269_v42 = vld [vmem:[%s14809_s9 + $0x360] sm:$0xff] }
 0x33e   : > { %v15233_v57 = vadd.f32 %v8903_v48, %v8860_v51  ;;  %8954 = vmatmul.bf16.gmra.mxu0 %v11485_v49  ;;  %v12914_v48 = vld [vmem:[%s17090_s0 + $0x2c] sm:$0xf]  ;;  %v10790_v49 = vld [vmem:[%s17090_s0 + $0xb8] sm:$0xf0] }
 0x33f   : > { %8998 = vmatmul.bf16.gmra.mxu1 %v11489_v50  ;;  %v10793_v60 = vor.u32 %v12914_v48, %v10790_v49  ;;  %v11068_v49 = vld [vmem:[%s17090_s0 + $0x260] sm:$0xf] }
 0x340   : > { %9042 = vmatmul.bf16.gmra.mxu2 %v11493_v54 }
 0x341   : > { %9086 = vmatmul.bf16.gmra.mxu3 %v11497_v55 }
 0x343   : > { %v8862_v62 = vpop.f32.mrf.mxu2  ;;  %v8776_v2 = vpop.f32.mrf.mxu0 }
 0x344   : > { %v8906_v63 = vpop.f32.mrf.mxu3  ;;  %v8863_v0 = vadd.f32 %v8862_v62, %v8819_v56  ;;  %v8820_v3 = vpop.f32.mrf.mxu1 }
 0x345   : > { %v8821_v4 = vadd.f32 %v8820_v3, %v8776_v2  ;;  %v13286_v2 = vld [vmem:[%s14809_s9 + $0x3e8] sm:$0xff] }
 0x346   : > { %v15238_v6 = vadd.f32 %v8906_v63, %v8863_v0  ;;  %v13278_v63 = vld [vmem:[%s14809_s9 + $0x3a8] sm:$0xff]  ;;  %9407 = vmatpush.bf16.msrb.mxu3 %v13286_v2 }
 0x347   : > { %v13262_v0 = vld [vmem:[%s14809_s9 + $0x328] sm:$0xff]  ;;  %9363 = vmatpush.bf16.msrb.mxu2 %v13278_v63 }
 0x348   : > { %v13270_v3 = vld [vmem:[%s14809_s9 + $0x368] sm:$0xff]  ;;  %9275 = vmatpush.bf16.msrb.mxu0 %v13262_v0 }
 0x349   : > { %9319 = vmatpush.bf16.msrb.mxu1 %v13270_v3 }
 0x34b   : > { %v8864_v16 = vpop.f32.mrf.mxu2  ;;  %v8779_v21 = vpop.f32.mrf.mxu0  ;;  %9364 = vmatpush.bf16.msrb.mxu2 %v13277_v15 }
 0x34c   : > { %v8908_v17 = vpop.f32.mrf.mxu3  ;;  %v8865_v20 = vadd.f32 %v8864_v16, %v8821_v4  ;;  %v8823_v22 = vpop.f32.mrf.mxu1  ;;  %v12949_v16 = vld [vmem:[%s17090_s0 + $0x144] sm:$0xf] }
 0x34d   : > { %v8824_v26 = vadd.f32 %v8823_v22, %v8779_v21  ;;  %v10934_v21 = vld [vmem:[%s17090_s0 + $0x1d8] sm:$0xf0]  ;;  %9320 = vmatpush.bf16.msrb.mxu1 %v13269_v42 }
 0x34e   : > { %v15265_v28 = vadd.f32 %v8908_v17, %v8865_v20  ;;  %8959 = vmatmul.bf16.gmra.mxu0 %v11629_v18  ;;  %v10926_v17 = vld [vmem:[%s17090_s0 + $0x1d0] sm:$0xf0]  ;;  %v10932_v18 = vld [vmem:[%s17090_s0 + $0x148] sm:$0xf]  ;;  %v12950_v20 = vld [vmem:[%s17090_s0 + $0x14c] sm:$0xf] }
 0x34f   : > { %9003 = vmatmul.bf16.gmra.mxu1 %v11633_v19  ;;  %v12968_v19 = vld [vmem:[%s17090_s0 + $0x1d4] sm:$0xf0] }
 0x350   : > { %9047 = vmatmul.bf16.gmra.mxu2 %v11637_v23  ;;  %v10933_v32 = vor.u32 %v12968_v19, %v10932_v18 }
 0x351   : > { %9091 = vmatmul.bf16.gmra.mxu3 %v11641_v24  ;;  %v10925_v24 = vor.u32 %v12967_v14, %v10924_v13  ;;  %v13268_v14 = vld [vmem:[%s14809_s9 + $0x358] sm:$0xff] }
 0x352   : > { %9321 = vmatpush.bf16.msrb.mxu1 %v13268_v14 }
 0x353   : > { %v8867_v33 = vpop.f32.mrf.mxu2  ;;  %v8781_v38 = vpop.f32.mrf.mxu0 }
 0x354   : > { %v8911_v36 = vpop.f32.mrf.mxu3  ;;  %v8868_v37 = vadd.f32 %v8867_v33, %v8824_v26  ;;  %v8825_v39 = vpop.f32.mrf.mxu1  ;;  %v10929_v26 = vor.u32 %v12949_v16, %v10926_v17  ;;  %v10937_v33 = vor.u32 %v12950_v20, %v10934_v21 }
 0x355   : > { %v8826_v40 = vadd.f32 %v8825_v39, %v8781_v38  ;;  %v13261_v38 = vld [vmem:[%s14809_s9 + $0x320] sm:$0xff] }
 0x356   : > { %v15271_v41 = vadd.f32 %v8911_v36, %v8868_v37  ;;  %v13285_v39 = vld [vmem:[%s14809_s9 + $0x3e0] sm:$0xff]  ;;  %9276 = vmatpush.bf16.msrb.mxu0 %v13261_v38  ;;  %v13022_v38 = vld [vmem:[%s17090_s0 + $0x38c] sm:$0xf] }
 0x357   : > { %9408 = vmatpush.bf16.msrb.mxu3 %v13285_v39  ;;  %v11222_v39 = vld [vmem:[%s17090_s0 + $0x418] sm:$0xf0] }
 0x35b   : > { %v8869_v50 = vpop.f32.mrf.mxu2  ;;  %v8784_v55 = vpop.f32.mrf.mxu0 }
 0x35c   : > { %v8913_v51 = vpop.f32.mrf.mxu3  ;;  %v8870_v54 = vadd.f32 %v8869_v50, %v8826_v40  ;;  %v8828_v56 = vpop.f32.mrf.mxu1  ;;  %v13003_v50 = vld [vmem:[%s17090_s0 + $0x2ec] sm:$0xf0] }
 0x35d   : > { %v8829_v61 = vadd.f32 %v8828_v56, %v8784_v55  ;;  %v12985_v55 = vld [vmem:[%s17090_s0 + $0x264] sm:$0xf]  ;;  %v11076_v56 = vld [vmem:[%s17090_s0 + $0x268] sm:$0xf]  ;;  %v11069_v2 = vor.u32 %v13003_v50, %v11068_v49  ;;  %v11225_v49 = vor.u32 %v13022_v38, %v11222_v39 }
 0x35e   : > { %v15297_v62 = vadd.f32 %v8913_v51, %v8870_v54  ;;  %9105 = vmatmul.bf16.vlgmr.msra.gmra.mxu0 %v10781_v52  ;;  %v13276_v52 = vld [vmem:[%s14809_s9 + $0x398] sm:$0xff]  ;;  %v13257_v38 = vld [vmem:[%s14809_s9 + $0x300] sm:$0xff] }
 0x35f   : > { %9149 = vmatmul.bf16.vlgmr.msra.gmra.mxu1 %v10785_v53  ;;  %v13260_v53 = vld [vmem:[%s14809_s9 + $0x318] sm:$0xff]  ;;  %9365 = vmatpush.bf16.msrb.mxu2 %v13276_v52  ;;  %v13281_v39 = vld [vmem:[%s14809_s9 + $0x3c0] sm:$0xff] }
 0x360   : > { %9193 = vmatmul.bf16.vlgmr.msra.gmra.mxu2 %v10789_v59  ;;  %v13284_v54 = vld [vmem:[%s14809_s9 + $0x3d8] sm:$0xff]  ;;  %9277 = vmatpush.bf16.msrb.mxu0 %v13260_v53 }
 0x361   : > { %9237 = vmatmul.bf16.vlgmr.msra.gmra.mxu3 %v10793_v60  ;;  %v13004_v59 = vld [vmem:[%s17090_s0 + $0x2f4] sm:$0xf0]  ;;  %v12986_v60 = vld [vmem:[%s17090_s0 + $0x26c] sm:$0xf] }
 0x362   : > { %9409 = vmatpush.bf16.msrb.mxu3 %v13284_v54 }
 0x363   : > { %v8872_v4 = vpop.f32.mrf.mxu2  ;;  %v8786_v9 = vpop.f32.mrf.mxu0 }
 0x364   : > { %v8916_v7 = vpop.f32.mrf.mxu3  ;;  %v8873_v8 = vadd.f32 %v8872_v4, %v8829_v61  ;;  %v8830_v10 = vpop.f32.mrf.mxu1  ;;  %v11078_v61 = vld [vmem:[%s17090_s0 + $0x2f8] sm:$0xf0] }
 0x365   : > { %v8831_v11 = vadd.f32 %v8830_v10, %v8786_v9  ;;  %v11077_v9 = vor.u32 %v13004_v59, %v11076_v56  ;;  %v11081_v10 = vor.u32 %v12986_v60, %v11078_v61  ;;  %v13075_v61 = vld [vmem:[%s17090_s0 + $0x52c] sm:$0xf0] }
 0x366   : > { %v15303_v12 = vadd.f32 %v8916_v7, %v8873_v8 }
 0x36b   : > { %v8874_v22 = vpop.f32.mrf.mxu2  ;;  %v8930_v30 = vpop.f32.mrf.mxu0 }
 0x36c   : > { %v8918_v23 = vpop.f32.mrf.mxu3  ;;  %v8875_v29 = vadd.f32 %v8874_v22, %v8831_v11  ;;  %v8974_v31 = vpop.f32.mrf.mxu1  ;;  %v8931_v36 = vadd.f32 %v8930_v30, %v15107_v5  ;;  %v11212_v22 = vld [vmem:[%s17090_s0 + $0x380] sm:$0xf]  ;;  %v13259_v30 = vld [vmem:[%s14809_s9 + $0x310] sm:$0xff] }
 0x36d   : > { %9278 = vmatpush.bf16.msrb.mxu0 %v13259_v30 }
 0x36e   : > { %v15331_v37 = vadd.f32 %v8918_v23, %v8875_v29  ;;  %v8975_v40 = vadd.f32 %v8974_v31, %v8931_v36  ;;  %9110 = vmatmul.bf16.gmra.mxu0 %v10925_v24  ;;  %v13039_v23 = vld [vmem:[%s17090_s0 + $0x40c] sm:$0xf0]  ;;  %v13021_v24 = vld [vmem:[%s17090_s0 + $0x384] sm:$0xf]  ;;  %v13040_v36 = vld [vmem:[%s17090_s0 + $0x414] sm:$0xf0] }
 0x36f   : > { %9154 = vmatmul.bf16.gmra.mxu1 %v10929_v26  ;;  %v13275_v29 = vld [vmem:[%s14809_s9 + $0x390] sm:$0xff] }
 0x370   : > { %9198 = vmatmul.bf16.gmra.mxu2 %v10933_v32  ;;  %v13283_v31 = vld [vmem:[%s14809_s9 + $0x3d0] sm:$0xff]  ;;  %v11220_v32 = vld [vmem:[%s17090_s0 + $0x388] sm:$0xf] }
 0x371   : > { %9242 = vmatmul.bf16.gmra.mxu3 %v10937_v33  ;;  %v13267_v33 = vld [vmem:[%s14809_s9 + $0x350] sm:$0xff]  ;;  %9366 = vmatpush.bf16.msrb.mxu2 %v13275_v29  ;;  %v13273_v29 = vld [vmem:[%s14809_s9 + $0x380] sm:$0xff] }
 0x372   : > { %9410 = vmatpush.bf16.msrb.mxu3 %v13283_v31  ;;  %9322 = vmatpush.bf16.msrb.mxu1 %v13267_v33 }
 0x373   : > { %v9018_v43 = vpop.f32.mrf.mxu2  ;;  %v8932_v5 = vpop.f32.mrf.mxu0 }
 0x374   : > { %v9062_v44 = vpop.f32.mrf.mxu3  ;;  %v9019_v45 = vadd.f32 %v9018_v43, %v8975_v40  ;;  %v8976_v46 = vpop.f32.mrf.mxu1  ;;  %v8933_v47 = vadd.f32 %v8932_v5, %v15136_v27  ;;  %v11070_v27 = vld [vmem:[%s17090_s0 + $0x2f0] sm:$0xf0]  ;;  %v11213_v43 = vor.u32 %v13039_v23, %v11212_v22 }
 0x375   : > { %v11073_v3 = vor.u32 %v12985_v55, %v11070_v27 }
 0x376   : > { %v15337_v48 = vadd.f32 %v9062_v44, %v9019_v45  ;;  %v8977_v51 = vadd.f32 %v8976_v46, %v8933_v47  ;;  %v11221_v47 = vor.u32 %v13040_v36, %v11220_v32 }
 0x37b   : > { %v9020_v63 = vpop.f32.mrf.mxu2  ;;  %v8935_v7 = vpop.f32.mrf.mxu0 }
 0x37c   : > { %v9064_v0 = vpop.f32.mrf.mxu3  ;;  %v9021_v4 = vadd.f32 %v9020_v63, %v8977_v51  ;;  %v8979_v8 = vpop.f32.mrf.mxu1  ;;  %v8936_v11 = vadd.f32 %v8935_v7, %v15139_v35  ;;  %v13274_v63 = vld [vmem:[%s14809_s9 + $0x388] sm:$0xff]  ;;  %v13057_v7 = vld [vmem:[%s17090_s0 + $0x4a4] sm:$0xf] }
 0x37d   : > { %9367 = vmatpush.bf16.msrb.mxu2 %v13274_v63 }
 0x37e   : > { %v15367_v13 = vadd.f32 %v9064_v0, %v9021_v4  ;;  %v8980_v15 = vadd.f32 %v8979_v8, %v8936_v11  ;;  %9115 = vmatmul.bf16.gmra.mxu0 %v11069_v2  ;;  %v13258_v2 = vld [vmem:[%s14809_s9 + $0x308] sm:$0xff]  ;;  %v11366_v11 = vld [vmem:[%s17090_s0 + $0x538] sm:$0xf0] }
 0x37f   : > { %9159 = vmatmul.bf16.gmra.mxu1 %v11073_v3  ;;  %v13282_v3 = vld [vmem:[%s14809_s9 + $0x3c8] sm:$0xff]  ;;  %9279 = vmatpush.bf16.msrb.mxu0 %v13258_v2  ;;  %v13312_v2 = vld [vmem:[%s14809_s9 + $0x4b8] sm:$0xff] }
 0x380   : > { %9203 = vmatmul.bf16.gmra.mxu2 %v11077_v9  ;;  %v13266_v4 = vld [vmem:[%s14809_s9 + $0x348] sm:$0xff]  ;;  %v13076_v9 = vld [vmem:[%s17090_s0 + $0x534] sm:$0xf0]  ;;  %9411 = vmatpush.bf16.msrb.mxu3 %v13282_v3 }
 0x381   : > { %9247 = vmatmul.bf16.gmra.mxu3 %v11081_v10  ;;  %v11364_v8 = vld [vmem:[%s17090_s0 + $0x4a8] sm:$0xf]  ;;  %v13058_v10 = vld [vmem:[%s17090_s0 + $0x4ac] sm:$0xf]  ;;  %9323 = vmatpush.bf16.msrb.mxu1 %v13266_v4  ;;  %v13296_v3 = vld [vmem:[%s14809_s9 + $0x438] sm:$0xff] }
 0x382   : > { %v11369_v22 = vor.u32 %v13058_v10, %v11366_v11  ;;  %9368 = vmatpush.bf16.msrb.mxu2 %v13273_v29  ;;  %v13320_v4 = vld [vmem:[%s14809_s9 + $0x4f8] sm:$0xff] }
 0x383   : > { %v9023_v16 = vpop.f32.mrf.mxu2  ;;  %v8937_v19 = vpop.f32.mrf.mxu0  ;;  %9280 = vmatpush.bf16.msrb.mxu0 %v13257_v38 }
 0x384   : > { %v9067_v17 = vpop.f32.mrf.mxu3  ;;  %v9024_v18 = vadd.f32 %v9023_v16, %v8980_v15  ;;  %v8981_v20 = vpop.f32.mrf.mxu1  ;;  %v8938_v35 = vadd.f32 %v8937_v19, %v15169_v58  ;;  %v11214_v58 = vld [vmem:[%s17090_s0 + $0x410] sm:$0xf0]  ;;  %9412 = vmatpush.bf16.msrb.mxu3 %v13281_v39 }
 0x385   : > { %v11217_v44 = vor.u32 %v13021_v24, %v11214_v58 }
 0x386   : > { %v15371_v21 = vadd.f32 %v9067_v17, %v9024_v18  ;;  %v8982_v26 = vadd.f32 %v8981_v20, %v8938_v35  ;;  %v11365_v35 = vor.u32 %v13076_v9, %v11364_v8  ;;  %9537 = vmatpush.bf16.msra.mxu2 %v13312_v2 }
 0x387   : > { %9449 = vmatpush.bf16.msra.mxu0 %v13296_v3 }
 0x388   : > { %9581 = vmatpush.bf16.msra.mxu3 %v13320_v4 }
 0x38b   : > { %v9025_v40 = vpop.f32.mrf.mxu2  ;;  %v8940_v5 = vpop.f32.mrf.mxu0 }
 0x38c   : > { %v9069_v42 = vpop.f32.mrf.mxu3  ;;  %v9026_v45 = vadd.f32 %v9025_v40, %v8982_v26  ;;  %v8984_v46 = vpop.f32.mrf.mxu1  ;;  %v8941_v50 = vadd.f32 %v8940_v5, %v15171_v1  ;;  %v11356_v1 = vld [vmem:[%s17090_s0 + $0x4a0] sm:$0xf]  ;;  %v11508_v5 = vld [vmem:[%s17090_s0 + $0x5c8] sm:$0xf] }
 0x38d   : > { %v11357_v16 = vor.u32 %v13075_v61, %v11356_v1 }
 0x38e   : > { %v15402_v51 = vadd.f32 %v9069_v42, %v9026_v45  ;;  %v8985_v52 = vadd.f32 %v8984_v46, %v8941_v50  ;;  %9120 = vmatmul.bf16.gmra.mxu0 %v11213_v43  ;;  %v11500_v42 = vld [vmem:[%s17090_s0 + $0x5c0] sm:$0xf]  ;;  %v13111_v43 = vld [vmem:[%s17090_s0 + $0x64c] sm:$0xf0]  ;;  %v13093_v45 = vld [vmem:[%s17090_s0 + $0x5c4] sm:$0xf] }
 0x38f   : > { %9164 = vmatmul.bf16.gmra.mxu1 %v11217_v44  ;;  %v13265_v44 = vld [vmem:[%s14809_s9 + $0x340] sm:$0xff]  ;;  %v13112_v46 = vld [vmem:[%s17090_s0 + $0x654] sm:$0xf0] }
 0x390   : > { %9208 = vmatmul.bf16.gmra.mxu2 %v11221_v47  ;;  %v13094_v47 = vld [vmem:[%s17090_s0 + $0x5cc] sm:$0xf]  ;;  %9324 = vmatpush.bf16.msrb.mxu1 %v13265_v44  ;;  %v13319_v44 = vld [vmem:[%s14809_s9 + $0x4f0] sm:$0xff] }
 0x391   : > { %9252 = vmatmul.bf16.gmra.mxu3 %v11225_v49  ;;  %v11510_v49 = vld [vmem:[%s17090_s0 + $0x658] sm:$0xf0] }
 0x392   : > { %v11513_v1 = vor.u32 %v13094_v47, %v11510_v49  ;;  %9582 = vmatpush.bf16.msra.mxu3 %v13319_v44 }
 0x393   : > { %v9028_v53 = vpop.f32.mrf.mxu2  ;;  %v8942_v27 = vpop.f32.mrf.mxu0 }
 0x394   : > { %v9072_v54 = vpop.f32.mrf.mxu3  ;;  %v9029_v55 = vadd.f32 %v9028_v53, %v8985_v52  ;;  %v8986_v56 = vpop.f32.mrf.mxu1  ;;  %v8943_v59 = vadd.f32 %v8942_v27, %v15201_v25  ;;  %v11358_v25 = vld [vmem:[%s17090_s0 + $0x530] sm:$0xf0]  ;;  %v11501_v53 = vor.u32 %v13111_v43, %v11500_v42 }
 0x395   : > { %v11361_v17 = vor.u32 %v13057_v7, %v11358_v25  ;;  %v13311_v42 = vld [vmem:[%s14809_s9 + $0x4b0] sm:$0xff] }
 0x396   : > { %v15405_v60 = vadd.f32 %v9072_v54, %v9029_v55  ;;  %v8987_v0 = vadd.f32 %v8986_v56, %v8943_v59  ;;  %v11509_v59 = vor.u32 %v13112_v46, %v11508_v5  ;;  %v13295_v43 = vld [vmem:[%s14809_s9 + $0x430] sm:$0xff]  ;;  %9538 = vmatpush.bf16.msra.mxu2 %v13311_v42 }
 0x397   : > { %9450 = vmatpush.bf16.msra.mxu0 %v13295_v43 }
 0x39b   : > { %v9030_v14 = vpop.f32.mrf.mxu2  ;;  %v8945_v19 = vpop.f32.mrf.mxu0 }
 0x39c   : > { %v9074_v15 = vpop.f32.mrf.mxu3  ;;  %v9031_v18 = vadd.f32 %v9030_v14, %v8987_v0  ;;  %v8989_v20 = vpop.f32.mrf.mxu1  ;;  %v8946_v23 = vadd.f32 %v8945_v19, %v15204_v34  ;;  %v13304_v14 = vld [vmem:[%s14809_s9 + $0x478] sm:$0xff]  ;;  %v11652_v19 = vld [vmem:[%s17090_s0 + $0x6e8] sm:$0xf] }
 0x39d   : > { %9493 = vmatpush.bf16.msra.mxu1 %v13304_v14  ;;  %v13310_v14 = vld [vmem:[%s14809_s9 + $0x4a8] sm:$0xff] }
 0x39e   : > { %v15436_v24 = vadd.f32 %v9074_v15, %v9031_v18  ;;  %v8990_v26 = vadd.f32 %v8989_v20, %v8946_v23  ;;  %9125 = vmatmul.bf16.gmra.mxu0 %v11357_v16  ;;  %v11644_v16 = vld [vmem:[%s17090_s0 + $0x6e0] sm:$0xf]  ;;  %v13129_v18 = vld [vmem:[%s17090_s0 + $0x6e4] sm:$0xf]  ;;  %v13148_v20 = vld [vmem:[%s17090_s0 + $0x774] sm:$0xf0]  ;;  %9539 = vmatpush.bf16.msra.mxu2 %v13310_v14 }
 0x39f   : > { %9169 = vmatmul.bf16.gmra.mxu1 %v11361_v17  ;;  %v13147_v17 = vld [vmem:[%s17090_s0 + $0x76c] sm:$0xf0]  ;;  %v12988_v14 = vld [vmem:[%s17090_s0 + $0x27c] sm:$0xf] }
 0x3a0   : > { %9213 = vmatmul.bf16.gmra.mxu2 %v11365_v35  ;;  %v13130_v35 = vld [vmem:[%s17090_s0 + $0x6ec] sm:$0xf]  ;;  %v11645_v29 = vor.u32 %v13147_v17, %v11644_v16 }
 0x3a1   : > { %9257 = vmatmul.bf16.gmra.mxu3 %v11369_v22  ;;  %v11654_v22 = vld [vmem:[%s17090_s0 + $0x778] sm:$0xf0]  ;;  %v13294_v16 = vld [vmem:[%s14809_s9 + $0x428] sm:$0xff] }
 0x3a2   : > { %v13318_v17 = vld [vmem:[%s14809_s9 + $0x4e8] sm:$0xff]  ;;  %9451 = vmatpush.bf16.msra.mxu0 %v13294_v16 }
 0x3a3   : > { %v9033_v30 = vpop.f32.mrf.mxu2  ;;  %v8947_v32 = vpop.f32.mrf.mxu0  ;;  %9583 = vmatpush.bf16.msra.mxu3 %v13318_v17 }
 0x3a4   : > { %v9077_v31 = vpop.f32.mrf.mxu3  ;;  %v9034_v58 = vadd.f32 %v9033_v30, %v8990_v26  ;;  %v8991_v33 = vpop.f32.mrf.mxu1  ;;  %v8948_v36 = vadd.f32 %v8947_v32, %v15233_v57  ;;  %v11502_v57 = vld [vmem:[%s17090_s0 + $0x650] sm:$0xf0] }
 0x3a5   : > { %v11505_v54 = vor.u32 %v13093_v45, %v11502_v57  ;;  %v13303_v45 = vld [vmem:[%s14809_s9 + $0x470] sm:$0xff] }
 0x3a6   : > { %v15440_v34 = vadd.f32 %v9077_v31, %v9034_v58  ;;  %v8992_v40 = vadd.f32 %v8991_v33, %v8948_v36  ;;  %v11653_v33 = vor.u32 %v13148_v20, %v11652_v19  ;;  %v11657_v36 = vor.u32 %v13130_v35, %v11654_v22  ;;  %9494 = vmatpush.bf16.msra.mxu1 %v13303_v45 }
 0x3ab   : > { %v9035_v50 = vpop.f32.mrf.mxu2  ;;  %v8950_v27 = vpop.f32.mrf.mxu0 }
 0x3ac   : > { %v9079_v52 = vpop.f32.mrf.mxu3  ;;  %v9036_v55 = vadd.f32 %v9035_v50, %v8992_v40  ;;  %v8994_v56 = vpop.f32.mrf.mxu1  ;;  %v8951_v61 = vadd.f32 %v8950_v27, %v15238_v6  ;;  %v10798_v27 = vld [vmem:[%s17090_s0 + $0xc0] sm:$0xf0] }
 0x3ae   : > { %v15470_v63 = vadd.f32 %v9079_v52, %v9036_v55  ;;  %v8995_v0 = vadd.f32 %v8994_v56, %v8951_v61  ;;  %9130 = vmatmul.bf16.gmra.mxu0 %v11501_v53  ;;  %v10796_v53 = vld [vmem:[%s17090_s0 + $0x30] sm:$0xf]  ;;  %v12915_v55 = vld [vmem:[%s17090_s0 + $0x34] sm:$0xf]  ;;  %v12934_v56 = vld [vmem:[%s17090_s0 + $0xc4] sm:$0xf0] }
 0x3af   : > { %9174 = vmatmul.bf16.gmra.mxu1 %v11505_v54  ;;  %v12933_v54 = vld [vmem:[%s17090_s0 + $0xbc] sm:$0xf0]  ;;  %v10801_v3 = vor.u32 %v12915_v55, %v10798_v27 }
 0x3b0   : > { %9218 = vmatmul.bf16.gmra.mxu2 %v11509_v59  ;;  %v12916_v59 = vld [vmem:[%s17090_s0 + $0x3c] sm:$0xf]  ;;  %v10797_v2 = vor.u32 %v12933_v54, %v10796_v53  ;;  %v13317_v53 = vld [vmem:[%s14809_s9 + $0x4e0] sm:$0xff] }
 0x3b1   : > { %9262 = vmatmul.bf16.gmra.mxu3 %v11513_v1  ;;  %v10806_v1 = vld [vmem:[%s17090_s0 + $0xc8] sm:$0xf0]  ;;  %v13301_v55 = vld [vmem:[%s14809_s9 + $0x460] sm:$0xff] }
 0x3b2   : > { %9584 = vmatpush.bf16.msra.mxu3 %v13317_v53  ;;  %v11238_v53 = vld [vmem:[%s17090_s0 + $0x428] sm:$0xf0] }
 0x3b3   : > { %v9038_v7 = vpop.f32.mrf.mxu2  ;;  %v8952_v9 = vpop.f32.mrf.mxu0 }
 0x3b4   : > { %v9082_v25 = vpop.f32.mrf.mxu3  ;;  %v9039_v8 = vadd.f32 %v9038_v7, %v8995_v0  ;;  %v8996_v10 = vpop.f32.mrf.mxu1  ;;  %v8953_v6 = vadd.f32 %v8952_v9, %v15265_v28  ;;  %v11646_v28 = vld [vmem:[%s17090_s0 + $0x770] sm:$0xf0]  ;;  %v10809_v9 = vor.u32 %v12916_v59, %v10806_v1 }
 0x3b5   : > { %v11649_v30 = vor.u32 %v13129_v18, %v11646_v28  ;;  %v13302_v18 = vld [vmem:[%s14809_s9 + $0x468] sm:$0xff] }
 0x3b6   : > { %v15476_v11 = vadd.f32 %v9082_v25, %v9039_v8  ;;  %v8997_v15 = vadd.f32 %v8996_v10, %v8953_v6  ;;  %9495 = vmatpush.bf16.msra.mxu1 %v13302_v18 }
 0x3ba   : > { %9496 = vmatpush.bf16.msra.mxu1 %v13301_v55 }
 0x3bb   : > { %v9040_v23 = vpop.f32.mrf.mxu2  ;;  %v8955_v58 = vpop.f32.mrf.mxu0 }
 0x3bc   : > { %v9084_v26 = vpop.f32.mrf.mxu3  ;;  %v9041_v31 = vadd.f32 %v9040_v23, %v8997_v15  ;;  %v8999_v32 = vpop.f32.mrf.mxu1  ;;  %v8956_v38 = vadd.f32 %v8955_v58, %v15271_v41  ;;  %v12951_v58 = vld [vmem:[%s17090_s0 + $0x154] sm:$0xf] }
 0x3be   : > { %v15504_v39 = vadd.f32 %v9084_v26, %v9041_v31  ;;  %v9000_v40 = vadd.f32 %v8999_v32, %v8956_v38  ;;  %9135 = vmatmul.bf16.gmra.mxu0 %v11645_v29  ;;  %v10940_v29 = vld [vmem:[%s17090_s0 + $0x150] sm:$0xf]  ;;  %v13309_v31 = vld [vmem:[%s14809_s9 + $0x4a0] sm:$0xff]  ;;  %v10948_v32 = vld [vmem:[%s17090_s0 + $0x158] sm:$0xf] }
 0x3bf   : > { %9179 = vmatmul.bf16.gmra.mxu1 %v11649_v30  ;;  %v12969_v30 = vld [vmem:[%s17090_s0 + $0x1dc] sm:$0xf0]  ;;  %v10950_v38 = vld [vmem:[%s17090_s0 + $0x1e8] sm:$0xf0]  ;;  %9540 = vmatpush.bf16.msra.mxu2 %v13309_v31 }
 0x3c0   : > { %9223 = vmatmul.bf16.gmra.mxu2 %v11653_v33  ;;  %v12970_v33 = vld [vmem:[%s17090_s0 + $0x1e4] sm:$0xf0]  ;;  %v10941_v43 = vor.u32 %v12969_v30, %v10940_v29  ;;  %v13300_v30 = vld [vmem:[%s14809_s9 + $0x458] sm:$0xff] }
 0x3c1   : > { %9267 = vmatmul.bf16.gmra.mxu3 %v11657_v36  ;;  %v12952_v36 = vld [vmem:[%s17090_s0 + $0x15c] sm:$0xf]  ;;  %9497 = vmatpush.bf16.msra.mxu1 %v13300_v30 }
 0x3c3   : > { %v9043_v57 = vpop.f32.mrf.mxu2  ;;  %v8957_v47 = vpop.f32.mrf.mxu0 }
 0x3c4   : > { %v9087_v5 = vpop.f32.mrf.mxu3  ;;  %v9044_v46 = vadd.f32 %v9043_v57, %v9000_v40  ;;  %v9001_v41 = vpop.f32.mrf.mxu1  ;;  %v8958_v49 = vadd.f32 %v8957_v47, %v15297_v62  ;;  %v10804_v62 = vld [vmem:[%s17090_s0 + $0x38] sm:$0xf]  ;;  %v10953_v47 = vor.u32 %v12952_v36, %v10950_v38 }
 0x3c5   : > { %v10805_v8 = vor.u32 %v12934_v56, %v10804_v62 }
 0x3c6   : > { %v15511_v50 = vadd.f32 %v9087_v5, %v9044_v46  ;;  %v9002_v52 = vadd.f32 %v9001_v41, %v8958_v49  ;;  %v10949_v46 = vor.u32 %v12970_v33, %v10948_v32 }
 0x3cb   : > { %v9045_v61 = vpop.f32.mrf.mxu2  ;;  %v8960_v7 = vpop.f32.mrf.mxu0 }
 0x3cc   : > { %v9089_v0 = vpop.f32.mrf.mxu3  ;;  %v9046_v4 = vadd.f32 %v9045_v61, %v9002_v52  ;;  %v9004_v25 = vpop.f32.mrf.mxu1  ;;  %v8961_v10 = vadd.f32 %v8960_v7, %v15303_v12  ;;  %v13293_v52 = vld [vmem:[%s14809_s9 + $0x420] sm:$0xff]  ;;  %v13292_v7 = vld [vmem:[%s14809_s9 + $0x418] sm:$0xff] }
 0x3cd   : > { %9452 = vmatpush.bf16.msra.mxu0 %v13293_v52  ;;  %v13024_v52 = vld [vmem:[%s17090_s0 + $0x39c] sm:$0xf] }
 0x3ce   : > { %v15538_v6 = vadd.f32 %v9089_v0, %v9046_v4  ;;  %v9005_v15 = vadd.f32 %v9004_v25, %v8961_v10  ;;  %9281 = vmatmul.bf16.vlgmr.msrb.gmra.mxu0 %v10797_v2  ;;  %v11084_v0 = vld [vmem:[%s17090_s0 + $0x270] sm:$0xf]  ;;  %v13005_v2 = vld [vmem:[%s17090_s0 + $0x2fc] sm:$0xf0]  ;;  %v13308_v4 = vld [vmem:[%s14809_s9 + $0x498] sm:$0xff] }
 0x3cf   : > { %9325 = vmatmul.bf16.vlgmr.msrb.gmra.mxu1 %v10801_v3  ;;  %v13316_v25 = vld [vmem:[%s14809_s9 + $0x4d8] sm:$0xff]  ;;  %v13006_v10 = vld [vmem:[%s17090_s0 + $0x304] sm:$0xf0]  ;;  %9541 = vmatpush.bf16.msra.mxu2 %v13308_v4  ;;  %v11085_v18 = vor.u32 %v13005_v2, %v11084_v0  ;;  %v11241_v0 = vor.u32 %v13024_v52, %v11238_v53  ;;  %v13289_v52 = vld [vmem:[%s14809_s9 + $0x400] sm:$0xff] }
 0x3d0   : > { %9369 = vmatmul.bf16.vlgmr.msrb.gmra.mxu2 %v10805_v8  ;;  %v12987_v8 = vld [vmem:[%s17090_s0 + $0x274] sm:$0xf]  ;;  %9585 = vmatpush.bf16.msra.mxu3 %v13316_v25  ;;  %v13313_v53 = vld [vmem:[%s14809_s9 + $0x4c0] sm:$0xff] }
 0x3d1   : > { %9413 = vmatmul.bf16.vlgmr.msrb.gmra.mxu3 %v10809_v9  ;;  %v11092_v9 = vld [vmem:[%s17090_s0 + $0x278] sm:$0xf]  ;;  %9453 = vmatpush.bf16.msra.mxu0 %v13292_v7 }
 0x3d3   : > { %v9048_v28 = vpop.f32.mrf.mxu2  ;;  %v8962_v12 = vpop.f32.mrf.mxu0 }
 0x3d4   : > { %v9092_v19 = vpop.f32.mrf.mxu3  ;;  %v9049_v20 = vadd.f32 %v9048_v28, %v9005_v15  ;;  %v9006_v35 = vpop.f32.mrf.mxu1  ;;  %v8963_v22 = vadd.f32 %v8962_v12, %v15331_v37  ;;  %v10942_v37 = vld [vmem:[%s17090_s0 + $0x1e0] sm:$0xf0]  ;;  %v11094_v15 = vld [vmem:[%s17090_s0 + $0x308] sm:$0xf0] }
 0x3d5   : > { %v10945_v44 = vor.u32 %v12951_v58, %v10942_v37 }
 0x3d6   : > { %v15545_v23 = vadd.f32 %v9092_v19, %v9049_v20  ;;  %v9007_v26 = vadd.f32 %v9006_v35, %v8963_v22  ;;  %v11093_v35 = vor.u32 %v13006_v10, %v11092_v9  ;;  %v11097_v22 = vor.u32 %v12988_v14, %v11094_v15  ;;  %v13077_v15 = vld [vmem:[%s17090_s0 + $0x53c] sm:$0xf0] }
 0x3db   : > { %v9050_v40 = vpop.f32.mrf.mxu2  ;;  %v9106_v57 = vpop.f32.mrf.mxu0 }
 0x3dc   : > { %v9094_v42 = vpop.f32.mrf.mxu3  ;;  %v9051_v45 = vadd.f32 %v9050_v40, %v9007_v26  ;;  %v9150_v5 = vpop.f32.mrf.mxu1  ;;  %v9107_v41 = vadd.f32 %v9106_v57, %v15337_v48  ;;  %v11228_v40 = vld [vmem:[%s17090_s0 + $0x390] sm:$0xf] }
 0x3dd   : > { %v13291_v57 = vld [vmem:[%s14809_s9 + $0x410] sm:$0xff] }
 0x3de   : > { %v15573_v49 = vadd.f32 %v9094_v42, %v9051_v45  ;;  %v9151_v54 = vadd.f32 %v9150_v5, %v9107_v41  ;;  %9286 = vmatmul.bf16.gmra.mxu0 %v10941_v43  ;;  %v13041_v42 = vld [vmem:[%s17090_s0 + $0x41c] sm:$0xf0]  ;;  %v13023_v43 = vld [vmem:[%s17090_s0 + $0x394] sm:$0xf]  ;;  %v13042_v41 = vld [vmem:[%s17090_s0 + $0x424] sm:$0xf0] }
 0x3df   : > { %9330 = vmatmul.bf16.gmra.mxu1 %v10945_v44  ;;  %v13307_v45 = vld [vmem:[%s14809_s9 + $0x490] sm:$0xff]  ;;  %9454 = vmatpush.bf16.msra.mxu0 %v13291_v57 }
 0x3e0   : > { %9374 = vmatmul.bf16.gmra.mxu2 %v10949_v46  ;;  %v13315_v5 = vld [vmem:[%s14809_s9 + $0x4d0] sm:$0xff]  ;;  %v11236_v46 = vld [vmem:[%s17090_s0 + $0x398] sm:$0xf] }
 0x3e1   : > { %9418 = vmatmul.bf16.gmra.mxu3 %v10953_v47  ;;  %v13299_v47 = vld [vmem:[%s14809_s9 + $0x450] sm:$0xff]  ;;  %9542 = vmatpush.bf16.msra.mxu2 %v13307_v45  ;;  %v13305_v45 = vld [vmem:[%s14809_s9 + $0x480] sm:$0xff] }
 0x3e2   : > { %9586 = vmatpush.bf16.msra.mxu3 %v13315_v5  ;;  %9498 = vmatpush.bf16.msra.mxu1 %v13299_v47 }
 0x3e3   : > { %v9194_v27 = vpop.f32.mrf.mxu2  ;;  %v9108_v48 = vpop.f32.mrf.mxu0 }
 0x3e4   : > { %v9238_v62 = vpop.f32.mrf.mxu3  ;;  %v9195_v56 = vadd.f32 %v9194_v27, %v9151_v54  ;;  %v9152_v59 = vpop.f32.mrf.mxu1  ;;  %v9109_v1 = vadd.f32 %v9108_v48, %v15367_v13  ;;  %v11086_v13 = vld [vmem:[%s17090_s0 + $0x300] sm:$0xf0]  ;;  %v11229_v27 = vor.u32 %v13041_v42, %v11228_v40 }
 0x3e5   : > { %v11089_v28 = vor.u32 %v12987_v8, %v11086_v13 }
 0x3e6   : > { %v15579_v61 = vadd.f32 %v9238_v62, %v9195_v56  ;;  %v9153_v3 = vadd.f32 %v9152_v59, %v9109_v1  ;;  %v11237_v1 = vor.u32 %v13042_v41, %v11236_v46 }
 0x3eb   : > { %v9196_v16 = vpop.f32.mrf.mxu2  ;;  %v9111_v20 = vpop.f32.mrf.mxu0 }
 0x3ec   : > { %v9240_v17 = vpop.f32.mrf.mxu3  ;;  %v9197_v19 = vadd.f32 %v9196_v16, %v9153_v3  ;;  %v9155_v12 = vpop.f32.mrf.mxu1  ;;  %v9112_v26 = vadd.f32 %v9111_v20, %v15371_v21  ;;  %v13306_v16 = vld [vmem:[%s14809_s9 + $0x488] sm:$0xff]  ;;  %v13059_v20 = vld [vmem:[%s17090_s0 + $0x4b4] sm:$0xf] }
 0x3ed   : > { %9543 = vmatpush.bf16.msra.mxu2 %v13306_v16 }
 0x3ee   : > { %v15609_v29 = vadd.f32 %v9240_v17, %v9197_v19  ;;  %v9156_v31 = vadd.f32 %v9155_v12, %v9112_v26  ;;  %9291 = vmatmul.bf16.gmra.mxu0 %v11085_v18  ;;  %v13290_v18 = vld [vmem:[%s14809_s9 + $0x408] sm:$0xff]  ;;  %v11380_v12 = vld [vmem:[%s17090_s0 + $0x4b8] sm:$0xf] }
 0x3ef   : > { %9335 = vmatmul.bf16.gmra.mxu1 %v11089_v28  ;;  %v13314_v28 = vld [vmem:[%s14809_s9 + $0x4c8] sm:$0xff]  ;;  %9455 = vmatpush.bf16.msra.mxu0 %v13290_v18  ;;  %v13344_v18 = vld [vmem:[%s14809_s9 + $0x5b8] sm:$0xff] }
 0x3f0   : > { %9379 = vmatmul.bf16.gmra.mxu2 %v11093_v35  ;;  %v13298_v19 = vld [vmem:[%s14809_s9 + $0x448] sm:$0xff]  ;;  %9587 = vmatpush.bf16.msra.mxu3 %v13314_v28  ;;  %v13328_v28 = vld [vmem:[%s14809_s9 + $0x538] sm:$0xff] }
 0x3f1   : > { %9423 = vmatmul.bf16.gmra.mxu3 %v11097_v22  ;;  %v13078_v35 = vld [vmem:[%s17090_s0 + $0x544] sm:$0xf0]  ;;  %v13060_v22 = vld [vmem:[%s17090_s0 + $0x4bc] sm:$0xf]  ;;  %v11382_v26 = vld [vmem:[%s17090_s0 + $0x548] sm:$0xf0]  ;;  %9499 = vmatpush.bf16.msra.mxu1 %v13298_v19 }
 0x3f2   : > { %v11385_v40 = vor.u32 %v13060_v22, %v11382_v26  ;;  %9544 = vmatpush.bf16.msra.mxu2 %v13305_v45  ;;  %v13352_v19 = vld [vmem:[%s14809_s9 + $0x5f8] sm:$0xff] }
 0x3f3   : > { %v9199_v58 = vpop.f32.mrf.mxu2  ;;  %v9113_v33 = vpop.f32.mrf.mxu0  ;;  %9456 = vmatpush.bf16.msra.mxu0 %v13289_v52 }
 0x3f4   : > { %v9243_v37 = vpop.f32.mrf.mxu3  ;;  %v9200_v32 = vadd.f32 %v9199_v58, %v9156_v31  ;;  %v9157_v36 = vpop.f32.mrf.mxu1  ;;  %v9114_v21 = vadd.f32 %v9113_v33, %v15402_v51  ;;  %v11230_v51 = vld [vmem:[%s17090_s0 + $0x420] sm:$0xf0]  ;;  %9588 = vmatpush.bf16.msra.mxu3 %v13313_v53 }
 0x3f5   : > { %v11233_v62 = vor.u32 %v13023_v43, %v11230_v51 }
 0x3f6   : > { %v15613_v38 = vadd.f32 %v9243_v37, %v9200_v32  ;;  %v9158_v44 = vadd.f32 %v9157_v36, %v9114_v21  ;;  %v11381_v21 = vor.u32 %v13078_v35, %v11380_v12  ;;  %9713 = vmatpush.bf16.msrb.mxu2 %v13344_v18 }
 0x3f7   : > { %9625 = vmatpush.bf16.msrb.mxu0 %v13328_v28 }
 0x3f8   : > { %9757 = vmatpush.bf16.msrb.mxu3 %v13352_v19 }
 0x3fb   : > { %v9201_v54 = vpop.f32.mrf.mxu2  ;;  %v9116_v48 = vpop.f32.mrf.mxu0 }
 0x3fc   : > { %v9245_v55 = vpop.f32.mrf.mxu3  ;;  %v9202_v56 = vadd.f32 %v9201_v54, %v9158_v44  ;;  %v9160_v59 = vpop.f32.mrf.mxu1  ;;  %v9117_v2 = vadd.f32 %v9116_v48, %v15405_v60  ;;  %v11372_v60 = vld [vmem:[%s17090_s0 + $0x4b0] sm:$0xf]  ;;  %v11524_v48 = vld [vmem:[%s17090_s0 + $0x5d8] sm:$0xf] }
 0x3fd   : > { %v11373_v58 = vor.u32 %v13077_v15, %v11372_v60 }
 0x3fe   : > { %v15644_v3 = vadd.f32 %v9245_v55, %v9202_v56  ;;  %v9161_v4 = vadd.f32 %v9160_v59, %v9117_v2  ;;  %9296 = vmatmul.bf16.gmra.mxu0 %v11229_v27  ;;  %v11516_v55 = vld [vmem:[%s17090_s0 + $0x5d0] sm:$0xf]  ;;  %v13113_v27 = vld [vmem:[%s17090_s0 + $0x65c] sm:$0xf0]  ;;  %v13095_v56 = vld [vmem:[%s17090_s0 + $0x5d4] sm:$0xf] }
 0x3ff   : > { %9340 = vmatmul.bf16.gmra.mxu1 %v11233_v62  ;;  %v13297_v62 = vld [vmem:[%s14809_s9 + $0x440] sm:$0xff]  ;;  %v13114_v59 = vld [vmem:[%s17090_s0 + $0x664] sm:$0xf0] }
 0x400   : > { %9384 = vmatmul.bf16.gmra.mxu2 %v11237_v1  ;;  %v13096_v1 = vld [vmem:[%s17090_s0 + $0x5dc] sm:$0xf]  ;;  %9500 = vmatpush.bf16.msra.mxu1 %v13297_v62  ;;  %v13351_v62 = vld [vmem:[%s14809_s9 + $0x5f0] sm:$0xff] }
 0x401   : > { %9428 = vmatmul.bf16.gmra.mxu3 %v11241_v0  ;;  %v11526_v0 = vld [vmem:[%s17090_s0 + $0x668] sm:$0xf0] }
 0x402   : > { %v11529_v60 = vor.u32 %v13096_v1, %v11526_v0  ;;  %9758 = vmatpush.bf16.msrb.mxu3 %v13351_v62 }
 0x403   : > { %v9204_v7 = vpop.f32.mrf.mxu2  ;;  %v9118_v13 = vpop.f32.mrf.mxu0 }
 0x404   : > { %v9248_v25 = vpop.f32.mrf.mxu3  ;;  %v9205_v8 = vadd.f32 %v9204_v7, %v9161_v4  ;;  %v9162_v9 = vpop.f32.mrf.mxu1  ;;  %v9119_v10 = vadd.f32 %v9118_v13, %v15436_v24  ;;  %v11374_v24 = vld [vmem:[%s17090_s0 + $0x540] sm:$0xf0]  ;;  %v11517_v7 = vor.u32 %v13113_v27, %v11516_v55  ;;  %v13343_v55 = vld [vmem:[%s14809_s9 + $0x5b0] sm:$0xff] }
 0x405   : > { %v11377_v37 = vor.u32 %v13059_v20, %v11374_v24  ;;  %v13327_v27 = vld [vmem:[%s14809_s9 + $0x530] sm:$0xff]  ;;  %9714 = vmatpush.bf16.msrb.mxu2 %v13343_v55 }
 0x406   : > { %v15647_v14 = vadd.f32 %v9248_v25, %v9205_v8  ;;  %v9163_v17 = vadd.f32 %v9162_v9, %v9119_v10  ;;  %v11525_v10 = vor.u32 %v13114_v59, %v11524_v48  ;;  %9626 = vmatpush.bf16.msrb.mxu0 %v13327_v27 }
 0x40b   : > { %v9206_v30 = vpop.f32.mrf.mxu2  ;;  %v9121_v33 = vpop.f32.mrf.mxu0 }
 0x40c   : > { %v9250_v31 = vpop.f32.mrf.mxu3  ;;  %v9207_v32 = vadd.f32 %v9206_v30, %v9163_v17  ;;  %v9165_v36 = vpop.f32.mrf.mxu1  ;;  %v9122_v42 = vadd.f32 %v9121_v33, %v15440_v34  ;;  %v13336_v30 = vld [vmem:[%s14809_s9 + $0x578] sm:$0xff] }
 0x40d   : > { %v11668_v33 = vld [vmem:[%s17090_s0 + $0x6f8] sm:$0xf]  ;;  %9669 = vmatpush.bf16.msrb.mxu1 %v13336_v30  ;;  %v13342_v30 = vld [vmem:[%s14809_s9 + $0x5a8] sm:$0xff] }
 0x40e   : > { %v15678_v43 = vadd.f32 %v9250_v31, %v9207_v32  ;;  %v9166_v44 = vadd.f32 %v9165_v36, %v9122_v42  ;;  %9301 = vmatmul.bf16.gmra.mxu0 %v11373_v58  ;;  %v11660_v58 = vld [vmem:[%s17090_s0 + $0x6f0] sm:$0xf]  ;;  %v13131_v32 = vld [vmem:[%s17090_s0 + $0x6f4] sm:$0xf]  ;;  %v13150_v36 = vld [vmem:[%s17090_s0 + $0x784] sm:$0xf0]  ;;  %9715 = vmatpush.bf16.msrb.mxu2 %v13342_v30 }
 0x40f   : > { %9345 = vmatmul.bf16.gmra.mxu1 %v11377_v37  ;;  %v13149_v37 = vld [vmem:[%s17090_s0 + $0x77c] sm:$0xf0]  ;;  %v12990_v30 = vld [vmem:[%s17090_s0 + $0x28c] sm:$0xf] }
 0x410   : > { %9389 = vmatmul.bf16.gmra.mxu2 %v11381_v21  ;;  %v13132_v21 = vld [vmem:[%s17090_s0 + $0x6fc] sm:$0xf]  ;;  %v11661_v45 = vor.u32 %v13149_v37, %v11660_v58  ;;  %v13326_v58 = vld [vmem:[%s14809_s9 + $0x528] sm:$0xff] }
 0x411   : > { %9433 = vmatmul.bf16.gmra.mxu3 %v11385_v40  ;;  %v11670_v40 = vld [vmem:[%s17090_s0 + $0x788] sm:$0xf0]  ;;  %9627 = vmatpush.bf16.msrb.mxu0 %v13326_v58 }
 0x412   : > { %v13350_v37 = vld [vmem:[%s14809_s9 + $0x5e8] sm:$0xff] }
 0x413   : > { %v9209_v57 = vpop.f32.mrf.mxu2  ;;  %v9123_v46 = vpop.f32.mrf.mxu0  ;;  %9759 = vmatpush.bf16.msrb.mxu3 %v13350_v37 }
 0x414   : > { %v9253_v5 = vpop.f32.mrf.mxu3  ;;  %v9210_v51 = vadd.f32 %v9209_v57, %v9166_v44  ;;  %v9167_v47 = vpop.f32.mrf.mxu1  ;;  %v9124_v41 = vadd.f32 %v9123_v46, %v15470_v63  ;;  %v11518_v63 = vld [vmem:[%s17090_s0 + $0x660] sm:$0xf0] }
 0x415   : > { %v11521_v25 = vor.u32 %v13095_v56, %v11518_v63  ;;  %v13335_v56 = vld [vmem:[%s14809_s9 + $0x570] sm:$0xff] }
 0x416   : > { %v15682_v34 = vadd.f32 %v9253_v5, %v9210_v51  ;;  %v9168_v54 = vadd.f32 %v9167_v47, %v9124_v41  ;;  %v11669_v47 = vor.u32 %v13150_v36, %v11668_v33  ;;  %v11673_v41 = vor.u32 %v13132_v21, %v11670_v40  ;;  %9670 = vmatpush.bf16.msrb.mxu1 %v13335_v56 }
 0x41b   : > { %v9211_v2 = vpop.f32.mrf.mxu2  ;;  %v9126_v13 = vpop.f32.mrf.mxu0 }
 0x41c   : > { %v9255_v4 = vpop.f32.mrf.mxu3  ;;  %v9212_v8 = vadd.f32 %v9211_v2, %v9168_v54  ;;  %v9170_v9 = vpop.f32.mrf.mxu1  ;;  %v9127_v15 = vadd.f32 %v9126_v13, %v15476_v11  ;;  %v10814_v13 = vld [vmem:[%s17090_s0 + $0xd0] sm:$0xf0] }
 0x41e   : > { %v15712_v16 = vadd.f32 %v9255_v4, %v9212_v8  ;;  %v9171_v17 = vadd.f32 %v9170_v9, %v9127_v15  ;;  %9306 = vmatmul.bf16.gmra.mxu0 %v11517_v7  ;;  %v10812_v7 = vld [vmem:[%s17090_s0 + $0x40] sm:$0xf]  ;;  %v12917_v8 = vld [vmem:[%s17090_s0 + $0x44] sm:$0xf]  ;;  %v12936_v9 = vld [vmem:[%s17090_s0 + $0xd4] sm:$0xf0] }
 0x41f   : > { %9350 = vmatmul.bf16.gmra.mxu1 %v11521_v25  ;;  %v12935_v25 = vld [vmem:[%s17090_s0 + $0xcc] sm:$0xf0]  ;;  %v10817_v28 = vor.u32 %v12917_v8, %v10814_v13  ;;  %v13333_v8 = vld [vmem:[%s14809_s9 + $0x560] sm:$0xff] }
 0x420   : > { %9394 = vmatmul.bf16.gmra.mxu2 %v11525_v10  ;;  %v12918_v10 = vld [vmem:[%s17090_s0 + $0x4c] sm:$0xf]  ;;  %v10813_v18 = vor.u32 %v12935_v25, %v10812_v7  ;;  %v13349_v7 = vld [vmem:[%s14809_s9 + $0x5e0] sm:$0xff] }
 0x421   : > { %9438 = vmatmul.bf16.gmra.mxu3 %v11529_v60  ;;  %v10822_v60 = vld [vmem:[%s17090_s0 + $0xd8] sm:$0xf0] }
 0x422   : > { %9760 = vmatpush.bf16.msrb.mxu3 %v13349_v7  ;;  %v11254_v7 = vld [vmem:[%s17090_s0 + $0x438] sm:$0xf0] }
 0x423   : > { %v9214_v20 = vpop.f32.mrf.mxu2  ;;  %v9128_v35 = vpop.f32.mrf.mxu0 }
 0x424   : > { %v9258_v24 = vpop.f32.mrf.mxu3  ;;  %v9215_v12 = vadd.f32 %v9214_v20, %v9171_v17  ;;  %v9172_v22 = vpop.f32.mrf.mxu1  ;;  %v9129_v11 = vadd.f32 %v9128_v35, %v15504_v39  ;;  %v11662_v39 = vld [vmem:[%s17090_s0 + $0x780] sm:$0xf0]  ;;  %v10825_v35 = vor.u32 %v12918_v10, %v10822_v60 }
 0x425   : > { %v11665_v57 = vor.u32 %v13131_v32, %v11662_v39  ;;  %v13334_v32 = vld [vmem:[%s14809_s9 + $0x568] sm:$0xff] }
 0x426   : > { %v15718_v26 = vadd.f32 %v9258_v24, %v9215_v12  ;;  %v9173_v31 = vadd.f32 %v9172_v22, %v9129_v11  ;;  %9671 = vmatpush.bf16.msrb.mxu1 %v13334_v32 }
 0x42a   : > { %9672 = vmatpush.bf16.msrb.mxu1 %v13333_v8 }
 0x42b   : > { %v9216_v42 = vpop.f32.mrf.mxu2  ;;  %v9131_v51 = vpop.f32.mrf.mxu0 }
 0x42c   : > { %v9260_v44 = vpop.f32.mrf.mxu3  ;;  %v9217_v5 = vadd.f32 %v9216_v42, %v9173_v31  ;;  %v9175_v46 = vpop.f32.mrf.mxu1  ;;  %v9132_v52 = vadd.f32 %v9131_v51, %v15511_v50  ;;  %v12953_v51 = vld [vmem:[%s17090_s0 + $0x164] sm:$0xf] }
 0x42e   : > { %v15746_v53 = vadd.f32 %v9260_v44, %v9217_v5  ;;  %v9176_v54 = vadd.f32 %v9175_v46, %v9132_v52  ;;  %9311 = vmatmul.bf16.gmra.mxu0 %v11661_v45  ;;  %v10956_v45 = vld [vmem:[%s17090_s0 + $0x160] sm:$0xf]  ;;  %v10964_v46 = vld [vmem:[%s17090_s0 + $0x168] sm:$0xf]  ;;  %v10966_v52 = vld [vmem:[%s17090_s0 + $0x1f8] sm:$0xf0] }
 0x42f   : > { %9355 = vmatmul.bf16.gmra.mxu1 %v11665_v57  ;;  %v12971_v57 = vld [vmem:[%s17090_s0 + $0x1ec] sm:$0xf0]  ;;  %v13341_v5 = vld [vmem:[%s14809_s9 + $0x5a0] sm:$0xff] }
 0x430   : > { %9399 = vmatmul.bf16.gmra.mxu2 %v11669_v47  ;;  %v12972_v47 = vld [vmem:[%s17090_s0 + $0x1f4] sm:$0xf0]  ;;  %v10957_v27 = vor.u32 %v12971_v57, %v10956_v45 }
 0x431   : > { %9443 = vmatmul.bf16.gmra.mxu3 %v11673_v41  ;;  %v12954_v41 = vld [vmem:[%s17090_s0 + $0x16c] sm:$0xf]  ;;  %9716 = vmatpush.bf16.msrb.mxu2 %v13341_v5  ;;  %v13332_v57 = vld [vmem:[%s14809_s9 + $0x558] sm:$0xff] }
 0x432   : > { %9673 = vmatpush.bf16.msrb.mxu1 %v13332_v57 }
 0x433   : > { %v9219_v63 = vpop.f32.mrf.mxu2  ;;  %v9133_v1 = vpop.f32.mrf.mxu0 }
 0x434   : > { %v9263_v48 = vpop.f32.mrf.mxu3  ;;  %v9220_v59 = vadd.f32 %v9219_v63, %v9176_v54  ;;  %v9177_v50 = vpop.f32.mrf.mxu1  ;;  %v9134_v0 = vadd.f32 %v9133_v1, %v15538_v6  ;;  %v10820_v6 = vld [vmem:[%s17090_s0 + $0x48] sm:$0xf]  ;;  %v10969_v1 = vor.u32 %v12954_v41, %v10966_v52 }
 0x435   : > { %v10821_v12 = vor.u32 %v12936_v9, %v10820_v6 }
 0x436   : > { %v15753_v2 = vadd.f32 %v9263_v48, %v9220_v59  ;;  %v9178_v4 = vadd.f32 %v9177_v50, %v9134_v0  ;;  %v10965_v59 = vor.u32 %v12972_v47, %v10964_v46 }
 0x43b   : > { %v9221_v15 = vpop.f32.mrf.mxu2  ;;  %v9136_v20 = vpop.f32.mrf.mxu0 }
 0x43c   : > { %v9265_v17 = vpop.f32.mrf.mxu3  ;;  %v9222_v19 = vadd.f32 %v9221_v15, %v9178_v4  ;;  %v9180_v24 = vpop.f32.mrf.mxu1  ;;  %v9137_v22 = vadd.f32 %v9136_v20, %v15545_v23  ;;  %v13325_v4 = vld [vmem:[%s14809_s9 + $0x520] sm:$0xff]  ;;  %v13324_v20 = vld [vmem:[%s14809_s9 + $0x518] sm:$0xff] }
 0x43d   : > { %9628 = vmatpush.bf16.msrb.mxu0 %v13325_v4  ;;  %v13026_v4 = vld [vmem:[%s17090_s0 + $0x3ac] sm:$0xf] }
 0x43e   : > { %v15780_v11 = vadd.f32 %v9265_v17, %v9222_v19  ;;  %v9181_v31 = vadd.f32 %v9180_v24, %v9137_v22  ;;  %9457 = vmatmul.bf16.vlgmr.msra.gmra.mxu0 %v10813_v18  ;;  %v11100_v17 = vld [vmem:[%s17090_s0 + $0x280] sm:$0xf]  ;;  %v13007_v18 = vld [vmem:[%s17090_s0 + $0x30c] sm:$0xf0]  ;;  %v13340_v19 = vld [vmem:[%s14809_s9 + $0x598] sm:$0xff] }
 0x43f   : > { %9501 = vmatmul.bf16.vlgmr.msra.gmra.mxu1 %v10817_v28  ;;  %v13348_v24 = vld [vmem:[%s14809_s9 + $0x5d8] sm:$0xff]  ;;  %9717 = vmatpush.bf16.msrb.mxu2 %v13340_v19  ;;  %v11101_v32 = vor.u32 %v13007_v18, %v11100_v17  ;;  %v11257_v17 = vor.u32 %v13026_v4, %v11254_v7  ;;  %v13321_v4 = vld [vmem:[%s14809_s9 + $0x500] sm:$0xff] }
 0x440   : > { %9545 = vmatmul.bf16.vlgmr.msra.gmra.mxu2 %v10821_v12  ;;  %v12989_v12 = vld [vmem:[%s17090_s0 + $0x284] sm:$0xf]  ;;  %v13008_v22 = vld [vmem:[%s17090_s0 + $0x314] sm:$0xf0]  ;;  %9761 = vmatpush.bf16.msrb.mxu3 %v13348_v24 }
 0x441   : > { %9589 = vmatmul.bf16.vlgmr.msra.gmra.mxu3 %v10825_v35  ;;  %v11108_v35 = vld [vmem:[%s17090_s0 + $0x288] sm:$0xf]  ;;  %9629 = vmatpush.bf16.msrb.mxu0 %v13324_v20  ;;  %v13345_v7 = vld [vmem:[%s14809_s9 + $0x5c0] sm:$0xff] }
 0x443   : > { %v9224_v39 = vpop.f32.mrf.mxu2  ;;  %v9138_v23 = vpop.f32.mrf.mxu0 }
 0x444   : > { %v9268_v33 = vpop.f32.mrf.mxu3  ;;  %v9225_v36 = vadd.f32 %v9224_v39, %v9181_v31  ;;  %v9182_v21 = vpop.f32.mrf.mxu1  ;;  %v9139_v40 = vadd.f32 %v9138_v23, %v15573_v49  ;;  %v10958_v49 = vld [vmem:[%s17090_s0 + $0x1f0] sm:$0xf0]  ;;  %v11110_v31 = vld [vmem:[%s17090_s0 + $0x318] sm:$0xf0] }
 0x445   : > { %v10961_v62 = vor.u32 %v12953_v51, %v10958_v49 }
 0x446   : > { %v15787_v42 = vadd.f32 %v9268_v33, %v9225_v36  ;;  %v9183_v44 = vadd.f32 %v9182_v21, %v9139_v40  ;;  %v11109_v21 = vor.u32 %v13008_v22, %v11108_v35  ;;  %v11113_v40 = vor.u32 %v12990_v30, %v11110_v31  ;;  %v13079_v31 = vld [vmem:[%s17090_s0 + $0x54c] sm:$0xf0] }
 0x44b   : > { %v9226_v54 = vpop.f32.mrf.mxu2  ;;  %v9282_v63 = vpop.f32.mrf.mxu0 }
 0x44c   : > { %v9270_v55 = vpop.f32.mrf.mxu3  ;;  %v9227_v56 = vadd.f32 %v9226_v54, %v9183_v44  ;;  %v9326_v48 = vpop.f32.mrf.mxu1  ;;  %v9283_v50 = vadd.f32 %v9282_v63, %v15579_v61  ;;  %v11244_v54 = vld [vmem:[%s17090_s0 + $0x3a0] sm:$0xf]  ;;  %v13323_v63 = vld [vmem:[%s14809_s9 + $0x510] sm:$0xff] }
 0x44d   : > { %9630 = vmatpush.bf16.msrb.mxu0 %v13323_v63 }
 0x44e   : > { %v15815_v0 = vadd.f32 %v9270_v55, %v9227_v56  ;;  %v9327_v25 = vadd.f32 %v9326_v48, %v9283_v50  ;;  %9462 = vmatmul.bf16.gmra.mxu0 %v10957_v27  ;;  %v13043_v55 = vld [vmem:[%s17090_s0 + $0x42c] sm:$0xf0]  ;;  %v13025_v27 = vld [vmem:[%s17090_s0 + $0x3a4] sm:$0xf]  ;;  %v13044_v50 = vld [vmem:[%s17090_s0 + $0x434] sm:$0xf0] }
 0x44f   : > { %9506 = vmatmul.bf16.gmra.mxu1 %v10961_v62  ;;  %v13339_v56 = vld [vmem:[%s14809_s9 + $0x590] sm:$0xff] }
 0x450   : > { %9550 = vmatmul.bf16.gmra.mxu2 %v10965_v59  ;;  %v13347_v48 = vld [vmem:[%s14809_s9 + $0x5d0] sm:$0xff]  ;;  %v11252_v59 = vld [vmem:[%s17090_s0 + $0x3a8] sm:$0xf] }
 0x451   : > { %9594 = vmatmul.bf16.gmra.mxu3 %v10969_v1  ;;  %v13331_v1 = vld [vmem:[%s14809_s9 + $0x550] sm:$0xff]  ;;  %9718 = vmatpush.bf16.msrb.mxu2 %v13339_v56  ;;  %v13337_v56 = vld [vmem:[%s14809_s9 + $0x580] sm:$0xff] }
 0x452   : > { %9762 = vmatpush.bf16.msrb.mxu3 %v13347_v48  ;;  %9674 = vmatpush.bf16.msrb.mxu1 %v13331_v1 }
 0x453   : > { %v9370_v13 = vpop.f32.mrf.mxu2  ;;  %v9284_v61 = vpop.f32.mrf.mxu0 }
 0x454   : > { %v9414_v6 = vpop.f32.mrf.mxu3  ;;  %v9371_v9 = vadd.f32 %v9370_v13, %v9327_v25  ;;  %v9328_v10 = vpop.f32.mrf.mxu1  ;;  %v9285_v60 = vadd.f32 %v9284_v61, %v15609_v29  ;;  %v11102_v29 = vld [vmem:[%s17090_s0 + $0x310] sm:$0xf0]  ;;  %v11245_v13 = vor.u32 %v13043_v55, %v11244_v54 }
 0x455   : > { %v11105_v39 = vor.u32 %v12989_v12, %v11102_v29 }
 0x456   : > { %v15821_v15 = vadd.f32 %v9414_v6, %v9371_v9  ;;  %v9329_v28 = vadd.f32 %v9328_v10, %v9285_v60  ;;  %v11253_v60 = vor.u32 %v13044_v50, %v11252_v59 }
 0x45b   : > { %v9372_v58 = vpop.f32.mrf.mxu2  ;;  %v9287_v36 = vpop.f32.mrf.mxu0 }
 0x45c   : > { %v9416_v37 = vpop.f32.mrf.mxu3  ;;  %v9373_v33 = vadd.f32 %v9372_v58, %v9329_v28  ;;  %v9331_v23 = vpop.f32.mrf.mxu1  ;;  %v9288_v44 = vadd.f32 %v9287_v36, %v15613_v38  ;;  %v13338_v58 = vld [vmem:[%s14809_s9 + $0x588] sm:$0xff]  ;;  %v13061_v36 = vld [vmem:[%s17090_s0 + $0x4c4] sm:$0xf] }
 0x45d   : > { %9719 = vmatpush.bf16.msrb.mxu2 %v13338_v58 }
 0x45e   : > { %v15851_v45 = vadd.f32 %v9416_v37, %v9373_v33  ;;  %v9332_v5 = vadd.f32 %v9331_v23, %v9288_v44  ;;  %9467 = vmatmul.bf16.gmra.mxu0 %v11101_v32  ;;  %v13322_v32 = vld [vmem:[%s14809_s9 + $0x508] sm:$0xff]  ;;  %v11398_v44 = vld [vmem:[%s17090_s0 + $0x558] sm:$0xf0] }
 0x45f   : > { %9511 = vmatmul.bf16.gmra.mxu1 %v11105_v39  ;;  %v13346_v39 = vld [vmem:[%s14809_s9 + $0x5c8] sm:$0xff]  ;;  %9631 = vmatpush.bf16.msrb.mxu0 %v13322_v32  ;;  %v13376_v32 = vld [vmem:[%s14809_s9 + $0x6b8] sm:$0xff] }
 0x460   : > { %9555 = vmatmul.bf16.gmra.mxu2 %v11109_v21  ;;  %v13330_v33 = vld [vmem:[%s14809_s9 + $0x548] sm:$0xff]  ;;  %v13080_v21 = vld [vmem:[%s17090_s0 + $0x554] sm:$0xf0]  ;;  %9763 = vmatpush.bf16.msrb.mxu3 %v13346_v39 }
 0x461   : > { %9599 = vmatmul.bf16.gmra.mxu3 %v11113_v40  ;;  %v11396_v23 = vld [vmem:[%s17090_s0 + $0x4c8] sm:$0xf]  ;;  %v13062_v40 = vld [vmem:[%s17090_s0 + $0x4cc] sm:$0xf]  ;;  %9675 = vmatpush.bf16.msrb.mxu1 %v13330_v33  ;;  %v13360_v39 = vld [vmem:[%s14809_s9 + $0x638] sm:$0xff] }
 0x462   : > { %v11401_v54 = vor.u32 %v13062_v40, %v11398_v44  ;;  %9720 = vmatpush.bf16.msrb.mxu2 %v13337_v56  ;;  %v13384_v33 = vld [vmem:[%s14809_s9 + $0x6f8] sm:$0xff] }
 0x463   : > { %v9375_v51 = vpop.f32.mrf.mxu2  ;;  %v9289_v47 = vpop.f32.mrf.mxu0  ;;  %9632 = vmatpush.bf16.msrb.mxu0 %v13321_v4 }
 0x464   : > { %v9419_v49 = vpop.f32.mrf.mxu3  ;;  %v9376_v46 = vadd.f32 %v9375_v51, %v9332_v5  ;;  %v9333_v41 = vpop.f32.mrf.mxu1  ;;  %v9290_v38 = vadd.f32 %v9289_v47, %v15644_v3  ;;  %v11246_v3 = vld [vmem:[%s17090_s0 + $0x430] sm:$0xf0]  ;;  %9764 = vmatpush.bf16.msrb.mxu3 %v13345_v7 }
 0x465   : > { %v11249_v6 = vor.u32 %v13025_v27, %v11246_v3 }
 0x466   : > { %v15855_v52 = vadd.f32 %v9419_v49, %v9376_v46  ;;  %v9334_v62 = vadd.f32 %v9333_v41, %v9290_v38  ;;  %v11397_v38 = vor.u32 %v13080_v21, %v11396_v23  ;;  %9889 = vmatpush.bf16.msra.mxu2 %v13376_v32 }
 0x467   : > { %9801 = vmatpush.bf16.msra.mxu0 %v13360_v39 }
 0x468   : > { %9933 = vmatpush.bf16.msra.mxu3 %v13384_v33 }
 0x46b   : > { %v9377_v25 = vpop.f32.mrf.mxu2  ;;  %v9292_v61 = vpop.f32.mrf.mxu0 }
 0x46c   : > { %v9421_v8 = vpop.f32.mrf.mxu3  ;;  %v9378_v9 = vadd.f32 %v9377_v25, %v9334_v62  ;;  %v9336_v10 = vpop.f32.mrf.mxu1  ;;  %v9293_v18 = vadd.f32 %v9292_v61, %v15647_v14  ;;  %v11388_v14 = vld [vmem:[%s17090_s0 + $0x4c0] sm:$0xf]  ;;  %v11540_v61 = vld [vmem:[%s17090_s0 + $0x5e8] sm:$0xf] }
 0x46d   : > { %v11389_v51 = vor.u32 %v13079_v31, %v11388_v14 }
 0x46e   : > { %v15886_v28 = vadd.f32 %v9421_v8, %v9378_v9  ;;  %v9337_v19 = vadd.f32 %v9336_v10, %v9293_v18  ;;  %9472 = vmatmul.bf16.gmra.mxu0 %v11245_v13  ;;  %v11532_v8 = vld [vmem:[%s17090_s0 + $0x5e0] sm:$0xf]  ;;  %v13115_v13 = vld [vmem:[%s17090_s0 + $0x66c] sm:$0xf0]  ;;  %v13097_v9 = vld [vmem:[%s17090_s0 + $0x5e4] sm:$0xf] }
 0x46f   : > { %9516 = vmatmul.bf16.gmra.mxu1 %v11249_v6  ;;  %v13329_v6 = vld [vmem:[%s14809_s9 + $0x540] sm:$0xff]  ;;  %v13116_v10 = vld [vmem:[%s17090_s0 + $0x674] sm:$0xf0] }
 0x470   : > { %9560 = vmatmul.bf16.gmra.mxu2 %v11253_v60  ;;  %v13098_v60 = vld [vmem:[%s17090_s0 + $0x5ec] sm:$0xf]  ;;  %9676 = vmatpush.bf16.msrb.mxu1 %v13329_v6  ;;  %v13383_v6 = vld [vmem:[%s14809_s9 + $0x6f0] sm:$0xff] }
 0x471   : > { %9604 = vmatmul.bf16.gmra.mxu3 %v11257_v17  ;;  %v11542_v17 = vld [vmem:[%s17090_s0 + $0x678] sm:$0xf0] }
 0x472   : > { %v11545_v14 = vor.u32 %v13098_v60, %v11542_v17  ;;  %9934 = vmatpush.bf16.msra.mxu3 %v13383_v6 }
 0x473   : > { %v9380_v20 = vpop.f32.mrf.mxu2  ;;  %v9294_v29 = vpop.f32.mrf.mxu0 }
 0x474   : > { %v9424_v24 = vpop.f32.mrf.mxu3  ;;  %v9381_v12 = vadd.f32 %v9380_v20, %v9337_v19  ;;  %v9338_v35 = vpop.f32.mrf.mxu1  ;;  %v9295_v22 = vadd.f32 %v9294_v29, %v15678_v43  ;;  %v11390_v43 = vld [vmem:[%s17090_s0 + $0x550] sm:$0xf0]  ;;  %v11533_v20 = vor.u32 %v13115_v13, %v11532_v8 }
 0x475   : > { %v11393_v49 = vor.u32 %v13061_v36, %v11390_v43  ;;  %v13375_v8 = vld [vmem:[%s14809_s9 + $0x6b0] sm:$0xff] }
 0x476   : > { %v15889_v30 = vadd.f32 %v9424_v24, %v9381_v12  ;;  %v9339_v37 = vadd.f32 %v9338_v35, %v9295_v22  ;;  %v11541_v22 = vor.u32 %v13116_v10, %v11540_v61  ;;  %v13359_v13 = vld [vmem:[%s14809_s9 + $0x630] sm:$0xff]  ;;  %9890 = vmatpush.bf16.msra.mxu2 %v13375_v8 }
 0x477   : > { %9802 = vmatpush.bf16.msra.mxu0 %v13359_v13 }
 0x47b   : > { %v9382_v57 = vpop.f32.mrf.mxu2  ;;  %v9297_v47 = vpop.f32.mrf.mxu0 }
 0x47c   : > { %v9426_v5 = vpop.f32.mrf.mxu3  ;;  %v9383_v46 = vadd.f32 %v9382_v57, %v9339_v37  ;;  %v9341_v41 = vpop.f32.mrf.mxu1  ;;  %v9298_v55 = vadd.f32 %v9297_v47, %v15682_v34  ;;  %v13368_v57 = vld [vmem:[%s14809_s9 + $0x678] sm:$0xff]  ;;  %v11684_v47 = vld [vmem:[%s17090_s0 + $0x708] sm:$0xf] }
 0x47d   : > { %9845 = vmatpush.bf16.msra.mxu1 %v13368_v57  ;;  %v13374_v57 = vld [vmem:[%s14809_s9 + $0x6a8] sm:$0xff] }
 0x47e   : > { %v15920_v27 = vadd.f32 %v9426_v5, %v9383_v46  ;;  %v9342_v62 = vadd.f32 %v9341_v41, %v9298_v55  ;;  %9477 = vmatmul.bf16.gmra.mxu0 %v11389_v51  ;;  %v11676_v51 = vld [vmem:[%s17090_s0 + $0x700] sm:$0xf]  ;;  %v13133_v46 = vld [vmem:[%s17090_s0 + $0x704] sm:$0xf]  ;;  %v13152_v41 = vld [vmem:[%s17090_s0 + $0x794] sm:$0xf0]  ;;  %9891 = vmatpush.bf16.msra.mxu2 %v13374_v57 }
 0x47f   : > { %9521 = vmatmul.bf16.gmra.mxu1 %v11393_v49  ;;  %v13151_v49 = vld [vmem:[%s17090_s0 + $0x78c] sm:$0xf0]  ;;  %v12992_v57 = vld [vmem:[%s17090_s0 + $0x29c] sm:$0xf] }
 0x480   : > { %9565 = vmatmul.bf16.gmra.mxu2 %v11397_v38  ;;  %v13134_v38 = vld [vmem:[%s17090_s0 + $0x70c] sm:$0xf]  ;;  %v11677_v56 = vor.u32 %v13151_v49, %v11676_v51 }
 0x481   : > { %9609 = vmatmul.bf16.gmra.mxu3 %v11401_v54  ;;  %v11686_v54 = vld [vmem:[%s17090_s0 + $0x798] sm:$0xf0]  ;;  %v13358_v51 = vld [vmem:[%s14809_s9 + $0x628] sm:$0xff] }
 0x482   : > { %v13382_v49 = vld [vmem:[%s14809_s9 + $0x6e8] sm:$0xff]  ;;  %9803 = vmatpush.bf16.msra.mxu0 %v13358_v51 }
 0x483   : > { %v9385_v63 = vpop.f32.mrf.mxu2  ;;  %v9299_v59 = vpop.f32.mrf.mxu0  ;;  %9935 = vmatpush.bf16.msra.mxu3 %v13382_v49 }
 0x484   : > { %v9429_v48 = vpop.f32.mrf.mxu3  ;;  %v9386_v3 = vadd.f32 %v9385_v63, %v9342_v62  ;;  %v9343_v1 = vpop.f32.mrf.mxu1  ;;  %v9300_v50 = vadd.f32 %v9299_v59, %v15712_v16  ;;  %v11534_v16 = vld [vmem:[%s17090_s0 + $0x670] sm:$0xf0] }
 0x485   : > { %v11537_v24 = vor.u32 %v13097_v9, %v11534_v16  ;;  %v13367_v9 = vld [vmem:[%s14809_s9 + $0x670] sm:$0xff] }
 0x486   : > { %v15924_v34 = vadd.f32 %v9429_v48, %v9386_v3  ;;  %v9344_v25 = vadd.f32 %v9343_v1, %v9300_v50  ;;  %v11685_v1 = vor.u32 %v13152_v41, %v11684_v47  ;;  %v11689_v50 = vor.u32 %v13134_v38, %v11686_v54  ;;  %9846 = vmatpush.bf16.msra.mxu1 %v13367_v9 }
 0x48b   : > { %v9387_v18 = vpop.f32.mrf.mxu2  ;;  %v9302_v29 = vpop.f32.mrf.mxu0 }
 0x48c   : > { %v9431_v19 = vpop.f32.mrf.mxu3  ;;  %v9388_v12 = vadd.f32 %v9387_v18, %v9344_v25  ;;  %v9346_v35 = vpop.f32.mrf.mxu1  ;;  %v9303_v31 = vadd.f32 %v9302_v29, %v15718_v26  ;;  %v10830_v29 = vld [vmem:[%s17090_s0 + $0xe0] sm:$0xf0] }
 0x48e   : > { %v15954_v58 = vadd.f32 %v9431_v19, %v9388_v12  ;;  %v9347_v37 = vadd.f32 %v9346_v35, %v9303_v31  ;;  %9482 = vmatmul.bf16.gmra.mxu0 %v11533_v20  ;;  %v10828_v20 = vld [vmem:[%s17090_s0 + $0x50] sm:$0xf]  ;;  %v12919_v12 = vld [vmem:[%s17090_s0 + $0x54] sm:$0xf]  ;;  %v12938_v35 = vld [vmem:[%s17090_s0 + $0xe4] sm:$0xf0] }
 0x48f   : > { %9526 = vmatmul.bf16.gmra.mxu1 %v11537_v24  ;;  %v12937_v24 = vld [vmem:[%s17090_s0 + $0xdc] sm:$0xf0]  ;;  %v10833_v39 = vor.u32 %v12919_v12, %v10830_v29 }
 0x490   : > { %9570 = vmatmul.bf16.gmra.mxu2 %v11541_v22  ;;  %v12920_v22 = vld [vmem:[%s17090_s0 + $0x5c] sm:$0xf]  ;;  %v10829_v32 = vor.u32 %v12937_v24, %v10828_v20  ;;  %v13381_v20 = vld [vmem:[%s14809_s9 + $0x6e0] sm:$0xff] }
 0x491   : > { %9614 = vmatmul.bf16.gmra.mxu3 %v11545_v14  ;;  %v10838_v14 = vld [vmem:[%s17090_s0 + $0xe8] sm:$0xf0]  ;;  %v13365_v12 = vld [vmem:[%s14809_s9 + $0x660] sm:$0xff] }
 0x492   : > { %9936 = vmatpush.bf16.msra.mxu3 %v13381_v20  ;;  %v11270_v20 = vld [vmem:[%s17090_s0 + $0x448] sm:$0xf0] }
 0x493   : > { %v9390_v36 = vpop.f32.mrf.mxu2  ;;  %v9304_v21 = vpop.f32.mrf.mxu0 }
 0x494   : > { %v9434_v43 = vpop.f32.mrf.mxu3  ;;  %v9391_v23 = vadd.f32 %v9390_v36, %v9347_v37  ;;  %v9348_v40 = vpop.f32.mrf.mxu1  ;;  %v9305_v26 = vadd.f32 %v9304_v21, %v15746_v53  ;;  %v11678_v53 = vld [vmem:[%s17090_s0 + $0x790] sm:$0xf0]  ;;  %v10841_v21 = vor.u32 %v12920_v22, %v10838_v14 }
 0x495   : > { %v11681_v63 = vor.u32 %v13133_v46, %v11678_v53  ;;  %v13366_v46 = vld [vmem:[%s14809_s9 + $0x668] sm:$0xff] }
 0x496   : > { %v15960_v44 = vadd.f32 %v9434_v43, %v9391_v23  ;;  %v9349_v5 = vadd.f32 %v9348_v40, %v9305_v26  ;;  %9847 = vmatpush.bf16.msra.mxu1 %v13366_v46 }
 0x49a   : > { %9848 = vmatpush.bf16.msra.mxu1 %v13365_v12 }
 0x49b   : > { %v9392_v55 = vpop.f32.mrf.mxu2  ;;  %v9307_v3 = vpop.f32.mrf.mxu0 }
 0x49c   : > { %v9436_v62 = vpop.f32.mrf.mxu3  ;;  %v9393_v48 = vadd.f32 %v9392_v55, %v9349_v5  ;;  %v9351_v59 = vpop.f32.mrf.mxu1  ;;  %v9308_v4 = vadd.f32 %v9307_v3, %v15753_v2  ;;  %v12955_v3 = vld [vmem:[%s17090_s0 + $0x174] sm:$0xf] }
 0x49e   : > { %v15988_v7 = vadd.f32 %v9436_v62, %v9393_v48  ;;  %v9352_v25 = vadd.f32 %v9351_v59, %v9308_v4  ;;  %9487 = vmatmul.bf16.gmra.mxu0 %v11677_v56  ;;  %v10972_v56 = vld [vmem:[%s17090_s0 + $0x170] sm:$0xf]  ;;  %v13373_v48 = vld [vmem:[%s14809_s9 + $0x6a0] sm:$0xff]  ;;  %v10980_v59 = vld [vmem:[%s17090_s0 + $0x178] sm:$0xf] }
 0x49f   : > { %9531 = vmatmul.bf16.gmra.mxu1 %v11681_v63  ;;  %v12973_v63 = vld [vmem:[%s17090_s0 + $0x1fc] sm:$0xf0]  ;;  %v10982_v4 = vld [vmem:[%s17090_s0 + $0x208] sm:$0xf0]  ;;  %9892 = vmatpush.bf16.msra.mxu2 %v13373_v48 }
 0x4a0   : > { %9575 = vmatmul.bf16.gmra.mxu2 %v11685_v1  ;;  %v12974_v1 = vld [vmem:[%s17090_s0 + $0x204] sm:$0xf0]  ;;  %v10973_v13 = vor.u32 %v12973_v63, %v10972_v56  ;;  %v13364_v63 = vld [vmem:[%s14809_s9 + $0x658] sm:$0xff] }
 0x4a1   : > { %9619 = vmatmul.bf16.gmra.mxu3 %v11689_v50  ;;  %v12956_v50 = vld [vmem:[%s17090_s0 + $0x17c] sm:$0xf]  ;;  %9849 = vmatpush.bf16.msra.mxu1 %v13364_v63 }
 0x4a3   : > { %v9395_v16 = vpop.f32.mrf.mxu2  ;;  %v9309_v60 = vpop.f32.mrf.mxu0 }
 0x4a4   : > { %v9439_v61 = vpop.f32.mrf.mxu3  ;;  %v9396_v10 = vadd.f32 %v9395_v16, %v9352_v25  ;;  %v9353_v2 = vpop.f32.mrf.mxu1  ;;  %v9310_v17 = vadd.f32 %v9309_v60, %v15780_v11  ;;  %v10836_v11 = vld [vmem:[%s17090_s0 + $0x58] sm:$0xf]  ;;  %v10985_v60 = vor.u32 %v12956_v50, %v10982_v4 }
 0x4a5   : > { %v10837_v23 = vor.u32 %v12938_v35, %v10836_v11 }
 0x4a6   : > { %v15995_v18 = vadd.f32 %v9439_v61, %v9396_v10  ;;  %v9354_v19 = vadd.f32 %v9353_v2, %v9310_v17  ;;  %v10981_v10 = vor.u32 %v12974_v1, %v10980_v59 }
 0x4ab   : > { %v9397_v31 = vpop.f32.mrf.mxu2  ;;  %v9312_v36 = vpop.f32.mrf.mxu0 }
 0x4ac   : > { %v9441_v37 = vpop.f32.mrf.mxu3  ;;  %v9398_v33 = vadd.f32 %v9397_v31, %v9354_v19  ;;  %v9356_v43 = vpop.f32.mrf.mxu1  ;;  %v9313_v40 = vadd.f32 %v9312_v36, %v15787_v42  ;;  %v13357_v19 = vld [vmem:[%s14809_s9 + $0x620] sm:$0xff]  ;;  %v13356_v36 = vld [vmem:[%s14809_s9 + $0x618] sm:$0xff] }
 0x4ad   : > { %9804 = vmatpush.bf16.msra.mxu0 %v13357_v19  ;;  %v13028_v19 = vld [vmem:[%s17090_s0 + $0x3bc] sm:$0xf] }
 0x4ae   : > { %v16022_v26 = vadd.f32 %v9441_v37, %v9398_v33  ;;  %v9357_v5 = vadd.f32 %v9356_v43, %v9313_v40  ;;  %9633 = vmatmul.bf16.vlgmr.msrb.gmra.mxu0 %v10829_v32  ;;  %v11116_v37 = vld [vmem:[%s17090_s0 + $0x290] sm:$0xf]  ;;  %v13009_v32 = vld [vmem:[%s17090_s0 + $0x31c] sm:$0xf0]  ;;  %v13372_v33 = vld [vmem:[%s14809_s9 + $0x698] sm:$0xff] }
 0x4af   : > { %9677 = vmatmul.bf16.vlgmr.msrb.gmra.mxu1 %v10833_v39  ;;  %v13380_v43 = vld [vmem:[%s14809_s9 + $0x6d8] sm:$0xff]  ;;  %v13010_v40 = vld [vmem:[%s17090_s0 + $0x324] sm:$0xf0]  ;;  %9893 = vmatpush.bf16.msra.mxu2 %v13372_v33  ;;  %v11117_v46 = vor.u32 %v13009_v32, %v11116_v37  ;;  %v11273_v37 = vor.u32 %v13028_v19, %v11270_v20  ;;  %v13353_v19 = vld [vmem:[%s14809_s9 + $0x600] sm:$0xff] }
 0x4b0   : > { %9721 = vmatmul.bf16.vlgmr.msrb.gmra.mxu2 %v10837_v23  ;;  %v12991_v23 = vld [vmem:[%s17090_s0 + $0x294] sm:$0xf]  ;;  %9937 = vmatpush.bf16.msra.mxu3 %v13380_v43  ;;  %v13377_v20 = vld [vmem:[%s14809_s9 + $0x6c0] sm:$0xff] }
 0x4b1   : > { %9765 = vmatmul.bf16.vlgmr.msrb.gmra.mxu3 %v10841_v21  ;;  %v11124_v21 = vld [vmem:[%s17090_s0 + $0x298] sm:$0xf]  ;;  %9805 = vmatpush.bf16.msra.mxu0 %v13356_v36 }
 0x4b3   : > { %v9400_v53 = vpop.f32.mrf.mxu2  ;;  %v9314_v42 = vpop.f32.mrf.mxu0 }
 0x4b4   : > { %v9444_v47 = vpop.f32.mrf.mxu3  ;;  %v9401_v41 = vadd.f32 %v9400_v53, %v9357_v5  ;;  %v9358_v38 = vpop.f32.mrf.mxu1  ;;  %v9315_v54 = vadd.f32 %v9314_v42, %v15815_v0  ;;  %v10974_v0 = vld [vmem:[%s17090_s0 + $0x200] sm:$0xf0]  ;;  %v11126_v5 = vld [vmem:[%s17090_s0 + $0x328] sm:$0xf0] }
 0x4b5   : > { %v10977_v6 = vor.u32 %v12955_v3, %v10974_v0 }
 0x4b6   : > { %v16029_v55 = vadd.f32 %v9444_v47, %v9401_v41  ;;  %v9359_v62 = vadd.f32 %v9358_v38, %v9315_v54  ;;  %v11125_v38 = vor.u32 %v13010_v40, %v11124_v21  ;;  %v11129_v54 = vor.u32 %v12992_v57, %v11126_v5  ;;  %v13081_v5 = vld [vmem:[%s17090_s0 + $0x55c] sm:$0xf0] }
 0x4bb   : > { %v9402_v25 = vpop.f32.mrf.mxu2  ;;  %v9458_v16 = vpop.f32.mrf.mxu0 }
 0x4bc   : > { %v9446_v8 = vpop.f32.mrf.mxu3  ;;  %v9403_v9 = vadd.f32 %v9402_v25, %v9359_v62  ;;  %v9502_v61 = vpop.f32.mrf.mxu1  ;;  %v9459_v2 = vadd.f32 %v9458_v16, %v15821_v15  ;;  %v11260_v25 = vld [vmem:[%s17090_s0 + $0x3b0] sm:$0xf] }
 0x4bd   : > { %v13355_v16 = vld [vmem:[%s14809_s9 + $0x610] sm:$0xff] }
 0x4be   : > { %v16057_v17 = vadd.f32 %v9446_v8, %v9403_v9  ;;  %v9503_v24 = vadd.f32 %v9502_v61, %v9459_v2  ;;  %9638 = vmatmul.bf16.gmra.mxu0 %v10973_v13  ;;  %v13045_v8 = vld [vmem:[%s17090_s0 + $0x43c] sm:$0xf0]  ;;  %v13027_v13 = vld [vmem:[%s17090_s0 + $0x3b4] sm:$0xf]  ;;  %v13046_v2 = vld [vmem:[%s17090_s0 + $0x444] sm:$0xf0] }
 0x4bf   : > { %9682 = vmatmul.bf16.gmra.mxu1 %v10977_v6  ;;  %v13371_v9 = vld [vmem:[%s14809_s9 + $0x690] sm:$0xff]  ;;  %9806 = vmatpush.bf16.msra.mxu0 %v13355_v16 }
 0x4c0   : > { %9726 = vmatmul.bf16.gmra.mxu2 %v10981_v10  ;;  %v13379_v61 = vld [vmem:[%s14809_s9 + $0x6d0] sm:$0xff]  ;;  %v11268_v10 = vld [vmem:[%s17090_s0 + $0x3b8] sm:$0xf] }
 0x4c1   : > { %9770 = vmatmul.bf16.gmra.mxu3 %v10985_v60  ;;  %v13363_v60 = vld [vmem:[%s14809_s9 + $0x650] sm:$0xff]  ;;  %9894 = vmatpush.bf16.msra.mxu2 %v13371_v9  ;;  %v13369_v9 = vld [vmem:[%s14809_s9 + $0x680] sm:$0xff] }
 0x4c2   : > { %9938 = vmatpush.bf16.msra.mxu3 %v13379_v61  ;;  %9850 = vmatpush.bf16.msra.mxu1 %v13363_v60 }
 0x4c3   : > { %v9546_v29 = vpop.f32.mrf.mxu2  ;;  %v9460_v15 = vpop.f32.mrf.mxu0 }
 0x4c4   : > { %v9590_v11 = vpop.f32.mrf.mxu3  ;;  %v9547_v35 = vadd.f32 %v9546_v29, %v9503_v24  ;;  %v9504_v22 = vpop.f32.mrf.mxu1  ;;  %v9461_v14 = vadd.f32 %v9460_v15, %v15851_v45  ;;  %v11118_v45 = vld [vmem:[%s17090_s0 + $0x320] sm:$0xf0]  ;;  %v11261_v29 = vor.u32 %v13045_v8, %v11260_v25 }
 0x4c5   : > { %v11121_v53 = vor.u32 %v12991_v23, %v11118_v45 }
 0x4c6   : > { %v16063_v31 = vadd.f32 %v9590_v11, %v9547_v35  ;;  %v9505_v39 = vadd.f32 %v9504_v22, %v9461_v14  ;;  %v11269_v14 = vor.u32 %v13046_v2, %v11268_v10 }
 0x4cb   : > { %v9548_v51 = vpop.f32.mrf.mxu2  ;;  %v9463_v41 = vpop.f32.mrf.mxu0 }
 0x4cc   : > { %v9592_v49 = vpop.f32.mrf.mxu3  ;;  %v9549_v47 = vadd.f32 %v9548_v51, %v9505_v39  ;;  %v9507_v42 = vpop.f32.mrf.mxu1  ;;  %v9464_v62 = vadd.f32 %v9463_v41, %v15855_v52  ;;  %v13370_v51 = vld [vmem:[%s14809_s9 + $0x688] sm:$0xff]  ;;  %v13063_v41 = vld [vmem:[%s17090_s0 + $0x4d4] sm:$0xf] }
 0x4cd   : > { %9895 = vmatpush.bf16.msra.mxu2 %v13370_v51 }
 0x4ce   : > { %v16093_v56 = vadd.f32 %v9592_v49, %v9549_v47  ;;  %v9508_v48 = vadd.f32 %v9507_v42, %v9464_v62  ;;  %9643 = vmatmul.bf16.gmra.mxu0 %v11117_v46  ;;  %v13354_v46 = vld [vmem:[%s14809_s9 + $0x608] sm:$0xff]  ;;  %v11412_v42 = vld [vmem:[%s17090_s0 + $0x4d8] sm:$0xf] }
 0x4cf   : > { %9687 = vmatmul.bf16.gmra.mxu1 %v11121_v53  ;;  %v13378_v53 = vld [vmem:[%s14809_s9 + $0x6c8] sm:$0xff]  ;;  %9807 = vmatpush.bf16.msra.mxu0 %v13354_v46  ;;  %v13408_v46 = vld [vmem:[%s14809_s9 + $0x7b8] sm:$0xff] }
 0x4d0   : > { %9731 = vmatmul.bf16.gmra.mxu2 %v11125_v38  ;;  %v13362_v47 = vld [vmem:[%s14809_s9 + $0x648] sm:$0xff]  ;;  %9939 = vmatpush.bf16.msra.mxu3 %v13378_v53  ;;  %v13392_v53 = vld [vmem:[%s14809_s9 + $0x738] sm:$0xff] }
 0x4d1   : > { %9775 = vmatmul.bf16.gmra.mxu3 %v11129_v54  ;;  %v13082_v38 = vld [vmem:[%s17090_s0 + $0x564] sm:$0xf0]  ;;  %v13064_v54 = vld [vmem:[%s17090_s0 + $0x4dc] sm:$0xf]  ;;  %v11414_v62 = vld [vmem:[%s17090_s0 + $0x568] sm:$0xf0]  ;;  %9851 = vmatpush.bf16.msra.mxu1 %v13362_v47 }
 0x4d2   : > { %v11417_v25 = vor.u32 %v13064_v54, %v11414_v62  ;;  %9896 = vmatpush.bf16.msra.mxu2 %v13369_v9  ;;  %v13416_v47 = vld [vmem:[%s14809_s9 + $0x7f8] sm:$0xff] }
 0x4d3   : > { %v9551_v3 = vpop.f32.mrf.mxu2  ;;  %v9465_v1 = vpop.f32.mrf.mxu0  ;;  %9808 = vmatpush.bf16.msra.mxu0 %v13353_v19 }
 0x4d4   : > { %v9595_v0 = vpop.f32.mrf.mxu3  ;;  %v9552_v59 = vadd.f32 %v9551_v3, %v9508_v48  ;;  %v9509_v50 = vpop.f32.mrf.mxu1  ;;  %v9466_v52 = vadd.f32 %v9465_v1, %v15886_v28  ;;  %v11262_v28 = vld [vmem:[%s17090_s0 + $0x440] sm:$0xf0]  ;;  %9940 = vmatpush.bf16.msra.mxu3 %v13377_v20 }
 0x4d5   : > { %v11265_v11 = vor.u32 %v13027_v13, %v11262_v28 }
 0x4d6   : > { %v16097_v4 = vadd.f32 %v9595_v0, %v9552_v59  ;;  %v9510_v6 = vadd.f32 %v9509_v50, %v9466_v52  ;;  %v11413_v52 = vor.u32 %v13082_v38, %v11412_v42  ;;  %10065 = vmatpush.bf16.msrb.mxu2 %v13408_v46 }
 0x4d7   : > { %9977 = vmatpush.bf16.msrb.mxu0 %v13392_v53 }
 0x4d8   : > { %10109 = vmatpush.bf16.msrb.mxu3 %v13416_v47 }
 0x4db   : > { %v9553_v24 = vpop.f32.mrf.mxu2  ;;  %v9468_v15 = vpop.f32.mrf.mxu0 }
 0x4dc   : > { %v9597_v12 = vpop.f32.mrf.mxu3  ;;  %v9554_v35 = vadd.f32 %v9553_v24, %v9510_v6  ;;  %v9512_v22 = vpop.f32.mrf.mxu1  ;;  %v9469_v32 = vadd.f32 %v9468_v15, %v15889_v30  ;;  %v11404_v30 = vld [vmem:[%s17090_s0 + $0x4d0] sm:$0xf]  ;;  %v11556_v15 = vld [vmem:[%s17090_s0 + $0x5f8] sm:$0xf] }
 0x4dd   : > { %v11405_v3 = vor.u32 %v13081_v5, %v11404_v30 }
 0x4de   : > { %v16128_v39 = vadd.f32 %v9597_v12, %v9554_v35  ;;  %v9513_v33 = vadd.f32 %v9512_v22, %v9469_v32  ;;  %9648 = vmatmul.bf16.gmra.mxu0 %v11261_v29  ;;  %v11548_v12 = vld [vmem:[%s17090_s0 + $0x5f0] sm:$0xf]  ;;  %v13117_v29 = vld [vmem:[%s17090_s0 + $0x67c] sm:$0xf0]  ;;  %v13099_v35 = vld [vmem:[%s17090_s0 + $0x5f4] sm:$0xf] }
 0x4df   : > { %9692 = vmatmul.bf16.gmra.mxu1 %v11265_v11  ;;  %v13361_v11 = vld [vmem:[%s14809_s9 + $0x640] sm:$0xff]  ;;  %v13118_v22 = vld [vmem:[%s17090_s0 + $0x684] sm:$0xf0] }
 0x4e0   : > { %9736 = vmatmul.bf16.gmra.mxu2 %v11269_v14  ;;  %v13100_v14 = vld [vmem:[%s17090_s0 + $0x5fc] sm:$0xf]  ;;  %9852 = vmatpush.bf16.msra.mxu1 %v13361_v11  ;;  %v13415_v11 = vld [vmem:[%s14809_s9 + $0x7f0] sm:$0xff] }
 0x4e1   : > { %9780 = vmatmul.bf16.gmra.mxu3 %v11273_v37  ;;  %v11558_v37 = vld [vmem:[%s17090_s0 + $0x688] sm:$0xf0] }
 0x4e2   : > { %v11561_v30 = vor.u32 %v13100_v14, %v11558_v37  ;;  %10110 = vmatpush.bf16.msrb.mxu3 %v13415_v11 }
 0x4e3   : > { %v9556_v36 = vpop.f32.mrf.mxu2  ;;  %v9470_v45 = vpop.f32.mrf.mxu0 }
 0x4e4   : > { %v9600_v43 = vpop.f32.mrf.mxu3  ;;  %v9557_v23 = vadd.f32 %v9556_v36, %v9513_v33  ;;  %v9514_v21 = vpop.f32.mrf.mxu1  ;;  %v9471_v40 = vadd.f32 %v9470_v45, %v15920_v27  ;;  %v11406_v27 = vld [vmem:[%s17090_s0 + $0x560] sm:$0xf0]  ;;  %v11549_v36 = vor.u32 %v13117_v29, %v11548_v12  ;;  %v13407_v12 = vld [vmem:[%s14809_s9 + $0x7b0] sm:$0xff] }
 0x4e5   : > { %v11409_v0 = vor.u32 %v13063_v41, %v11406_v27  ;;  %v13391_v29 = vld [vmem:[%s14809_s9 + $0x730] sm:$0xff]  ;;  %10066 = vmatpush.bf16.msrb.mxu2 %v13407_v12 }
 0x4e6   : > { %v16131_v57 = vadd.f32 %v9600_v43, %v9557_v23  ;;  %v9515_v49 = vadd.f32 %v9514_v21, %v9471_v40  ;;  %v11557_v40 = vor.u32 %v13118_v22, %v11556_v15  ;;  %9978 = vmatpush.bf16.msrb.mxu0 %v13391_v29 }
 0x4eb   : > { %v9558_v63 = vpop.f32.mrf.mxu2  ;;  %v9473_v1 = vpop.f32.mrf.mxu0 }
 0x4ec   : > { %v9602_v48 = vpop.f32.mrf.mxu3  ;;  %v9559_v59 = vadd.f32 %v9558_v63, %v9515_v49  ;;  %v9517_v50 = vpop.f32.mrf.mxu1  ;;  %v9474_v8 = vadd.f32 %v9473_v1, %v15924_v34  ;;  %v13400_v63 = vld [vmem:[%s14809_s9 + $0x778] sm:$0xff] }
 0x4ed   : > { %v11700_v1 = vld [vmem:[%s17090_s0 + $0x718] sm:$0xf]  ;;  %10021 = vmatpush.bf16.msrb.mxu1 %v13400_v63  ;;  %v13406_v63 = vld [vmem:[%s14809_s9 + $0x7a8] sm:$0xff] }
 0x4ee   : > { %v16162_v13 = vadd.f32 %v9602_v48, %v9559_v59  ;;  %v9518_v6 = vadd.f32 %v9517_v50, %v9474_v8  ;;  %9653 = vmatmul.bf16.gmra.mxu0 %v11405_v3  ;;  %v11692_v3 = vld [vmem:[%s17090_s0 + $0x710] sm:$0xf]  ;;  %v13135_v59 = vld [vmem:[%s17090_s0 + $0x714] sm:$0xf]  ;;  %v13154_v50 = vld [vmem:[%s17090_s0 + $0x7a4] sm:$0xf0]  ;;  %10067 = vmatpush.bf16.msrb.mxu2 %v13406_v63 }
 0x4ef   : > { %9697 = vmatmul.bf16.gmra.mxu1 %v11409_v0  ;;  %v13153_v0 = vld [vmem:[%s17090_s0 + $0x79c] sm:$0xf0]  ;;  %v12994_v63 = vld [vmem:[%s17090_s0 + $0x2ac] sm:$0xf] }
 0x4f0   : > { %9741 = vmatmul.bf16.gmra.mxu2 %v11413_v52  ;;  %v13136_v52 = vld [vmem:[%s17090_s0 + $0x71c] sm:$0xf]  ;;  %v11693_v9 = vor.u32 %v13153_v0, %v11692_v3  ;;  %v13390_v3 = vld [vmem:[%s14809_s9 + $0x728] sm:$0xff] }
 0x4f1   : > { %9785 = vmatmul.bf16.gmra.mxu3 %v11417_v25  ;;  %v11702_v25 = vld [vmem:[%s17090_s0 + $0x7a8] sm:$0xf0]  ;;  %9979 = vmatpush.bf16.msrb.mxu0 %v13390_v3 }
 0x4f2   : > { %v13414_v0 = vld [vmem:[%s14809_s9 + $0x7e8] sm:$0xff] }
 0x4f3   : > { %v9561_v16 = vpop.f32.mrf.mxu2  ;;  %v9475_v10 = vpop.f32.mrf.mxu0  ;;  %10111 = vmatpush.bf16.msrb.mxu3 %v13414_v0 }
 0x4f4   : > { %v9605_v61 = vpop.f32.mrf.mxu3  ;;  %v9562_v28 = vadd.f32 %v9561_v16, %v9518_v6  ;;  %v9519_v60 = vpop.f32.mrf.mxu1  ;;  %v9476_v2 = vadd.f32 %v9475_v10, %v15954_v58  ;;  %v11550_v58 = vld [vmem:[%s17090_s0 + $0x680] sm:$0xf0] }
 0x4f5   : > { %v11553_v43 = vor.u32 %v13099_v35, %v11550_v58  ;;  %v13399_v35 = vld [vmem:[%s14809_s9 + $0x770] sm:$0xff] }
 0x4f6   : > { %v16166_v34 = vadd.f32 %v9605_v61, %v9562_v28  ;;  %v9520_v24 = vadd.f32 %v9519_v60, %v9476_v2  ;;  %v11701_v60 = vor.u32 %v13154_v50, %v11700_v1  ;;  %v11705_v2 = vor.u32 %v13136_v52, %v11702_v25  ;;  %10022 = vmatpush.bf16.msrb.mxu1 %v13399_v35 }
 0x4fb   : > { %v9563_v32 = vpop.f32.mrf.mxu2  ;;  %v9478_v45 = vpop.f32.mrf.mxu0 }
 0x4fc   : > { %v9607_v33 = vpop.f32.mrf.mxu3  ;;  %v9564_v23 = vadd.f32 %v9563_v32, %v9520_v24  ;;  %v9522_v21 = vpop.f32.mrf.mxu1  ;;  %v9479_v5 = vadd.f32 %v9478_v45, %v15960_v44  ;;  %v10846_v45 = vld [vmem:[%s17090_s0 + $0xf0] sm:$0xf0] }
 0x4fe   : > { %v16196_v51 = vadd.f32 %v9607_v33, %v9564_v23  ;;  %v9523_v49 = vadd.f32 %v9522_v21, %v9479_v5  ;;  %9658 = vmatmul.bf16.gmra.mxu0 %v11549_v36  ;;  %v10844_v36 = vld [vmem:[%s17090_s0 + $0x60] sm:$0xf]  ;;  %v12921_v23 = vld [vmem:[%s17090_s0 + $0x64] sm:$0xf]  ;;  %v12940_v21 = vld [vmem:[%s17090_s0 + $0xf4] sm:$0xf0] }
 0x4ff   : > { %9702 = vmatmul.bf16.gmra.mxu1 %v11553_v43  ;;  %v12939_v43 = vld [vmem:[%s17090_s0 + $0xec] sm:$0xf0]  ;;  %v10849_v53 = vor.u32 %v12921_v23, %v10846_v45  ;;  %v13397_v23 = vld [vmem:[%s14809_s9 + $0x760] sm:$0xff] }
 0x500   : > { %9746 = vmatmul.bf16.gmra.mxu2 %v11557_v40  ;;  %v12922_v40 = vld [vmem:[%s17090_s0 + $0x6c] sm:$0xf]  ;;  %v10845_v46 = vor.u32 %v12939_v43, %v10844_v36  ;;  %v13413_v36 = vld [vmem:[%s14809_s9 + $0x7e0] sm:$0xff] }
 0x501   : > { %9790 = vmatmul.bf16.gmra.mxu3 %v11561_v30  ;;  %v10854_v30 = vld [vmem:[%s17090_s0 + $0xf8] sm:$0xf0] }
 0x502   : > { %10112 = vmatpush.bf16.msrb.mxu3 %v13413_v36  ;;  %v11286_v36 = vld [vmem:[%s17090_s0 + $0x458] sm:$0xf0] }
 0x503   : > { %v9566_v41 = vpop.f32.mrf.mxu2  ;;  %v9480_v38 = vpop.f32.mrf.mxu0 }
 0x504   : > { %v9610_v27 = vpop.f32.mrf.mxu3  ;;  %v9567_v42 = vadd.f32 %v9566_v41, %v9523_v49  ;;  %v9524_v54 = vpop.f32.mrf.mxu1  ;;  %v9481_v44 = vadd.f32 %v9480_v38, %v15988_v7  ;;  %v11694_v7 = vld [vmem:[%s17090_s0 + $0x7a0] sm:$0xf0]  ;;  %v10857_v38 = vor.u32 %v12922_v40, %v10854_v30 }
 0x505   : > { %v11697_v16 = vor.u32 %v13135_v59, %v11694_v7  ;;  %v13398_v59 = vld [vmem:[%s14809_s9 + $0x768] sm:$0xff] }
 0x506   : > { %v16202_v62 = vadd.f32 %v9610_v27, %v9567_v42  ;;  %v9525_v48 = vadd.f32 %v9524_v54, %v9481_v44  ;;  %10023 = vmatpush.bf16.msrb.mxu1 %v13398_v59 }
 0x50a   : > { %10024 = vmatpush.bf16.msrb.mxu1 %v13397_v23 }
 0x50b   : > { %v9568_v8 = vpop.f32.mrf.mxu2  ;;  %v9483_v28 = vpop.f32.mrf.mxu0 }
 0x50c   : > { %v9612_v6 = vpop.f32.mrf.mxu3  ;;  %v9569_v61 = vadd.f32 %v9568_v8, %v9525_v48  ;;  %v9527_v10 = vpop.f32.mrf.mxu1  ;;  %v9484_v19 = vadd.f32 %v9483_v28, %v15995_v18  ;;  %v12957_v28 = vld [vmem:[%s17090_s0 + $0x184] sm:$0xf] }
 0x50e   : > { %v16230_v20 = vadd.f32 %v9612_v6, %v9569_v61  ;;  %v9528_v24 = vadd.f32 %v9527_v10, %v9484_v19  ;;  %9663 = vmatmul.bf16.gmra.mxu0 %v11693_v9  ;;  %v10988_v9 = vld [vmem:[%s17090_s0 + $0x180] sm:$0xf]  ;;  %v10996_v10 = vld [vmem:[%s17090_s0 + $0x188] sm:$0xf]  ;;  %v10998_v19 = vld [vmem:[%s17090_s0 + $0x218] sm:$0xf0] }
 0x50f   : > { %9707 = vmatmul.bf16.gmra.mxu1 %v11697_v16  ;;  %v12975_v16 = vld [vmem:[%s17090_s0 + $0x20c] sm:$0xf0]  ;;  %v13405_v61 = vld [vmem:[%s14809_s9 + $0x7a0] sm:$0xff] }
 0x510   : > { %9751 = vmatmul.bf16.gmra.mxu2 %v11701_v60  ;;  %v12976_v60 = vld [vmem:[%s17090_s0 + $0x214] sm:$0xf0]  ;;  %v10989_v29 = vor.u32 %v12975_v16, %v10988_v9 }
 0x511   : > { %9795 = vmatmul.bf16.gmra.mxu3 %v11705_v2  ;;  %v12958_v2 = vld [vmem:[%s17090_s0 + $0x18c] sm:$0xf]  ;;  %10068 = vmatpush.bf16.msrb.mxu2 %v13405_v61  ;;  %v13396_v16 = vld [vmem:[%s14809_s9 + $0x758] sm:$0xff] }
 0x512   : > { %10025 = vmatpush.bf16.msrb.mxu1 %v13396_v16 }
 0x513   : > { %v9571_v58 = vpop.f32.mrf.mxu2  ;;  %v9485_v14 = vpop.f32.mrf.mxu0 }
 0x514   : > { %v9615_v15 = vpop.f32.mrf.mxu3  ;;  %v9572_v22 = vadd.f32 %v9571_v58, %v9528_v24  ;;  %v9529_v18 = vpop.f32.mrf.mxu1  ;;  %v9486_v37 = vadd.f32 %v9485_v14, %v16022_v26  ;;  %v10852_v26 = vld [vmem:[%s17090_s0 + $0x68] sm:$0xf]  ;;  %v11001_v14 = vor.u32 %v12958_v2, %v10998_v19 }
 0x515   : > { %v10853_v42 = vor.u32 %v12940_v21, %v10852_v26 }
 0x516   : > { %v16237_v32 = vadd.f32 %v9615_v15, %v9572_v22  ;;  %v9530_v33 = vadd.f32 %v9529_v18, %v9486_v37  ;;  %v10997_v22 = vor.u32 %v12976_v60, %v10996_v10 }
 0x51b   : > { %v9573_v5 = vpop.f32.mrf.mxu2  ;;  %v9488_v41 = vpop.f32.mrf.mxu0 }
 0x51c   : > { %v9617_v49 = vpop.f32.mrf.mxu3  ;;  %v9574_v47 = vadd.f32 %v9573_v5, %v9530_v33  ;;  %v9532_v27 = vpop.f32.mrf.mxu1  ;;  %v9489_v54 = vadd.f32 %v9488_v41, %v16029_v55  ;;  %v13389_v33 = vld [vmem:[%s14809_s9 + $0x720] sm:$0xff]  ;;  %v13388_v41 = vld [vmem:[%s14809_s9 + $0x718] sm:$0xff] }
 0x51d   : > { %9980 = vmatpush.bf16.msrb.mxu0 %v13389_v33  ;;  %v13030_v33 = vld [vmem:[%s17090_s0 + $0x3cc] sm:$0xf] }
 0x51e   : > { %v16264_v44 = vadd.f32 %v9617_v49, %v9574_v47  ;;  %v9533_v48 = vadd.f32 %v9532_v27, %v9489_v54  ;;  %9809 = vmatmul.bf16.vlgmr.msra.gmra.mxu0 %v10845_v46  ;;  %v11132_v49 = vld [vmem:[%s17090_s0 + $0x2a0] sm:$0xf]  ;;  %v13011_v46 = vld [vmem:[%s17090_s0 + $0x32c] sm:$0xf0]  ;;  %v13404_v47 = vld [vmem:[%s14809_s9 + $0x798] sm:$0xff] }
 0x51f   : > { %9853 = vmatmul.bf16.vlgmr.msra.gmra.mxu1 %v10849_v53  ;;  %v13412_v27 = vld [vmem:[%s14809_s9 + $0x7d8] sm:$0xff]  ;;  %10069 = vmatpush.bf16.msrb.mxu2 %v13404_v47  ;;  %v11133_v59 = vor.u32 %v13011_v46, %v11132_v49  ;;  %v11289_v49 = vor.u32 %v13030_v33, %v11286_v36  ;;  %v13385_v33 = vld [vmem:[%s14809_s9 + $0x700] sm:$0xff] }
 0x520   : > { %9897 = vmatmul.bf16.vlgmr.msra.gmra.mxu2 %v10853_v42  ;;  %v12993_v42 = vld [vmem:[%s17090_s0 + $0x2a4] sm:$0xf]  ;;  %v13012_v54 = vld [vmem:[%s17090_s0 + $0x334] sm:$0xf0]  ;;  %10113 = vmatpush.bf16.msrb.mxu3 %v13412_v27 }
 0x521   : > { %9941 = vmatmul.bf16.vlgmr.msra.gmra.mxu3 %v10857_v38  ;;  %v11140_v38 = vld [vmem:[%s17090_s0 + $0x2a8] sm:$0xf]  ;;  %9981 = vmatpush.bf16.msrb.mxu0 %v13388_v41  ;;  %v13409_v36 = vld [vmem:[%s14809_s9 + $0x7c0] sm:$0xff] }
 0x523   : > { %v9576_v7 = vpop.f32.mrf.mxu2  ;;  %v9490_v55 = vpop.f32.mrf.mxu0 }
 0x524   : > { %v9620_v1 = vpop.f32.mrf.mxu3  ;;  %v9577_v50 = vadd.f32 %v9576_v7, %v9533_v48  ;;  %v9534_v52 = vpop.f32.mrf.mxu1  ;;  %v9491_v25 = vadd.f32 %v9490_v55, %v16057_v17  ;;  %v10990_v17 = vld [vmem:[%s17090_s0 + $0x210] sm:$0xf0]  ;;  %v11142_v48 = vld [vmem:[%s17090_s0 + $0x338] sm:$0xf0] }
 0x525   : > { %v10993_v11 = vor.u32 %v12957_v28, %v10990_v17 }
 0x526   : > { %v16271_v8 = vadd.f32 %v9620_v1, %v9577_v50  ;;  %v9535_v6 = vadd.f32 %v9534_v52, %v9491_v25  ;;  %v11141_v52 = vor.u32 %v13012_v54, %v11140_v38  ;;  %v11145_v25 = vor.u32 %v12994_v63, %v11142_v48  ;;  %v13083_v48 = vld [vmem:[%s17090_s0 + $0x56c] sm:$0xf0] }
 0x52b   : > { %v9578_v24 = vpop.f32.mrf.mxu2  ;;  %v9634_v58 = vpop.f32.mrf.mxu0 }
 0x52c   : > { %v9622_v12 = vpop.f32.mrf.mxu3  ;;  %v9579_v35 = vadd.f32 %v9578_v24, %v9535_v6  ;;  %v9678_v15 = vpop.f32.mrf.mxu1  ;;  %v9635_v18 = vadd.f32 %v9634_v58, %v16063_v31  ;;  %v11276_v24 = vld [vmem:[%s17090_s0 + $0x3c0] sm:$0xf]  ;;  %v13387_v58 = vld [vmem:[%s14809_s9 + $0x710] sm:$0xff] }
 0x52d   : > { %9982 = vmatpush.bf16.msrb.mxu0 %v13387_v58 }
 0x52e   : > { %v16299_v37 = vadd.f32 %v9622_v12, %v9579_v35  ;;  %v9679_v43 = vadd.f32 %v9678_v15, %v9635_v18  ;;  %9814 = vmatmul.bf16.gmra.mxu0 %v10989_v29  ;;  %v13047_v12 = vld [vmem:[%s17090_s0 + $0x44c] sm:$0xf0]  ;;  %v13029_v29 = vld [vmem:[%s17090_s0 + $0x3c4] sm:$0xf]  ;;  %v13048_v18 = vld [vmem:[%s17090_s0 + $0x454] sm:$0xf0] }
 0x52f   : > { %9858 = vmatmul.bf16.gmra.mxu1 %v10993_v11  ;;  %v13403_v35 = vld [vmem:[%s14809_s9 + $0x790] sm:$0xff] }
 0x530   : > { %9902 = vmatmul.bf16.gmra.mxu2 %v10997_v22  ;;  %v13411_v15 = vld [vmem:[%s14809_s9 + $0x7d0] sm:$0xff]  ;;  %v11284_v22 = vld [vmem:[%s17090_s0 + $0x3c8] sm:$0xf] }
 0x531   : > { %9946 = vmatmul.bf16.gmra.mxu3 %v11001_v14  ;;  %v13395_v14 = vld [vmem:[%s14809_s9 + $0x750] sm:$0xff]  ;;  %10070 = vmatpush.bf16.msrb.mxu2 %v13403_v35  ;;  %v13401_v35 = vld [vmem:[%s14809_s9 + $0x780] sm:$0xff] }
 0x532   : > { %10114 = vmatpush.bf16.msrb.mxu3 %v13411_v15  ;;  %10026 = vmatpush.bf16.msrb.mxu1 %v13395_v14 }
 0x533   : > { %v9722_v45 = vpop.f32.mrf.mxu2  ;;  %v9636_v31 = vpop.f32.mrf.mxu0 }
 0x534   : > { %v9766_v26 = vpop.f32.mrf.mxu3  ;;  %v9723_v21 = vadd.f32 %v9722_v45, %v9679_v43  ;;  %v9680_v40 = vpop.f32.mrf.mxu1  ;;  %v9637_v30 = vadd.f32 %v9636_v31, %v16093_v56  ;;  %v11134_v56 = vld [vmem:[%s17090_s0 + $0x330] sm:$0xf0]  ;;  %v11277_v45 = vor.u32 %v13047_v12, %v11276_v24 }
 0x535   : > { %v11137_v7 = vor.u32 %v12993_v42, %v11134_v56 }
 0x536   : > { %v16305_v5 = vadd.f32 %v9766_v26, %v9723_v21  ;;  %v9681_v53 = vadd.f32 %v9680_v40, %v9637_v30  ;;  %v11285_v30 = vor.u32 %v13048_v18, %v11284_v22 }
 0x53b   : > { %v9724_v3 = vpop.f32.mrf.mxu2  ;;  %v9639_v50 = vpop.f32.mrf.mxu0 }
 0x53c   : > { %v9768_v0 = vpop.f32.mrf.mxu3  ;;  %v9725_v1 = vadd.f32 %v9724_v3, %v9681_v53  ;;  %v9683_v55 = vpop.f32.mrf.mxu1  ;;  %v9640_v6 = vadd.f32 %v9639_v50, %v16097_v4  ;;  %v13402_v3 = vld [vmem:[%s14809_s9 + $0x788] sm:$0xff]  ;;  %v13065_v50 = vld [vmem:[%s17090_s0 + $0x4e4] sm:$0xf] }
 0x53d   : > { %10071 = vmatpush.bf16.msrb.mxu2 %v13402_v3 }
 0x53e   : > { %v16335_v9 = vadd.f32 %v9768_v0, %v9725_v1  ;;  %v9684_v61 = vadd.f32 %v9683_v55, %v9640_v6  ;;  %9819 = vmatmul.bf16.gmra.mxu0 %v11133_v59  ;;  %v13386_v59 = vld [vmem:[%s14809_s9 + $0x708] sm:$0xff]  ;;  %v11430_v6 = vld [vmem:[%s17090_s0 + $0x578] sm:$0xf0] }
 0x53f   : > { %9863 = vmatmul.bf16.gmra.mxu1 %v11137_v7  ;;  %v13410_v7 = vld [vmem:[%s14809_s9 + $0x7c8] sm:$0xff]  ;;  %9983 = vmatpush.bf16.msrb.mxu0 %v13386_v59  ;;  %v13440_v59 = vld [vmem:[%s14809_s9 + $0x8b8] sm:$0xff] }
 0x540   : > { %9907 = vmatmul.bf16.gmra.mxu2 %v11141_v52  ;;  %v13394_v1 = vld [vmem:[%s14809_s9 + $0x748] sm:$0xff]  ;;  %v13084_v52 = vld [vmem:[%s17090_s0 + $0x574] sm:$0xf0]  ;;  %10115 = vmatpush.bf16.msrb.mxu3 %v13410_v7 }
 0x541   : > { %9951 = vmatmul.bf16.gmra.mxu3 %v11145_v25  ;;  %v11428_v55 = vld [vmem:[%s17090_s0 + $0x4e8] sm:$0xf]  ;;  %v13066_v25 = vld [vmem:[%s17090_s0 + $0x4ec] sm:$0xf]  ;;  %10027 = vmatpush.bf16.msrb.mxu1 %v13394_v1  ;;  %v13424_v7 = vld [vmem:[%s14809_s9 + $0x838] sm:$0xff] }
 0x542   : > { %v11433_v24 = vor.u32 %v13066_v25, %v11430_v6  ;;  %10072 = vmatpush.bf16.msrb.mxu2 %v13401_v35  ;;  %v13448_v1 = vld [vmem:[%s14809_s9 + $0x8f8] sm:$0xff] }
 0x543   : > { %v9727_v28 = vpop.f32.mrf.mxu2  ;;  %v9641_v60 = vpop.f32.mrf.mxu0  ;;  %9984 = vmatpush.bf16.msrb.mxu0 %v13385_v33 }
 0x544   : > { %v9771_v17 = vpop.f32.mrf.mxu3  ;;  %v9728_v10 = vadd.f32 %v9727_v28, %v9684_v61  ;;  %v9685_v2 = vpop.f32.mrf.mxu1  ;;  %v9642_v4 = vadd.f32 %v9641_v60, %v16128_v39  ;;  %v11278_v39 = vld [vmem:[%s17090_s0 + $0x450] sm:$0xf0]  ;;  %10116 = vmatpush.bf16.msrb.mxu3 %v13409_v36 }
 0x545   : > { %v11281_v26 = vor.u32 %v13029_v29, %v11278_v39 }
 0x546   : > { %v16339_v19 = vadd.f32 %v9771_v17, %v9728_v10  ;;  %v9686_v11 = vadd.f32 %v9685_v2, %v9642_v4  ;;  %v11429_v4 = vor.u32 %v13084_v52, %v11428_v55  ;;  %10241 = vmatpush.bf16.msra.mxu2 %v13440_v59 }
 0x547   : > { %10153 = vmatpush.bf16.msra.mxu0 %v13424_v7 }
 0x548   : > { %10285 = vmatpush.bf16.msra.mxu3 %v13448_v1 }
 0x54b   : > { %v9729_v43 = vpop.f32.mrf.mxu2  ;;  %v9644_v31 = vpop.f32.mrf.mxu0 }
 0x54c   : > { %v9773_v23 = vpop.f32.mrf.mxu3  ;;  %v9730_v21 = vadd.f32 %v9729_v43, %v9686_v11  ;;  %v9688_v40 = vpop.f32.mrf.mxu1  ;;  %v9645_v46 = vadd.f32 %v9644_v31, %v16131_v57  ;;  %v11420_v57 = vld [vmem:[%s17090_s0 + $0x4e0] sm:$0xf]  ;;  %v11572_v31 = vld [vmem:[%s17090_s0 + $0x608] sm:$0xf] }
 0x54d   : > { %v11421_v28 = vor.u32 %v13083_v48, %v11420_v57 }
 0x54e   : > { %v16370_v53 = vadd.f32 %v9773_v23, %v9730_v21  ;;  %v9689_v47 = vadd.f32 %v9688_v40, %v9645_v46  ;;  %9824 = vmatmul.bf16.gmra.mxu0 %v11277_v45  ;;  %v11564_v23 = vld [vmem:[%s17090_s0 + $0x600] sm:$0xf]  ;;  %v13119_v45 = vld [vmem:[%s17090_s0 + $0x68c] sm:$0xf0]  ;;  %v13101_v21 = vld [vmem:[%s17090_s0 + $0x604] sm:$0xf] }
 0x54f   : > { %9868 = vmatmul.bf16.gmra.mxu1 %v11281_v26  ;;  %v13393_v26 = vld [vmem:[%s14809_s9 + $0x740] sm:$0xff]  ;;  %v13120_v40 = vld [vmem:[%s17090_s0 + $0x694] sm:$0xf0] }
 0x550   : > { %9912 = vmatmul.bf16.gmra.mxu2 %v11285_v30  ;;  %v13102_v30 = vld [vmem:[%s17090_s0 + $0x60c] sm:$0xf]  ;;  %10028 = vmatpush.bf16.msrb.mxu1 %v13393_v26  ;;  %v13447_v26 = vld [vmem:[%s14809_s9 + $0x8f0] sm:$0xff] }
 0x551   : > { %9956 = vmatmul.bf16.gmra.mxu3 %v11289_v49  ;;  %v11574_v49 = vld [vmem:[%s17090_s0 + $0x698] sm:$0xf0] }
 0x552   : > { %v11577_v57 = vor.u32 %v13102_v30, %v11574_v49  ;;  %10286 = vmatpush.bf16.msra.mxu3 %v13447_v26 }
 0x553   : > { %v9732_v41 = vpop.f32.mrf.mxu2  ;;  %v9646_v56 = vpop.f32.mrf.mxu0 }
 0x554   : > { %v9776_v27 = vpop.f32.mrf.mxu3  ;;  %v9733_v42 = vadd.f32 %v9732_v41, %v9689_v47  ;;  %v9690_v38 = vpop.f32.mrf.mxu1  ;;  %v9647_v54 = vadd.f32 %v9646_v56, %v16162_v13  ;;  %v11422_v13 = vld [vmem:[%s17090_s0 + $0x570] sm:$0xf0]  ;;  %v11565_v41 = vor.u32 %v13119_v45, %v11564_v23 }
 0x555   : > { %v11425_v17 = vor.u32 %v13065_v50, %v11422_v13  ;;  %v13439_v23 = vld [vmem:[%s14809_s9 + $0x8b0] sm:$0xff] }
 0x556   : > { %v16373_v63 = vadd.f32 %v9776_v27, %v9733_v42  ;;  %v9691_v0 = vadd.f32 %v9690_v38, %v9647_v54  ;;  %v11573_v54 = vor.u32 %v13120_v40, %v11572_v31  ;;  %v13423_v45 = vld [vmem:[%s14809_s9 + $0x830] sm:$0xff]  ;;  %10242 = vmatpush.bf16.msra.mxu2 %v13439_v23 }
 0x557   : > { %10154 = vmatpush.bf16.msra.mxu0 %v13423_v45 }
 0x55b   : > { %v9734_v16 = vpop.f32.mrf.mxu2  ;;  %v9649_v60 = vpop.f32.mrf.mxu0 }
 0x55c   : > { %v9778_v61 = vpop.f32.mrf.mxu3  ;;  %v9735_v10 = vadd.f32 %v9734_v16, %v9691_v0  ;;  %v9693_v2 = vpop.f32.mrf.mxu1  ;;  %v9650_v12 = vadd.f32 %v9649_v60, %v16166_v34  ;;  %v13432_v16 = vld [vmem:[%s14809_s9 + $0x878] sm:$0xff]  ;;  %v11716_v60 = vld [vmem:[%s17090_s0 + $0x728] sm:$0xf] }
 0x55d   : > { %10197 = vmatpush.bf16.msra.mxu1 %v13432_v16  ;;  %v13438_v16 = vld [vmem:[%s14809_s9 + $0x8a8] sm:$0xff] }
 0x55e   : > { %v16404_v29 = vadd.f32 %v9778_v61, %v9735_v10  ;;  %v9694_v11 = vadd.f32 %v9693_v2, %v9650_v12  ;;  %9829 = vmatmul.bf16.gmra.mxu0 %v11421_v28  ;;  %v11708_v28 = vld [vmem:[%s17090_s0 + $0x720] sm:$0xf]  ;;  %v13137_v10 = vld [vmem:[%s17090_s0 + $0x724] sm:$0xf]  ;;  %v13156_v2 = vld [vmem:[%s17090_s0 + $0x7b4] sm:$0xf0]  ;;  %10243 = vmatpush.bf16.msra.mxu2 %v13438_v16 }
 0x55f   : > { %9873 = vmatmul.bf16.gmra.mxu1 %v11425_v17  ;;  %v13155_v17 = vld [vmem:[%s17090_s0 + $0x7ac] sm:$0xf0]  ;;  %v12996_v16 = vld [vmem:[%s17090_s0 + $0x2bc] sm:$0xf] }
 0x560   : > { %9917 = vmatmul.bf16.gmra.mxu2 %v11429_v4  ;;  %v13138_v4 = vld [vmem:[%s17090_s0 + $0x72c] sm:$0xf]  ;;  %v11709_v35 = vor.u32 %v13155_v17, %v11708_v28 }
 0x561   : > { %9961 = vmatmul.bf16.gmra.mxu3 %v11433_v24  ;;  %v11718_v24 = vld [vmem:[%s17090_s0 + $0x7b8] sm:$0xf0]  ;;  %v13422_v28 = vld [vmem:[%s14809_s9 + $0x828] sm:$0xff] }
 0x562   : > { %v13446_v17 = vld [vmem:[%s14809_s9 + $0x8e8] sm:$0xff]  ;;  %10155 = vmatpush.bf16.msra.mxu0 %v13422_v28 }
 0x563   : > { %v9737_v58 = vpop.f32.mrf.mxu2  ;;  %v9651_v22 = vpop.f32.mrf.mxu0  ;;  %10287 = vmatpush.bf16.msra.mxu3 %v13446_v17 }
 0x564   : > { %v9781_v15 = vpop.f32.mrf.mxu3  ;;  %v9738_v39 = vadd.f32 %v9737_v58, %v9694_v11  ;;  %v9695_v14 = vpop.f32.mrf.mxu1  ;;  %v9652_v18 = vadd.f32 %v9651_v22, %v16196_v51  ;;  %v11566_v51 = vld [vmem:[%s17090_s0 + $0x690] sm:$0xf0] }
 0x565   : > { %v11569_v27 = vor.u32 %v13101_v21, %v11566_v51  ;;  %v13431_v21 = vld [vmem:[%s14809_s9 + $0x870] sm:$0xff] }
 0x566   : > { %v16408_v34 = vadd.f32 %v9781_v15, %v9738_v39  ;;  %v9696_v43 = vadd.f32 %v9695_v14, %v9652_v18  ;;  %v11717_v14 = vor.u32 %v13156_v2, %v11716_v60  ;;  %v11721_v18 = vor.u32 %v13138_v4, %v11718_v24  ;;  %10198 = vmatpush.bf16.msra.mxu1 %v13431_v21 }
 0x56b   : > { %v9739_v46 = vpop.f32.mrf.mxu2  ;;  %v9654_v56 = vpop.f32.mrf.mxu0 }
 0x56c   : > { %v9783_v47 = vpop.f32.mrf.mxu3  ;;  %v9740_v42 = vadd.f32 %v9739_v46, %v9696_v43  ;;  %v9698_v38 = vpop.f32.mrf.mxu1  ;;  %v9655_v48 = vadd.f32 %v9654_v56, %v16202_v62  ;;  %v10862_v56 = vld [vmem:[%s17090_s0 + $0x100] sm:$0xf0] }
 0x56e   : > { %v16438_v3 = vadd.f32 %v9783_v47, %v9740_v42  ;;  %v9699_v0 = vadd.f32 %v9698_v38, %v9655_v48  ;;  %9834 = vmatmul.bf16.gmra.mxu0 %v11565_v41  ;;  %v10860_v41 = vld [vmem:[%s17090_s0 + $0x70] sm:$0xf]  ;;  %v12923_v42 = vld [vmem:[%s17090_s0 + $0x74] sm:$0xf]  ;;  %v12942_v38 = vld [vmem:[%s17090_s0 + $0x104] sm:$0xf0] }
 0x56f   : > { %9878 = vmatmul.bf16.gmra.mxu1 %v11569_v27  ;;  %v12941_v27 = vld [vmem:[%s17090_s0 + $0xfc] sm:$0xf0]  ;;  %v10865_v7 = vor.u32 %v12923_v42, %v10862_v56 }
 0x570   : > { %9922 = vmatmul.bf16.gmra.mxu2 %v11573_v54  ;;  %v12924_v54 = vld [vmem:[%s17090_s0 + $0x7c] sm:$0xf]  ;;  %v10861_v59 = vor.u32 %v12941_v27, %v10860_v41  ;;  %v13445_v41 = vld [vmem:[%s14809_s9 + $0x8e0] sm:$0xff] }
 0x571   : > { %9966 = vmatmul.bf16.gmra.mxu3 %v11577_v57  ;;  %v10870_v57 = vld [vmem:[%s17090_s0 + $0x108] sm:$0xf0]  ;;  %v13429_v42 = vld [vmem:[%s14809_s9 + $0x860] sm:$0xff] }
 0x572   : > { %10288 = vmatpush.bf16.msra.mxu3 %v13445_v41  ;;  %v11302_v41 = vld [vmem:[%s17090_s0 + $0x468] sm:$0xf0] }
 0x573   : > { %v9742_v50 = vpop.f32.mrf.mxu2  ;;  %v9656_v52 = vpop.f32.mrf.mxu0 }
 0x574   : > { %v9786_v13 = vpop.f32.mrf.mxu3  ;;  %v9743_v55 = vadd.f32 %v9742_v50, %v9699_v0  ;;  %v9700_v25 = vpop.f32.mrf.mxu1  ;;  %v9657_v62 = vadd.f32 %v9656_v52, %v16230_v20  ;;  %v11710_v20 = vld [vmem:[%s17090_s0 + $0x7b0] sm:$0xf0]  ;;  %v10873_v52 = vor.u32 %v12924_v54, %v10870_v57 }
 0x575   : > { %v11713_v58 = vor.u32 %v13137_v10, %v11710_v20  ;;  %v13430_v10 = vld [vmem:[%s14809_s9 + $0x868] sm:$0xff] }
 0x576   : > { %v16444_v6 = vadd.f32 %v9786_v13, %v9743_v55  ;;  %v9701_v61 = vadd.f32 %v9700_v25, %v9657_v62  ;;  %10199 = vmatpush.bf16.msra.mxu1 %v13430_v10 }
 0x57a   : > { %10200 = vmatpush.bf16.msra.mxu1 %v13429_v42 }
 0x57b   : > { %v9744_v12 = vpop.f32.mrf.mxu2  ;;  %v9659_v39 = vpop.f32.mrf.mxu0 }
 0x57c   : > { %v9788_v11 = vpop.f32.mrf.mxu3  ;;  %v9745_v15 = vadd.f32 %v9744_v12, %v9701_v61  ;;  %v9703_v22 = vpop.f32.mrf.mxu1  ;;  %v9660_v33 = vadd.f32 %v9659_v39, %v16237_v32  ;;  %v12959_v39 = vld [vmem:[%s17090_s0 + $0x194] sm:$0xf] }
 0x57e   : > { %v16472_v36 = vadd.f32 %v9788_v11, %v9745_v15  ;;  %v9704_v43 = vadd.f32 %v9703_v22, %v9660_v33  ;;  %9839 = vmatmul.bf16.gmra.mxu0 %v11709_v35  ;;  %v11004_v35 = vld [vmem:[%s17090_s0 + $0x190] sm:$0xf]  ;;  %v13437_v15 = vld [vmem:[%s14809_s9 + $0x8a0] sm:$0xff]  ;;  %v11012_v22 = vld [vmem:[%s17090_s0 + $0x198] sm:$0xf] }
 0x57f   : > { %9883 = vmatmul.bf16.gmra.mxu1 %v11713_v58  ;;  %v12977_v58 = vld [vmem:[%s17090_s0 + $0x21c] sm:$0xf0]  ;;  %v11014_v33 = vld [vmem:[%s17090_s0 + $0x228] sm:$0xf0]  ;;  %10244 = vmatpush.bf16.msra.mxu2 %v13437_v15 }
 0x580   : > { %9927 = vmatmul.bf16.gmra.mxu2 %v11717_v14  ;;  %v12978_v14 = vld [vmem:[%s17090_s0 + $0x224] sm:$0xf0]  ;;  %v11005_v45 = vor.u32 %v12977_v58, %v11004_v35  ;;  %v13428_v58 = vld [vmem:[%s14809_s9 + $0x858] sm:$0xff] }
 0x581   : > { %9971 = vmatmul.bf16.gmra.mxu3 %v11721_v18  ;;  %v12960_v18 = vld [vmem:[%s17090_s0 + $0x19c] sm:$0xf]  ;;  %10201 = vmatpush.bf16.msra.mxu1 %v13428_v58 }
 0x583   : > { %v9747_v51 = vpop.f32.mrf.mxu2  ;;  %v9661_v30 = vpop.f32.mrf.mxu0 }
 0x584   : > { %v9791_v31 = vpop.f32.mrf.mxu3  ;;  %v9748_v40 = vadd.f32 %v9747_v51, %v9704_v43  ;;  %v9705_v32 = vpop.f32.mrf.mxu1  ;;  %v9662_v49 = vadd.f32 %v9661_v30, %v16264_v44  ;;  %v10868_v44 = vld [vmem:[%s17090_s0 + $0x78] sm:$0xf]  ;;  %v11017_v30 = vor.u32 %v12960_v18, %v11014_v33 }
 0x585   : > { %v10869_v55 = vor.u32 %v12942_v38, %v10868_v44 }
 0x586   : > { %v16479_v46 = vadd.f32 %v9791_v31, %v9748_v40  ;;  %v9706_v47 = vadd.f32 %v9705_v32, %v9662_v49  ;;  %v11013_v40 = vor.u32 %v12978_v14, %v11012_v22 }
 0x58b   : > { %v9749_v48 = vpop.f32.mrf.mxu2  ;;  %v9664_v50 = vpop.f32.mrf.mxu0 }
 0x58c   : > { %v9793_v0 = vpop.f32.mrf.mxu3  ;;  %v9750_v1 = vadd.f32 %v9749_v48, %v9706_v47  ;;  %v9708_v13 = vpop.f32.mrf.mxu1  ;;  %v9665_v25 = vadd.f32 %v9664_v50, %v16271_v8  ;;  %v13421_v47 = vld [vmem:[%s14809_s9 + $0x820] sm:$0xff]  ;;  %v13420_v50 = vld [vmem:[%s14809_s9 + $0x818] sm:$0xff] }
 0x58d   : > { %10156 = vmatpush.bf16.msra.mxu0 %v13421_v47  ;;  %v13032_v47 = vld [vmem:[%s17090_s0 + $0x3dc] sm:$0xf] }
 0x58e   : > { %v16506_v62 = vadd.f32 %v9793_v0, %v9750_v1  ;;  %v9709_v61 = vadd.f32 %v9708_v13, %v9665_v25  ;;  %9985 = vmatmul.bf16.vlgmr.msrb.gmra.mxu0 %v10861_v59  ;;  %v11148_v0 = vld [vmem:[%s17090_s0 + $0x2b0] sm:$0xf]  ;;  %v13013_v59 = vld [vmem:[%s17090_s0 + $0x33c] sm:$0xf0]  ;;  %v13436_v1 = vld [vmem:[%s14809_s9 + $0x898] sm:$0xff] }
 0x58f   : > { %10029 = vmatmul.bf16.vlgmr.msrb.gmra.mxu1 %v10865_v7  ;;  %v13444_v13 = vld [vmem:[%s14809_s9 + $0x8d8] sm:$0xff]  ;;  %v13014_v25 = vld [vmem:[%s17090_s0 + $0x344] sm:$0xf0]  ;;  %10245 = vmatpush.bf16.msra.mxu2 %v13436_v1  ;;  %v11149_v10 = vor.u32 %v13013_v59, %v11148_v0  ;;  %v11305_v0 = vor.u32 %v13032_v47, %v11302_v41  ;;  %v13417_v47 = vld [vmem:[%s14809_s9 + $0x800] sm:$0xff] }
 0x590   : > { %10073 = vmatmul.bf16.vlgmr.msrb.gmra.mxu2 %v10869_v55  ;;  %v12995_v55 = vld [vmem:[%s17090_s0 + $0x2b4] sm:$0xf]  ;;  %10289 = vmatpush.bf16.msra.mxu3 %v13444_v13  ;;  %v13441_v41 = vld [vmem:[%s14809_s9 + $0x8c0] sm:$0xff] }
 0x591   : > { %10117 = vmatmul.bf16.vlgmr.msrb.gmra.mxu3 %v10873_v52  ;;  %v11156_v52 = vld [vmem:[%s17090_s0 + $0x2b8] sm:$0xf]  ;;  %10157 = vmatpush.bf16.msra.mxu0 %v13420_v50 }
 0x593   : > { %v9752_v20 = vpop.f32.mrf.mxu2  ;;  %v9666_v8 = vpop.f32.mrf.mxu0 }
 0x594   : > { %v9796_v60 = vpop.f32.mrf.mxu3  ;;  %v9753_v2 = vadd.f32 %v9752_v20, %v9709_v61  ;;  %v9710_v4 = vpop.f32.mrf.mxu1  ;;  %v9667_v24 = vadd.f32 %v9666_v8, %v16299_v37  ;;  %v11006_v37 = vld [vmem:[%s17090_s0 + $0x220] sm:$0xf0]  ;;  %v11158_v61 = vld [vmem:[%s17090_s0 + $0x348] sm:$0xf0] }
 0x595   : > { %v11009_v26 = vor.u32 %v12959_v39, %v11006_v37 }
 0x596   : > { %v16513_v12 = vadd.f32 %v9796_v60, %v9753_v2  ;;  %v9711_v11 = vadd.f32 %v9710_v4, %v9667_v24  ;;  %v11157_v4 = vor.u32 %v13014_v25, %v11156_v52  ;;  %v11161_v24 = vor.u32 %v12996_v16, %v11158_v61  ;;  %v13085_v61 = vld [vmem:[%s17090_s0 + $0x57c] sm:$0xf0] }
 0x59b   : > { %v9754_v43 = vpop.f32.mrf.mxu2  ;;  %v9810_v51 = vpop.f32.mrf.mxu0 }
 0x59c   : > { %v9798_v23 = vpop.f32.mrf.mxu3  ;;  %v9755_v21 = vadd.f32 %v9754_v43, %v9711_v11  ;;  %v9854_v31 = vpop.f32.mrf.mxu1  ;;  %v9811_v32 = vadd.f32 %v9810_v51, %v16305_v5  ;;  %v11292_v43 = vld [vmem:[%s17090_s0 + $0x3d0] sm:$0xf] }
 0x59d   : > { %v13419_v51 = vld [vmem:[%s14809_s9 + $0x810] sm:$0xff] }
 0x59e   : > { %v16541_v49 = vadd.f32 %v9798_v23, %v9755_v21  ;;  %v9855_v27 = vadd.f32 %v9854_v31, %v9811_v32  ;;  %9990 = vmatmul.bf16.gmra.mxu0 %v11005_v45  ;;  %v13049_v23 = vld [vmem:[%s17090_s0 + $0x45c] sm:$0xf0]  ;;  %v13031_v45 = vld [vmem:[%s17090_s0 + $0x3d4] sm:$0xf]  ;;  %v13050_v32 = vld [vmem:[%s17090_s0 + $0x464] sm:$0xf0] }
 0x59f   : > { %10034 = vmatmul.bf16.gmra.mxu1 %v11009_v26  ;;  %v13435_v21 = vld [vmem:[%s14809_s9 + $0x890] sm:$0xff]  ;;  %10158 = vmatpush.bf16.msra.mxu0 %v13419_v51 }
 0x5a0   : > { %10078 = vmatmul.bf16.gmra.mxu2 %v11013_v40  ;;  %v13443_v31 = vld [vmem:[%s14809_s9 + $0x8d0] sm:$0xff]  ;;  %v11300_v40 = vld [vmem:[%s17090_s0 + $0x3d8] sm:$0xf] }
 0x5a1   : > { %10122 = vmatmul.bf16.gmra.mxu3 %v11017_v30  ;;  %v13427_v30 = vld [vmem:[%s14809_s9 + $0x850] sm:$0xff]  ;;  %10246 = vmatpush.bf16.msra.mxu2 %v13435_v21  ;;  %v13433_v21 = vld [vmem:[%s14809_s9 + $0x880] sm:$0xff] }
 0x5a2   : > { %10290 = vmatpush.bf16.msra.mxu3 %v13443_v31  ;;  %10202 = vmatpush.bf16.msra.mxu1 %v13427_v30 }
 0x5a3   : > { %v9898_v56 = vpop.f32.mrf.mxu2  ;;  %v9812_v5 = vpop.f32.mrf.mxu0 }
 0x5a4   : > { %v9942_v44 = vpop.f32.mrf.mxu3  ;;  %v9899_v38 = vadd.f32 %v9898_v56, %v9855_v27  ;;  %v9856_v54 = vpop.f32.mrf.mxu1  ;;  %v9813_v57 = vadd.f32 %v9812_v5, %v16335_v9  ;;  %v11150_v9 = vld [vmem:[%s17090_s0 + $0x340] sm:$0xf0]  ;;  %v11293_v56 = vor.u32 %v13049_v23, %v11292_v43 }
 0x5a5   : > { %v11153_v20 = vor.u32 %v12995_v55, %v11150_v9 }
 0x5a6   : > { %v16547_v48 = vadd.f32 %v9942_v44, %v9899_v38  ;;  %v9857_v7 = vadd.f32 %v9856_v54, %v9813_v57  ;;  %v11301_v57 = vor.u32 %v13050_v32, %v11300_v40 }
 0x5ab   : > { %v9900_v28 = vpop.f32.mrf.mxu2  ;;  %v9815_v2 = vpop.f32.mrf.mxu0 }
 0x5ac   : > { %v9944_v17 = vpop.f32.mrf.mxu3  ;;  %v9901_v60 = vadd.f32 %v9900_v28, %v9857_v7  ;;  %v9859_v8 = vpop.f32.mrf.mxu1  ;;  %v9816_v11 = vadd.f32 %v9815_v2, %v16339_v19  ;;  %v13434_v28 = vld [vmem:[%s14809_s9 + $0x888] sm:$0xff]  ;;  %v13067_v2 = vld [vmem:[%s17090_s0 + $0x4f4] sm:$0xf] }
 0x5ad   : > { %10247 = vmatpush.bf16.msra.mxu2 %v13434_v28 }
 0x5ae   : > { %v16577_v35 = vadd.f32 %v9944_v17, %v9901_v60  ;;  %v9860_v15 = vadd.f32 %v9859_v8, %v9816_v11  ;;  %9995 = vmatmul.bf16.gmra.mxu0 %v11149_v10  ;;  %v13418_v10 = vld [vmem:[%s14809_s9 + $0x808] sm:$0xff]  ;;  %v11444_v8 = vld [vmem:[%s17090_s0 + $0x4f8] sm:$0xf] }
 0x5af   : > { %10039 = vmatmul.bf16.gmra.mxu1 %v11153_v20  ;;  %v13442_v20 = vld [vmem:[%s14809_s9 + $0x8c8] sm:$0xff]  ;;  %10159 = vmatpush.bf16.msra.mxu0 %v13418_v10 }
 0x5b0   : > { %10083 = vmatmul.bf16.gmra.mxu2 %v11157_v4  ;;  %v13426_v60 = vld [vmem:[%s14809_s9 + $0x848] sm:$0xff]  ;;  %10291 = vmatpush.bf16.msra.mxu3 %v13442_v20 }
 0x5b1   : > { %10127 = vmatmul.bf16.gmra.mxu3 %v11161_v24  ;;  %v13086_v4 = vld [vmem:[%s17090_s0 + $0x584] sm:$0xf0]  ;;  %v13068_v24 = vld [vmem:[%s17090_s0 + $0x4fc] sm:$0xf]  ;;  %v11446_v11 = vld [vmem:[%s17090_s0 + $0x588] sm:$0xf0]  ;;  %10203 = vmatpush.bf16.msra.mxu1 %v13426_v60 }
 0x5b2   : > { %v11449_v43 = vor.u32 %v13068_v24, %v11446_v11  ;;  %10248 = vmatpush.bf16.msra.mxu2 %v13433_v21  ;;  %v13157_v11 = vld [vmem:[%s17090_s0 + $0x7bc] sm:$0xf0] }
 0x5b3   : > { %v9903_v39 = vpop.f32.mrf.mxu2  ;;  %v9817_v14 = vpop.f32.mrf.mxu0  ;;  %10160 = vmatpush.bf16.msra.mxu0 %v13417_v47 }
 0x5b4   : > { %v9947_v37 = vpop.f32.mrf.mxu3  ;;  %v9904_v22 = vadd.f32 %v9903_v39, %v9860_v15  ;;  %v9861_v18 = vpop.f32.mrf.mxu1  ;;  %v9818_v19 = vadd.f32 %v9817_v14, %v16370_v53  ;;  %v11294_v53 = vld [vmem:[%s17090_s0 + $0x460] sm:$0xf0]  ;;  %10292 = vmatpush.bf16.msra.mxu3 %v13441_v41 }
 0x5b5   : > { %v11297_v44 = vor.u32 %v13031_v45, %v11294_v53 }
 0x5b6   : > { %v16581_v33 = vadd.f32 %v9947_v37, %v9904_v22  ;;  %v9862_v26 = vadd.f32 %v9861_v18, %v9818_v19  ;;  %v11445_v19 = vor.u32 %v13086_v4, %v11444_v8 }
 0x5bb   : > { %v9905_v27 = vpop.f32.mrf.mxu2  ;;  %v9820_v5 = vpop.f32.mrf.mxu0 }
 0x5bc   : > { %v9949_v42 = vpop.f32.mrf.mxu3  ;;  %v9906_v38 = vadd.f32 %v9905_v27, %v9862_v26  ;;  %v9864_v54 = vpop.f32.mrf.mxu1  ;;  %v9821_v59 = vadd.f32 %v9820_v5, %v16373_v63  ;;  %v11436_v63 = vld [vmem:[%s17090_s0 + $0x4f0] sm:$0xf]  ;;  %v11588_v5 = vld [vmem:[%s17090_s0 + $0x618] sm:$0xf] }
 0x5bd   : > { %v11437_v39 = vor.u32 %v13085_v61, %v11436_v63 }
 0x5be   : > { %v16612_v7 = vadd.f32 %v9949_v42, %v9906_v38  ;;  %v9865_v1 = vadd.f32 %v9864_v54, %v9821_v59  ;;  %10000 = vmatmul.bf16.gmra.mxu0 %v11293_v56  ;;  %v11580_v42 = vld [vmem:[%s17090_s0 + $0x610] sm:$0xf]  ;;  %v13121_v56 = vld [vmem:[%s17090_s0 + $0x69c] sm:$0xf0]  ;;  %v13103_v38 = vld [vmem:[%s17090_s0 + $0x614] sm:$0xf] }
 0x5bf   : > { %10044 = vmatmul.bf16.gmra.mxu1 %v11297_v44  ;;  %v13425_v44 = vld [vmem:[%s14809_s9 + $0x840] sm:$0xff]  ;;  %v13122_v54 = vld [vmem:[%s17090_s0 + $0x6a4] sm:$0xf0] }
 0x5c0   : > { %10088 = vmatmul.bf16.gmra.mxu2 %v11301_v57  ;;  %v13104_v57 = vld [vmem:[%s17090_s0 + $0x61c] sm:$0xf]  ;;  %10204 = vmatpush.bf16.msra.mxu1 %v13425_v44 }
 0x5c1   : > { %10132 = vmatmul.bf16.gmra.mxu3 %v11305_v0  ;;  %v11590_v0 = vld [vmem:[%s17090_s0 + $0x6a8] sm:$0xf0] }
 0x5c2   : > { %v11593_v63 = vor.u32 %v13104_v57, %v11590_v0  ;;  %v12944_v57 = vld [vmem:[%s17090_s0 + $0x114] sm:$0xf0]  ;;  %v12926_v0 = vld [vmem:[%s17090_s0 + $0x8c] sm:$0xf] }
 0x5c3   : > { %v9908_v50 = vpop.f32.mrf.mxu2  ;;  %v9822_v9 = vpop.f32.mrf.mxu0 }
 0x5c4   : > { %v9952_v13 = vpop.f32.mrf.mxu3  ;;  %v9909_v55 = vadd.f32 %v9908_v50, %v9865_v1  ;;  %v9866_v52 = vpop.f32.mrf.mxu1  ;;  %v9823_v25 = vadd.f32 %v9822_v9, %v16404_v29  ;;  %v11438_v29 = vld [vmem:[%s17090_s0 + $0x580] sm:$0xf0]  ;;  %v11581_v50 = vor.u32 %v13121_v56, %v11580_v42 }
 0x5c5   : > { %v11441_v37 = vor.u32 %v13067_v2, %v11438_v29 }
 0x5c6   : > { %v16615_v16 = vadd.f32 %v9952_v13, %v9909_v55  ;;  %v9867_v17 = vadd.f32 %v9866_v52, %v9823_v25  ;;  %v11589_v25 = vor.u32 %v13122_v54, %v11588_v5  ;;  %v12925_v5 = vld [vmem:[%s17090_s0 + $0x84] sm:$0xf]  ;;  %v10878_v54 = vld [vmem:[%s17090_s0 + $0x110] sm:$0xf0] }
 0x5cb   : > { %v9910_v58 = vpop.f32.mrf.mxu2  ;;  %v9825_v14 = vpop.f32.mrf.mxu0 }
 0x5cc   : > { %v9954_v15 = vpop.f32.mrf.mxu3  ;;  %v9911_v22 = vadd.f32 %v9910_v58, %v9867_v17  ;;  %v9869_v18 = vpop.f32.mrf.mxu1  ;;  %v9826_v23 = vadd.f32 %v9825_v14, %v16408_v34  ;;  %v13139_v58 = vld [vmem:[%s17090_s0 + $0x734] sm:$0xf] }
 0x5ce   : > { %v16646_v45 = vadd.f32 %v9954_v15, %v9911_v22  ;;  %v9870_v26 = vadd.f32 %v9869_v18, %v9826_v23  ;;  %10005 = vmatmul.bf16.gmra.mxu0 %v11437_v39  ;;  %v11726_v15 = vld [vmem:[%s17090_s0 + $0x7c0] sm:$0xf0]  ;;  %v13158_v39 = vld [vmem:[%s17090_s0 + $0x7c4] sm:$0xf0]  ;;  %v11734_v22 = vld [vmem:[%s17090_s0 + $0x7c8] sm:$0xf0] }
 0x5cf   : > { %10049 = vmatmul.bf16.gmra.mxu1 %v11441_v37  ;;  %v13140_v37 = vld [vmem:[%s17090_s0 + $0x73c] sm:$0xf] }
 0x5d0   : > { %10093 = vmatmul.bf16.gmra.mxu2 %v11445_v19 }
 0x5d1   : > { %10137 = vmatmul.bf16.gmra.mxu3 %v11449_v43  ;;  %v11729_v43 = vor.u32 %v13139_v58, %v11726_v15  ;;  %v12979_v15 = vld [vmem:[%s17090_s0 + $0x22c] sm:$0xf0] }
 0x5d3   : > { %v9913_v51 = vpop.f32.mrf.mxu2  ;;  %v9827_v40 = vpop.f32.mrf.mxu0 }
 0x5d4   : > { %v9957_v31 = vpop.f32.mrf.mxu3  ;;  %v9914_v53 = vadd.f32 %v9913_v51, %v9870_v26  ;;  %v9871_v30 = vpop.f32.mrf.mxu1  ;;  %v9828_v32 = vadd.f32 %v9827_v40, %v16438_v3  ;;  %v11582_v3 = vld [vmem:[%s17090_s0 + $0x6a0] sm:$0xf0] }
 0x5d5   : > { %v11585_v13 = vor.u32 %v13103_v38, %v11582_v3  ;;  %v12943_v3 = vld [vmem:[%s17090_s0 + $0x10c] sm:$0xf0] }
 0x5d6   : > { %v16650_v34 = vadd.f32 %v9957_v31, %v9914_v53  ;;  %v9872_v27 = vadd.f32 %v9871_v30, %v9828_v32  ;;  %v11737_v31 = vor.u32 %v13140_v37, %v11734_v22  ;;  %v12980_v37 = vld [vmem:[%s17090_s0 + $0x234] sm:$0xf0]  ;;  %v12962_v22 = vld [vmem:[%s17090_s0 + $0x1ac] sm:$0xf] }
 0x5db   : > { %v9915_v59 = vpop.f32.mrf.mxu2  ;;  %v9830_v9 = vpop.f32.mrf.mxu0 }
 0x5dc   : > { %v9959_v1 = vpop.f32.mrf.mxu3  ;;  %v9916_v55 = vadd.f32 %v9915_v59, %v9872_v27  ;;  %v9874_v52 = vpop.f32.mrf.mxu1  ;;  %v9831_v61 = vadd.f32 %v9830_v9, %v16444_v6  ;;  %v11724_v6 = vld [vmem:[%s17090_s0 + $0x730] sm:$0xf]  ;;  %v10886_v59 = vld [vmem:[%s17090_s0 + $0x118] sm:$0xf0] }
 0x5dd   : > { %v11725_v19 = vor.u32 %v13157_v11, %v11724_v6 }
 0x5de   : > { %v16680_v28 = vadd.f32 %v9959_v1, %v9916_v55  ;;  %v9875_v17 = vadd.f32 %v9874_v52, %v9831_v61  ;;  %10010 = vmatmul.bf16.gmra.mxu0 %v11581_v50  ;;  %v10881_v55 = vor.u32 %v12925_v5, %v10878_v54  ;;  %v10889_v61 = vor.u32 %v12926_v0, %v10886_v59  ;;  %v13015_v54 = vld [vmem:[%s17090_s0 + $0x34c] sm:$0xf0]  ;;  %v13016_v0 = vld [vmem:[%s17090_s0 + $0x354] sm:$0xf0]  ;;  %v12998_v59 = vld [vmem:[%s17090_s0 + $0x2cc] sm:$0xf] }
 0x5df   : > { %10054 = vmatmul.bf16.gmra.mxu1 %v11585_v13 }
 0x5e0   : > { %10098 = vmatmul.bf16.gmra.mxu2 %v11589_v25 }
 0x5e1   : > { %10142 = vmatmul.bf16.gmra.mxu3 %v11593_v63 }
 0x5e3   : > { %v9918_v10 = vpop.f32.mrf.mxu2  ;;  %v9832_v2 = vpop.f32.mrf.mxu0 }
 0x5e4   : > { %v9962_v20 = vpop.f32.mrf.mxu3  ;;  %v9919_v60 = vadd.f32 %v9918_v10, %v9875_v17  ;;  %v9876_v29 = vpop.f32.mrf.mxu1  ;;  %v9833_v8 = vadd.f32 %v9832_v2, %v16472_v36  ;;  %v11732_v36 = vld [vmem:[%s17090_s0 + $0x738] sm:$0xf] }
 0x5e5   : > { %v11733_v51 = vor.u32 %v13158_v39, %v11732_v36  ;;  %v12961_v36 = vld [vmem:[%s17090_s0 + $0x1a4] sm:$0xf]  ;;  %v11022_v39 = vld [vmem:[%s17090_s0 + $0x230] sm:$0xf0] }
 0x5e6   : > { %v16683_v4 = vadd.f32 %v9962_v20, %v9919_v60  ;;  %v9877_v24 = vadd.f32 %v9876_v29, %v9833_v8 }
 0x5eb   : > { %v9920_v14 = vpop.f32.mrf.mxu2  ;;  %v9835_v26 = vpop.f32.mrf.mxu0 }
 0x5ec   : > { %v9964_v18 = vpop.f32.mrf.mxu3  ;;  %v9921_v23 = vadd.f32 %v9920_v14, %v9877_v24  ;;  %v9879_v21 = vpop.f32.mrf.mxu1  ;;  %v9836_v53 = vadd.f32 %v9835_v26, %v16479_v46  ;;  %v10876_v46 = vld [vmem:[%s17090_s0 + $0x80] sm:$0xf]  ;;  %v11030_v14 = vld [vmem:[%s17090_s0 + $0x238] sm:$0xf0] }
 0x5ed   : > { %v10877_v13 = vor.u32 %v12943_v3, %v10876_v46 }
 0x5ee   : > { %v16710_v40 = vadd.f32 %v9964_v18, %v9921_v23  ;;  %v9880_v30 = vadd.f32 %v9879_v21, %v9836_v53  ;;  %10015 = vmatmul.bf16.gmra.mxu0 %v11725_v19  ;;  %v11025_v23 = vor.u32 %v12961_v36, %v11022_v39  ;;  %v11033_v53 = vor.u32 %v12962_v22, %v11030_v14  ;;  %v13051_v39 = vld [vmem:[%s17090_s0 + $0x46c] sm:$0xf0]  ;;  %v13052_v22 = vld [vmem:[%s17090_s0 + $0x474] sm:$0xf0]  ;;  %v13034_v14 = vld [vmem:[%s17090_s0 + $0x3ec] sm:$0xf] }
 0x5ef   : > { %10059 = vmatmul.bf16.gmra.mxu1 %v11729_v43 }
 0x5f0   : > { %10103 = vmatmul.bf16.gmra.mxu2 %v11733_v51 }
 0x5f1   : > { %10147 = vmatmul.bf16.gmra.mxu3 %v11737_v31 }
 0x5f3   : > { %v9923_v32 = vpop.f32.mrf.mxu2  ;;  %v9837_v27 = vpop.f32.mrf.mxu0 }
 0x5f4   : > { %v9967_v47 = vpop.f32.mrf.mxu3  ;;  %v9924_v41 = vadd.f32 %v9923_v32, %v9880_v30  ;;  %v9881_v42 = vpop.f32.mrf.mxu1  ;;  %v9838_v56 = vadd.f32 %v9837_v27, %v16506_v62  ;;  %v10884_v62 = vld [vmem:[%s17090_s0 + $0x88] sm:$0xf] }
 0x5f5   : > { %v10885_v63 = vor.u32 %v12944_v57, %v10884_v62  ;;  %v12997_v62 = vld [vmem:[%s17090_s0 + $0x2c4] sm:$0xf]  ;;  %v11166_v57 = vld [vmem:[%s17090_s0 + $0x350] sm:$0xf0] }
 0x5f6   : > { %v16713_v44 = vadd.f32 %v9967_v47, %v9924_v41  ;;  %v9882_v38 = vadd.f32 %v9881_v42, %v9838_v56 }
 0x5fb   : > { %v9925_v1 = vpop.f32.mrf.mxu2  ;;  %v9840_v52 = vpop.f32.mrf.mxu0 }
 0x5fc   : > { %v9969_v50 = vpop.f32.mrf.mxu3  ;;  %v9926_v9 = vadd.f32 %v9925_v1, %v9882_v38  ;;  %v9884_v25 = vpop.f32.mrf.mxu1  ;;  %v9841_v17 = vadd.f32 %v9840_v52, %v16513_v12  ;;  %v11020_v12 = vld [vmem:[%s17090_s0 + $0x1a0] sm:$0xf]  ;;  %v11174_v1 = vld [vmem:[%s17090_s0 + $0x358] sm:$0xf0] }
 0x5fd   : > { %v11021_v43 = vor.u32 %v12979_v15, %v11020_v12 }
 0x5fe   : > { %v16740_v10 = vadd.f32 %v9969_v50, %v9926_v9  ;;  %v9885_v20 = vadd.f32 %v9884_v25, %v9841_v17  ;;  %10161 = vmatmul.bf16.vlgmr.msra.gmra.mxu0 %v10877_v13  ;;  %v11169_v9 = vor.u32 %v12997_v62, %v11166_v57  ;;  %v11177_v17 = vor.u32 %v12998_v59, %v11174_v1  ;;  %v13087_v57 = vld [vmem:[%s17090_s0 + $0x58c] sm:$0xf0]  ;;  %v13088_v59 = vld [vmem:[%s17090_s0 + $0x594] sm:$0xf0]  ;;  %v13070_v1 = vld [vmem:[%s17090_s0 + $0x50c] sm:$0xf] }
 0x5ff   : > { %10205 = vmatmul.bf16.vlgmr.msra.gmra.mxu1 %v10881_v55 }
 0x600   : > { %10249 = vmatmul.bf16.vlgmr.msra.gmra.mxu2 %v10885_v63 }
 0x601   : > { %10293 = vmatmul.bf16.vlgmr.msra.gmra.mxu3 %v10889_v61 }
 0x603   : > { %v9928_v60 = vpop.f32.mrf.mxu2  ;;  %v9842_v8 = vpop.f32.mrf.mxu0 }
 0x604   : > { %v9972_v2 = vpop.f32.mrf.mxu3  ;;  %v9929_v29 = vadd.f32 %v9928_v60, %v9885_v20  ;;  %v9886_v24 = vpop.f32.mrf.mxu1  ;;  %v9843_v6 = vadd.f32 %v9842_v8, %v16541_v49  ;;  %v11028_v49 = vld [vmem:[%s17090_s0 + $0x1a8] sm:$0xf] }
 0x605   : > { %v11029_v31 = vor.u32 %v12980_v37, %v11028_v49  ;;  %v13033_v49 = vld [vmem:[%s17090_s0 + $0x3e4] sm:$0xf]  ;;  %v11310_v37 = vld [vmem:[%s17090_s0 + $0x470] sm:$0xf0] }
 0x606   : > { %v16743_v11 = vadd.f32 %v9972_v2, %v9929_v29  ;;  %v9887_v58 = vadd.f32 %v9886_v24, %v9843_v6 }
 0x60b   : > { %v9930_v18 = vpop.f32.mrf.mxu2  ;;  %v9986_v21 = vpop.f32.mrf.mxu0 }
 0x60c   : > { %v9974_v19 = vpop.f32.mrf.mxu3  ;;  %v9931_v26 = vadd.f32 %v9930_v18, %v9887_v58  ;;  %v10030_v51 = vpop.f32.mrf.mxu1  ;;  %v9987_v30 = vadd.f32 %v9986_v21, %v16547_v48  ;;  %v11164_v48 = vld [vmem:[%s17090_s0 + $0x2c0] sm:$0xf]  ;;  %v11318_v18 = vld [vmem:[%s17090_s0 + $0x478] sm:$0xf0] }
 0x60d   : > { %v11165_v55 = vor.u32 %v13015_v54, %v11164_v48 }
 0x60e   : > { %v16770_v32 = vadd.f32 %v9974_v19, %v9931_v26  ;;  %v10031_v47 = vadd.f32 %v10030_v51, %v9987_v30  ;;  %10166 = vmatmul.bf16.gmra.mxu0 %v11021_v43  ;;  %v11313_v26 = vor.u32 %v13033_v49, %v11310_v37  ;;  %v11321_v30 = vor.u32 %v13034_v14, %v11318_v18  ;;  %v13123_v37 = vld [vmem:[%s17090_s0 + $0x6ac] sm:$0xf0]  ;;  %v13124_v14 = vld [vmem:[%s17090_s0 + $0x6b4] sm:$0xf0]  ;;  %v13106_v18 = vld [vmem:[%s17090_s0 + $0x62c] sm:$0xf] }
 0x60f   : > { %10210 = vmatmul.bf16.gmra.mxu1 %v11025_v23 }
 0x610   : > { %10254 = vmatmul.bf16.gmra.mxu2 %v11029_v31 }
 0x611   : > { %10298 = vmatmul.bf16.gmra.mxu3 %v11033_v53 }
 0x613   : > { %v10074_v41 = vpop.f32.mrf.mxu2  ;;  %v9988_v56 = vpop.f32.mrf.mxu0 }
 0x614   : > { %v10118_v27 = vpop.f32.mrf.mxu3  ;;  %v10075_v42 = vadd.f32 %v10074_v41, %v10031_v47  ;;  %v10032_v38 = vpop.f32.mrf.mxu1  ;;  %v9989_v46 = vadd.f32 %v9988_v56, %v16577_v35  ;;  %v11172_v35 = vld [vmem:[%s17090_s0 + $0x2c8] sm:$0xf] }
 0x615   : > { %v11173_v61 = vor.u32 %v13016_v0, %v11172_v35  ;;  %v13069_v35 = vld [vmem:[%s17090_s0 + $0x504] sm:$0xf]  ;;  %v11454_v0 = vld [vmem:[%s17090_s0 + $0x590] sm:$0xf0] }
 0x616   : > { %v16773_v3 = vadd.f32 %v10118_v27, %v10075_v42  ;;  %v10033_v5 = vadd.f32 %v10032_v38, %v9989_v46 }
 0x61b   : > { %v10076_v50 = vpop.f32.mrf.mxu2  ;;  %v9991_v25 = vpop.f32.mrf.mxu0 }
 0x61c   : > { %v10120_v13 = vpop.f32.mrf.mxu3  ;;  %v10077_v52 = vadd.f32 %v10076_v50, %v10033_v5  ;;  %v10035_v63 = vpop.f32.mrf.mxu1  ;;  %v9992_v20 = vadd.f32 %v9991_v25, %v16581_v33  ;;  %v11308_v33 = vld [vmem:[%s17090_s0 + $0x3e0] sm:$0xf]  ;;  %v11462_v50 = vld [vmem:[%s17090_s0 + $0x598] sm:$0xf0] }
 0x61d   : > { %v11309_v23 = vor.u32 %v13051_v39, %v11308_v33 }
 0x61e   : > { %v16800_v60 = vadd.f32 %v10120_v13, %v10077_v52  ;;  %v10036_v2 = vadd.f32 %v10035_v63, %v9992_v20  ;;  %10171 = vmatmul.bf16.gmra.mxu0 %v11165_v55  ;;  %v11457_v52 = vor.u32 %v13069_v35, %v11454_v0  ;;  %v11465_v20 = vor.u32 %v13070_v1, %v11462_v50  ;;  %v13159_v0 = vld [vmem:[%s17090_s0 + $0x7cc] sm:$0xf0]  ;;  %v13160_v1 = vld [vmem:[%s17090_s0 + $0x7d4] sm:$0xf0]  ;;  %v13142_v50 = vld [vmem:[%s17090_s0 + $0x74c] sm:$0xf] }
 0x61f   : > { %10215 = vmatmul.bf16.gmra.mxu1 %v11169_v9 }
 0x620   : > { %10259 = vmatmul.bf16.gmra.mxu2 %v11173_v61 }
 0x621   : > { %10303 = vmatmul.bf16.gmra.mxu3 %v11177_v17 }
 0x623   : > { %v10079_v29 = vpop.f32.mrf.mxu2  ;;  %v9993_v6 = vpop.f32.mrf.mxu0 }
 0x624   : > { %v10123_v8 = vpop.f32.mrf.mxu3  ;;  %v10080_v24 = vadd.f32 %v10079_v29, %v10036_v2  ;;  %v10037_v58 = vpop.f32.mrf.mxu1  ;;  %v9994_v12 = vadd.f32 %v9993_v6, %v16612_v7  ;;  %v11316_v7 = vld [vmem:[%s17090_s0 + $0x3e8] sm:$0xf] }
 0x625   : > { %v11317_v53 = vor.u32 %v13052_v22, %v11316_v7  ;;  %v13105_v7 = vld [vmem:[%s17090_s0 + $0x624] sm:$0xf]  ;;  %v11598_v22 = vld [vmem:[%s17090_s0 + $0x6b0] sm:$0xf0] }
 0x626   : > { %v16803_v15 = vadd.f32 %v10123_v8, %v10080_v24  ;;  %v10038_v36 = vadd.f32 %v10037_v58, %v9994_v12 }
 0x62b   : > { %v10081_v19 = vpop.f32.mrf.mxu2  ;;  %v9996_v51 = vpop.f32.mrf.mxu0 }
 0x62c   : > { %v10125_v43 = vpop.f32.mrf.mxu3  ;;  %v10082_v21 = vadd.f32 %v10081_v19, %v10038_v36  ;;  %v10040_v31 = vpop.f32.mrf.mxu1  ;;  %v9997_v47 = vadd.f32 %v9996_v51, %v16615_v16  ;;  %v11452_v16 = vld [vmem:[%s17090_s0 + $0x500] sm:$0xf]  ;;  %v11606_v19 = vld [vmem:[%s17090_s0 + $0x6b8] sm:$0xf0] }
 0x62d   : > { %v11453_v9 = vor.u32 %v13087_v57, %v11452_v16 }
 0x62e   : > { %v16830_v41 = vadd.f32 %v10125_v43, %v10082_v21  ;;  %v10041_v27 = vadd.f32 %v10040_v31, %v9997_v47  ;;  %10176 = vmatmul.bf16.gmra.mxu0 %v11309_v23  ;;  %v11601_v21 = vor.u32 %v13105_v7, %v11598_v22  ;;  %v11609_v47 = vor.u32 %v13106_v18, %v11606_v19 }
 0x62f   : > { %10220 = vmatmul.bf16.gmra.mxu1 %v11313_v26 }
 0x630   : > { %10264 = vmatmul.bf16.gmra.mxu2 %v11317_v53 }
 0x631   : > { %10308 = vmatmul.bf16.gmra.mxu3 %v11321_v30 }
 0x633   : > { %v10084_v42 = vpop.f32.mrf.mxu2  ;;  %v9998_v46 = vpop.f32.mrf.mxu0 }
 0x634   : > { %v10128_v56 = vpop.f32.mrf.mxu3  ;;  %v10085_v38 = vadd.f32 %v10084_v42, %v10041_v27  ;;  %v10042_v5 = vpop.f32.mrf.mxu1  ;;  %v9999_v48 = vadd.f32 %v9998_v46, %v16646_v45  ;;  %v11460_v45 = vld [vmem:[%s17090_s0 + $0x508] sm:$0xf] }
 0x635   : > { %v11461_v17 = vor.u32 %v13088_v59, %v11460_v45  ;;  %v13141_v45 = vld [vmem:[%s17090_s0 + $0x744] sm:$0xf]  ;;  %v11742_v59 = vld [vmem:[%s17090_s0 + $0x7d0] sm:$0xf0] }
 0x636   : > { %v16833_v54 = vadd.f32 %v10128_v56, %v10085_v38  ;;  %v10043_v62 = vadd.f32 %v10042_v5, %v9999_v48 }
 0x63b   : > { %v10086_v13 = vpop.f32.mrf.mxu2  ;;  %v10001_v63 = vpop.f32.mrf.mxu0 }
 0x63c   : > { %v10130_v55 = vpop.f32.mrf.mxu3  ;;  %v10087_v25 = vadd.f32 %v10086_v13, %v10043_v62  ;;  %v10045_v61 = vpop.f32.mrf.mxu1  ;;  %v10002_v2 = vadd.f32 %v10001_v63, %v16650_v34  ;;  %v11596_v34 = vld [vmem:[%s17090_s0 + $0x620] sm:$0xf]  ;;  %v11750_v13 = vld [vmem:[%s17090_s0 + $0x7d8] sm:$0xf0] }
 0x63d   : > { %v11597_v26 = vor.u32 %v13123_v37, %v11596_v34 }
 0x63e   : > { %v16860_v29 = vadd.f32 %v10130_v55, %v10087_v25  ;;  %v10046_v8 = vadd.f32 %v10045_v61, %v10002_v2  ;;  %10181 = vmatmul.bf16.gmra.mxu0 %v11453_v9  ;;  %v11745_v25 = vor.u32 %v13141_v45, %v11742_v59  ;;  %v11753_v2 = vor.u32 %v13142_v50, %v11750_v13 }
 0x63f   : > { %10225 = vmatmul.bf16.gmra.mxu1 %v11457_v52 }
 0x640   : > { %10269 = vmatmul.bf16.gmra.mxu2 %v11461_v17 }
 0x641   : > { %10313 = vmatmul.bf16.gmra.mxu3 %v11465_v20 }
 0x643   : > { %v10089_v24 = vpop.f32.mrf.mxu2  ;;  %v10003_v12 = vpop.f32.mrf.mxu0 }
 0x644   : > { %v10133_v6 = vpop.f32.mrf.mxu3  ;;  %v10090_v58 = vadd.f32 %v10089_v24, %v10046_v8  ;;  %v10047_v36 = vpop.f32.mrf.mxu1  ;;  %v10004_v33 = vadd.f32 %v10003_v12, %v16680_v28  ;;  %v11604_v28 = vld [vmem:[%s17090_s0 + $0x628] sm:$0xf] }
 0x645   : > { %v11605_v30 = vor.u32 %v13124_v14, %v11604_v28 }
 0x646   : > { %v16863_v39 = vadd.f32 %v10133_v6, %v10090_v58  ;;  %v10048_v49 = vadd.f32 %v10047_v36, %v10004_v33 }
 0x64b   : > { %v10091_v43 = vpop.f32.mrf.mxu2  ;;  %v10006_v31 = vpop.f32.mrf.mxu0 }
 0x64c   : > { %v10135_v23 = vpop.f32.mrf.mxu3  ;;  %v10092_v51 = vadd.f32 %v10091_v43, %v10048_v49  ;;  %v10050_v53 = vpop.f32.mrf.mxu1  ;;  %v10007_v27 = vadd.f32 %v10006_v31, %v16683_v4  ;;  %v11740_v4 = vld [vmem:[%s17090_s0 + $0x740] sm:$0xf] }
 0x64d   : > { %v11741_v52 = vor.u32 %v13159_v0, %v11740_v4 }
 0x64e   : > { %v16890_v42 = vadd.f32 %v10135_v23, %v10092_v51  ;;  %v10051_v56 = vadd.f32 %v10050_v53, %v10007_v27  ;;  %10186 = vmatmul.bf16.gmra.mxu0 %v11597_v26 }
 0x64f   : > { %10230 = vmatmul.bf16.gmra.mxu1 %v11601_v21 }
 0x650   : > { %10274 = vmatmul.bf16.gmra.mxu2 %v11605_v30 }
 0x651   : > { %10318 = vmatmul.bf16.gmra.mxu3 %v11609_v47 }
 0x653   : > { %v10094_v38 = vpop.f32.mrf.mxu2  ;;  %v10008_v48 = vpop.f32.mrf.mxu0 }
 0x654   : > { %v10138_v46 = vpop.f32.mrf.mxu3  ;;  %v10095_v5 = vadd.f32 %v10094_v38, %v10051_v56  ;;  %v10052_v62 = vpop.f32.mrf.mxu1  ;;  %v10009_v16 = vadd.f32 %v10008_v48, %v16710_v40  ;;  %v11748_v40 = vld [vmem:[%s17090_s0 + $0x748] sm:$0xf] }
 0x655   : > { %v11749_v20 = vor.u32 %v13160_v1, %v11748_v40 }
 0x656   : > { %v16893_v57 = vadd.f32 %v10138_v46, %v10095_v5  ;;  %v10053_v35 = vadd.f32 %v10052_v62, %v10009_v16 }
 0x65b   : > { %v10096_v55 = vpop.f32.mrf.mxu2  ;;  %v10011_v61 = vpop.f32.mrf.mxu0 }
 0x65c   : > { %v10140_v9 = vpop.f32.mrf.mxu3  ;;  %v10097_v63 = vadd.f32 %v10096_v55, %v10053_v35  ;;  %v10055_v17 = vpop.f32.mrf.mxu1  ;;  %v10012_v8 = vadd.f32 %v10011_v61, %v16713_v44 }
 0x65e   : > { %v16920_v24 = vadd.f32 %v10140_v9, %v10097_v63  ;;  %v10056_v6 = vadd.f32 %v10055_v17, %v10012_v8  ;;  %10191 = vmatmul.bf16.gmra.mxu0 %v11741_v52 }
 0x65f   : > { %10235 = vmatmul.bf16.gmra.mxu1 %v11745_v25 }
 0x660   : > { %10279 = vmatmul.bf16.gmra.mxu2 %v11749_v20 }
 0x661   : > { %10323 = vmatmul.bf16.gmra.mxu3 %v11753_v2 }
 0x663   : > { %v10099_v58 = vpop.f32.mrf.mxu2  ;;  %v10013_v33 = vpop.f32.mrf.mxu0 }
 0x664   : > { %v10143_v12 = vpop.f32.mrf.mxu3  ;;  %v10100_v36 = vadd.f32 %v10099_v58, %v10056_v6  ;;  %v10057_v49 = vpop.f32.mrf.mxu1  ;;  %v10014_v34 = vadd.f32 %v10013_v33, %v16740_v10 }
 0x666   : > { %v16923_v37 = vadd.f32 %v10143_v12, %v10100_v36  ;;  %v10058_v7 = vadd.f32 %v10057_v49, %v10014_v34 }
 0x66b   : > { %v10101_v22 = vpop.f32.mrf.mxu2  ;;  %v10016_v14 = vpop.f32.mrf.mxu0 }
 0x66c   : > { %v10145_v28 = vpop.f32.mrf.mxu3  ;;  %v10102_v44 = vadd.f32 %v10101_v22, %v10058_v7  ;;  %v10060_v18 = vpop.f32.mrf.mxu1  ;;  %v10017_v19 = vadd.f32 %v10016_v14, %v16743_v11 }
 0x66e   : > { %v16926_v43 = vadd.f32 %v10145_v28, %v10102_v44  ;;  %v10061_v23 = vadd.f32 %v10060_v18, %v10017_v19 }
 0x673   : > { %v10104_v26 = vpop.f32.mrf.mxu2  ;;  %v10018_v31 = vpop.f32.mrf.mxu0 }
 0x674   : > { %v10148_v21 = vpop.f32.mrf.mxu3  ;;  %v10105_v51 = vadd.f32 %v10104_v26, %v10061_v23  ;;  %v10062_v53 = vpop.f32.mrf.mxu1  ;;  %v10019_v10 = vadd.f32 %v10018_v31, %v16770_v32 }
 0x676   : > { %v16929_v30 = vadd.f32 %v10148_v21, %v10105_v51  ;;  %v10063_v47 = vadd.f32 %v10062_v53, %v10019_v10 }
 0x67b   : > { %v10106_v27 = vpop.f32.mrf.mxu2  ;;  %v10162_v46 = vpop.f32.mrf.mxu0 }
 0x67c   : > { %v10150_v56 = vpop.f32.mrf.mxu3  ;;  %v10107_v38 = vadd.f32 %v10106_v27, %v10063_v47  ;;  %v10206_v5 = vpop.f32.mrf.mxu1  ;;  %v10163_v11 = vadd.f32 %v10162_v46, %v16773_v3 }
 0x67e   : > { %v16932_v48 = vadd.f32 %v10150_v56, %v10107_v38  ;;  %v10207_v62 = vadd.f32 %v10206_v5, %v10163_v11 }
 0x683   : > { %v10250_v16 = vpop.f32.mrf.mxu2  ;;  %v10164_v0 = vpop.f32.mrf.mxu0 }
 0x684   : > { %v10294_v35 = vpop.f32.mrf.mxu3  ;;  %v10251_v4 = vadd.f32 %v10250_v16, %v10207_v62  ;;  %v10208_v45 = vpop.f32.mrf.mxu1  ;;  %v10165_v32 = vadd.f32 %v10164_v0, %v16800_v60 }
 0x686   : > { %v16935_v59 = vadd.f32 %v10294_v35, %v10251_v4  ;;  %v10209_v40 = vadd.f32 %v10208_v45, %v10165_v32 }
 0x68b   : > { %v10252_v1 = vpop.f32.mrf.mxu2  ;;  %v10167_v55 = vpop.f32.mrf.mxu0 }
 0x68c   : > { %v10296_v50 = vpop.f32.mrf.mxu3  ;;  %v10253_v13 = vadd.f32 %v10252_v1, %v10209_v40  ;;  %v10211_v9 = vpop.f32.mrf.mxu1  ;;  %v10168_v3 = vadd.f32 %v10167_v55, %v16803_v15 }
 0x68e   : > { %v16938_v52 = vadd.f32 %v10296_v50, %v10253_v13  ;;  %v10212_v25 = vadd.f32 %v10211_v9, %v10168_v3 }
 0x693   : > { %v10255_v63 = vpop.f32.mrf.mxu2  ;;  %v10169_v20 = vpop.f32.mrf.mxu0 }
 0x694   : > { %v10299_v61 = vpop.f32.mrf.mxu3  ;;  %v10256_v17 = vadd.f32 %v10255_v63, %v10212_v25  ;;  %v10213_v2 = vpop.f32.mrf.mxu1  ;;  %v10170_v5 = vadd.f32 %v10169_v20, %v16830_v41  ;;  %v10363_v41 = vadd.f32 %v16938_v52, %v16935_v59 }
 0x696   : > { %v16940_v8 = vadd.f32 %v10299_v61, %v10256_v17  ;;  %v10214_v62 = vadd.f32 %v10213_v2, %v10170_v5 }
 0x698   : > { %v10364_v25 = vadd.f32 %v10363_v41, %v16940_v8 }
 0x69b   : > { %v10257_v60 = vpop.f32.mrf.mxu2  ;;  %v10172_v58 = vpop.f32.mrf.mxu0 }
 0x69c   : > { %v10301_v6 = vpop.f32.mrf.mxu3  ;;  %v10216_v12 = vpop.f32.mrf.mxu1  ;;  %v10173_v11 = vadd.f32 %v10172_v58, %v16833_v54  ;;  %v10258_v35 = vadd.f32 %v10257_v60, %v10214_v62 }
 0x69e   : > { %v10217_v4 = vadd.f32 %v10216_v12, %v10173_v11  ;;  %v16949_v9 = vadd.f32 %v10301_v6, %v10258_v35 }
 0x6a0   : > { %v10365_v20 = vadd.f32 %v10364_v25, %v16949_v9 }
 0x6a3   : > { %v10260_v36 = vpop.f32.mrf.mxu2  ;;  %v10174_v49 = vpop.f32.mrf.mxu0 }
 0x6a4   : > { %v10304_v33 = vpop.f32.mrf.mxu3  ;;  %v10218_v34 = vpop.f32.mrf.mxu1  ;;  %v10175_v16 = vadd.f32 %v10174_v49, %v16860_v29  ;;  %v10261_v1 = vadd.f32 %v10260_v36, %v10217_v4 }
 0x6a6   : > { %v10219_v50 = vadd.f32 %v10218_v34, %v10175_v16  ;;  %v16953_v63 = vadd.f32 %v10304_v33, %v10261_v1 }
 0x6ab   : > { %v10262_v7 = vpop.f32.mrf.mxu2  ;;  %v10177_v22 = vpop.f32.mrf.mxu0 }
 0x6ac   : > { %v10306_v15 = vpop.f32.mrf.mxu3  ;;  %v10221_v28 = vpop.f32.mrf.mxu1  ;;  %v10178_v32 = vadd.f32 %v10177_v22, %v16863_v39  ;;  %v10263_v54 = vadd.f32 %v10262_v7, %v10219_v50 }
 0x6ae   : > { %v10222_v3 = vadd.f32 %v10221_v28, %v10178_v32 }
 0x6b3   : > { %v10265_v44 = vpop.f32.mrf.mxu2  ;;  %v10179_v18 = vpop.f32.mrf.mxu0 }
 0x6b4   : > { %v10309_v14 = vpop.f32.mrf.mxu3  ;;  %v10223_v19 = vpop.f32.mrf.mxu1  ;;  %v10180_v55 = vadd.f32 %v10179_v18, %v16890_v42  ;;  %v10266_v39 = vadd.f32 %v10265_v44, %v10222_v3  ;;  %v16957_v42 = vadd.f32 %v10306_v15, %v10263_v54 }
 0x6b6   : > { %v10224_v61 = vadd.f32 %v10223_v19, %v10180_v55  ;;  %v16961_v49 = vadd.f32 %v10309_v14, %v10266_v39 }
 0x6bb   : > { %v10267_v23 = vpop.f32.mrf.mxu2  ;;  %v10182_v21 = vpop.f32.mrf.mxu0 }
 0x6bc   : > { %v10311_v26 = vpop.f32.mrf.mxu3  ;;  %v10226_v51 = vpop.f32.mrf.mxu1  ;;  %v10183_v29 = vadd.f32 %v10182_v21, %v16893_v57  ;;  %v10268_v6 = vadd.f32 %v10267_v23, %v10224_v61  ;;  %v10366_v57 = vadd.f32 %v10365_v20, %v16953_v63 }
 0x6be   : > { %v10227_v58 = vadd.f32 %v10226_v51, %v10183_v29  ;;  %v16965_v15 = vadd.f32 %v10311_v26, %v10268_v6 }
 0x6c3   : > { %v10270_v31 = vpop.f32.mrf.mxu2  ;;  %v10184_v10 = vpop.f32.mrf.mxu0 }
 0x6c4   : > { %v10314_v53 = vpop.f32.mrf.mxu3  ;;  %v10228_v47 = vpop.f32.mrf.mxu1  ;;  %v10185_v17 = vadd.f32 %v10184_v10, %v16920_v24  ;;  %v10271_v33 = vadd.f32 %v10270_v31, %v10227_v58  ;;  %v10367_v24 = vadd.f32 %v10366_v57, %v16957_v42 }
 0x6c6   : > { %v10229_v34 = vadd.f32 %v10228_v47, %v10185_v17  ;;  %v16969_v19 = vadd.f32 %v10314_v53, %v10271_v33 }
 0x6cb   : > { %v10272_v27 = vpop.f32.mrf.mxu2  ;;  %v10187_v38 = vpop.f32.mrf.mxu0 }
 0x6cc   : > { %v10316_v56 = vpop.f32.mrf.mxu3  ;;  %v10231_v46 = vpop.f32.mrf.mxu1  ;;  %v10188_v12 = vadd.f32 %v10187_v38, %v16923_v37  ;;  %v10273_v28 = vadd.f32 %v10272_v27, %v10229_v34  ;;  %v10368_v37 = vadd.f32 %v10367_v24, %v16961_v49 }
 0x6ce   : > { %v10232_v44 = vadd.f32 %v10231_v46, %v10188_v12  ;;  %v10369_v31 = vadd.f32 %v10368_v37, %v16965_v15 }
 0x6d0   : > { %v10370_v27 = vadd.f32 %v10369_v31, %v16969_v19 }
 0x6d3   : > { %v10275_v0 = vpop.f32.mrf.mxu2  ;;  %v10189_v40 = vpop.f32.mrf.mxu0 }
 0x6d4   : > { %v10319_v45 = vpop.f32.mrf.mxu3  ;;  %v10233_v13 = vpop.f32.mrf.mxu1  ;;  %v10190_v7 = vadd.f32 %v10189_v40, %v16926_v43  ;;  %v10276_v23 = vadd.f32 %v10275_v0, %v10232_v44  ;;  %v16972_v43 = vadd.f32 %v10316_v56, %v10273_v28 }
 0x6d6   : > { %v10234_v14 = vadd.f32 %v10233_v13, %v10190_v7  ;;  %v16975_v38 = vadd.f32 %v10319_v45, %v10276_v23  ;;  %v10371_v53 = vadd.f32 %v10370_v27, %v16972_v43 }
 0x6d8   : > { %v10372_v62 = vadd.f32 %v10371_v53, %v16975_v38 }
 0x6db   : > { %v10277_v2 = vpop.f32.mrf.mxu2  ;;  %v10192_v36 = vpop.f32.mrf.mxu0 }
 0x6dc   : > { %v10321_v60 = vpop.f32.mrf.mxu3  ;;  %v10236_v22 = vpop.f32.mrf.mxu1  ;;  %v10193_v18 = vadd.f32 %v10192_v36, %v16929_v30  ;;  %v10278_v10 = vadd.f32 %v10277_v2, %v10234_v14 }
 0x6de   : > { %v10237_v47 = vadd.f32 %v10236_v22, %v10193_v18  ;;  %v16979_v5 = vadd.f32 %v10321_v60, %v10278_v10 }
 0x6e0   : > { %v10373_v4 = vadd.f32 %v10372_v62, %v16979_v5 }
 0x6e3   : > { %v10280_v21 = vpop.f32.mrf.mxu2  ;;  %v10194_v26 = vpop.f32.mrf.mxu0 }
 0x6e4   : > { %v10324_v51 = vpop.f32.mrf.mxu3  ;;  %v10281_v30 = vadd.f32 %v10280_v21, %v10237_v47  ;;  %v10195_v46 = vadd.f32 %v10194_v26, %v16932_v48  ;;  %v10238_v11 = vpop.f32.mrf.mxu1 }
 0x6e6   : > { %v16982_v16 = vadd.f32 %v10324_v51, %v10281_v30  ;;  %v10239_v56 = vadd.f32 %v10238_v11, %v10195_v46 }
 0x6e8   : > { %v10374_v45 = vadd.f32 %v10373_v4, %v16982_v16 }
 0x6eb   : > { %v10282_v35 = vpop.f32.mrf.mxu2 }
 0x6ec   : > { %v10283_v0 = vadd.f32 %v10282_v35, %v10239_v56  ;;  %v10326_v32 = vpop.f32.mrf.mxu3 }
 0x6ee   : > { %v16986_v40 = vadd.f32 %v10326_v32, %v10283_v0 }
 0x6f0   : > { %v10375_v48 = vadd.f32 %v10374_v45, %v16986_v40 }
 0x6f2   : > { %v10376_v1 = vrot.slane %v10375_v48, 4 }
 0x6f4   : > { %v10377_v50 = vadd.f32 %v10376_v1, %v10375_v48 }
 0x6f6   : > { %v10378_v13 = vrot.slane %v10377_v50, 2 }
 0x6f8   : > { %v10379_v55 = vadd.f32 %v10378_v13, %v10377_v50 }
 0x6fa   : > { %v10380_v41 = vrot.slane %v10379_v55, 1 }
 0x6fc   : > { %v10381_v54 = vadd.f32 %v10380_v41, %v10379_v55 }
 0x6fe   : > { %v16989_v3 = vmul.f32 0.010204081, %v10381_v54 }
 0x700   : > { %v10383_v29 = vsub.f32 %v16935_v59, %v16989_v3  ;;  %v10384_v25 = vsub.f32 %v16938_v52, %v16989_v3  ;;  %v10385_v39 = vsub.f32 %v16940_v8, %v16989_v3  ;;  %v10386_v20 = vsub.f32 %v16949_v9, %v16989_v3 }
 0x701   : > { %v10387_v2 = vsub.f32 %v16953_v63, %v16989_v3  ;;  %v10388_v58 = vsub.f32 %v16957_v42, %v16989_v3  ;;  %v10389_v57 = vsub.f32 %v16961_v49, %v16989_v3  ;;  %v10390_v7 = vsub.f32 %v16965_v15, %v16989_v3 }
 0x702   : > { %v10397_v61 = vmul.f32 %v10383_v29, %v10383_v29  ;;  %v10398_v17 = vmul.f32 %v10384_v25, %v10384_v25  ;;  %v10399_v60 = vmul.f32 %v10385_v39, %v10385_v39  ;;  %v10400_v12 = vmul.f32 %v10386_v20, %v10386_v20 }
 0x703   : > { %v10401_v33 = vmul.f32 %v10387_v2, %v10387_v2  ;;  %v10402_v24 = vmul.f32 %v10388_v58, %v10388_v58  ;;  %v10391_v28 = vsub.f32 %v16969_v19, %v16989_v3  ;;  %v10403_v44 = vmul.f32 %v10389_v57, %v10389_v57 }
 0x704   : > { %v10411_v6 = vadd.f32 %v10398_v17, %v10397_v61  ;;  %v10392_v37 = vsub.f32 %v16972_v43, %v16989_v3  ;;  %v10404_v23 = vmul.f32 %v10390_v7, %v10390_v7  ;;  %v10393_v21 = vsub.f32 %v16975_v38, %v16989_v3 }
 0x705   : > { %v10405_v51 = vmul.f32 %v10391_v28, %v10391_v28  ;;  %v10394_v10 = vsub.f32 %v16979_v5, %v16989_v3  ;;  %v10395_v27 = vsub.f32 %v16982_v16, %v16989_v3  ;;  %v10396_v53 = vsub.f32 %v16986_v40, %v16989_v3 }
 0x706   : > { %v10412_v36 = vadd.f32 %v10411_v6, %v10399_v60  ;;  %v10406_v47 = vmul.f32 %v10392_v37, %v10392_v37  ;;  %v10407_v30 = vmul.f32 %v10393_v21, %v10393_v21  ;;  %v10430_v13 = vmul.f32 14.0, %v16989_v3 }
 0x707   : > { %v10408_v11 = vmul.f32 %v10394_v10, %v10394_v10  ;;  %v10409_v56 = vmul.f32 %v10395_v27, %v10395_v27  ;;  %v10410_v4 = vmul.f32 %v10396_v53, %v10396_v53 }
 0x708   : > { %v10413_v34 = vadd.f32 %v10412_v36, %v10400_v12  ;;  %v10431_v54 = vmul.f32 %v10430_v13, %v16989_v3  ;;  %v10446_v12 = vld [vmem:[%s4925_s29] sm:$0x1] }
 0x70a   : > { %v10414_v22 = vadd.f32 %v10413_v34, %v10401_v33  ;;  %v10448_v33 = vld [vmem:[%s4928_s5] sm:$0x1] }
 0x70c   : > { %v10415_v18 = vadd.f32 %v10414_v22, %v10402_v24 }
 0x70e   : > { %v10416_v14 = vadd.f32 %v10415_v18, %v10403_v44 }
 0x710   : > { %v10417_v31 = vadd.f32 %v10416_v14, %v10404_v23 }
 0x712   : > { %v10418_v26 = vadd.f32 %v10417_v31, %v10405_v51 }
 0x714   : > { %v10419_v46 = vadd.f32 %v10418_v26, %v10406_v47 }
 0x716   : > { %v10420_v62 = vadd.f32 %v10419_v46, %v10407_v30 }
 0x718   : > { %v10421_v35 = vadd.f32 %v10420_v62, %v10408_v11 }
 0x71a   : > { %v10422_v0 = vadd.f32 %v10421_v35, %v10409_v56 }
 0x71c   : > { %v10423_v32 = vadd.f32 %v10422_v0, %v10410_v4 }
 0x71e   : > { %v10424_v45 = vrot.slane %v10423_v32, 4 }
 0x720   : > { %v10425_v48 = vadd.f32 %v10424_v45, %v10423_v32 }
 0x722   : > { %v10426_v1 = vrot.slane %v10425_v48, 2 }
 0x724   : > { %v10427_v50 = vadd.f32 %v10426_v1, %v10425_v48 }
 0x726   : > { %v10428_v55 = vrot.slane %v10427_v50, 1 }
 0x728   : > { %v10429_v41 = vadd.f32 %v10428_v55, %v10427_v50 }
 0x72a   : > { %v10432_v29 = vsub.f32 %v10429_v41, %v10431_v54 }
 0x72c   : > { %v10433_v25 = vmul.f32 0.010204081, %v10432_v29 }
 0x72e   : > { %v10434_v39 = vmax.f32 %v10433_v25, 0.0 }
 0x730   : > { %v10435_v61 = vadd.f32 1e-05, %v10434_v39 }
 0x732   : > { %13533 = vrsqrt.f32 %v10435_v61  ;;  %vm10442_vm1 = vweird.f32 %v10435_v61 }
 0x738   : > { %v13534_v17 = vpop.eup %13533 }
 0x739   : > { %v10437_v20 = vmul.f32 %v13534_v17, %v10435_v61  ;;  %vm10443_vm0 = vweird.f32 %v13534_v17 }
 0x73a   : > { %vm10444_vm2 = vmor %vm10442_vm1, %vm10443_vm0 }
 0x73b   : > { %v10438_v2 = vmul.f32 %v13534_v17, %v10437_v20 }
 0x73d   : > { %v10439_v60 = vmul.f32 0.5, %v10438_v2 }
 0x73f   : > { %v10440_v6 = vsub.f32 1.5, %v10439_v60 }
 0x741   : > { %v10441_v58 = vmul.f32 %v13534_v17, %v10440_v6 }
 0x743   : > { %v10445_v36 = vsel %vm10444_vm2, %v13534_v17, %v10441_v58 }
 0x744   : > { %v10447_v57 = vmul.f32 %v10446_v12, %v10445_v36 }
 0x746   : > { %v10449_v34 = vmul.f32 %v10447_v57, %v16989_v3  ;;  %v10452_v7 = vperm.slane %v10447_v57, 0 }
 0x748   : > { %v10450_v24 = vsub.f32 %v10448_v33, %v10449_v34  ;;  %v10454_v22 = vmul.f32 %v10452_v7, %v16935_v59  ;;  %v10455_v28 = vmul.f32 %v10452_v7, %v16938_v52  ;;  %v10456_v44 = vmul.f32 %v10452_v7, %v16940_v8 }
 0x749   : > { %v10457_v18 = vmul.f32 %v10452_v7, %v16949_v9  ;;  %v10458_v37 = vmul.f32 %v10452_v7, %v16953_v63  ;;  %v10459_v23 = vmul.f32 %v10452_v7, %v16957_v42  ;;  %v10460_v14 = vmul.f32 %v10452_v7, %v16961_v49 }
 0x74a   : > { %v10461_v21 = vmul.f32 %v10452_v7, %v16965_v15  ;;  %v10462_v3 = vmul.f32 %v10452_v7, %v16969_v19  ;;  %v10463_v51 = vmul.f32 %v10452_v7, %v16972_v43  ;;  %v10469_v59 = vperm.slane %v10450_v24, 0 }
 0x74b   : > { %v10464_v52 = vmul.f32 %v10452_v7, %v16975_v38  ;;  %v10465_v8 = vmul.f32 %v10452_v7, %v16979_v5  ;;  %v10466_v9 = vmul.f32 %v10452_v7, %v16982_v16  ;;  %v10467_v63 = vmul.f32 %v10452_v7, %v16986_v40 }
 0x74c   : > { %v10471_v31 = vadd.f32 %v10469_v59, %v10454_v22  ;;  %v10472_v42 = vadd.f32 %v10469_v59, %v10455_v28  ;;  %v10473_v10 = vadd.f32 %v10469_v59, %v10456_v44  ;;  %v10474_v49 = vadd.f32 %v10469_v59, %v10457_v18 }
 0x74d   : > { %v10475_v47 = vadd.f32 %v10469_v59, %v10458_v37  ;;  %v10476_v15 = vadd.f32 %v10469_v59, %v10459_v23  ;;  %v10477_v26 = vadd.f32 %v10469_v59, %v10460_v14  ;;  %v10478_v27 = vadd.f32 %v10469_v59, %v10461_v21 }
 0x74e   : > { %v10479_v19 = vadd.f32 %v10469_v59, %v10462_v3  ;;  %v10480_v43 = vadd.f32 %v10469_v59, %v10463_v51  ;;  %v10481_v30 = vadd.f32 %v10469_v59, %v10464_v52  ;;  %v10482_v38 = vadd.f32 %v10469_v59, %v10465_v8 }
 0x74f   : > { %v10483_v46 = vadd.f32 %v10469_v59, %v10466_v9  ;;  %v10484_v5 = vadd.f32 %v10469_v59, %v10467_v63  ;;  %v10485_v53 = vmax.f32 %v10471_v31, 0.0  ;;  %v10486_v16 = vmax.f32 %v10472_v42, 0.0 }
 0x750   : > { %v10487_v11 = vmax.f32 %v10473_v10, 0.0  ;;  %v10488_v40 = vmax.f32 %v10474_v49, 0.0  ;;  %v10489_v62 = vmax.f32 %v10475_v47, 0.0  ;;  %v10490_v56 = vmax.f32 %v10476_v15, 0.0 }
 0x751   : > { %v10491_v35 = vmax.f32 %v10477_v26, 0.0  ;;  %v10492_v4 = vmax.f32 %v10478_v27, 0.0  ;;  %v10493_v0 = vmax.f32 %v10479_v19, 0.0  ;;  %v10494_v32 = vmax.f32 %v10480_v43, 0.0 }
 0x752   : > { %v10495_v45 = vmax.f32 %v10481_v30, 0.0  ;;  %v10496_v48 = vmax.f32 %v10482_v38, 0.0  ;;  %v10497_v1 = vmax.f32 %v10483_v46, 0.0  ;;  %v10498_v50 = vmax.f32 %v10484_v5, 0.0 }
 0x753   : > { %v13452_v13 = vpack.c.bf16 %v10486_v16, %v10485_v53  ;;  %v13457_v55 = vpack.c.bf16 %v10488_v40, %v10487_v11  ;;  %v13462_v41 = vpack.c.bf16 %v10490_v56, %v10489_v62  ;;  %v13467_v54 = vpack.c.bf16 %v10492_v4, %v10491_v35 }
 0x754   : > { %v13472_v29 = vpack.c.bf16 %v10494_v32, %v10493_v0  ;;  %v13477_v25 = vpack.c.bf16 %v10496_v48, %v10495_v45  ;;  %v13482_v39 = vpack.c.bf16 %v10498_v50, %v10497_v1 }
 0x755   : > { %13453 = vst [vmem:[%s17046_s15] sm:$0xff] %v13452_v13  }
 0x756   : > { %13484 = vst [vmem:[%s17046_s15 + $0x8] sm:$0xff] %v13457_v55  }
 0x757   : > { %13485 = vst [vmem:[%s17046_s15 + $0x10] sm:$0xff] %v13462_v41   ;;  %10533 = sbr.rel (!%p13635_p6) target bundleno = 1899 (0x76b), region = 96 }
 0x758   : > { %13486 = vst [vmem:[%s17046_s15 + $0x18] sm:$0xff] %v13467_v54  }
 0x759   : > { %13487 = vst [vmem:[%s17046_s15 + $0x20] sm:$0xff] %v13472_v29  }
 0x75a   : > { %13488 = vst [vmem:[%s17046_s15 + $0x28] sm:$0xff] %v13477_v25  }
 0x75b   : > { %13489 = vst [vmem:[%s17046_s15 + $0x30] sm:$0xff] %v13482_v39  }
 0x75c   : > { %v10552_v61 = vld [vmem:[%s17046_s15] sm:$0xf]  ;;  %v10554_v17 = vld [vmem:[%s17046_s15 + $0x4] sm:$0xf] }
 0x75d   : > { %v10556_v20 = vld [vmem:[%s17046_s15 + $0x8] sm:$0xf]  ;;  %10553 = vst [vmem:[%s10535_s11] sm:$0xf] %v10552_v61  ;;  %v10558_v2 = vld [vmem:[%s17046_s15 + $0xc] sm:$0xf] }
 0x75e   : > { %10555 = vst [vmem:[%s10535_s11 + $0x8] sm:$0xf] %v10554_v17  ;;  %v10560_v60 = vld [vmem:[%s17046_s15 + $0x10] sm:$0xf]  ;;  %v10562_v6 = vld [vmem:[%s17046_s15 + $0x14] sm:$0xf] }
 0x75f   : > { %10557 = vst [vmem:[%s10535_s11 + $0x10] sm:$0xf] %v10556_v20  ;;  %v10564_v58 = vld [vmem:[%s17046_s15 + $0x18] sm:$0xf]  ;;  %v10566_v12 = vld [vmem:[%s17046_s15 + $0x1c] sm:$0xf] }
 0x760   : > { %10559 = vst [vmem:[%s10535_s11 + $0x18] sm:$0xf] %v10558_v2  ;;  %v10568_v36 = vld [vmem:[%s17046_s15 + $0x20] sm:$0xf]  ;;  %v10570_v57 = vld [vmem:[%s17046_s15 + $0x24] sm:$0xf] }
 0x761   : > { %10561 = vst [vmem:[%s10535_s11 + $0x20] sm:$0xf] %v10560_v60  ;;  %v10572_v33 = vld [vmem:[%s17046_s15 + $0x28] sm:$0xf]  ;;  %v10574_v34 = vld [vmem:[%s17046_s15 + $0x2c] sm:$0xf] }
 0x762   : > { %10563 = vst [vmem:[%s10535_s11 + $0x28] sm:$0xf] %v10562_v6  ;;  %v10576_v7 = vld [vmem:[%s17046_s15 + $0x30] sm:$0xf]  ;;  %v10578_v24 = vld [vmem:[%s17046_s15 + $0x34] sm:$0xf] }
 0x763   : > { %10565 = vst [vmem:[%s10535_s11 + $0x30] sm:$0xf] %v10564_v58 }
 0x764   : > { %10567 = vst [vmem:[%s10535_s11 + $0x38] sm:$0xf] %v10566_v12 }
 0x765   : > { %10569 = vst [vmem:[%s10535_s11 + $0x40] sm:$0xf] %v10568_v36 }
 0x766   : > { %10571 = vst [vmem:[%s10535_s11 + $0x48] sm:$0xf] %v10570_v57 }
 0x767   : > { %10573 = vst [vmem:[%s10535_s11 + $0x50] sm:$0xf] %v10572_v33 }
 0x768   : > { %10575 = vst [vmem:[%s10535_s11 + $0x58] sm:$0xf] %v10574_v34 }
 0x769   : > { %10577 = vst [vmem:[%s10535_s11 + $0x60] sm:$0xf] %v10576_v7 }
 0x76a   : > { %10579 = vst [vmem:[%s10535_s11 + $0x68] sm:$0xf] %v10578_v24 }
 0x76b PF: > { %s14_s19 = sadd.s32 1, %s13573_s19   ;;  %s17096_s15 = smov %s13561_s16 }
 0x76c   : > { %p11_p12 = scmp.ge.s32.totalorder %s14_s19, 4   ;;  %s17097_s16 = smov %s13640_s25 }
 0x76d   : > { %s17098_s17 = smov %s13569_s18  ;;  %s17099_s18 = smov %s17101_s20 }
 0x76e   :  { %13 = sbr.rel (!%p11_p12) target bundleno = 3 (0x3), region = 182 }

// kernel: generator_forward.6
= control target key start
LH: loop header
LB: loop body
LE: loop exit
PB: predicated region body
PF: predicated region fallthrough
CT: control target
= control target key end

     0   :  { %s3045_s15 = smov 0   ;;  %s3047_s16 = smov 0   ;;  %s3873_s0 = inlined_call_operand.vmem [shape: bf16[4,112,1024], index: 0, kind: input, shape index: {}]   ;;  %s3874_s1 = inlined_call_operand.vmem [shape: bf16[4,1024,128], index: 1, kind: input, shape index: {}]   ;;  %s3875_s2 = inlined_call_operand.vmem [shape: f32[1,128], index: 2, kind: input, shape index: {}]   ;;  %s3876_s3 = inlined_call_operand.vmem [shape: f32[1,128], index: 3, kind: input, shape index: {}]   ;;  %s3877_s4 = inlined_call_operand.vmem [shape: bf16[448,128], index: 4, kind: output, shape index: {}]  }
   0x1   :  { %s3049_s17 = smov 0  }
   0x2 LB: > { %s23_s18 = sadd.s32 1, %s3014_s16  ;;  %p2193_p0 = scmp.ge.s32.totalorder %s3018_s17, 1  ;;  %s3018_s17 = sphi %s3049_s17, %s14_s17   ;;  %s3014_s16 = sphi %s3047_s16, %s3942_s16   ;;  %s3010_s15 = sphi %s3045_s15, %s3941_s15  }
   0x3   : > { %p24_p1 = scmp.ge.s32.totalorder %s23_s18, 4  ;;  %p205_p2 = scmp.lt.s32.totalorder %s3018_s17, 5 }
   0x5   : > { %s3944_s18 = smov (%p24_p1, %s23_s18), 0  ;;  %p206_p3 = pnand %p2193_p0, %p205_p2 }
   0x6   : > { %p244_p4 = scmp.lt.s32.totalorder (!%p206_p3), %s3010_s15, 3  ;;  %s1467_s28 = smul.u32 (!%p206_p3), 112, %s3010_s15 }
   0x7   : > { %209 = sbr.rel (%p206_p3) target bundleno = 745 (0x2e9), region = 36  ;;  %p2677_p5 = scmp.ne.s32.totalorder (!%p206_p3), %s3010_s15, 3 }
   0x8   : > { %s3288_s29 = scalar_lea.vmem (!%p206_p3), [#allocation2], %s1467_s28 }
   0xc   : > { %s3067_s19 = scalar_select %p244_p4, %s3010_s15, 3 }
   0xe   : > { %s2681_s20 = sshll.u32 %s3067_s19, 9  ;;  %s2969_s24 = smul.u32 448, %s3067_s19 }
   0xf   : > { %s3073_s23 = scalar_lea.vmem %s3874_s1, %s2681_s20 }
  0x10   : > { %v2745_v0 = vld [vmem:[%s3073_s23 + $0x38] sm:$0xff]  ;;  %v2744_v4 = vld [vmem:[%s3073_s23 + $0x30] sm:$0xff]  ;;  %v2743_v8 = vld [vmem:[%s3073_s23 + $0x28] sm:$0xff]  ;;  %s3105_s27 = scalar_lea.vmem %s3873_s0, %s2969_s24 }
  0x11   : > { %v2753_v1 = vld [vmem:[%s3073_s23 + $0x78] sm:$0xff]  ;;  %1115 = vmatpush.bf16.msra.mxu0 %v2745_v0  ;;  %v2752_v5 = vld [vmem:[%s3073_s23 + $0x70] sm:$0xff]  ;;  %v2751_v9 = vld [vmem:[%s3073_s23 + $0x68] sm:$0xff] }
  0x12   : > { %v2761_v2 = vld [vmem:[%s3073_s23 + $0xb8] sm:$0xff]  ;;  %1159 = vmatpush.bf16.msra.mxu1 %v2753_v1  ;;  %v2760_v6 = vld [vmem:[%s3073_s23 + $0xb0] sm:$0xff]  ;;  %v2759_v10 = vld [vmem:[%s3073_s23 + $0xa8] sm:$0xff] }
  0x13   : > { %v2769_v3 = vld [vmem:[%s3073_s23 + $0xf8] sm:$0xff]  ;;  %1203 = vmatpush.bf16.msra.mxu2 %v2761_v2  ;;  %v2768_v7 = vld [vmem:[%s3073_s23 + $0xf0] sm:$0xff]  ;;  %v2767_v11 = vld [vmem:[%s3073_s23 + $0xe8] sm:$0xff] }
  0x14   : > { %1247 = vmatpush.bf16.msra.mxu3 %v2769_v3  ;;  %v2742_v12 = vld [vmem:[%s3073_s23 + $0x20] sm:$0xff]  ;;  %v2741_v16 = vld [vmem:[%s3073_s23 + $0x18] sm:$0xff]  ;;  %v2740_v20 = vld [vmem:[%s3073_s23 + $0x10] sm:$0xff] }
  0x15   : > { %1116 = vmatpush.bf16.msra.mxu0 %v2744_v4  ;;  %v2750_v13 = vld [vmem:[%s3073_s23 + $0x60] sm:$0xff]  ;;  %v2749_v17 = vld [vmem:[%s3073_s23 + $0x58] sm:$0xff]  ;;  %v2748_v21 = vld [vmem:[%s3073_s23 + $0x50] sm:$0xff] }
  0x16   : > { %1160 = vmatpush.bf16.msra.mxu1 %v2752_v5  ;;  %v2758_v14 = vld [vmem:[%s3073_s23 + $0xa0] sm:$0xff]  ;;  %v2757_v18 = vld [vmem:[%s3073_s23 + $0x98] sm:$0xff]  ;;  %v2756_v22 = vld [vmem:[%s3073_s23 + $0x90] sm:$0xff] }
  0x17   : > { %1204 = vmatpush.bf16.msra.mxu2 %v2760_v6  ;;  %v2766_v15 = vld [vmem:[%s3073_s23 + $0xe0] sm:$0xff]  ;;  %v2765_v19 = vld [vmem:[%s3073_s23 + $0xd8] sm:$0xff]  ;;  %v2764_v23 = vld [vmem:[%s3073_s23 + $0xd0] sm:$0xff] }
  0x18   : > { %1248 = vmatpush.bf16.msra.mxu3 %v2768_v7  ;;  %v2739_v24 = vld [vmem:[%s3073_s23 + $0x8] sm:$0xff]  ;;  %v2738_v28 = vld [vmem:[%s3073_s23] sm:$0xff]  ;;  %v2793_v40 = vld [vmem:[%s3073_s23 + $0x1b8] sm:$0xff] }
  0x19   : > { %1117 = vmatpush.bf16.msra.mxu0 %v2743_v8  ;;  %v2747_v25 = vld [vmem:[%s3073_s23 + $0x48] sm:$0xff]  ;;  %v2746_v29 = vld [vmem:[%s3073_s23 + $0x40] sm:$0xff]  ;;  %v2777_v41 = vld [vmem:[%s3073_s23 + $0x138] sm:$0xff] }
  0x1a   : > { %1161 = vmatpush.bf16.msra.mxu1 %v2751_v9  ;;  %v2755_v26 = vld [vmem:[%s3073_s23 + $0x88] sm:$0xff]  ;;  %v2754_v30 = vld [vmem:[%s3073_s23 + $0x80] sm:$0xff]  ;;  %v2801_v46 = vld [vmem:[%s3073_s23 + $0x1f8] sm:$0xff] }
  0x1b   : > { %1205 = vmatpush.bf16.msra.mxu2 %v2759_v10  ;;  %v2763_v27 = vld [vmem:[%s3073_s23 + $0xc8] sm:$0xff]  ;;  %v2762_v31 = vld [vmem:[%s3073_s23 + $0xc0] sm:$0xff]  ;;  %v2785_v47 = vld [vmem:[%s3073_s23 + $0x178] sm:$0xff] }
  0x1c   : > { %1249 = vmatpush.bf16.msra.mxu3 %v2767_v11  ;;  %v2199_v32 = vld [vmem:[%s3105_s27] sm:$0xf]  ;;  %v2682_v34 = vld [vmem:[%s3105_s27 + $0x4] sm:$0xf]  ;;  %v2207_v36 = vld [vmem:[%s3105_s27 + $0x8] sm:$0xf] }
  0x1d   : > { %1118 = vmatpush.bf16.msra.mxu0 %v2742_v12  ;;  %v2686_v33 = vld [vmem:[%s3105_s27 + $0x1c] sm:$0xf0]  ;;  %v2201_v35 = vld [vmem:[%s3105_s27 + $0x20] sm:$0xf0]  ;;  %v2687_v37 = vld [vmem:[%s3105_s27 + $0x24] sm:$0xf0] }
  0x1e   : > { %1162 = vmatpush.bf16.msra.mxu1 %v2750_v13  ;;  %v2683_v38 = vld [vmem:[%s3105_s27 + $0xc] sm:$0xf]  ;;  %v2200_v42 = vor.u32 %v2686_v33, %v2199_v32  ;;  %v2204_v43 = vor.u32 %v2682_v34, %v2201_v35  ;;  %v2208_v44 = vor.u32 %v2687_v37, %v2207_v36  ;;  %v2792_v48 = vld [vmem:[%s3073_s23 + $0x1b0] sm:$0xff]  ;;  %v2231_v56 = vld [vmem:[%s3105_s27 + $0x40] sm:$0xf] }
  0x1f   : > { %1206 = vmatpush.bf16.msra.mxu2 %v2758_v14  ;;  %v2209_v39 = vld [vmem:[%s3105_s27 + $0x28] sm:$0xf0]  ;;  %v2776_v49 = vld [vmem:[%s3073_s23 + $0x130] sm:$0xff]  ;;  %v2790_v57 = vld [vmem:[%s3073_s23 + $0x1a0] sm:$0xff] }
  0x20   : > { %1250 = vmatpush.bf16.msra.mxu3 %v2766_v15  ;;  %v2212_v45 = vor.u32 %v2683_v38, %v2209_v39  ;;  %v2800_v50 = vld [vmem:[%s3073_s23 + $0x1f0] sm:$0xff]  ;;  %v2791_v52 = vld [vmem:[%s3073_s23 + $0x1a8] sm:$0xff]  ;;  %v2774_v58 = vld [vmem:[%s3073_s23 + $0x120] sm:$0xff] }
  0x21   : > { %1119 = vmatpush.bf16.msra.mxu0 %v2741_v16  ;;  %v2784_v51 = vld [vmem:[%s3073_s23 + $0x170] sm:$0xff]  ;;  %v2775_v53 = vld [vmem:[%s3073_s23 + $0x128] sm:$0xff]  ;;  %v2694_v59 = vld [vmem:[%s3105_s27 + $0x5c] sm:$0xf0] }
  0x22   : > { %1163 = vmatpush.bf16.msra.mxu1 %v2749_v17  ;;  %v2799_v54 = vld [vmem:[%s3073_s23 + $0x1e8] sm:$0xff]  ;;  %v2690_v60 = vld [vmem:[%s3105_s27 + $0x44] sm:$0xf]  ;;  %v2232_v4 = vor.u32 %v2694_v59, %v2231_v56  ;;  %v2789_v8 = vld [vmem:[%s3073_s23 + $0x198] sm:$0xff] }
  0x23   : > { %1207 = vmatpush.bf16.msra.mxu2 %v2757_v18  ;;  %v2783_v55 = vld [vmem:[%s3073_s23 + $0x168] sm:$0xff]  ;;  %v2233_v61 = vld [vmem:[%s3105_s27 + $0x60] sm:$0xf0]  ;;  %v2773_v9 = vld [vmem:[%s3073_s23 + $0x118] sm:$0xff] }
  0x24   : > { %1251 = vmatpush.bf16.msra.mxu3 %v2765_v19  ;;  %v2239_v62 = vld [vmem:[%s3105_s27 + $0x48] sm:$0xf]  ;;  %v2691_v0 = vld [vmem:[%s3105_s27 + $0x4c] sm:$0xf]  ;;  %v2798_v2 = vld [vmem:[%s3073_s23 + $0x1e0] sm:$0xff]  ;;  %v2236_v5 = vor.u32 %v2690_v60, %v2233_v61 }
  0x25   : > { %1120 = vmatpush.bf16.msra.mxu0 %v2740_v20  ;;  %v2695_v63 = vld [vmem:[%s3105_s27 + $0x64] sm:$0xf0]  ;;  %v2241_v1 = vld [vmem:[%s3105_s27 + $0x68] sm:$0xf0]  ;;  %v2782_v3 = vld [vmem:[%s3073_s23 + $0x160] sm:$0xff] }
  0x26   : > { %1164 = vmatpush.bf16.msra.mxu1 %v2748_v21  ;;  %v2240_v6 = vor.u32 %v2695_v63, %v2239_v62  ;;  %v2244_v7 = vor.u32 %v2691_v0, %v2241_v1  ;;  %v2797_v10 = vld [vmem:[%s3073_s23 + $0x1d8] sm:$0xff]  ;;  %v2263_v12 = vld [vmem:[%s3105_s27 + $0x80] sm:$0xf]  ;;  %v2698_v14 = vld [vmem:[%s3105_s27 + $0x84] sm:$0xf] }
  0x27   : > { %1208 = vmatpush.bf16.msra.mxu2 %v2756_v22  ;;  %v2781_v11 = vld [vmem:[%s3073_s23 + $0x158] sm:$0xff]  ;;  %v2702_v13 = vld [vmem:[%s3105_s27 + $0x9c] sm:$0xf0]  ;;  %v2265_v15 = vld [vmem:[%s3105_s27 + $0xa0] sm:$0xf0] }
  0x28   : > { %1252 = vmatpush.bf16.msra.mxu3 %v2764_v23  ;;  %v2271_v16 = vld [vmem:[%s3105_s27 + $0x88] sm:$0xf]  ;;  %v2699_v18 = vld [vmem:[%s3105_s27 + $0x8c] sm:$0xf]  ;;  %v2264_v20 = vor.u32 %v2702_v13, %v2263_v12  ;;  %v2268_v21 = vor.u32 %v2698_v14, %v2265_v15  ;;  %v2786_v56 = vld [vmem:[%s3073_s23 + $0x180] sm:$0xff] }
  0x29   : > { %1121 = vmatpush.bf16.msra.mxu0 %v2739_v24  ;;  %v2703_v17 = vld [vmem:[%s3105_s27 + $0xa4] sm:$0xf0]  ;;  %v2273_v19 = vld [vmem:[%s3105_s27 + $0xa8] sm:$0xf0]  ;;  %v2788_v24 = vld [vmem:[%s3073_s23 + $0x190] sm:$0xff] }
  0x2a   : > { %1165 = vmatpush.bf16.msra.mxu1 %v2747_v25  ;;  %v2272_v22 = vor.u32 %v2703_v17, %v2271_v16  ;;  %v2276_v23 = vor.u32 %v2699_v18, %v2273_v19  ;;  %v2772_v25 = vld [vmem:[%s3073_s23 + $0x110] sm:$0xff]  ;;  %v2303_v32 = vld [vmem:[%s3105_s27 + $0xc8] sm:$0xf]  ;;  %v2707_v34 = vld [vmem:[%s3105_s27 + $0xcc] sm:$0xf] }
  0x2b   : > { %1209 = vmatpush.bf16.msra.mxu2 %v2755_v26  ;;  %v2796_v26 = vld [vmem:[%s3073_s23 + $0x1d0] sm:$0xff]  ;;  %v2711_v33 = vld [vmem:[%s3105_s27 + $0xe4] sm:$0xf0]  ;;  %v2305_v35 = vld [vmem:[%s3105_s27 + $0xe8] sm:$0xf0] }
  0x2c   : > { %1253 = vmatpush.bf16.msra.mxu3 %v2763_v27  ;;  %v2780_v27 = vld [vmem:[%s3073_s23 + $0x150] sm:$0xff]  ;;  %v2304_v38 = vor.u32 %v2711_v33, %v2303_v32  ;;  %v2308_v39 = vor.u32 %v2707_v34, %v2305_v35  ;;  %v2778_v59 = vld [vmem:[%s3073_s23 + $0x140] sm:$0xff]  ;;  %v2367_v0 = vld [vmem:[%s3105_s27 + $0x148] sm:$0xf] }
  0x2d   : > { %1122 = vmatpush.bf16.msra.mxu0 %v2738_v28  ;;  %v2295_v28 = vld [vmem:[%s3105_s27 + $0xc0] sm:$0xf]  ;;  %v2722_v62 = vld [vmem:[%s3105_s27 + $0x144] sm:$0xf]  ;;  %v2727_v1 = vld [vmem:[%s3105_s27 + $0x164] sm:$0xf0] }
  0x2e   : > { %1166 = vmatpush.bf16.msra.mxu1 %v2746_v29  ;;  %v2710_v29 = vld [vmem:[%s3105_s27 + $0xdc] sm:$0xf0]  ;;  %v2361_v63 = vld [vmem:[%s3105_s27 + $0x160] sm:$0xf0]  ;;  %v2399_v12 = vld [vmem:[%s3105_s27 + $0x188] sm:$0xf] }
  0x2f   : > { %1210 = vmatpush.bf16.msra.mxu2 %v2754_v30  ;;  %v2706_v30 = vld [vmem:[%s3105_s27 + $0xc4] sm:$0xf]  ;;  %v2296_v36 = vor.u32 %v2710_v29, %v2295_v28  ;;  %v2359_v60 = vld [vmem:[%s3105_s27 + $0x140] sm:$0xf]  ;;  %v2735_v13 = vld [vmem:[%s3105_s27 + $0x1a4] sm:$0xf0] }
  0x30   : > { %1254 = vmatpush.bf16.msra.mxu3 %v2762_v31  ;;  %1123 = vmatmul.bf16.vlgmr.msra.gmra.mxu0 %v2200_v42  ;;  %v2297_v31 = vld [vmem:[%s3105_s27 + $0xe0] sm:$0xf0]  ;;  %v2795_v42 = vld [vmem:[%s3073_s23 + $0x1c8] sm:$0xff]  ;;  %v2726_v61 = vld [vmem:[%s3105_s27 + $0x15c] sm:$0xf0]  ;;  %v2400_v18 = vor.u32 %v2735_v13, %v2399_v12 }
  0x31   : > { %1291 = vmatpush.bf16.msrb.mxu0 %v2777_v41  ;;  %1167 = vmatmul.bf16.vlgmr.msra.gmra.mxu1 %v2204_v43  ;;  %v2300_v37 = vor.u32 %v2706_v30, %v2297_v31  ;;  %v2771_v41 = vld [vmem:[%s3073_s23 + $0x108] sm:$0xff]  ;;  %v2247_v32 = vld [vmem:[%s3105_s27 + $0x50] sm:$0xf]  ;;  %v2692_v34 = vld [vmem:[%s3105_s27 + $0x54] sm:$0xf] }
  0x32   : > { %1211 = vmatmul.bf16.vlgmr.msra.gmra.mxu2 %v2208_v44  ;;  %1335 = vmatpush.bf16.msrb.mxu1 %v2785_v47  ;;  %v2779_v43 = vld [vmem:[%s3073_s23 + $0x148] sm:$0xff]  ;;  %v2327_v44 = vld [vmem:[%s3105_s27 + $0x100] sm:$0xf]  ;;  %v2329_v47 = vld [vmem:[%s3105_s27 + $0x120] sm:$0xf0] }
  0x33   : > { %1379 = vmatpush.bf16.msrb.mxu2 %v2793_v40  ;;  %1255 = vmatmul.bf16.vlgmr.msra.gmra.mxu3 %v2212_v45  ;;  %v2787_v40 = vld [vmem:[%s3073_s23 + $0x188] sm:$0xff]  ;;  %v2718_v45 = vld [vmem:[%s3105_s27 + $0x11c] sm:$0xf0]  ;;  %v2696_v33 = vld [vmem:[%s3105_s27 + $0x6c] sm:$0xf0] }
  0x34   : > { %1423 = vmatpush.bf16.msrb.mxu3 %v2801_v46  ;;  %v2714_v46 = vld [vmem:[%s3105_s27 + $0x104] sm:$0xf]  ;;  %v2731_v14 = vld [vmem:[%s3105_s27 + $0x18c] sm:$0xf]  ;;  %v2249_v35 = vld [vmem:[%s3105_s27 + $0x70] sm:$0xf0] }
  0x35   : > { %1292 = vmatpush.bf16.msrb.mxu0 %v2776_v49  ;;  %v2719_v49 = vld [vmem:[%s3105_s27 + $0x124] sm:$0xf0]  ;;  %v2401_v15 = vld [vmem:[%s3105_s27 + $0x1a8] sm:$0xf0] }
  0x36   : > { %1336 = vmatpush.bf16.msrb.mxu1 %v2784_v51  ;;  %v2337_v51 = vld [vmem:[%s3105_s27 + $0x128] sm:$0xf0]  ;;  %v2404_v19 = vor.u32 %v2731_v14, %v2401_v15 }
  0x37   : > { %1380 = vmatpush.bf16.msrb.mxu2 %v2792_v48  ;;  %v2335_v48 = vld [vmem:[%s3105_s27 + $0x108] sm:$0xf] }
  0x38   : > { %1424 = vmatpush.bf16.msrb.mxu3 %v2800_v50  ;;  %v2715_v50 = vld [vmem:[%s3105_s27 + $0x10c] sm:$0xf] }
  0x39   : > { %1293 = vmatpush.bf16.msrb.mxu0 %v2775_v53  ;;  %v2332_v53 = vor.u32 %v2714_v46, %v2329_v47 }
  0x3a   : > { %1337 = vmatpush.bf16.msrb.mxu1 %v2783_v55  ;;  %v2340_v55 = vor.u32 %v2715_v50, %v2337_v51 }
  0x3b   : > { %1381 = vmatpush.bf16.msrb.mxu2 %v2791_v52  ;;  %v2328_v52 = vor.u32 %v2718_v45, %v2327_v44 }
  0x3c   : > { %1425 = vmatpush.bf16.msrb.mxu3 %v2799_v54  ;;  %v2336_v54 = vor.u32 %v2719_v49, %v2335_v48 }
  0x3d   : > { %1294 = vmatpush.bf16.msrb.mxu0 %v2774_v58  ;;  %v2794_v58 = vld [vmem:[%s3073_s23 + $0x1c0] sm:$0xff] }
  0x3e   : > { %1338 = vmatpush.bf16.msrb.mxu1 %v2782_v3  ;;  %v2369_v3 = vld [vmem:[%s3105_s27 + $0x168] sm:$0xf0] }
  0x3f   : > { %1382 = vmatpush.bf16.msrb.mxu2 %v2790_v57  ;;  %v2770_v57 = vld [vmem:[%s3073_s23 + $0x100] sm:$0xff] }
  0x40   : > { %1426 = vmatpush.bf16.msrb.mxu3 %v2798_v2  ;;  %1128 = vmatmul.bf16.gmra.mxu0 %v2232_v4  ;;  %v2723_v2 = vld [vmem:[%s3105_s27 + $0x14c] sm:$0xf]  ;;  %v2360_v4 = vor.u32 %v2726_v61, %v2359_v60  ;;  %v2701_v60 = vld [vmem:[%s3105_s27 + $0x9c] sm:$0xf] }
  0x41   : > { %1172 = vmatmul.bf16.gmra.mxu1 %v2236_v5  ;;  %1295 = vmatpush.bf16.msrb.mxu0 %v2773_v9  ;;  %v2364_v5 = vor.u32 %v2722_v62, %v2361_v63  ;;  %v2734_v9 = vld [vmem:[%s3105_s27 + $0x19c] sm:$0xf0]  ;;  %v2289_v61 = vld [vmem:[%s3105_s27 + $0xb8] sm:$0xf0] }
  0x42   : > { %1216 = vmatmul.bf16.gmra.mxu2 %v2240_v6  ;;  %1339 = vmatpush.bf16.msrb.mxu1 %v2781_v11  ;;  %v2368_v6 = vor.u32 %v2727_v1, %v2367_v0  ;;  %v2393_v11 = vld [vmem:[%s3105_s27 + $0x1a0] sm:$0xf0] }
  0x43   : > { %1260 = vmatmul.bf16.gmra.mxu3 %v2244_v7  ;;  %1383 = vmatpush.bf16.msrb.mxu2 %v2789_v8  ;;  %v2372_v7 = vor.u32 %v2723_v2, %v2369_v3  ;;  %v2391_v8 = vld [vmem:[%s3105_s27 + $0x180] sm:$0xf] }
  0x44   : > { %1427 = vmatpush.bf16.msrb.mxu3 %v2797_v10  ;;  %v2730_v10 = vld [vmem:[%s3105_s27 + $0x184] sm:$0xf]  ;;  %v2392_v16 = vor.u32 %v2734_v9, %v2391_v8 }
  0x45   : > { %1296 = vmatpush.bf16.msrb.mxu0 %v2772_v25  ;;  %v2396_v17 = vor.u32 %v2730_v10, %v2393_v11  ;;  %v2689_v25 = vld [vmem:[%s3105_s27 + $0x34] sm:$0xf0] }
  0x46   : > { %1340 = vmatpush.bf16.msrb.mxu1 %v2780_v27  ;;  %v2225_v27 = vld [vmem:[%s3105_s27 + $0x38] sm:$0xf0] }
  0x47   : > { %1384 = vmatpush.bf16.msrb.mxu2 %v2788_v24  ;;  %v2223_v24 = vld [vmem:[%s3105_s27 + $0x18] sm:$0xf] }
  0x48   : > { %1428 = vmatpush.bf16.msrb.mxu3 %v2796_v26  ;;  %v2685_v26 = vld [vmem:[%s3105_s27 + $0x1c] sm:$0xf]  ;;  %v2224_v30 = vor.u32 %v2689_v25, %v2223_v24 }
  0x49   : > { %1297 = vmatpush.bf16.msrb.mxu0 %v2771_v41  ;;  %v2228_v31 = vor.u32 %v2685_v26, %v2225_v27  ;;  %v2252_v41 = vor.u32 %v2692_v34, %v2249_v35 }
  0x4a   : > { %1341 = vmatpush.bf16.msrb.mxu1 %v2779_v43 }
  0x4b   : > { %1385 = vmatpush.bf16.msrb.mxu2 %v2787_v40  ;;  %v2248_v40 = vor.u32 %v2696_v33, %v2247_v32 }
  0x4c   : > { %1429 = vmatpush.bf16.msrb.mxu3 %v2795_v42 }
  0x4d   : > { %1298 = vmatpush.bf16.msrb.mxu0 %v2770_v57  ;;  %v2281_v57 = vld [vmem:[%s3105_s27 + $0xb0] sm:$0xf0] }
  0x4e   : > { %1342 = vmatpush.bf16.msrb.mxu1 %v2778_v59  ;;  %v2705_v59 = vld [vmem:[%s3105_s27 + $0xb4] sm:$0xf0] }
  0x4f   : > { %1386 = vmatpush.bf16.msrb.mxu2 %v2786_v56  ;;  %v2700_v56 = vld [vmem:[%s3105_s27 + $0x94] sm:$0xf] }
  0x50   : > { %1133 = vmatmul.bf16.gmra.mxu0 %v2264_v20  ;;  %1430 = vmatpush.bf16.msrb.mxu3 %v2794_v58  ;;  %v2215_v20 = vld [vmem:[%s3105_s27 + $0x10] sm:$0xf]  ;;  %v2287_v58 = vld [vmem:[%s3105_s27 + $0x98] sm:$0xf]  ;;  %v2284_v1 = vor.u32 %v2700_v56, %v2281_v57 }
  0x51   : > { %1177 = vmatmul.bf16.gmra.mxu1 %v2268_v21  ;;  %v2688_v21 = vld [vmem:[%s3105_s27 + $0x2c] sm:$0xf0] }
  0x52   : > { %1221 = vmatmul.bf16.gmra.mxu2 %v2272_v22  ;;  %v2684_v22 = vld [vmem:[%s3105_s27 + $0x14] sm:$0xf]  ;;  %v2216_v28 = vor.u32 %v2688_v21, %v2215_v20  ;;  %v2319_v20 = vld [vmem:[%s3105_s27 + $0xd8] sm:$0xf] }
  0x53   : > { %1265 = vmatmul.bf16.gmra.mxu3 %v2276_v23  ;;  %v2217_v23 = vld [vmem:[%s3105_s27 + $0x30] sm:$0xf0]  ;;  %v2713_v21 = vld [vmem:[%s3105_s27 + $0xf4] sm:$0xf0] }
  0x54   : > { %v2220_v29 = vor.u32 %v2684_v22, %v2217_v23  ;;  %v2709_v22 = vld [vmem:[%s3105_s27 + $0xdc] sm:$0xf] }
  0x55   : > { %v2321_v23 = vld [vmem:[%s3105_s27 + $0xf8] sm:$0xf0] }
  0x56   : > { %v2324_v32 = vor.u32 %v2709_v22, %v2321_v23 }
  0x60   : > { %1138 = vmatmul.bf16.gmra.mxu0 %v2296_v36  ;;  %v2255_v36 = vld [vmem:[%s3105_s27 + $0x58] sm:$0xf] }
  0x61   : > { %1182 = vmatmul.bf16.gmra.mxu1 %v2300_v37  ;;  %v2697_v37 = vld [vmem:[%s3105_s27 + $0x74] sm:$0xf0] }
  0x62   : > { %1226 = vmatmul.bf16.gmra.mxu2 %v2304_v38  ;;  %v2693_v38 = vld [vmem:[%s3105_s27 + $0x5c] sm:$0xf]  ;;  %v2256_v44 = vor.u32 %v2697_v37, %v2255_v36 }
  0x63   : > { %1270 = vmatmul.bf16.gmra.mxu3 %v2308_v39  ;;  %v2257_v39 = vld [vmem:[%s3105_s27 + $0x78] sm:$0xf0] }
  0x64   : > { %v2260_v45 = vor.u32 %v2693_v38, %v2257_v39 }
  0x70   : > { %1143 = vmatmul.bf16.gmra.mxu0 %v2328_v52 }
  0x71   : > { %1187 = vmatmul.bf16.gmra.mxu1 %v2332_v53 }
  0x72   : > { %1231 = vmatmul.bf16.gmra.mxu2 %v2336_v54  ;;  %v2279_v54 = vld [vmem:[%s3105_s27 + $0x90] sm:$0xf] }
  0x73   : > { %1275 = vmatmul.bf16.gmra.mxu3 %v2340_v55  ;;  %v2704_v55 = vld [vmem:[%s3105_s27 + $0xac] sm:$0xf0] }
  0x74   : > { %v2280_v0 = vor.u32 %v2704_v55, %v2279_v54 }
  0x80   : > { %1148 = vmatmul.bf16.gmra.mxu0 %v2360_v4 }
  0x81   : > { %1192 = vmatmul.bf16.gmra.mxu1 %v2364_v5  ;;  %v2288_v5 = vor.u32 %v2705_v59, %v2287_v58 }
  0x82   : > { %1236 = vmatmul.bf16.gmra.mxu2 %v2368_v6  ;;  %v2292_v6 = vor.u32 %v2701_v60, %v2289_v61 }
  0x83   : > { %1280 = vmatmul.bf16.gmra.mxu3 %v2372_v7 }
  0x90   : > { %1153 = vmatmul.bf16.gmra.mxu0 %v2392_v16  ;;  %v2311_v16 = vld [vmem:[%s3105_s27 + $0xd0] sm:$0xf] }
  0x91   : > { %1197 = vmatmul.bf16.gmra.mxu1 %v2396_v17  ;;  %v2712_v17 = vld [vmem:[%s3105_s27 + $0xec] sm:$0xf0] }
  0x92   : > { %1241 = vmatmul.bf16.gmra.mxu2 %v2400_v18  ;;  %v2708_v18 = vld [vmem:[%s3105_s27 + $0xd4] sm:$0xf]  ;;  %v2312_v26 = vor.u32 %v2712_v17, %v2311_v16 }
  0x93   : > { %1285 = vmatmul.bf16.gmra.mxu3 %v2404_v19  ;;  %v2313_v19 = vld [vmem:[%s3105_s27 + $0xf0] sm:$0xf0] }
  0x94   : > { %v2316_v27 = vor.u32 %v2708_v18, %v2313_v19 }
  0xa0   : > { %1299 = vmatmul.bf16.vlgmr.msrb.gmra.mxu0 %v2216_v28 }
  0xa1   : > { %1343 = vmatmul.bf16.vlgmr.msrb.gmra.mxu1 %v2220_v29 }
  0xa2   : > { %1387 = vmatmul.bf16.vlgmr.msrb.gmra.mxu2 %v2224_v30 }
  0xa3   : > { %1431 = vmatmul.bf16.vlgmr.msrb.gmra.mxu3 %v2228_v31  ;;  %v2320_v31 = vor.u32 %v2713_v21, %v2319_v20 }
  0xad   : > { %v1124_v42 = vpop.f32.mrf.mxu0 }
  0xae   : > { %v1168_v43 = vpop.f32.mrf.mxu1 }
  0xaf   : > { %v1169_v46 = vadd.f32 %v1168_v43, %v1124_v42  ;;  %v2343_v42 = vld [vmem:[%s3105_s27 + $0x110] sm:$0xf] }
  0xb0   : > { %1304 = vmatmul.bf16.gmra.mxu0 %v2248_v40  ;;  %v2720_v43 = vld [vmem:[%s3105_s27 + $0x12c] sm:$0xf0] }
  0xb1   : > { %1348 = vmatmul.bf16.gmra.mxu1 %v2252_v41 }
  0xb2   : > { %1392 = vmatmul.bf16.gmra.mxu2 %v2256_v44  ;;  %v2716_v44 = vld [vmem:[%s3105_s27 + $0x114] sm:$0xf] }
  0xb3   : > { %1436 = vmatmul.bf16.gmra.mxu3 %v2260_v45  ;;  %v2345_v45 = vld [vmem:[%s3105_s27 + $0x130] sm:$0xf0] }
  0xb4   : > { %v2348_v54 = vor.u32 %v2716_v44, %v2345_v45 }
  0xb5   : > { %v1212_v47 = vpop.f32.mrf.mxu2  ;;  %v1126_v50 = vpop.f32.mrf.mxu0 }
  0xb6   : > { %v1256_v48 = vpop.f32.mrf.mxu3  ;;  %v1213_v49 = vadd.f32 %v1212_v47, %v1169_v46  ;;  %v1170_v51 = vpop.f32.mrf.mxu1  ;;  %v2351_v46 = vld [vmem:[%s3105_s27 + $0x118] sm:$0xf] }
  0xb7   : > { %v1171_v52 = vadd.f32 %v1170_v51, %v1126_v50  ;;  %v2721_v47 = vld [vmem:[%s3105_s27 + $0x134] sm:$0xf0] }
  0xb8   : > { %v3217_v53 = vadd.f32 %v1256_v48, %v1213_v49  ;;  %v2717_v48 = vld [vmem:[%s3105_s27 + $0x11c] sm:$0xf]  ;;  %v2352_v58 = vor.u32 %v2721_v47, %v2351_v46 }
  0xb9   : > { %v2353_v49 = vld [vmem:[%s3105_s27 + $0x138] sm:$0xf0] }
  0xba   : > { %v2356_v59 = vor.u32 %v2717_v48, %v2353_v49 }
  0xbd   : > { %v1214_v62 = vpop.f32.mrf.mxu2  ;;  %v1129_v3 = vpop.f32.mrf.mxu0 }
  0xbe   : > { %v1258_v63 = vpop.f32.mrf.mxu3  ;;  %v1215_v2 = vadd.f32 %v1214_v62, %v1171_v52  ;;  %v1173_v4 = vpop.f32.mrf.mxu1  ;;  %v2344_v52 = vor.u32 %v2720_v43, %v2343_v42  ;;  %v2417_v42 = vld [vmem:[%s3105_s27 + $0x1b8] sm:$0xf0] }
  0xbf   : > { %v1174_v7 = vadd.f32 %v1173_v4, %v1129_v3 }
  0xc0   : > { %v3227_v8 = vadd.f32 %v1258_v63, %v1215_v2  ;;  %1309 = vmatmul.bf16.gmra.mxu0 %v2280_v0 }
  0xc1   : > { %1353 = vmatmul.bf16.gmra.mxu1 %v2284_v1 }
  0xc2   : > { %1397 = vmatmul.bf16.gmra.mxu2 %v2288_v5  ;;  %v2375_v5 = vld [vmem:[%s3105_s27 + $0x150] sm:$0xf] }
  0xc3   : > { %1441 = vmatmul.bf16.gmra.mxu3 %v2292_v6  ;;  %v2728_v6 = vld [vmem:[%s3105_s27 + $0x16c] sm:$0xf0] }
  0xc4   : > { %v2376_v17 = vor.u32 %v2728_v6, %v2375_v5 }
  0xc5   : > { %v1217_v9 = vpop.f32.mrf.mxu2  ;;  %v1131_v12 = vpop.f32.mrf.mxu0 }
  0xc6   : > { %v1261_v10 = vpop.f32.mrf.mxu3  ;;  %v1218_v11 = vadd.f32 %v1217_v9, %v1174_v7  ;;  %v1175_v13 = vpop.f32.mrf.mxu1  ;;  %v2724_v7 = vld [vmem:[%s3105_s27 + $0x154] sm:$0xf] }
  0xc7   : > { %v1176_v14 = vadd.f32 %v1175_v13, %v1131_v12  ;;  %v2377_v9 = vld [vmem:[%s3105_s27 + $0x170] sm:$0xf0]  ;;  %v2725_v12 = vld [vmem:[%s3105_s27 + $0x15c] sm:$0xf] }
  0xc8   : > { %v3229_v15 = vadd.f32 %v1261_v10, %v1218_v11  ;;  %v2383_v10 = vld [vmem:[%s3105_s27 + $0x158] sm:$0xf]  ;;  %v2385_v13 = vld [vmem:[%s3105_s27 + $0x178] sm:$0xf0]  ;;  %v2380_v18 = vor.u32 %v2724_v7, %v2377_v9 }
  0xc9   : > { %v2729_v11 = vld [vmem:[%s3105_s27 + $0x174] sm:$0xf0]  ;;  %v2388_v23 = vor.u32 %v2725_v12, %v2385_v13 }
  0xca   : > { %v2384_v22 = vor.u32 %v2729_v11, %v2383_v10 }
  0xcd   : > { %v1219_v24 = vpop.f32.mrf.mxu2  ;;  %v1134_v29 = vpop.f32.mrf.mxu0 }
  0xce   : > { %v1263_v25 = vpop.f32.mrf.mxu3  ;;  %v1220_v28 = vadd.f32 %v1219_v24, %v1176_v14  ;;  %v1178_v30 = vpop.f32.mrf.mxu1 }
  0xcf   : > { %v1179_v33 = vadd.f32 %v1178_v30, %v1134_v29 }
  0xd0   : > { %v3239_v34 = vadd.f32 %v1263_v25, %v1220_v28  ;;  %1314 = vmatmul.bf16.gmra.mxu0 %v2312_v26 }
  0xd1   : > { %1358 = vmatmul.bf16.gmra.mxu1 %v2316_v27 }
  0xd2   : > { %1402 = vmatmul.bf16.gmra.mxu2 %v2320_v31 }
  0xd3   : > { %1446 = vmatmul.bf16.gmra.mxu3 %v2324_v32 }
  0xd5   : > { %v1222_v35 = vpop.f32.mrf.mxu2  ;;  %v1136_v38 = vpop.f32.mrf.mxu0 }
  0xd6   : > { %v1266_v36 = vpop.f32.mrf.mxu3  ;;  %v1223_v37 = vadd.f32 %v1222_v35, %v1179_v33  ;;  %v1180_v39 = vpop.f32.mrf.mxu1  ;;  %v2407_v33 = vld [vmem:[%s3105_s27 + $0x190] sm:$0xf] }
  0xd7   : > { %v1181_v40 = vadd.f32 %v1180_v39, %v1136_v38  ;;  %v2736_v35 = vld [vmem:[%s3105_s27 + $0x1ac] sm:$0xf0]  ;;  %v2415_v38 = vld [vmem:[%s3105_s27 + $0x198] sm:$0xf] }
  0xd8   : > { %v3241_v41 = vadd.f32 %v1266_v36, %v1223_v37  ;;  %v2732_v36 = vld [vmem:[%s3105_s27 + $0x194] sm:$0xf]  ;;  %v2737_v39 = vld [vmem:[%s3105_s27 + $0x1b4] sm:$0xf0]  ;;  %v2408_v45 = vor.u32 %v2736_v35, %v2407_v33 }
  0xd9   : > { %v2409_v37 = vld [vmem:[%s3105_s27 + $0x1b0] sm:$0xf0] }
  0xda   : > { %v2412_v46 = vor.u32 %v2732_v36, %v2409_v37 }
  0xdd   : > { %v1224_v50 = vpop.f32.mrf.mxu2  ;;  %v1139_v56 = vpop.f32.mrf.mxu0 }
  0xde   : > { %v1268_v51 = vpop.f32.mrf.mxu3  ;;  %v1225_v55 = vadd.f32 %v1224_v50, %v1181_v40  ;;  %v1183_v57 = vpop.f32.mrf.mxu1  ;;  %v2733_v40 = vld [vmem:[%s3105_s27 + $0x19c] sm:$0xf]  ;;  %v2416_v50 = vor.u32 %v2737_v39, %v2415_v38 }
  0xdf   : > { %v1184_v60 = vadd.f32 %v1183_v57, %v1139_v56 }
  0xe0   : > { %v3251_v61 = vadd.f32 %v1268_v51, %v1225_v55  ;;  %1319 = vmatmul.bf16.gmra.mxu0 %v2344_v52  ;;  %v2420_v51 = vor.u32 %v2733_v40, %v2417_v42 }
  0xe1   : > { %1363 = vmatmul.bf16.gmra.mxu1 %v2348_v54 }
  0xe2   : > { %1407 = vmatmul.bf16.gmra.mxu2 %v2352_v58 }
  0xe3   : > { %1451 = vmatmul.bf16.gmra.mxu3 %v2356_v59 }
  0xe5   : > { %v1227_v62 = vpop.f32.mrf.mxu2  ;;  %v1141_v1 = vpop.f32.mrf.mxu0 }
  0xe6   : > { %v1271_v63 = vpop.f32.mrf.mxu3  ;;  %v1228_v0 = vadd.f32 %v1227_v62, %v1184_v60  ;;  %v1185_v2 = vpop.f32.mrf.mxu1 }
  0xe7   : > { %v1186_v3 = vadd.f32 %v1185_v2, %v1141_v1 }
  0xe8   : > { %v3253_v4 = vadd.f32 %v1271_v63, %v1228_v0 }
  0xed   : > { %v1229_v14 = vpop.f32.mrf.mxu2  ;;  %v1144_v20 = vpop.f32.mrf.mxu0 }
  0xee   : > { %v1273_v16 = vpop.f32.mrf.mxu3  ;;  %v1230_v19 = vadd.f32 %v1229_v14, %v1186_v3  ;;  %v1188_v21 = vpop.f32.mrf.mxu1 }
  0xef   : > { %v1189_v24 = vadd.f32 %v1188_v21, %v1144_v20 }
  0xf0   : > { %v3263_v25 = vadd.f32 %v1273_v16, %v1230_v19  ;;  %1324 = vmatmul.bf16.gmra.mxu0 %v2376_v17 }
  0xf1   : > { %1368 = vmatmul.bf16.gmra.mxu1 %v2380_v18 }
  0xf2   : > { %1412 = vmatmul.bf16.gmra.mxu2 %v2384_v22 }
  0xf3   : > { %1456 = vmatmul.bf16.gmra.mxu3 %v2388_v23 }
  0xf5   : > { %v1232_v26 = vpop.f32.mrf.mxu2  ;;  %v1146_v29 = vpop.f32.mrf.mxu0 }
  0xf6   : > { %v1276_v27 = vpop.f32.mrf.mxu3  ;;  %v1233_v28 = vadd.f32 %v1232_v26, %v1189_v24  ;;  %v1190_v30 = vpop.f32.mrf.mxu1 }
  0xf7   : > { %v1191_v31 = vadd.f32 %v1190_v30, %v1146_v29 }
  0xf8   : > { %v3265_v32 = vadd.f32 %v1276_v27, %v1233_v28 }
  0xfd   : > { %v1234_v43 = vpop.f32.mrf.mxu2  ;;  %v1149_v48 = vpop.f32.mrf.mxu0 }
  0xfe   : > { %v1278_v44 = vpop.f32.mrf.mxu3  ;;  %v1235_v47 = vadd.f32 %v1234_v43, %v1191_v31  ;;  %v1193_v49 = vpop.f32.mrf.mxu1 }
  0xff   : > { %v1194_v52 = vadd.f32 %v1193_v49, %v1149_v48 }
 0x100   : > { %v3275_v54 = vadd.f32 %v1278_v44, %v1235_v47  ;;  %1329 = vmatmul.bf16.gmra.mxu0 %v2408_v45 }
 0x101   : > { %1373 = vmatmul.bf16.gmra.mxu1 %v2412_v46 }
 0x102   : > { %1417 = vmatmul.bf16.gmra.mxu2 %v2416_v50 }
 0x103   : > { %1461 = vmatmul.bf16.gmra.mxu3 %v2420_v51 }
 0x105   : > { %v1237_v55 = vpop.f32.mrf.mxu2  ;;  %v1151_v58 = vpop.f32.mrf.mxu0 }
 0x106   : > { %v1281_v56 = vpop.f32.mrf.mxu3  ;;  %v1238_v57 = vadd.f32 %v1237_v55, %v1194_v52  ;;  %v1195_v59 = vpop.f32.mrf.mxu1 }
 0x107   : > { %v1196_v60 = vadd.f32 %v1195_v59, %v1151_v58 }
 0x108   : > { %v3277_v62 = vadd.f32 %v1281_v56, %v1238_v57 }
 0x10d   : > { %v1239_v63 = vpop.f32.mrf.mxu2  ;;  %v1154_v2 = vpop.f32.mrf.mxu0 }
 0x10e   : > { %v1283_v0 = vpop.f32.mrf.mxu3  ;;  %v1240_v1 = vadd.f32 %v1239_v63, %v1196_v60  ;;  %v1198_v3 = vpop.f32.mrf.mxu1 }
 0x10f   : > { %v1199_v5 = vadd.f32 %v1198_v3, %v1154_v2 }
 0x110   : > { %v3279_v6 = vadd.f32 %v1283_v0, %v1240_v1 }
 0x115   : > { %v1242_v7 = vpop.f32.mrf.mxu2  ;;  %v1156_v11 = vpop.f32.mrf.mxu0 }
 0x116   : > { %v1286_v9 = vpop.f32.mrf.mxu3  ;;  %v1243_v10 = vadd.f32 %v1242_v7, %v1199_v5  ;;  %v1200_v12 = vpop.f32.mrf.mxu1 }
 0x117   : > { %v1201_v13 = vadd.f32 %v1200_v12, %v1156_v11 }
 0x118   : > { %v3281_v14 = vadd.f32 %v1286_v9, %v1243_v10 }
 0x11d   : > { %v1244_v16 = vpop.f32.mrf.mxu2  ;;  %v1300_v19 = vpop.f32.mrf.mxu0 }
 0x11e   : > { %v1288_v17 = vpop.f32.mrf.mxu3  ;;  %v1245_v18 = vadd.f32 %v1244_v16, %v1201_v13  ;;  %v1344_v20 = vpop.f32.mrf.mxu1  ;;  %v1301_v22 = vadd.f32 %v1300_v19, %v3217_v53 }
 0x120   : > { %v3283_v21 = vadd.f32 %v1288_v17, %v1245_v18  ;;  %v1345_v23 = vadd.f32 %v1344_v20, %v1301_v22 }
 0x125   : > { %v1388_v24 = vpop.f32.mrf.mxu2  ;;  %v1302_v28 = vpop.f32.mrf.mxu0 }
 0x126   : > { %v1432_v26 = vpop.f32.mrf.mxu3  ;;  %v1389_v27 = vadd.f32 %v1388_v24, %v1345_v23  ;;  %v1346_v29 = vpop.f32.mrf.mxu1  ;;  %v1303_v31 = vadd.f32 %v1302_v28, %v3227_v8 }
 0x128   : > { %v1433_v30 = vadd.f32 %v1432_v26, %v1389_v27  ;;  %v1347_v33 = vadd.f32 %v1346_v29, %v1303_v31 }
 0x12a   : > { %1469 = vst [vmem:[%s3288_s29] sm:$0xff] %v1433_v30 }
 0x12d   : > { %v1390_v35 = vpop.f32.mrf.mxu2  ;;  %v1305_v37 = vpop.f32.mrf.mxu0 }
 0x12e   : > { %v1434_v36 = vpop.f32.mrf.mxu3  ;;  %v1391_v53 = vadd.f32 %v1390_v35, %v1347_v33  ;;  %v1349_v38 = vpop.f32.mrf.mxu1  ;;  %v1306_v40 = vadd.f32 %v1305_v37, %v3229_v15 }
 0x130   : > { %v1435_v39 = vadd.f32 %v1434_v36, %v1391_v53  ;;  %v1350_v42 = vadd.f32 %v1349_v38, %v1306_v40 }
 0x132   : > { %1470 = vst [vmem:[%s3288_s29 + $0x8] sm:$0xff] %v1435_v39 }
 0x135   : > { %v1393_v43 = vpop.f32.mrf.mxu2  ;;  %v1307_v45 = vpop.f32.mrf.mxu0 }
 0x136   : > { %v1437_v8 = vpop.f32.mrf.mxu3  ;;  %v1394_v44 = vadd.f32 %v1393_v43, %v1350_v42  ;;  %v1351_v46 = vpop.f32.mrf.mxu1  ;;  %v1308_v48 = vadd.f32 %v1307_v45, %v3239_v34 }
 0x138   : > { %v1438_v47 = vadd.f32 %v1437_v8, %v1394_v44  ;;  %v1352_v49 = vadd.f32 %v1351_v46, %v1308_v48 }
 0x13a   : > { %1471 = vst [vmem:[%s3288_s29 + $0x10] sm:$0xff] %v1438_v47 }
 0x13d   : > { %v1395_v50 = vpop.f32.mrf.mxu2  ;;  %v1310_v55 = vpop.f32.mrf.mxu0 }
 0x13e   : > { %v1439_v51 = vpop.f32.mrf.mxu3  ;;  %v1396_v52 = vadd.f32 %v1395_v50, %v1352_v49  ;;  %v1354_v56 = vpop.f32.mrf.mxu1  ;;  %v1311_v57 = vadd.f32 %v1310_v55, %v3241_v41 }
 0x140   : > { %v1440_v15 = vadd.f32 %v1439_v51, %v1396_v52  ;;  %v1355_v58 = vadd.f32 %v1354_v56, %v1311_v57 }
 0x142   : > { %1472 = vst [vmem:[%s3288_s29 + $0x18] sm:$0xff] %v1440_v15 }
 0x145   : > { %v1398_v59 = vpop.f32.mrf.mxu2  ;;  %v1312_v0 = vpop.f32.mrf.mxu0 }
 0x146   : > { %v1442_v60 = vpop.f32.mrf.mxu3  ;;  %v1399_v63 = vadd.f32 %v1398_v59, %v1355_v58  ;;  %v1356_v1 = vpop.f32.mrf.mxu1  ;;  %v1313_v2 = vadd.f32 %v1312_v0, %v3251_v61 }
 0x148   : > { %v1443_v34 = vadd.f32 %v1442_v60, %v1399_v63  ;;  %v1357_v3 = vadd.f32 %v1356_v1, %v1313_v2 }
 0x14a   : > { %1473 = vst [vmem:[%s3288_s29 + $0x20] sm:$0xff] %v1443_v34 }
 0x14d   : > { %v1400_v5 = vpop.f32.mrf.mxu2  ;;  %v1315_v10 = vpop.f32.mrf.mxu0 }
 0x14e   : > { %v1444_v7 = vpop.f32.mrf.mxu3  ;;  %v1401_v9 = vadd.f32 %v1400_v5, %v1357_v3  ;;  %v1359_v11 = vpop.f32.mrf.mxu1  ;;  %v1316_v12 = vadd.f32 %v1315_v10, %v3253_v4 }
 0x150   : > { %v1445_v41 = vadd.f32 %v1444_v7, %v1401_v9  ;;  %v1360_v13 = vadd.f32 %v1359_v11, %v1316_v12 }
 0x152   : > { %1474 = vst [vmem:[%s3288_s29 + $0x28] sm:$0xff] %v1445_v41 }
 0x155   : > { %v1403_v16 = vpop.f32.mrf.mxu2  ;;  %v1317_v19 = vpop.f32.mrf.mxu0 }
 0x156   : > { %v1447_v17 = vpop.f32.mrf.mxu3  ;;  %v1404_v18 = vadd.f32 %v1403_v16, %v1360_v13  ;;  %v1361_v20 = vpop.f32.mrf.mxu1  ;;  %v1318_v22 = vadd.f32 %v1317_v19, %v3263_v25 }
 0x158   : > { %v1448_v61 = vadd.f32 %v1447_v17, %v1404_v18  ;;  %v1362_v23 = vadd.f32 %v1361_v20, %v1318_v22 }
 0x15a   : > { %1475 = vst [vmem:[%s3288_s29 + $0x30] sm:$0xff] %v1448_v61 }
 0x15d   : > { %v1405_v24 = vpop.f32.mrf.mxu2  ;;  %v1320_v28 = vpop.f32.mrf.mxu0 }
 0x15e   : > { %v1449_v26 = vpop.f32.mrf.mxu3  ;;  %v1406_v27 = vadd.f32 %v1405_v24, %v1362_v23  ;;  %v1364_v29 = vpop.f32.mrf.mxu1  ;;  %v1321_v30 = vadd.f32 %v1320_v28, %v3265_v32 }
 0x160   : > { %v1450_v4 = vadd.f32 %v1449_v26, %v1406_v27  ;;  %v1365_v31 = vadd.f32 %v1364_v29, %v1321_v30 }
 0x162   : > { %1476 = vst [vmem:[%s3288_s29 + $0x38] sm:$0xff] %v1450_v4 }
 0x165   : > { %v1408_v33 = vpop.f32.mrf.mxu2  ;;  %v1322_v53 = vpop.f32.mrf.mxu0 }
 0x166   : > { %v1452_v35 = vpop.f32.mrf.mxu3  ;;  %v1409_v36 = vadd.f32 %v1408_v33, %v1365_v31  ;;  %v1366_v37 = vpop.f32.mrf.mxu1  ;;  %v1323_v38 = vadd.f32 %v1322_v53, %v3275_v54 }
 0x168   : > { %v1453_v25 = vadd.f32 %v1452_v35, %v1409_v36  ;;  %v1367_v39 = vadd.f32 %v1366_v37, %v1323_v38 }
 0x16a   : > { %1477 = vst [vmem:[%s3288_s29 + $0x40] sm:$0xff] %v1453_v25 }
 0x16d   : > { %v1410_v40 = vpop.f32.mrf.mxu2  ;;  %v1325_v8 = vpop.f32.mrf.mxu0 }
 0x16e   : > { %v1454_v42 = vpop.f32.mrf.mxu3  ;;  %v1411_v43 = vadd.f32 %v1410_v40, %v1367_v39  ;;  %v1369_v44 = vpop.f32.mrf.mxu1  ;;  %v1326_v45 = vadd.f32 %v1325_v8, %v3277_v62 }
 0x170   : > { %v1455_v32 = vadd.f32 %v1454_v42, %v1411_v43  ;;  %v1370_v46 = vadd.f32 %v1369_v44, %v1326_v45 }
 0x172   : > { %1478 = vst [vmem:[%s3288_s29 + $0x48] sm:$0xff] %v1455_v32 }
 0x175   : > { %v1413_v47 = vpop.f32.mrf.mxu2  ;;  %v1327_v50 = vpop.f32.mrf.mxu0 }
 0x176   : > { %v1457_v48 = vpop.f32.mrf.mxu3  ;;  %v1414_v49 = vadd.f32 %v1413_v47, %v1370_v46  ;;  %v1371_v51 = vpop.f32.mrf.mxu1  ;;  %v1328_v52 = vadd.f32 %v1327_v50, %v3279_v6 }
 0x178   : > { %v1458_v54 = vadd.f32 %v1457_v48, %v1414_v49  ;;  %v1372_v55 = vadd.f32 %v1371_v51, %v1328_v52 }
 0x17a   : > { %1479 = vst [vmem:[%s3288_s29 + $0x50] sm:$0xff] %v1458_v54 }
 0x17d   : > { %v1415_v56 = vpop.f32.mrf.mxu2  ;;  %v1330_v58 = vpop.f32.mrf.mxu0 }
 0x17e   : > { %v1459_v15 = vpop.f32.mrf.mxu3  ;;  %v1416_v57 = vadd.f32 %v1415_v56, %v1372_v55  ;;  %v1331_v62 = vadd.f32 %v1330_v58, %v3281_v14  ;;  %v1374_v60 = vpop.f32.mrf.mxu1 }
 0x180   : > { %v1460_v59 = vadd.f32 %v1459_v15, %v1416_v57  ;;  %v1375_v63 = vadd.f32 %v1374_v60, %v1331_v62 }
 0x182   : > { %1480 = vst [vmem:[%s3288_s29 + $0x58] sm:$0xff] %v1460_v59 }
 0x185   : > { %v1418_v0 = vpop.f32.mrf.mxu2  ;;  %v1332_v2 = vpop.f32.mrf.mxu0 }
 0x186   : > { %v1462_v1 = vpop.f32.mrf.mxu3  ;;  %v1419_v34 = vadd.f32 %v1418_v0, %v1375_v63  ;;  %v1333_v6 = vadd.f32 %v1332_v2, %v3283_v21  ;;  %v1376_v5 = vpop.f32.mrf.mxu1 }
 0x188   : > { %v1463_v3 = vadd.f32 %v1462_v1, %v1419_v34  ;;  %v1377_v7 = vadd.f32 %v1376_v5, %v1333_v6 }
 0x18a   : > { %1481 = vst [vmem:[%s3288_s29 + $0x60] sm:$0xff] %v1463_v3 }
 0x18d   : > { %v1420_v9 = vpop.f32.mrf.mxu2 }
 0x18e   : > { %v1421_v10 = vadd.f32 %v1420_v9, %v1377_v7  ;;  %v1464_v11 = vpop.f32.mrf.mxu3  ;;  %1486 = sbr.rel (%p2677_p5) target bundleno = 745 (0x2e9), region = 40 }
 0x190   : > { %v1465_v41 = vadd.f32 %v1464_v11, %v1421_v10 }
 0x192   : > { %1482 = vst [vmem:[%s3288_s29 + $0x68] sm:$0xff] %v1465_v41 }
 0x199   : > { %v3317_v14 = vld [vmem:[#allocation2] sm:$0xff]  ;;  %v3319_v12 = vld [vmem:[#allocation2 + $0x8] sm:$0xff]  ;;  %v3321_v13 = vld [vmem:[#allocation2 + $0x10] sm:$0xff] }
 0x19a   : > { %3901 = vst [vmem:[#allocation3_spill] sm:$0xff] %v3317_v14  ;;  %v1543_v21 = vadd.f32 %v3319_v12, %v3317_v14  ;;  %v3325_v16 = vld [vmem:[#allocation2 + $0x18] sm:$0xff]  ;;  %v3328_v18 = vld [vmem:[#allocation2 + $0x20] sm:$0xff]  ;;  %v3331_v20 = vld [vmem:[#allocation2 + $0x28] sm:$0xff] }
 0x19b   : > { %3902 = vst [vmem:[#allocation4_spill] sm:$0xff] %v3319_v12  ;;  %v3334_v22 = vld [vmem:[#allocation2 + $0x30] sm:$0xff]  ;;  %v3337_v24 = vld [vmem:[#allocation2 + $0x38] sm:$0xff]  ;;  %v3340_v27 = vld [vmem:[#allocation2 + $0x40] sm:$0xff] }
 0x19c   : > { %3903 = vst [vmem:[#allocation5_spill] sm:$0xff] %v3321_v13  ;;  %v1544_v17 = vadd.f32 %v1543_v21, %v3321_v13  ;;  %v3343_v29 = vld [vmem:[#allocation2 + $0x48] sm:$0xff]  ;;  %v3346_v30 = vld [vmem:[#allocation2 + $0x50] sm:$0xff]  ;;  %v3349_v33 = vld [vmem:[#allocation2 + $0x58] sm:$0xff] }
 0x19d   : > { %3904 = vst [vmem:[#allocation6_spill] sm:$0xff] %v3325_v16  ;;  %v3352_v36 = vld [vmem:[#allocation2 + $0x60] sm:$0xff]  ;;  %v3355_v37 = vld [vmem:[#allocation2 + $0x68] sm:$0xff]  ;;  %v3358_v38 = vld [vmem:[#allocation2 + $0x70] sm:$0xff] }
 0x19e   : > { %3905 = vst [vmem:[#allocation7_spill] sm:$0xff] %v3328_v18  ;;  %v1545_v19 = vadd.f32 %v1544_v17, %v3325_v16  ;;  %v3361_v40 = vld [vmem:[#allocation2 + $0x78] sm:$0xff]  ;;  %v3364_v43 = vld [vmem:[#allocation2 + $0x80] sm:$0xff]  ;;  %v3367_v44 = vld [vmem:[#allocation2 + $0x88] sm:$0xff] }
 0x19f   : > { %3906 = vst [vmem:[#allocation8_spill] sm:$0xff] %v3331_v20  ;;  %v3370_v45 = vld [vmem:[#allocation2 + $0x90] sm:$0xff]  ;;  %v3373_v47 = vld [vmem:[#allocation2 + $0x98] sm:$0xff]  ;;  %v3376_v49 = vld [vmem:[#allocation2 + $0xa0] sm:$0xff] }
 0x1a0   : > { %v1546_v61 = vadd.f32 %v1545_v19, %v3328_v18  ;;  %v3379_v51 = vld [vmem:[#allocation2 + $0xa8] sm:$0xff]  ;;  %v3382_v52 = vld [vmem:[#allocation2 + $0xb0] sm:$0xff]  ;;  %v3385_v56 = vld [vmem:[#allocation2 + $0xb8] sm:$0xff] }
 0x1a1   : > { %v3388_v57 = vld [vmem:[#allocation2 + $0xc0] sm:$0xff]  ;;  %v3391_v59 = vld [vmem:[#allocation2 + $0xc8] sm:$0xff]  ;;  %v3394_v60 = vld [vmem:[#allocation2 + $0xd0] sm:$0xff] }
 0x1a2   : > { %v1547_v23 = vadd.f32 %v1546_v61, %v3331_v20  ;;  %v3397_v0 = vld [vmem:[#allocation2 + $0xd8] sm:$0xff]  ;;  %v3400_v34 = vld [vmem:[#allocation2 + $0xe0] sm:$0xff]  ;;  %v3403_v3 = vld [vmem:[#allocation2 + $0xe8] sm:$0xff] }
 0x1a3   : > { %v3406_v5 = vld [vmem:[#allocation2 + $0xf0] sm:$0xff]  ;;  %v3409_v9 = vld [vmem:[#allocation2 + $0xf8] sm:$0xff]  ;;  %v3412_v11 = vld [vmem:[#allocation2 + $0x100] sm:$0xff] }
 0x1a4   : > { %v1548_v26 = vadd.f32 %v1547_v23, %v3334_v22  ;;  %v3415_v21 = vld [vmem:[#allocation2 + $0x108] sm:$0xff]  ;;  %v3418_v19 = vld [vmem:[#allocation2 + $0x110] sm:$0xff]  ;;  %v3421_v23 = vld [vmem:[#allocation2 + $0x118] sm:$0xff] }
 0x1a6   : > { %v1549_v28 = vadd.f32 %v1548_v26, %v3337_v24 }
 0x1a8   : > { %v1550_v4 = vadd.f32 %v1549_v28, %v3340_v27  ;;  %v3424_v28 = vld [vmem:[#allocation2 + $0x120] sm:$0xff] }
 0x1aa   : > { %v1551_v31 = vadd.f32 %v1550_v4, %v3343_v29 }
 0x1ac   : > { %v1552_v35 = vadd.f32 %v1551_v31, %v3346_v30  ;;  %v3427_v31 = vld [vmem:[#allocation2 + $0x128] sm:$0xff] }
 0x1ae   : > { %v1553_v53 = vadd.f32 %v1552_v35, %v3349_v33 }
 0x1b0   : > { %v1554_v25 = vadd.f32 %v1553_v53, %v3352_v36  ;;  %v3430_v53 = vld [vmem:[#allocation2 + $0x130] sm:$0xff] }
 0x1b2   : > { %v1555_v39 = vadd.f32 %v1554_v25, %v3355_v37 }
 0x1b4   : > { %v1556_v42 = vadd.f32 %v1555_v39, %v3358_v38  ;;  %v3433_v39 = vld [vmem:[#allocation2 + $0x138] sm:$0xff] }
 0x1b6   : > { %v1557_v8 = vadd.f32 %v1556_v42, %v3361_v40 }
 0x1b8   : > { %v1558_v32 = vadd.f32 %v1557_v8, %v3364_v43  ;;  %v3436_v8 = vld [vmem:[#allocation2 + $0x140] sm:$0xff] }
 0x1ba   : > { %v1559_v46 = vadd.f32 %v1558_v32, %v3367_v44 }
 0x1bc   : > { %v1560_v48 = vadd.f32 %v1559_v46, %v3370_v45  ;;  %v3439_v46 = vld [vmem:[#allocation2 + $0x148] sm:$0xff] }
 0x1be   : > { %v1561_v50 = vadd.f32 %v1560_v48, %v3373_v47 }
 0x1c0   : > { %v1562_v54 = vadd.f32 %v1561_v50, %v3376_v49  ;;  %v3442_v50 = vld [vmem:[#allocation2 + $0x150] sm:$0xff] }
 0x1c2   : > { %v1563_v55 = vadd.f32 %v1562_v54, %v3379_v51 }
 0x1c4   : > { %v1564_v15 = vadd.f32 %v1563_v55, %v3382_v52  ;;  %v3445_v55 = vld [vmem:[#allocation2 + $0x158] sm:$0xff] }
 0x1c6   : > { %v1565_v58 = vadd.f32 %v1564_v15, %v3385_v56 }
 0x1c8   : > { %v1566_v62 = vadd.f32 %v1565_v58, %v3388_v57  ;;  %v3448_v58 = vld [vmem:[#allocation2 + $0x160] sm:$0xff] }
 0x1c9   : > { %3907 = vst [vmem:[#allocation9_spill] sm:$0xff] %v3448_v58 }
 0x1ca   : > { %v1567_v63 = vadd.f32 %v1566_v62, %v3391_v59 }
 0x1cc   : > { %v1568_v1 = vadd.f32 %v1567_v63, %v3394_v60  ;;  %v3451_v63 = vld [vmem:[#allocation2 + $0x168] sm:$0xff] }
 0x1cd   : > { %3908 = vst [vmem:[#allocation10_spill] sm:$0xff] %v3451_v63 }
 0x1ce   : > { %v1569_v2 = vadd.f32 %v1568_v1, %v3397_v0 }
 0x1d0   : > { %v1570_v6 = vadd.f32 %v1569_v2, %v3400_v34  ;;  %v3454_v2 = vld [vmem:[#allocation2 + $0x170] sm:$0xff] }
 0x1d1   : > { %3909 = vst [vmem:[#allocation11_spill] sm:$0xff] %v3454_v2 }
 0x1d2   : > { %v1571_v7 = vadd.f32 %v1570_v6, %v3403_v3 }
 0x1d4   : > { %v1572_v10 = vadd.f32 %v1571_v7, %v3406_v5  ;;  %v3457_v7 = vld [vmem:[#allocation2 + $0x178] sm:$0xff] }
 0x1d5   : > { %3910 = vst [vmem:[#allocation12_spill] sm:$0xff] %v3457_v7 }
 0x1d6   : > { %v1573_v41 = vadd.f32 %v1572_v10, %v3409_v9 }
 0x1d8   : > { %v1574_v17 = vadd.f32 %v1573_v41, %v3412_v11  ;;  %v3460_v41 = vld [vmem:[#allocation2 + $0x180] sm:$0xff] }
 0x1d9   : > { %3911 = vst [vmem:[#allocation13_spill] sm:$0xff] %v3460_v41 }
 0x1da   : > { %v1575_v61 = vadd.f32 %v1574_v17, %v3415_v21 }
 0x1dc   : > { %v1576_v26 = vadd.f32 %v1575_v61, %v3418_v19  ;;  %v3463_v61 = vld [vmem:[#allocation2 + $0x188] sm:$0xff] }
 0x1dd   : > { %3912 = vst [vmem:[#allocation14_spill] sm:$0xff] %v3463_v61 }
 0x1de   : > { %v1577_v4 = vadd.f32 %v1576_v26, %v3421_v23 }
 0x1e0   : > { %v1578_v35 = vadd.f32 %v1577_v4, %v3424_v28  ;;  %v3466_v4 = vld [vmem:[#allocation2 + $0x190] sm:$0xff] }
 0x1e1   : > { %3913 = vst [vmem:[#allocation15_spill] sm:$0xff] %v3466_v4 }
 0x1e2   : > { %v1579_v25 = vadd.f32 %v1578_v35, %v3427_v31 }
 0x1e4   : > { %v1580_v42 = vadd.f32 %v1579_v25, %v3430_v53  ;;  %v3469_v25 = vld [vmem:[#allocation2 + $0x198] sm:$0xff] }
 0x1e5   : > { %3914 = vst [vmem:[#allocation16_spill] sm:$0xff] %v3469_v25 }
 0x1e6   : > { %v1581_v32 = vadd.f32 %v1580_v42, %v3433_v39 }
 0x1e8   : > { %v1582_v48 = vadd.f32 %v1581_v32, %v3436_v8  ;;  %v3472_v32 = vld [vmem:[#allocation2 + $0x1a0] sm:$0xff] }
 0x1e9   : > { %3915 = vst [vmem:[#allocation17_spill] sm:$0xff] %v3472_v32 }
 0x1ea   : > { %v1583_v54 = vadd.f32 %v1582_v48, %v3439_v46 }
 0x1ec   : > { %v1584_v15 = vadd.f32 %v1583_v54, %v3442_v50  ;;  %v3475_v54 = vld [vmem:[#allocation2 + $0x1a8] sm:$0xff] }
 0x1ed   : > { %3916 = vst [vmem:[#allocation18_spill] sm:$0xff] %v3475_v54 }
 0x1ee   : > { %v1585_v62 = vadd.f32 %v1584_v15, %v3445_v55 }
 0x1f0   : > { %v1586_v1 = vadd.f32 %v1585_v62, %v3448_v58 }
 0x1f2   : > { %v1587_v6 = vadd.f32 %v1586_v1, %v3451_v63  ;;  %v3479_v1 = vld [vmem:[#allocation2 + $0x1b0] sm:$0xff] }
 0x1f3   : > { %3917 = vst [vmem:[#allocation19_spill] sm:$0xff] %v3479_v1 }
 0x1f4   : > { %v1588_v10 = vadd.f32 %v1587_v6, %v3454_v2 }
 0x1f6   : > { %v1589_v17 = vadd.f32 %v1588_v10, %v3457_v7  ;;  %v3482_v10 = vld [vmem:[#allocation2 + $0x1b8] sm:$0xff] }
 0x1f7   : > { %3918 = vst [vmem:[#allocation20_spill] sm:$0xff] %v3482_v10 }
 0x1f8   : > { %v1590_v26 = vadd.f32 %v1589_v17, %v3460_v41 }
 0x1fa   : > { %v1591_v35 = vadd.f32 %v1590_v26, %v3463_v61 }
 0x1fc   : > { %v1592_v42 = vadd.f32 %v1591_v35, %v3466_v4 }
 0x1fe   : > { %v1593_v48 = vadd.f32 %v1592_v42, %v3469_v25 }
 0x200   : > { %v1594_v15 = vadd.f32 %v1593_v48, %v3472_v32 }
 0x202   : > { %v1595_v62 = vadd.f32 %v1594_v15, %v3475_v54 }
 0x204   : > { %v1596_v6 = vadd.f32 %v1595_v62, %v3479_v1 }
 0x206   : > { %v1597_v17 = vadd.f32 %v1596_v6, %v3482_v10 }
 0x208   : > { %v1598_v26 = vrot.slane %v1597_v17, 4 }
 0x20a   : > { %v1599_v35 = vadd.f32 %v1598_v26, %v1597_v17 }
 0x20c   : > { %v1600_v4 = vrot.slane %v1599_v35, 2 }
 0x20e   : > { %v1601_v61 = vadd.f32 %v1600_v4, %v1599_v35 }
 0x210   : > { %v1602_v41 = vrot.slane %v1601_v61, 1 }
 0x212   : > { %v1603_v42 = vadd.f32 %v1602_v41, %v1601_v61 }
 0x214   : > { %v3485_v25 = vmul.f32 0.0025510204, %v1603_v42 }
 0x216   : > { %v1605_v48 = vsub.f32 %v3317_v14, %v3485_v25  ;;  %v1606_v15 = vsub.f32 %v3319_v12, %v3485_v25  ;;  %v1607_v62 = vsub.f32 %v3321_v13, %v3485_v25  ;;  %v1608_v6 = vsub.f32 %v3325_v16, %v3485_v25 }
 0x217   : > { %v1609_v4 = vsub.f32 %v3328_v18, %v3485_v25  ;;  %v1610_v61 = vsub.f32 %v3331_v20, %v3485_v25  ;;  %v1611_v42 = vsub.f32 %v3334_v22, %v3485_v25  ;;  %v1612_v13 = vsub.f32 %v3337_v24, %v3485_v25 }
 0x218   : > { %v1661_v10 = vmul.f32 %v1605_v48, %v1605_v48  ;;  %v1662_v17 = vmul.f32 %v1606_v15, %v1606_v15  ;;  %v1663_v41 = vmul.f32 %v1607_v62, %v1607_v62  ;;  %v1664_v26 = vmul.f32 %v1608_v6, %v1608_v6 }
 0x219   : > { %v1665_v12 = vmul.f32 %v1609_v4, %v1609_v4  ;;  %v1666_v16 = vmul.f32 %v1610_v61, %v1610_v61  ;;  %v1613_v15 = vsub.f32 %v3340_v27, %v3485_v25  ;;  %v1667_v18 = vmul.f32 %v1611_v42, %v1611_v42 }
 0x21a   : > { %v1717_v35 = vadd.f32 %v1662_v17, %v1661_v10  ;;  %v1614_v20 = vsub.f32 %v3343_v29, %v3485_v25  ;;  %v1668_v6 = vmul.f32 %v1612_v13, %v1612_v13  ;;  %v1615_v17 = vsub.f32 %v3346_v30, %v3485_v25 }
 0x21b   : > { %v1669_v4 = vmul.f32 %v1613_v15, %v1613_v15 }
 0x21c   : > { %v1718_v14 = vadd.f32 %v1717_v35, %v1663_v41  ;;  %v1616_v35 = vsub.f32 %v3349_v33, %v3485_v25  ;;  %v1670_v61 = vmul.f32 %v1614_v20, %v1614_v20  ;;  %v1671_v42 = vmul.f32 %v1615_v17, %v1615_v17 }
 0x21e   : > { %v1719_v48 = vadd.f32 %v1718_v14, %v1664_v26  ;;  %v1617_v26 = vsub.f32 %v3352_v36, %v3485_v25  ;;  %v1672_v13 = vmul.f32 %v1616_v35, %v1616_v35 }
 0x220   : > { %v1720_v62 = vadd.f32 %v1719_v48, %v1665_v12  ;;  %v1618_v48 = vsub.f32 %v3355_v37, %v3485_v25  ;;  %v1673_v15 = vmul.f32 %v1617_v26, %v1617_v26 }
 0x222   : > { %v1721_v10 = vadd.f32 %v1720_v62, %v1666_v16  ;;  %v1619_v62 = vsub.f32 %v3358_v38, %v3485_v25  ;;  %v1674_v20 = vmul.f32 %v1618_v48, %v1618_v48 }
 0x224   : > { %v1722_v41 = vadd.f32 %v1721_v10, %v1667_v18  ;;  %v1620_v10 = vsub.f32 %v3361_v40, %v3485_v25  ;;  %v1675_v17 = vmul.f32 %v1619_v62, %v1619_v62 }
 0x226   : > { %v1723_v14 = vadd.f32 %v1722_v41, %v1668_v6  ;;  %v1621_v41 = vsub.f32 %v3364_v43, %v3485_v25  ;;  %v1676_v35 = vmul.f32 %v1620_v10, %v1620_v10 }
 0x228   : > { %v1724_v12 = vadd.f32 %v1723_v14, %v1669_v4  ;;  %v1622_v14 = vsub.f32 %v3367_v44, %v3485_v25  ;;  %v1677_v26 = vmul.f32 %v1621_v41, %v1621_v41 }
 0x22a   : > { %v1725_v16 = vadd.f32 %v1724_v12, %v1670_v61  ;;  %v1623_v12 = vsub.f32 %v3370_v45, %v3485_v25  ;;  %v1678_v48 = vmul.f32 %v1622_v14, %v1622_v14 }
 0x22c   : > { %v1726_v18 = vadd.f32 %v1725_v16, %v1671_v42  ;;  %v1624_v16 = vsub.f32 %v3373_v47, %v3485_v25  ;;  %v1679_v62 = vmul.f32 %v1623_v12, %v1623_v12 }
 0x22e   : > { %v1727_v6 = vadd.f32 %v1726_v18, %v1672_v13  ;;  %v1625_v18 = vsub.f32 %v3376_v49, %v3485_v25  ;;  %v1680_v10 = vmul.f32 %v1624_v16, %v1624_v16 }
 0x230   : > { %v1728_v4 = vadd.f32 %v1727_v6, %v1673_v15  ;;  %v1626_v6 = vsub.f32 %v3379_v51, %v3485_v25  ;;  %v1681_v41 = vmul.f32 %v1625_v18, %v1625_v18 }
 0x232   : > { %v1729_v61 = vadd.f32 %v1728_v4, %v1674_v20  ;;  %v1627_v4 = vsub.f32 %v3382_v52, %v3485_v25  ;;  %v1682_v14 = vmul.f32 %v1626_v6, %v1626_v6 }
 0x234   : > { %v1730_v42 = vadd.f32 %v1729_v61, %v1675_v17  ;;  %v1628_v61 = vsub.f32 %v3385_v56, %v3485_v25  ;;  %v1683_v12 = vmul.f32 %v1627_v4, %v1627_v4 }
 0x236   : > { %v1731_v13 = vadd.f32 %v1730_v42, %v1676_v35  ;;  %v1629_v42 = vsub.f32 %v3388_v57, %v3485_v25  ;;  %v1684_v16 = vmul.f32 %v1628_v61, %v1628_v61 }
 0x238   : > { %v1732_v15 = vadd.f32 %v1731_v13, %v1677_v26  ;;  %v1630_v13 = vsub.f32 %v3391_v59, %v3485_v25  ;;  %v1685_v18 = vmul.f32 %v1629_v42, %v1629_v42 }
 0x23a   : > { %v1733_v20 = vadd.f32 %v1732_v15, %v1678_v48  ;;  %v1631_v15 = vsub.f32 %v3394_v60, %v3485_v25  ;;  %v1686_v6 = vmul.f32 %v1630_v13, %v1630_v13 }
 0x23c   : > { %v1734_v17 = vadd.f32 %v1733_v20, %v1679_v62  ;;  %v1632_v20 = vsub.f32 %v3397_v0, %v3485_v25  ;;  %v1687_v4 = vmul.f32 %v1631_v15, %v1631_v15 }
 0x23e   : > { %v1735_v35 = vadd.f32 %v1734_v17, %v1680_v10  ;;  %v1633_v17 = vsub.f32 %v3400_v34, %v3485_v25  ;;  %v1688_v61 = vmul.f32 %v1632_v20, %v1632_v20 }
 0x240   : > { %v1736_v26 = vadd.f32 %v1735_v35, %v1681_v41  ;;  %v1634_v35 = vsub.f32 %v3403_v3, %v3485_v25  ;;  %v1689_v42 = vmul.f32 %v1633_v17, %v1633_v17 }
 0x242   : > { %v1737_v48 = vadd.f32 %v1736_v26, %v1682_v14  ;;  %v1635_v26 = vsub.f32 %v3406_v5, %v3485_v25  ;;  %v1690_v13 = vmul.f32 %v1634_v35, %v1634_v35 }
 0x244   : > { %v1738_v62 = vadd.f32 %v1737_v48, %v1683_v12  ;;  %v1636_v48 = vsub.f32 %v3409_v9, %v3485_v25  ;;  %v1691_v15 = vmul.f32 %v1635_v26, %v1635_v26 }
 0x246   : > { %v1739_v10 = vadd.f32 %v1738_v62, %v1684_v16  ;;  %v1637_v62 = vsub.f32 %v3412_v11, %v3485_v25  ;;  %v1692_v20 = vmul.f32 %v1636_v48, %v1636_v48 }
 0x248   : > { %v1740_v41 = vadd.f32 %v1739_v10, %v1685_v18  ;;  %v1638_v10 = vsub.f32 %v3415_v21, %v3485_v25  ;;  %v1693_v17 = vmul.f32 %v1637_v62, %v1637_v62 }
 0x24a   : > { %v1741_v14 = vadd.f32 %v1740_v41, %v1686_v6  ;;  %v1639_v41 = vsub.f32 %v3418_v19, %v3485_v25  ;;  %v1694_v35 = vmul.f32 %v1638_v10, %v1638_v10 }
 0x24c   : > { %v1742_v12 = vadd.f32 %v1741_v14, %v1687_v4  ;;  %v1640_v14 = vsub.f32 %v3421_v23, %v3485_v25  ;;  %v1695_v26 = vmul.f32 %v1639_v41, %v1639_v41 }
 0x24e   : > { %v1743_v16 = vadd.f32 %v1742_v12, %v1688_v61  ;;  %v1641_v12 = vsub.f32 %v3424_v28, %v3485_v25  ;;  %v1696_v48 = vmul.f32 %v1640_v14, %v1640_v14 }
 0x250   : > { %v1744_v18 = vadd.f32 %v1743_v16, %v1689_v42  ;;  %v1642_v16 = vsub.f32 %v3427_v31, %v3485_v25  ;;  %v1697_v62 = vmul.f32 %v1641_v12, %v1641_v12 }
 0x252   : > { %v1745_v6 = vadd.f32 %v1744_v18, %v1690_v13  ;;  %v1643_v18 = vsub.f32 %v3430_v53, %v3485_v25  ;;  %v1698_v10 = vmul.f32 %v1642_v16, %v1642_v16 }
 0x254   : > { %v1746_v4 = vadd.f32 %v1745_v6, %v1691_v15  ;;  %v1644_v6 = vsub.f32 %v3433_v39, %v3485_v25  ;;  %v1699_v41 = vmul.f32 %v1643_v18, %v1643_v18 }
 0x256   : > { %v1747_v61 = vadd.f32 %v1746_v4, %v1692_v20  ;;  %v1645_v4 = vsub.f32 %v3436_v8, %v3485_v25  ;;  %v1700_v14 = vmul.f32 %v1644_v6, %v1644_v6 }
 0x258   : > { %v1748_v42 = vadd.f32 %v1747_v61, %v1693_v17  ;;  %v1646_v61 = vsub.f32 %v3439_v46, %v3485_v25  ;;  %v1701_v12 = vmul.f32 %v1645_v4, %v1645_v4 }
 0x25a   : > { %v1749_v13 = vadd.f32 %v1748_v42, %v1694_v35  ;;  %v1647_v42 = vsub.f32 %v3442_v50, %v3485_v25  ;;  %v1702_v16 = vmul.f32 %v1646_v61, %v1646_v61 }
 0x25c   : > { %v1750_v15 = vadd.f32 %v1749_v13, %v1695_v26  ;;  %v1648_v13 = vsub.f32 %v3445_v55, %v3485_v25  ;;  %v1703_v18 = vmul.f32 %v1647_v42, %v1647_v42 }
 0x25e   : > { %v1751_v20 = vadd.f32 %v1750_v15, %v1696_v48  ;;  %v1649_v15 = vsub.f32 %v3448_v58, %v3485_v25  ;;  %v1704_v6 = vmul.f32 %v1648_v13, %v1648_v13 }
 0x260   : > { %v1752_v17 = vadd.f32 %v1751_v20, %v1697_v62  ;;  %v1650_v20 = vsub.f32 %v3451_v63, %v3485_v25  ;;  %v1705_v4 = vmul.f32 %v1649_v15, %v1649_v15 }
 0x262   : > { %v1753_v35 = vadd.f32 %v1752_v17, %v1698_v10  ;;  %v1651_v17 = vsub.f32 %v3454_v2, %v3485_v25  ;;  %v1706_v61 = vmul.f32 %v1650_v20, %v1650_v20 }
 0x264   : > { %v1754_v26 = vadd.f32 %v1753_v35, %v1699_v41  ;;  %v1652_v35 = vsub.f32 %v3457_v7, %v3485_v25  ;;  %v1707_v42 = vmul.f32 %v1651_v17, %v1651_v17 }
 0x266   : > { %v1755_v48 = vadd.f32 %v1754_v26, %v1700_v14  ;;  %v3919_v26 = vld [vmem:[#allocation13_spill] sm:$0xff]  ;;  %v1708_v13 = vmul.f32 %v1652_v35, %v1652_v35 }
 0x267   : > { %v1653_v58 = vsub.f32 %v3919_v26, %v3485_v25 }
 0x268   : > { %v1756_v62 = vadd.f32 %v1755_v48, %v1701_v12  ;;  %v3920_v48 = vld [vmem:[#allocation14_spill] sm:$0xff] }
 0x269   : > { %v1654_v63 = vsub.f32 %v3920_v48, %v3485_v25  ;;  %v1709_v15 = vmul.f32 %v1653_v58, %v1653_v58 }
 0x26a   : > { %v1757_v10 = vadd.f32 %v1756_v62, %v1702_v16  ;;  %v3921_v62 = vld [vmem:[#allocation15_spill] sm:$0xff] }
 0x26b   : > { %v1655_v2 = vsub.f32 %v3921_v62, %v3485_v25  ;;  %v1710_v20 = vmul.f32 %v1654_v63, %v1654_v63 }
 0x26c   : > { %v1758_v41 = vadd.f32 %v1757_v10, %v1703_v18  ;;  %v3922_v10 = vld [vmem:[#allocation16_spill] sm:$0xff] }
 0x26d   : > { %v1656_v7 = vsub.f32 %v3922_v10, %v3485_v25  ;;  %v1711_v17 = vmul.f32 %v1655_v2, %v1655_v2 }
 0x26e   : > { %v1759_v14 = vadd.f32 %v1758_v41, %v1704_v6  ;;  %v1657_v41 = vsub.f32 %v3472_v32, %v3485_v25 }
 0x26f   : > { %v1712_v35 = vmul.f32 %v1656_v7, %v1656_v7 }
 0x270   : > { %v1760_v12 = vadd.f32 %v1759_v14, %v1705_v4  ;;  %v1658_v14 = vsub.f32 %v3475_v54, %v3485_v25  ;;  %v1713_v58 = vmul.f32 %v1657_v41, %v1657_v41 }
 0x272   : > { %v1761_v16 = vadd.f32 %v1760_v12, %v1706_v61  ;;  %v1659_v12 = vsub.f32 %v3479_v1, %v3485_v25  ;;  %v1714_v63 = vmul.f32 %v1658_v14, %v1658_v14 }
 0x274   : > { %v1762_v18 = vadd.f32 %v1761_v16, %v1707_v42  ;;  %v3923_v16 = vld [vmem:[#allocation20_spill] sm:$0xff] }
 0x275   : > { %v1660_v10 = vsub.f32 %v3923_v16, %v3485_v25 }
 0x276   : > { %v1763_v6 = vadd.f32 %v1762_v18, %v1708_v13  ;;  %v1715_v18 = vmul.f32 %v1659_v12, %v1659_v12 }
 0x277   : > { %v1716_v32 = vmul.f32 %v1660_v10, %v1660_v10 }
 0x278   : > { %v1764_v4 = vadd.f32 %v1763_v6, %v1709_v15 }
 0x27a   : > { %v1765_v61 = vadd.f32 %v1764_v4, %v1710_v20  ;;  %v1778_v20 = vmul.f32 56.0, %v3485_v25 }
 0x27c   : > { %v1766_v42 = vadd.f32 %v1765_v61, %v1711_v17  ;;  %v1779_v41 = vmul.f32 %v1778_v20, %v3485_v25  ;;  %v3926_v20 = vld [vmem:[#allocation5_spill] sm:$0xff] }
 0x27e   : > { %v1767_v13 = vadd.f32 %v1766_v42, %v1712_v35 }
 0x280   : > { %v1768_v62 = vadd.f32 %v1767_v13, %v1713_v58 }
 0x282   : > { %v1769_v2 = vadd.f32 %v1768_v62, %v1714_v63 }
 0x284   : > { %v1770_v15 = vadd.f32 %v1769_v2, %v1715_v18  ;;  %v3924_v2 = vld [vmem:[#allocation3_spill] sm:$0xff] }
 0x286   : > { %v1771_v6 = vadd.f32 %v1770_v15, %v1716_v32 }
 0x288   : > { %v1772_v48 = vrot.slane %v1771_v6, 4 }
 0x28a   : > { %v1773_v54 = vadd.f32 %v1772_v48, %v1771_v6  ;;  %v3925_v6 = vld [vmem:[#allocation4_spill] sm:$0xff] }
 0x28c   : > { %v1774_v7 = vrot.slane %v1773_v54, 2 }
 0x28e   : > { %v1775_v4 = vadd.f32 %v1774_v7, %v1773_v54  ;;  %v1794_v54 = vld [vmem:[%s3875_s2] sm:$0x1] }
 0x290   : > { %v1776_v1 = vrot.slane %v1775_v4, 1 }
 0x292   : > { %v1777_v17 = vadd.f32 %v1776_v1, %v1775_v4 }
 0x294   : > { %v1780_v61 = vsub.f32 %v1777_v17, %v1779_v41  ;;  %v3927_v41 = vld [vmem:[#allocation6_spill] sm:$0xff] }
 0x296   : > { %v1781_v16 = vmul.f32 0.0025510204, %v1780_v61  ;;  %v3928_v61 = vld [vmem:[#allocation7_spill] sm:$0xff] }
 0x298   : > { %v1782_v14 = vmax.f32 %v1781_v16, 0.0  ;;  %v1796_v16 = vld [vmem:[%s3876_s3] sm:$0x1] }
 0x29a   : > { %v1783_v35 = vadd.f32 1e-05, %v1782_v14 }
 0x29c   : > { %2994 = vrsqrt.f32 %v1783_v35  ;;  %vm1790_vm0 = vweird.f32 %v1783_v35 }
 0x2a2   : > { %v2995_v12 = vpop.eup %2994 }
 0x2a3   : > { %v1785_v10 = vmul.f32 %v2995_v12, %v1783_v35  ;;  %vm1791_vm1 = vweird.f32 %v2995_v12  ;;  %v3929_v35 = vld [vmem:[#allocation8_spill] sm:$0xff] }
 0x2a4   : > { %vm1792_vm2 = vmor %vm1790_vm0, %vm1791_vm1 }
 0x2a5   : > { %v1786_v62 = vmul.f32 %v2995_v12, %v1785_v10 }
 0x2a7   : > { %v1787_v58 = vmul.f32 0.5, %v1786_v62 }
 0x2a9   : > { %v1788_v32 = vsub.f32 1.5, %v1787_v58 }
 0x2ab   : > { %v1789_v48 = vmul.f32 %v2995_v12, %v1788_v32 }
 0x2ad   : > { %v1793_v42 = vsel %vm1792_vm2, %v2995_v12, %v1789_v48 }
 0x2ae   : > { %v1795_v1 = vmul.f32 %v1794_v54, %v1793_v42 }
 0x2b0   : > { %v1797_v63 = vmul.f32 %v1795_v1, %v3485_v25  ;;  %v3608_v13 = vperm.slane %v1795_v1, 0 }
 0x2b2   : > { %v1798_v18 = vsub.f32 %v1796_v16, %v1797_v63  ;;  %v1802_v15 = vmul.f32 %v3608_v13, %v3924_v2  ;;  %v1803_v7 = vmul.f32 %v3608_v13, %v3925_v6  ;;  %v1804_v4 = vmul.f32 %v3608_v13, %v3926_v20 }
 0x2b3   : > { %v1805_v17 = vmul.f32 %v3608_v13, %v3927_v41  ;;  %v1806_v14 = vmul.f32 %v3608_v13, %v3928_v61  ;;  %v1807_v25 = vmul.f32 %v3608_v13, %v3929_v35  ;;  %v1808_v12 = vmul.f32 %v3608_v13, %v3334_v22 }
 0x2b4   : > { %v3624_v10 = vperm.slane %v1798_v18, 0  ;;  %v1809_v62 = vmul.f32 %v3608_v13, %v3337_v24  ;;  %v1810_v58 = vmul.f32 %v3608_v13, %v3340_v27  ;;  %v1811_v32 = vmul.f32 %v3608_v13, %v3343_v29 }
 0x2b5   : > { %v1812_v48 = vmul.f32 %v3608_v13, %v3346_v30  ;;  %v1813_v54 = vmul.f32 %v3608_v13, %v3349_v33  ;;  %v1814_v22 = vmul.f32 %v3608_v13, %v3352_v36  ;;  %v1815_v42 = vmul.f32 %v3608_v13, %v3355_v37 }
 0x2b6   : > { %v1861_v24 = vadd.f32 %v3624_v10, %v1802_v15  ;;  %v1862_v1 = vadd.f32 %v3624_v10, %v1803_v7  ;;  %v1863_v27 = vadd.f32 %v3624_v10, %v1804_v4  ;;  %v1864_v29 = vadd.f32 %v3624_v10, %v1805_v17 }
 0x2b7   : > { %v1865_v16 = vadd.f32 %v3624_v10, %v1806_v14  ;;  %v1866_v30 = vadd.f32 %v3624_v10, %v1807_v25  ;;  %v1867_v33 = vadd.f32 %v3624_v10, %v1808_v12  ;;  %v1868_v63 = vadd.f32 %v3624_v10, %v1809_v62 }
 0x2b8   : > { %v1917_v36 = vmax.f32 %v1861_v24, 0.0  ;;  %v1918_v18 = vmax.f32 %v1862_v1, 0.0  ;;  %v1919_v2 = vmax.f32 %v1863_v27, 0.0  ;;  %v1920_v37 = vmax.f32 %v1864_v29, 0.0 }
 0x2b9   : > { %v1921_v6 = vmax.f32 %v1865_v16, 0.0  ;;  %v1922_v15 = vmax.f32 %v1866_v30, 0.0  ;;  %v1923_v20 = vmax.f32 %v1867_v33, 0.0  ;;  %v1924_v7 = vmax.f32 %v1868_v63, 0.0 }
 0x2ba   : > { %v2805_v41 = vpack.c.bf16 %v1918_v18, %v1917_v36  ;;  %v2810_v4 = vpack.c.bf16 %v1920_v37, %v1919_v2  ;;  %v1869_v17 = vadd.f32 %v3624_v10, %v1810_v58  ;;  %v1870_v61 = vadd.f32 %v3624_v10, %v1811_v32 }
 0x2bb   : > { %v2815_v14 = vpack.c.bf16 %v1922_v15, %v1921_v6  ;;  %v2820_v35 = vpack.c.bf16 %v1924_v7, %v1923_v20  ;;  %v1871_v25 = vadd.f32 %v3624_v10, %v1812_v48  ;;  %v1872_v12 = vadd.f32 %v3624_v10, %v1813_v54 }
 0x2bc   : > { %2806 = vst [vmem:[%s3877_s4] sm:$0xff] %v2805_v41   ;;  %v1925_v62 = vmax.f32 %v1869_v17, 0.0  ;;  %v1926_v24 = vmax.f32 %v1870_v61, 0.0  ;;  %v1873_v1 = vadd.f32 %v3624_v10, %v1814_v22  ;;  %v1874_v27 = vadd.f32 %v3624_v10, %v1815_v42 }
 0x2bd   : > { %2942 = vst [vmem:[%s3877_s4 + $0x8] sm:$0xff] %v2810_v4   ;;  %v1927_v58 = vmax.f32 %v1871_v25, 0.0  ;;  %v1928_v32 = vmax.f32 %v1872_v12, 0.0  ;;  %v1816_v48 = vmul.f32 %v3608_v13, %v3358_v38  ;;  %v1817_v54 = vmul.f32 %v3608_v13, %v3361_v40 }
 0x2be   : > { %2943 = vst [vmem:[%s3877_s4 + $0x10] sm:$0xff] %v2815_v14   ;;  %v2825_v29 = vpack.c.bf16 %v1926_v24, %v1925_v62  ;;  %v1929_v22 = vmax.f32 %v1873_v1, 0.0  ;;  %v1930_v16 = vmax.f32 %v1874_v27, 0.0  ;;  %v1818_v42 = vmul.f32 %v3608_v13, %v3364_v43 }
 0x2bf   : > { %2944 = vst [vmem:[%s3877_s4 + $0x18] sm:$0xff] %v2820_v35   ;;  %v2830_v30 = vpack.c.bf16 %v1928_v32, %v1927_v58  ;;  %v1875_v38 = vadd.f32 %v3624_v10, %v1816_v48  ;;  %v1876_v33 = vadd.f32 %v3624_v10, %v1817_v54  ;;  %v1819_v40 = vmul.f32 %v3608_v13, %v3367_v44 }
 0x2c0   : > { %2945 = vst [vmem:[%s3877_s4 + $0x20] sm:$0xff] %v2825_v29   ;;  %v2835_v63 = vpack.c.bf16 %v1930_v16, %v1929_v22  ;;  %v1877_v36 = vadd.f32 %v3624_v10, %v1818_v42  ;;  %v1820_v43 = vmul.f32 %v3608_v13, %v3370_v45  ;;  %v1821_v18 = vmul.f32 %v3608_v13, %v3373_v47 }
 0x2c1   : > { %2946 = vst [vmem:[%s3877_s4 + $0x28] sm:$0xff] %v2830_v30   ;;  %v1931_v2 = vmax.f32 %v1875_v38, 0.0  ;;  %v1932_v37 = vmax.f32 %v1876_v33, 0.0  ;;  %v1878_v44 = vadd.f32 %v3624_v10, %v1819_v40  ;;  %v1822_v6 = vmul.f32 %v3608_v13, %v3376_v49 }
 0x2c2   : > { %2947 = vst [vmem:[%s3877_s4 + $0x30] sm:$0xff] %v2835_v63   ;;  %v1933_v15 = vmax.f32 %v1877_v36, 0.0  ;;  %v1879_v45 = vadd.f32 %v3624_v10, %v1820_v43  ;;  %v1880_v47 = vadd.f32 %v3624_v10, %v1821_v18  ;;  %v1823_v20 = vmul.f32 %v3608_v13, %v3379_v51 }
 0x2c3   : > { %v2840_v7 = vpack.c.bf16 %v1932_v37, %v1931_v2  ;;  %v1934_v41 = vmax.f32 %v1878_v44, 0.0  ;;  %v1881_v4 = vadd.f32 %v3624_v10, %v1822_v6  ;;  %v1824_v17 = vmul.f32 %v3608_v13, %v3382_v52 }
 0x2c4   : > { %v1935_v49 = vmax.f32 %v1879_v45, 0.0  ;;  %v1936_v61 = vmax.f32 %v1880_v47, 0.0  ;;  %v1882_v14 = vadd.f32 %v3624_v10, %v1823_v20  ;;  %v1825_v35 = vmul.f32 %v3608_v13, %v3385_v56 }
 0x2c5   : > { %2948 = vst [vmem:[%s3877_s4 + $0x38] sm:$0xff] %v2840_v7   ;;  %v2845_v25 = vpack.c.bf16 %v1934_v41, %v1933_v15  ;;  %v1937_v51 = vmax.f32 %v1881_v4, 0.0  ;;  %v1883_v12 = vadd.f32 %v3624_v10, %v1824_v17  ;;  %v1826_v62 = vmul.f32 %v3608_v13, %v3388_v57 }
 0x2c6   : > { %v2850_v24 = vpack.c.bf16 %v1936_v61, %v1935_v49  ;;  %v1938_v52 = vmax.f32 %v1882_v14, 0.0  ;;  %v1884_v1 = vadd.f32 %v3624_v10, %v1825_v35  ;;  %v1827_v27 = vmul.f32 %v3608_v13, %v3391_v59 }
 0x2c7   : > { %2949 = vst [vmem:[%s3877_s4 + $0x40] sm:$0xff] %v2845_v25   ;;  %v1939_v56 = vmax.f32 %v1883_v12, 0.0  ;;  %v1885_v58 = vadd.f32 %v3624_v10, %v1826_v62  ;;  %v1828_v32 = vmul.f32 %v3608_v13, %v3394_v60  ;;  %v1829_v57 = vmul.f32 %v3608_v13, %v3397_v0 }
 0x2c8   : > { %2950 = vst [vmem:[%s3877_s4 + $0x48] sm:$0xff] %v2850_v24   ;;  %v2855_v48 = vpack.c.bf16 %v1938_v52, %v1937_v51  ;;  %v1940_v54 = vmax.f32 %v1884_v1, 0.0  ;;  %v1886_v59 = vadd.f32 %v3624_v10, %v1827_v27  ;;  %v1830_v29 = vmul.f32 %v3608_v13, %v3400_v34 }
 0x2c9   : > { %v1941_v22 = vmax.f32 %v1885_v58, 0.0  ;;  %v1887_v16 = vadd.f32 %v3624_v10, %v1828_v32  ;;  %v1888_v42 = vadd.f32 %v3624_v10, %v1829_v57  ;;  %v1831_v60 = vmul.f32 %v3608_v13, %v3403_v3 }
 0x2ca   : > { %2951 = vst [vmem:[%s3877_s4 + $0x50] sm:$0xff] %v2855_v48   ;;  %v2860_v0 = vpack.c.bf16 %v1940_v54, %v1939_v56  ;;  %v1942_v30 = vmax.f32 %v1886_v59, 0.0  ;;  %v1889_v38 = vadd.f32 %v3624_v10, %v1830_v29  ;;  %v1832_v33 = vmul.f32 %v3608_v13, %v3406_v5  ;;  %v3930_v48 = vld [vmem:[#allocation9_spill] sm:$0xff] }
 0x2cb   : > { %v1943_v34 = vmax.f32 %v1887_v16, 0.0  ;;  %v1944_v40 = vmax.f32 %v1888_v42, 0.0  ;;  %v1890_v63 = vadd.f32 %v3624_v10, %v1831_v60  ;;  %v1833_v36 = vmul.f32 %v3608_v13, %v3409_v9 }
 0x2cc   : > { %2952 = vst [vmem:[%s3877_s4 + $0x58] sm:$0xff] %v2860_v0   ;;  %v2865_v3 = vpack.c.bf16 %v1942_v30, %v1941_v22  ;;  %v1945_v43 = vmax.f32 %v1889_v38, 0.0  ;;  %v1891_v18 = vadd.f32 %v3624_v10, %v1832_v33  ;;  %v1834_v2 = vmul.f32 %v3608_v13, %v3412_v11  ;;  %v3932_v0 = vld [vmem:[#allocation11_spill] sm:$0xff] }
 0x2cd   : > { %v2870_v37 = vpack.c.bf16 %v1944_v40, %v1943_v34  ;;  %v1946_v5 = vmax.f32 %v1890_v63, 0.0  ;;  %v1892_v44 = vadd.f32 %v3624_v10, %v1833_v36  ;;  %v1835_v6 = vmul.f32 %v3608_v13, %v3415_v21  ;;  %v3933_v40 = vld [vmem:[#allocation12_spill] sm:$0xff] }
 0x2ce   : > { %2953 = vst [vmem:[%s3877_s4 + $0x60] sm:$0xff] %v2865_v3   ;;  %v1947_v9 = vmax.f32 %v1891_v18, 0.0  ;;  %v1893_v15 = vadd.f32 %v3624_v10, %v1834_v2  ;;  %v1836_v45 = vmul.f32 %v3608_v13, %v3418_v19  ;;  %v1837_v11 = vmul.f32 %v3608_v13, %v3421_v23 }
 0x2cf   : > { %2954 = vst [vmem:[%s3877_s4 + $0x68] sm:$0xff] %v2870_v37   ;;  %v2875_v47 = vpack.c.bf16 %v1946_v5, %v1945_v43  ;;  %v1948_v20 = vmax.f32 %v1892_v44, 0.0  ;;  %v1894_v21 = vadd.f32 %v3624_v10, %v1835_v6  ;;  %v1838_v7 = vmul.f32 %v3608_v13, %v3424_v28  ;;  %v3934_v44 = vld [vmem:[#allocation14_spill] sm:$0xff] }
 0x2d0   : > { %v1949_v41 = vmax.f32 %v1893_v15, 0.0  ;;  %v1895_v4 = vadd.f32 %v3624_v10, %v1836_v45  ;;  %v1896_v17 = vadd.f32 %v3624_v10, %v1837_v11  ;;  %v1839_v19 = vmul.f32 %v3608_v13, %v3427_v31  ;;  %v3935_v45 = vld [vmem:[#allocation15_spill] sm:$0xff] }
 0x2d1   : > { %2955 = vst [vmem:[%s3877_s4 + $0x70] sm:$0xff] %v2875_v47   ;;  %v2880_v23 = vpack.c.bf16 %v1948_v20, %v1947_v9  ;;  %v1950_v49 = vmax.f32 %v1894_v21, 0.0  ;;  %v1897_v61 = vadd.f32 %v3624_v10, %v1838_v7  ;;  %v1840_v14 = vmul.f32 %v3608_v13, %v3430_v53  ;;  %v3936_v47 = vld [vmem:[#allocation16_spill] sm:$0xff] }
 0x2d2   : > { %v1951_v28 = vmax.f32 %v1895_v4, 0.0  ;;  %v1952_v35 = vmax.f32 %v1896_v17, 0.0  ;;  %v1898_v25 = vadd.f32 %v3624_v10, %v1839_v19  ;;  %v1841_v51 = vmul.f32 %v3608_v13, %v3433_v39 }
 0x2d3   : > { %2956 = vst [vmem:[%s3877_s4 + $0x78] sm:$0xff] %v2880_v23   ;;  %v2885_v31 = vpack.c.bf16 %v1950_v49, %v1949_v41  ;;  %v1953_v12 = vmax.f32 %v1897_v61, 0.0  ;;  %v1899_v62 = vadd.f32 %v3624_v10, %v1840_v14  ;;  %v1842_v24 = vmul.f32 %v3608_v13, %v3436_v8  ;;  %v3937_v41 = vld [vmem:[#allocation17_spill] sm:$0xff]  ;;  %v3938_v49 = vld [vmem:[#allocation18_spill] sm:$0xff] }
 0x2d4   : > { %v2890_v52 = vpack.c.bf16 %v1952_v35, %v1951_v28  ;;  %v1954_v53 = vmax.f32 %v1898_v25, 0.0  ;;  %v1900_v1 = vadd.f32 %v3624_v10, %v1841_v51  ;;  %v1843_v27 = vmul.f32 %v3608_v13, %v3439_v46  ;;  %v3939_v25 = vld [vmem:[#allocation19_spill] sm:$0xff] }
 0x2d5   : > { %2957 = vst [vmem:[%s3877_s4 + $0x80] sm:$0xff] %v2885_v31   ;;  %v1955_v39 = vmax.f32 %v1899_v62, 0.0  ;;  %v1901_v56 = vadd.f32 %v3624_v10, %v1842_v24  ;;  %v1844_v58 = vmul.f32 %v3608_v13, %v3442_v50  ;;  %v1845_v8 = vmul.f32 %v3608_v13, %v3445_v55  ;;  %v3931_v50 = vld [vmem:[#allocation10_spill] sm:$0xff]  ;;  %v3940_v24 = vld [vmem:[#allocation20_spill] sm:$0xff] }
 0x2d6   : > { %2958 = vst [vmem:[%s3877_s4 + $0x88] sm:$0xff] %v2890_v52   ;;  %v2895_v32 = vpack.c.bf16 %v1954_v53, %v1953_v12  ;;  %v1956_v57 = vmax.f32 %v1900_v1, 0.0  ;;  %v1902_v46 = vadd.f32 %v3624_v10, %v1843_v27  ;;  %v1846_v54 = vmul.f32 %v3608_v13, %v3930_v48 }
 0x2d7   : > { %v1957_v59 = vmax.f32 %v1901_v56, 0.0  ;;  %v1903_v29 = vadd.f32 %v3624_v10, %v1844_v58  ;;  %v1904_v22 = vadd.f32 %v3624_v10, %v1845_v8  ;;  %v1847_v16 = vmul.f32 %v3608_v13, %v3931_v50 }
 0x2d8   : > { %2959 = vst [vmem:[%s3877_s4 + $0x90] sm:$0xff] %v2895_v32   ;;  %v2900_v55 = vpack.c.bf16 %v1956_v57, %v1955_v39  ;;  %v1958_v42 = vmax.f32 %v1902_v46, 0.0  ;;  %v1905_v60 = vadd.f32 %v3624_v10, %v1846_v54  ;;  %v1848_v30 = vmul.f32 %v3608_v13, %v3932_v0 }
 0x2d9   : > { %v1959_v38 = vmax.f32 %v1903_v29, 0.0  ;;  %v1960_v33 = vmax.f32 %v1904_v22, 0.0  ;;  %v1906_v34 = vadd.f32 %v3624_v10, %v1847_v16  ;;  %v1849_v63 = vmul.f32 %v3608_v13, %v3933_v40 }
 0x2da   : > { %2960 = vst [vmem:[%s3877_s4 + $0x98] sm:$0xff] %v2900_v55   ;;  %v2905_v36 = vpack.c.bf16 %v1958_v42, %v1957_v59  ;;  %v1961_v3 = vmax.f32 %v1905_v60, 0.0  ;;  %v1907_v43 = vadd.f32 %v3624_v10, %v1848_v30  ;;  %v1850_v18 = vmul.f32 %v3608_v13, %v3919_v26 }
 0x2db   : > { %v2910_v2 = vpack.c.bf16 %v1960_v33, %v1959_v38  ;;  %v1962_v37 = vmax.f32 %v1906_v34, 0.0  ;;  %v1908_v5 = vadd.f32 %v3624_v10, %v1849_v63  ;;  %v1851_v6 = vmul.f32 %v3608_v13, %v3934_v44 }
 0x2dc   : > { %2961 = vst [vmem:[%s3877_s4 + $0xa0] sm:$0xff] %v2905_v36   ;;  %v1963_v9 = vmax.f32 %v1907_v43, 0.0  ;;  %v1909_v15 = vadd.f32 %v3624_v10, %v1850_v18  ;;  %v1852_v11 = vmul.f32 %v3608_v13, %v3935_v45  ;;  %v1853_v26 = vmul.f32 %v3608_v13, %v3936_v47 }
 0x2dd   : > { %2962 = vst [vmem:[%s3877_s4 + $0xa8] sm:$0xff] %v2910_v2   ;;  %v2915_v20 = vpack.c.bf16 %v1962_v37, %v1961_v3  ;;  %v1964_v21 = vmax.f32 %v1908_v5, 0.0  ;;  %v1910_v7 = vadd.f32 %v3624_v10, %v1851_v6  ;;  %v1854_v4 = vmul.f32 %v3608_v13, %v3937_v41 }
 0x2de   : > { %v1965_v17 = vmax.f32 %v1909_v15, 0.0  ;;  %v1911_v19 = vadd.f32 %v3624_v10, %v1852_v11  ;;  %v1912_v23 = vadd.f32 %v3624_v10, %v1853_v26  ;;  %v1855_v61 = vmul.f32 %v3608_v13, %v3938_v49 }
 0x2df   : > { %2963 = vst [vmem:[%s3877_s4 + $0xb0] sm:$0xff] %v2915_v20   ;;  %v2920_v14 = vpack.c.bf16 %v1964_v21, %v1963_v9  ;;  %v1966_v28 = vmax.f32 %v1910_v7, 0.0  ;;  %v1913_v35 = vadd.f32 %v3624_v10, %v1854_v4  ;;  %v1856_v51 = vmul.f32 %v3608_v13, %v3939_v25 }
 0x2e0   : > { %v1967_v31 = vmax.f32 %v1911_v19, 0.0  ;;  %v1968_v12 = vmax.f32 %v1912_v23, 0.0  ;;  %v1914_v62 = vadd.f32 %v3624_v10, %v1855_v61  ;;  %v1857_v52 = vmul.f32 %v3608_v13, %v3940_v24 }
 0x2e1   : > { %2964 = vst [vmem:[%s3877_s4 + $0xb8] sm:$0xff] %v2920_v14   ;;  %v2925_v53 = vpack.c.bf16 %v1966_v28, %v1965_v17  ;;  %v1969_v1 = vmax.f32 %v1913_v35, 0.0  ;;  %v1915_v27 = vadd.f32 %v3624_v10, %v1856_v51 }
 0x2e2   : > { %v2930_v39 = vpack.c.bf16 %v1968_v12, %v1967_v31  ;;  %v1970_v56 = vmax.f32 %v1914_v62, 0.0  ;;  %v1916_v58 = vadd.f32 %v3624_v10, %v1857_v52 }
 0x2e3   : > { %2965 = vst [vmem:[%s3877_s4 + $0xc0] sm:$0xff] %v2925_v53   ;;  %v1971_v8 = vmax.f32 %v1915_v27, 0.0 }
 0x2e4   : > { %2966 = vst [vmem:[%s3877_s4 + $0xc8] sm:$0xff] %v2930_v39   ;;  %v2935_v13 = vpack.c.bf16 %v1970_v56, %v1969_v1  ;;  %v1972_v32 = vmax.f32 %v1916_v58, 0.0 }
 0x2e6   : > { %2967 = vst [vmem:[%s3877_s4 + $0xd0] sm:$0xff] %v2935_v13   ;;  %v2940_v57 = vpack.c.bf16 %v1972_v32, %v1971_v8 }
 0x2e8   : > { %2968 = vst [vmem:[%s3877_s4 + $0xd8] sm:$0xff] %v2940_v57  }
 0x2e9 PF: > { %s14_s17 = sadd.s32 1, %s3018_s17   ;;  %s3941_s15 = smov %s3014_s16 }
 0x2ea   : > { %p11_p6 = scmp.ge.s32.totalorder %s14_s17, 6   ;;  %s3942_s16 = smov %s3944_s18 }
 0x2ec   :  { %13 = sbr.rel (!%p11_p6) target bundleno = 2 (0x2), region = 80 }

// kernel: generator_forward.7
= control target key start
LH: loop header
LB: loop body
LE: loop exit
PB: predicated region body
PF: predicated region fallthrough
CT: control target
= control target key end

     0   :  { %s2528_s9 = smov 0   ;;  %s2841_s0 = inlined_call_operand.vmem [shape: bf16[4,400,512], index: 0, kind: input, shape index: {}]   ;;  %s2842_s1 = inlined_call_operand.vmem [shape: bf16[4,512,128], index: 1, kind: input, shape index: {}]   ;;  %s2843_s2 = inlined_call_operand.vmem [shape: f32[4,400,128], index: 2, kind: output, shape index: {}]  }
   0x1 LB: > { %s1723_s10 = sadd.s32 4294967295, %s2511_s9   ;;  %p1727_p0 = scmp.ge.s32.totalorder %s2511_s9, 1  ;;  %s2511_s9 = sphi %s2528_s9, %s12_s9  }
   0x2   : > { %p122_p1 = scmp.lt.s32.totalorder %s2511_s9, 5 }
   0x4   : > { %p123_p2 = pnand %p1727_p0, %p122_p1 }
   0x5   : > { %p149_p3 = scmp.lt.s32.totalorder (!%p123_p2), %s1723_s10, 3 }
   0x6   : > { %126 = sbr.rel (%p123_p2) target bundleno = 584 (0x248), region = 28 }
   0xb   : > { %s2845_s10 = smov (!%p149_p3, %s1723_s10), 3 }
   0xc   : > { %s2262_s11 = sshll.u32 %s2845_s10, 8  ;;  %s2395_s15 = smul.u32 800, %s2845_s10 }
   0xd   : > { %s2542_s14 = scalar_lea.vmem %s2842_s1, %s2262_s11  ;;  %s2396_s19 = smul.u32 400, %s2845_s10 }
   0xe   : > { %v2370_v0 = vld [vmem:[%s2542_s14 + $0x38] sm:$0xff]  ;;  %v2369_v4 = vld [vmem:[%s2542_s14 + $0x30] sm:$0xff]  ;;  %v2368_v8 = vld [vmem:[%s2542_s14 + $0x28] sm:$0xff]  ;;  %s2574_s18 = scalar_lea.vmem %s2841_s0, %s2395_s15 }
   0xf   : > { %v2378_v1 = vld [vmem:[%s2542_s14 + $0x78] sm:$0xff]  ;;  %1020 = vmatpush.bf16.msra.mxu0 %v2370_v0  ;;  %v2377_v5 = vld [vmem:[%s2542_s14 + $0x70] sm:$0xff]  ;;  %v2376_v9 = vld [vmem:[%s2542_s14 + $0x68] sm:$0xff]  ;;  %s2666_s22 = scalar_lea.vmem %s2843_s2, %s2396_s19 }
  0x10   : > { %v2386_v2 = vld [vmem:[%s2542_s14 + $0xb8] sm:$0xff]  ;;  %1154 = vmatpush.bf16.msra.mxu1 %v2378_v1  ;;  %v2385_v6 = vld [vmem:[%s2542_s14 + $0xb0] sm:$0xff]  ;;  %v2384_v10 = vld [vmem:[%s2542_s14 + $0xa8] sm:$0xff] }
  0x11   : > { %v2394_v3 = vld [vmem:[%s2542_s14 + $0xf8] sm:$0xff]  ;;  %1288 = vmatpush.bf16.msra.mxu2 %v2386_v2  ;;  %v2393_v7 = vld [vmem:[%s2542_s14 + $0xf0] sm:$0xff]  ;;  %v2392_v11 = vld [vmem:[%s2542_s14 + $0xe8] sm:$0xff] }
  0x12   : > { %1422 = vmatpush.bf16.msra.mxu3 %v2394_v3  ;;  %v2367_v12 = vld [vmem:[%s2542_s14 + $0x20] sm:$0xff]  ;;  %v2366_v16 = vld [vmem:[%s2542_s14 + $0x18] sm:$0xff]  ;;  %v2365_v20 = vld [vmem:[%s2542_s14 + $0x10] sm:$0xff] }
  0x13   : > { %1021 = vmatpush.bf16.msra.mxu0 %v2369_v4  ;;  %v2375_v13 = vld [vmem:[%s2542_s14 + $0x60] sm:$0xff]  ;;  %v2374_v17 = vld [vmem:[%s2542_s14 + $0x58] sm:$0xff]  ;;  %v2373_v21 = vld [vmem:[%s2542_s14 + $0x50] sm:$0xff] }
  0x14   : > { %1155 = vmatpush.bf16.msra.mxu1 %v2377_v5  ;;  %v2383_v14 = vld [vmem:[%s2542_s14 + $0xa0] sm:$0xff]  ;;  %v2382_v18 = vld [vmem:[%s2542_s14 + $0x98] sm:$0xff]  ;;  %v2381_v22 = vld [vmem:[%s2542_s14 + $0x90] sm:$0xff] }
  0x15   : > { %1289 = vmatpush.bf16.msra.mxu2 %v2385_v6  ;;  %v2391_v15 = vld [vmem:[%s2542_s14 + $0xe0] sm:$0xff]  ;;  %v2390_v19 = vld [vmem:[%s2542_s14 + $0xd8] sm:$0xff]  ;;  %v2389_v23 = vld [vmem:[%s2542_s14 + $0xd0] sm:$0xff] }
  0x16   : > { %1423 = vmatpush.bf16.msra.mxu3 %v2393_v7  ;;  %v2364_v24 = vld [vmem:[%s2542_s14 + $0x8] sm:$0xff]  ;;  %v2363_v28 = vld [vmem:[%s2542_s14] sm:$0xff]  ;;  %v2265_v33 = vld [vmem:[%s2574_s18 + $0xc] sm:$0xf0] }
  0x17   : > { %1022 = vmatpush.bf16.msra.mxu0 %v2368_v8  ;;  %v2372_v25 = vld [vmem:[%s2542_s14 + $0x48] sm:$0xff]  ;;  %v2371_v29 = vld [vmem:[%s2542_s14 + $0x40] sm:$0xff]  ;;  %v1736_v35 = vld [vmem:[%s2574_s18 + $0x10] sm:$0xf0] }
  0x18   : > { %1156 = vmatpush.bf16.msra.mxu1 %v2376_v9  ;;  %v2380_v26 = vld [vmem:[%s2542_s14 + $0x88] sm:$0xff]  ;;  %v2379_v30 = vld [vmem:[%s2542_s14 + $0x80] sm:$0xff]  ;;  %v2266_v37 = vld [vmem:[%s2574_s18 + $0x14] sm:$0xf0] }
  0x19   : > { %1290 = vmatpush.bf16.msra.mxu2 %v2384_v10  ;;  %v2388_v27 = vld [vmem:[%s2542_s14 + $0xc8] sm:$0xff]  ;;  %v2387_v31 = vld [vmem:[%s2542_s14 + $0xc0] sm:$0xff]  ;;  %v1744_v39 = vld [vmem:[%s2574_s18 + $0x18] sm:$0xf0] }
  0x1a   : > { %1424 = vmatpush.bf16.msra.mxu3 %v2392_v11  ;;  %v1734_v32 = vld [vmem:[%s2574_s18] sm:$0xf]  ;;  %v2263_v34 = vld [vmem:[%s2574_s18 + $0x4] sm:$0xf]  ;;  %v1742_v36 = vld [vmem:[%s2574_s18 + $0x8] sm:$0xf] }
  0x1b   : > { %1023 = vmatpush.bf16.msra.mxu0 %v2367_v12  ;;  %v2264_v38 = vld [vmem:[%s2574_s18 + $0xc] sm:$0xf]  ;;  %v1735_v40 = vor.u32 %v2265_v33, %v1734_v32  ;;  %v1739_v41 = vor.u32 %v2263_v34, %v1736_v35  ;;  %v1743_v42 = vor.u32 %v2266_v37, %v1742_v36  ;;  %v1750_v44 = vld [vmem:[%s2574_s18 + $0x20] sm:$0xf]  ;;  %v2269_v45 = vld [vmem:[%s2574_s18 + $0x2c] sm:$0xf0] }
  0x1c   : > { %1157 = vmatpush.bf16.msra.mxu1 %v2375_v13  ;;  %v1747_v43 = vor.u32 %v2264_v38, %v1744_v39  ;;  %v2267_v46 = vld [vmem:[%s2574_s18 + $0x24] sm:$0xf]  ;;  %v1752_v47 = vld [vmem:[%s2574_s18 + $0x30] sm:$0xf0]  ;;  %v1758_v48 = vld [vmem:[%s2574_s18 + $0x28] sm:$0xf]  ;;  %v1751_v52 = vor.u32 %v2269_v45, %v1750_v44 }
  0x1d   : > { %1291 = vmatpush.bf16.msra.mxu2 %v2383_v14  ;;  %v2270_v49 = vld [vmem:[%s2574_s18 + $0x34] sm:$0xf0]  ;;  %v2268_v50 = vld [vmem:[%s2574_s18 + $0x2c] sm:$0xf]  ;;  %v1760_v51 = vld [vmem:[%s2574_s18 + $0x38] sm:$0xf0]  ;;  %v1755_v53 = vor.u32 %v2267_v46, %v1752_v47 }
  0x1e   : > { %1425 = vmatpush.bf16.msra.mxu3 %v2391_v15  ;;  %v1759_v54 = vor.u32 %v2270_v49, %v1758_v48  ;;  %v1763_v55 = vor.u32 %v2268_v50, %v1760_v51  ;;  %v1766_v56 = vld [vmem:[%s2574_s18 + $0x40] sm:$0xf]  ;;  %v2273_v57 = vld [vmem:[%s2574_s18 + $0x4c] sm:$0xf0]  ;;  %v2271_v58 = vld [vmem:[%s2574_s18 + $0x44] sm:$0xf] }
  0x1f   : > { %1024 = vmatpush.bf16.msra.mxu0 %v2366_v16  ;;  %v1768_v59 = vld [vmem:[%s2574_s18 + $0x50] sm:$0xf0]  ;;  %v1774_v60 = vld [vmem:[%s2574_s18 + $0x48] sm:$0xf]  ;;  %v2274_v61 = vld [vmem:[%s2574_s18 + $0x54] sm:$0xf0]  ;;  %v1767_v0 = vor.u32 %v2273_v57, %v1766_v56 }
  0x20   : > { %1158 = vmatpush.bf16.msra.mxu1 %v2374_v17  ;;  %v2272_v62 = vld [vmem:[%s2574_s18 + $0x4c] sm:$0xf]  ;;  %v1776_v63 = vld [vmem:[%s2574_s18 + $0x58] sm:$0xf0]  ;;  %v1771_v1 = vor.u32 %v2271_v58, %v1768_v59  ;;  %v1775_v2 = vor.u32 %v2274_v61, %v1774_v60  ;;  %v1782_v4 = vld [vmem:[%s2574_s18 + $0x60] sm:$0xf] }
  0x21   : > { %1292 = vmatpush.bf16.msra.mxu2 %v2382_v18  ;;  %v1779_v3 = vor.u32 %v2272_v62, %v1776_v63  ;;  %v2277_v5 = vld [vmem:[%s2574_s18 + $0x6c] sm:$0xf0]  ;;  %v2275_v6 = vld [vmem:[%s2574_s18 + $0x64] sm:$0xf]  ;;  %v1784_v7 = vld [vmem:[%s2574_s18 + $0x70] sm:$0xf0] }
  0x22   : > { %1426 = vmatpush.bf16.msra.mxu3 %v2390_v19  ;;  %v1790_v8 = vld [vmem:[%s2574_s18 + $0x68] sm:$0xf]  ;;  %v2278_v9 = vld [vmem:[%s2574_s18 + $0x74] sm:$0xf0]  ;;  %v2276_v10 = vld [vmem:[%s2574_s18 + $0x6c] sm:$0xf]  ;;  %v1783_v12 = vor.u32 %v2277_v5, %v1782_v4  ;;  %v1787_v13 = vor.u32 %v2275_v6, %v1784_v7 }
  0x23   : > { %1025 = vmatpush.bf16.msra.mxu0 %v2365_v20  ;;  %v1792_v11 = vld [vmem:[%s2574_s18 + $0x78] sm:$0xf0]  ;;  %v1791_v14 = vor.u32 %v2278_v9, %v1790_v8  ;;  %v1798_v16 = vld [vmem:[%s2574_s18 + $0x80] sm:$0xf]  ;;  %v2281_v17 = vld [vmem:[%s2574_s18 + $0x8c] sm:$0xf0] }
  0x24   : > { %1159 = vmatpush.bf16.msra.mxu1 %v2373_v21  ;;  %v1795_v15 = vor.u32 %v2276_v10, %v1792_v11  ;;  %v2279_v18 = vld [vmem:[%s2574_s18 + $0x84] sm:$0xf]  ;;  %v1800_v19 = vld [vmem:[%s2574_s18 + $0x90] sm:$0xf0]  ;;  %v1806_v20 = vld [vmem:[%s2574_s18 + $0x88] sm:$0xf] }
  0x25   : > { %1293 = vmatpush.bf16.msra.mxu2 %v2381_v22  ;;  %v2282_v21 = vld [vmem:[%s2574_s18 + $0x94] sm:$0xf0]  ;;  %v2280_v22 = vld [vmem:[%s2574_s18 + $0x8c] sm:$0xf]  ;;  %v1822_v32 = vld [vmem:[%s2574_s18 + $0xa8] sm:$0xf] }
  0x26   : > { %1427 = vmatpush.bf16.msra.mxu3 %v2389_v23  ;;  %v1808_v23 = vld [vmem:[%s2574_s18 + $0x98] sm:$0xf0]  ;;  %v2286_v33 = vld [vmem:[%s2574_s18 + $0xb4] sm:$0xf0]  ;;  %v2284_v34 = vld [vmem:[%s2574_s18 + $0xac] sm:$0xf] }
  0x27   : > { %1026 = vmatpush.bf16.msra.mxu0 %v2364_v24  ;;  %v1799_v24 = vor.u32 %v2281_v17, %v1798_v16  ;;  %v1824_v35 = vld [vmem:[%s2574_s18 + $0xb8] sm:$0xf0]  ;;  %v1823_v38 = vor.u32 %v2286_v33, %v1822_v32  ;;  %v1838_v44 = vld [vmem:[%s2574_s18 + $0xc8] sm:$0xf]  ;;  %v2290_v45 = vld [vmem:[%s2574_s18 + $0xd4] sm:$0xf0] }
  0x28   : > { %1160 = vmatpush.bf16.msra.mxu1 %v2372_v25  ;;  %v1803_v25 = vor.u32 %v2279_v18, %v1800_v19  ;;  %v1827_v39 = vor.u32 %v2284_v34, %v1824_v35  ;;  %v2288_v46 = vld [vmem:[%s2574_s18 + $0xcc] sm:$0xf]  ;;  %v1840_v47 = vld [vmem:[%s2574_s18 + $0xd8] sm:$0xf0]  ;;  %v1839_v50 = vor.u32 %v2290_v45, %v1838_v44  ;;  %v1854_v56 = vld [vmem:[%s2574_s18 + $0xe8] sm:$0xf] }
  0x29   : > { %1294 = vmatpush.bf16.msra.mxu2 %v2380_v26  ;;  %v1807_v26 = vor.u32 %v2282_v21, %v1806_v20  ;;  %v1843_v51 = vor.u32 %v2288_v46, %v1840_v47  ;;  %v2294_v57 = vld [vmem:[%s2574_s18 + $0xf4] sm:$0xf0]  ;;  %v2292_v58 = vld [vmem:[%s2574_s18 + $0xec] sm:$0xf]  ;;  %v1856_v59 = vld [vmem:[%s2574_s18 + $0xf8] sm:$0xf0] }
  0x2a   : > { %1428 = vmatpush.bf16.msra.mxu3 %v2388_v27  ;;  %v1811_v27 = vor.u32 %v2280_v22, %v1808_v23  ;;  %v1855_v62 = vor.u32 %v2294_v57, %v1854_v56  ;;  %v1859_v63 = vor.u32 %v2292_v58, %v1856_v59  ;;  %v1870_v4 = vld [vmem:[%s2574_s18 + $0x108] sm:$0xf]  ;;  %v2298_v5 = vld [vmem:[%s2574_s18 + $0x114] sm:$0xf0]  ;;  %v2296_v6 = vld [vmem:[%s2574_s18 + $0x10c] sm:$0xf] }
  0x2b   : > { %1027 = vmatpush.bf16.msra.mxu0 %v2363_v28  ;;  %v1814_v28 = vld [vmem:[%s2574_s18 + $0xa0] sm:$0xf]  ;;  %v1872_v7 = vld [vmem:[%s2574_s18 + $0x118] sm:$0xf0]  ;;  %v2301_v22 = vld [vmem:[%s2574_s18 + $0x12c] sm:$0xf0] }
  0x2c   : > { %1161 = vmatpush.bf16.msra.mxu1 %v2371_v29  ;;  %v2285_v29 = vld [vmem:[%s2574_s18 + $0xac] sm:$0xf0]  ;;  %v1878_v21 = vld [vmem:[%s2574_s18 + $0x120] sm:$0xf]  ;;  %v2299_v23 = vld [vmem:[%s2574_s18 + $0x124] sm:$0xf] }
  0x2d   : > { %1295 = vmatpush.bf16.msra.mxu2 %v2379_v30  ;;  %v2283_v30 = vld [vmem:[%s2574_s18 + $0xa4] sm:$0xf]  ;;  %v1815_v36 = vor.u32 %v2285_v29, %v1814_v28  ;;  %v1888_v28 = vld [vmem:[%s2574_s18 + $0x138] sm:$0xf0]  ;;  %v1879_v32 = vor.u32 %v2301_v22, %v1878_v21 }
  0x2e   : > { %1429 = vmatpush.bf16.msra.mxu3 %v2387_v31  ;;  %1028 = vmatmul.bf16.vlgmr.msra.gmra.mxu0 %v1735_v40  ;;  %v1816_v31 = vld [vmem:[%s2574_s18 + $0xb0] sm:$0xf0]  ;;  %v1830_v40 = vld [vmem:[%s2574_s18 + $0xc0] sm:$0xf]  ;;  %v1904_v56 = vld [vmem:[%s2574_s18 + $0x158] sm:$0xf0] }
  0x2f   : > { %1162 = vmatmul.bf16.vlgmr.msra.gmra.mxu1 %v1739_v41  ;;  %v1819_v37 = vor.u32 %v2283_v30, %v1816_v31  ;;  %v2289_v41 = vld [vmem:[%s2574_s18 + $0xcc] sm:$0xf0] }
  0x30   : > { %1296 = vmatmul.bf16.vlgmr.msra.gmra.mxu2 %v1743_v42  ;;  %v2287_v42 = vld [vmem:[%s2574_s18 + $0xc4] sm:$0xf]  ;;  %v1831_v48 = vor.u32 %v2289_v41, %v1830_v40 }
  0x31   : > { %1430 = vmatmul.bf16.vlgmr.msra.gmra.mxu3 %v1747_v43  ;;  %v1832_v43 = vld [vmem:[%s2574_s18 + $0xd0] sm:$0xf0] }
  0x32   : > { %v1835_v49 = vor.u32 %v2287_v42, %v1832_v43 }
  0x3e   : > { %1033 = vmatmul.bf16.gmra.mxu0 %v1751_v52  ;;  %v1846_v52 = vld [vmem:[%s2574_s18 + $0xe0] sm:$0xf] }
  0x3f   : > { %1167 = vmatmul.bf16.gmra.mxu1 %v1755_v53  ;;  %v2293_v53 = vld [vmem:[%s2574_s18 + $0xec] sm:$0xf0] }
  0x40   : > { %1301 = vmatmul.bf16.gmra.mxu2 %v1759_v54  ;;  %v2291_v54 = vld [vmem:[%s2574_s18 + $0xe4] sm:$0xf]  ;;  %v1847_v60 = vor.u32 %v2293_v53, %v1846_v52  ;;  %v1896_v52 = vld [vmem:[%s2574_s18 + $0x150] sm:$0xf0]  ;;  %v1902_v53 = vld [vmem:[%s2574_s18 + $0x148] sm:$0xf] }
  0x41   : > { %1435 = vmatmul.bf16.gmra.mxu3 %v1763_v55  ;;  %v1848_v55 = vld [vmem:[%s2574_s18 + $0xf0] sm:$0xf0] }
  0x42   : > { %v1851_v61 = vor.u32 %v2291_v54, %v1848_v55  ;;  %v2306_v54 = vld [vmem:[%s2574_s18 + $0x154] sm:$0xf0]  ;;  %v2304_v55 = vld [vmem:[%s2574_s18 + $0x14c] sm:$0xf] }
  0x4e   : > { %1038 = vmatmul.bf16.gmra.mxu0 %v1767_v0  ;;  %v1862_v0 = vld [vmem:[%s2574_s18 + $0x100] sm:$0xf] }
  0x4f   : > { %1172 = vmatmul.bf16.gmra.mxu1 %v1771_v1  ;;  %v2297_v1 = vld [vmem:[%s2574_s18 + $0x10c] sm:$0xf0] }
  0x50   : > { %1306 = vmatmul.bf16.gmra.mxu2 %v1775_v2  ;;  %v2295_v2 = vld [vmem:[%s2574_s18 + $0x104] sm:$0xf]  ;;  %v1863_v8 = vor.u32 %v2297_v1, %v1862_v0  ;;  %v1903_v1 = vor.u32 %v2306_v54, %v1902_v53 }
  0x51   : > { %1440 = vmatmul.bf16.gmra.mxu3 %v1779_v3  ;;  %v1864_v3 = vld [vmem:[%s2574_s18 + $0x110] sm:$0xf0] }
  0x52   : > { %v1867_v9 = vor.u32 %v2295_v2, %v1864_v3  ;;  %v1907_v2 = vor.u32 %v2304_v55, %v1904_v56 }
  0x5e   : > { %1043 = vmatmul.bf16.gmra.mxu0 %v1783_v12  ;;  %v1871_v12 = vor.u32 %v2298_v5, %v1870_v4 }
  0x5f   : > { %1177 = vmatmul.bf16.gmra.mxu1 %v1787_v13  ;;  %v1875_v13 = vor.u32 %v2296_v6, %v1872_v7 }
  0x60   : > { %1311 = vmatmul.bf16.gmra.mxu2 %v1791_v14 }
  0x61   : > { %1445 = vmatmul.bf16.gmra.mxu3 %v1795_v15 }
  0x6e   : > { %1048 = vmatmul.bf16.gmra.mxu0 %v1799_v24  ;;  %v1880_v24 = vld [vmem:[%s2574_s18 + $0x130] sm:$0xf0] }
  0x6f   : > { %1182 = vmatmul.bf16.gmra.mxu1 %v1803_v25  ;;  %v1886_v25 = vld [vmem:[%s2574_s18 + $0x128] sm:$0xf]  ;;  %v1883_v33 = vor.u32 %v2299_v23, %v1880_v24 }
  0x70   : > { %1316 = vmatmul.bf16.gmra.mxu2 %v1807_v26  ;;  %v2302_v26 = vld [vmem:[%s2574_s18 + $0x134] sm:$0xf0] }
  0x71   : > { %1450 = vmatmul.bf16.gmra.mxu3 %v1811_v27  ;;  %v2300_v27 = vld [vmem:[%s2574_s18 + $0x12c] sm:$0xf] }
  0x7e   : > { %1053 = vmatmul.bf16.gmra.mxu0 %v1815_v36 }
  0x7f   : > { %1187 = vmatmul.bf16.gmra.mxu1 %v1819_v37  ;;  %v1887_v37 = vor.u32 %v2302_v26, %v1886_v25 }
  0x80   : > { %1321 = vmatmul.bf16.gmra.mxu2 %v1823_v38  ;;  %v1891_v38 = vor.u32 %v2300_v27, %v1888_v28 }
  0x81   : > { %1455 = vmatmul.bf16.gmra.mxu3 %v1827_v39 }
  0x8e   : > { %1058 = vmatmul.bf16.gmra.mxu0 %v1831_v48 }
  0x8f   : > { %1192 = vmatmul.bf16.gmra.mxu1 %v1835_v49  ;;  %v1894_v49 = vld [vmem:[%s2574_s18 + $0x140] sm:$0xf] }
  0x90   : > { %1326 = vmatmul.bf16.gmra.mxu2 %v1839_v50  ;;  %v2305_v50 = vld [vmem:[%s2574_s18 + $0x14c] sm:$0xf0] }
  0x91   : > { %1460 = vmatmul.bf16.gmra.mxu3 %v1843_v51  ;;  %v2303_v51 = vld [vmem:[%s2574_s18 + $0x144] sm:$0xf] }
  0x9e   : > { %1063 = vmatmul.bf16.gmra.mxu0 %v1847_v60  ;;  %v1895_v60 = vor.u32 %v2305_v50, %v1894_v49 }
  0x9f   : > { %1197 = vmatmul.bf16.gmra.mxu1 %v1851_v61  ;;  %v1899_v61 = vor.u32 %v2303_v51, %v1896_v52 }
  0xa0   : > { %1331 = vmatmul.bf16.gmra.mxu2 %v1855_v62 }
  0xa1   : > { %1465 = vmatmul.bf16.gmra.mxu3 %v1859_v63 }
  0xab   : > { %v1029_v10 = vpop.f32.mrf.mxu0 }
  0xac   : > { %v1163_v11 = vpop.f32.mrf.mxu1 }
  0xad   : > { %v1164_v14 = vadd.f32 %v1163_v11, %v1029_v10 }
  0xae   : > { %1068 = vmatmul.bf16.gmra.mxu0 %v1863_v8 }
  0xaf   : > { %1202 = vmatmul.bf16.gmra.mxu1 %v1867_v9 }
  0xb0   : > { %1336 = vmatmul.bf16.gmra.mxu2 %v1871_v12 }
  0xb1   : > { %1470 = vmatmul.bf16.gmra.mxu3 %v1875_v13  ;;  %v1910_v13 = vld [vmem:[%s2574_s18 + $0x160] sm:$0xf] }
  0xb3   : > { %v1297_v15 = vpop.f32.mrf.mxu2  ;;  %v1031_v18 = vpop.f32.mrf.mxu0 }
  0xb4   : > { %v1431_v16 = vpop.f32.mrf.mxu3  ;;  %v1298_v17 = vadd.f32 %v1297_v15, %v1164_v14  ;;  %v1165_v19 = vpop.f32.mrf.mxu1  ;;  %v2309_v14 = vld [vmem:[%s2574_s18 + $0x16c] sm:$0xf0]  ;;  %v2307_v15 = vld [vmem:[%s2574_s18 + $0x164] sm:$0xf] }
  0xb5   : > { %v1166_v29 = vadd.f32 %v1165_v19, %v1031_v18  ;;  %v2310_v18 = vld [vmem:[%s2574_s18 + $0x174] sm:$0xf0]  ;;  %v2308_v19 = vld [vmem:[%s2574_s18 + $0x16c] sm:$0xf]  ;;  %v1911_v24 = vor.u32 %v2309_v14, %v1910_v13 }
  0xb6   : > { %v1432_v20 = vadd.f32 %v1431_v16, %v1298_v17  ;;  %v1912_v16 = vld [vmem:[%s2574_s18 + $0x170] sm:$0xf0]  ;;  %v1918_v17 = vld [vmem:[%s2574_s18 + $0x168] sm:$0xf] }
  0xb7   : > { %v1915_v25 = vor.u32 %v2307_v15, %v1912_v16 }
  0xb8   : > { %2405 = vtanh.f32 %v1432_v20  ;;  %v1920_v20 = vld [vmem:[%s2574_s18 + $0x178] sm:$0xf0] }
  0xbb   : > { %v1299_v30 = vpop.f32.mrf.mxu2  ;;  %v1034_v35 = vpop.f32.mrf.mxu0 }
  0xbc   : > { %v1433_v31 = vpop.f32.mrf.mxu3  ;;  %v1300_v34 = vadd.f32 %v1299_v30, %v1166_v29  ;;  %v1168_v36 = vpop.f32.mrf.mxu1  ;;  %v1919_v29 = vor.u32 %v2310_v18, %v1918_v17  ;;  %v1923_v30 = vor.u32 %v2308_v19, %v1920_v20 }
  0xbd   : > { %v1169_v41 = vadd.f32 %v1168_v36, %v1034_v35 }
  0xbe   : > { %v2406_v39 = vpop.eup %2405  ;;  %v1434_v40 = vadd.f32 %v1433_v31, %v1300_v34  ;;  %1073 = vmatmul.bf16.gmra.mxu0 %v1879_v32 }
  0xbf   : > { %1606 = vst [vmem:[%s2666_s22] sm:$0xff] %v2406_v39  ;;  %1207 = vmatmul.bf16.gmra.mxu1 %v1883_v33 }
  0xc0   : > { %2407 = vtanh.f32 %v1434_v40  ;;  %1341 = vmatmul.bf16.gmra.mxu2 %v1887_v37 }
  0xc1   : > { %1475 = vmatmul.bf16.gmra.mxu3 %v1891_v38 }
  0xc3   : > { %v1302_v42 = vpop.f32.mrf.mxu2  ;;  %v1036_v45 = vpop.f32.mrf.mxu0 }
  0xc4   : > { %v1436_v43 = vpop.f32.mrf.mxu3  ;;  %v1303_v44 = vadd.f32 %v1302_v42, %v1169_v41  ;;  %v1170_v46 = vpop.f32.mrf.mxu1  ;;  %v1926_v41 = vld [vmem:[%s2574_s18 + $0x180] sm:$0xf]  ;;  %v2313_v42 = vld [vmem:[%s2574_s18 + $0x18c] sm:$0xf0] }
  0xc5   : > { %v1171_v57 = vadd.f32 %v1170_v46, %v1036_v45  ;;  %v1934_v45 = vld [vmem:[%s2574_s18 + $0x188] sm:$0xf]  ;;  %v2314_v46 = vld [vmem:[%s2574_s18 + $0x194] sm:$0xf0]  ;;  %v1927_v52 = vor.u32 %v2313_v42, %v1926_v41 }
  0xc6   : > { %v2408_v47 = vpop.eup %2407  ;;  %v1437_v48 = vadd.f32 %v1436_v43, %v1303_v44  ;;  %v2311_v43 = vld [vmem:[%s2574_s18 + $0x184] sm:$0xf]  ;;  %v1928_v44 = vld [vmem:[%s2574_s18 + $0x190] sm:$0xf0] }
  0xc7   : > { %1607 = vst [vmem:[%s2666_s22 + $0x8] sm:$0xff] %v2408_v47  ;;  %v2312_v47 = vld [vmem:[%s2574_s18 + $0x18c] sm:$0xf]  ;;  %v1931_v53 = vor.u32 %v2311_v43, %v1928_v44 }
  0xc8   : > { %2409 = vtanh.f32 %v1437_v48  ;;  %v1936_v48 = vld [vmem:[%s2574_s18 + $0x198] sm:$0xf0] }
  0xcb   : > { %v1304_v58 = vpop.f32.mrf.mxu2  ;;  %v1039_v63 = vpop.f32.mrf.mxu0 }
  0xcc   : > { %v1438_v59 = vpop.f32.mrf.mxu3  ;;  %v1305_v62 = vadd.f32 %v1304_v58, %v1171_v57  ;;  %v1173_v0 = vpop.f32.mrf.mxu1  ;;  %v1935_v57 = vor.u32 %v2314_v46, %v1934_v45  ;;  %v1939_v58 = vor.u32 %v2312_v47, %v1936_v48 }
  0xcd   : > { %v1174_v5 = vadd.f32 %v1173_v0, %v1039_v63 }
  0xce   : > { %v2410_v3 = vpop.eup %2409  ;;  %v1439_v4 = vadd.f32 %v1438_v59, %v1305_v62  ;;  %1078 = vmatmul.bf16.gmra.mxu0 %v1895_v60 }
  0xcf   : > { %1608 = vst [vmem:[%s2666_s22 + $0x10] sm:$0xff] %v2410_v3  ;;  %1212 = vmatmul.bf16.gmra.mxu1 %v1899_v61 }
  0xd0   : > { %2411 = vtanh.f32 %v1439_v4  ;;  %1346 = vmatmul.bf16.gmra.mxu2 %v1903_v1 }
  0xd1   : > { %1480 = vmatmul.bf16.gmra.mxu3 %v1907_v2 }
  0xd3   : > { %v1307_v6 = vpop.f32.mrf.mxu2  ;;  %v1041_v9 = vpop.f32.mrf.mxu0 }
  0xd4   : > { %v1441_v7 = vpop.f32.mrf.mxu3  ;;  %v1308_v8 = vadd.f32 %v1307_v6, %v1174_v5  ;;  %v1175_v10 = vpop.f32.mrf.mxu1  ;;  %v1942_v5 = vld [vmem:[%s2574_s18 + $0x1a0] sm:$0xf]  ;;  %v2317_v6 = vld [vmem:[%s2574_s18 + $0x1ac] sm:$0xf0] }
  0xd5   : > { %v1176_v21 = vadd.f32 %v1175_v10, %v1041_v9  ;;  %v1950_v9 = vld [vmem:[%s2574_s18 + $0x1a8] sm:$0xf]  ;;  %v2318_v10 = vld [vmem:[%s2574_s18 + $0x1b4] sm:$0xf0]  ;;  %v1943_v16 = vor.u32 %v2317_v6, %v1942_v5 }
  0xd6   : > { %v2412_v11 = vpop.eup %2411  ;;  %v1442_v12 = vadd.f32 %v1441_v7, %v1308_v8  ;;  %v2315_v7 = vld [vmem:[%s2574_s18 + $0x1a4] sm:$0xf]  ;;  %v1944_v8 = vld [vmem:[%s2574_s18 + $0x1b0] sm:$0xf0] }
  0xd7   : > { %1609 = vst [vmem:[%s2666_s22 + $0x18] sm:$0xff] %v2412_v11  ;;  %v2316_v11 = vld [vmem:[%s2574_s18 + $0x1ac] sm:$0xf]  ;;  %v1947_v17 = vor.u32 %v2315_v7, %v1944_v8 }
  0xd8   : > { %2413 = vtanh.f32 %v1442_v12  ;;  %v1952_v12 = vld [vmem:[%s2574_s18 + $0x1b8] sm:$0xf0] }
  0xdb   : > { %v1309_v22 = vpop.f32.mrf.mxu2  ;;  %v1044_v27 = vpop.f32.mrf.mxu0 }
  0xdc   : > { %v1443_v23 = vpop.f32.mrf.mxu3  ;;  %v1310_v26 = vadd.f32 %v1309_v22, %v1176_v21  ;;  %v1178_v28 = vpop.f32.mrf.mxu1  ;;  %v1951_v21 = vor.u32 %v2318_v10, %v1950_v9  ;;  %v1955_v22 = vor.u32 %v2316_v11, %v1952_v12 }
  0xdd   : > { %v1179_v33 = vadd.f32 %v1178_v28, %v1044_v27 }
  0xde   : > { %v2414_v31 = vpop.eup %2413  ;;  %v1444_v32 = vadd.f32 %v1443_v23, %v1310_v26  ;;  %1083 = vmatmul.bf16.gmra.mxu0 %v1911_v24 }
  0xdf   : > { %1610 = vst [vmem:[%s2666_s22 + $0x20] sm:$0xff] %v2414_v31  ;;  %1217 = vmatmul.bf16.gmra.mxu1 %v1915_v25 }
  0xe0   : > { %2415 = vtanh.f32 %v1444_v32  ;;  %1351 = vmatmul.bf16.gmra.mxu2 %v1919_v29 }
  0xe1   : > { %1485 = vmatmul.bf16.gmra.mxu3 %v1923_v30 }
  0xe3   : > { %v1312_v34 = vpop.f32.mrf.mxu2  ;;  %v1046_v37 = vpop.f32.mrf.mxu0 }
  0xe4   : > { %v1446_v35 = vpop.f32.mrf.mxu3  ;;  %v1313_v36 = vadd.f32 %v1312_v34, %v1179_v33  ;;  %v1180_v38 = vpop.f32.mrf.mxu1  ;;  %v1958_v33 = vld [vmem:[%s2574_s18 + $0x1c0] sm:$0xf]  ;;  %v2321_v34 = vld [vmem:[%s2574_s18 + $0x1cc] sm:$0xf0] }
  0xe5   : > { %v1181_v49 = vadd.f32 %v1180_v38, %v1046_v37  ;;  %v1966_v37 = vld [vmem:[%s2574_s18 + $0x1c8] sm:$0xf]  ;;  %v2322_v38 = vld [vmem:[%s2574_s18 + $0x1d4] sm:$0xf0]  ;;  %v1959_v44 = vor.u32 %v2321_v34, %v1958_v33 }
  0xe6   : > { %v2416_v39 = vpop.eup %2415  ;;  %v1447_v40 = vadd.f32 %v1446_v35, %v1313_v36  ;;  %v2319_v35 = vld [vmem:[%s2574_s18 + $0x1c4] sm:$0xf]  ;;  %v1960_v36 = vld [vmem:[%s2574_s18 + $0x1d0] sm:$0xf0] }
  0xe7   : > { %1611 = vst [vmem:[%s2666_s22 + $0x28] sm:$0xff] %v2416_v39  ;;  %v2320_v39 = vld [vmem:[%s2574_s18 + $0x1cc] sm:$0xf]  ;;  %v1963_v45 = vor.u32 %v2319_v35, %v1960_v36 }
  0xe8   : > { %2417 = vtanh.f32 %v1447_v40  ;;  %v1968_v40 = vld [vmem:[%s2574_s18 + $0x1d8] sm:$0xf0] }
  0xeb   : > { %v1314_v50 = vpop.f32.mrf.mxu2  ;;  %v1049_v55 = vpop.f32.mrf.mxu0 }
  0xec   : > { %v1448_v51 = vpop.f32.mrf.mxu3  ;;  %v1315_v54 = vadd.f32 %v1314_v50, %v1181_v49  ;;  %v1183_v56 = vpop.f32.mrf.mxu1  ;;  %v1967_v49 = vor.u32 %v2322_v38, %v1966_v37  ;;  %v1971_v50 = vor.u32 %v2320_v39, %v1968_v40 }
  0xed   : > { %v1184_v61 = vadd.f32 %v1183_v56, %v1049_v55 }
  0xee   : > { %v2418_v59 = vpop.eup %2417  ;;  %v1449_v60 = vadd.f32 %v1448_v51, %v1315_v54  ;;  %1088 = vmatmul.bf16.gmra.mxu0 %v1927_v52 }
  0xef   : > { %1612 = vst [vmem:[%s2666_s22 + $0x30] sm:$0xff] %v2418_v59  ;;  %1222 = vmatmul.bf16.gmra.mxu1 %v1931_v53 }
  0xf0   : > { %2419 = vtanh.f32 %v1449_v60  ;;  %1356 = vmatmul.bf16.gmra.mxu2 %v1935_v57 }
  0xf1   : > { %1490 = vmatmul.bf16.gmra.mxu3 %v1939_v58 }
  0xf3   : > { %v1317_v62 = vpop.f32.mrf.mxu2  ;;  %v1051_v1 = vpop.f32.mrf.mxu0 }
  0xf4   : > { %v1451_v63 = vpop.f32.mrf.mxu3  ;;  %v1318_v0 = vadd.f32 %v1317_v62, %v1184_v61  ;;  %v1185_v2 = vpop.f32.mrf.mxu1  ;;  %v1974_v61 = vld [vmem:[%s2574_s18 + $0x1e0] sm:$0xf]  ;;  %v2325_v62 = vld [vmem:[%s2574_s18 + $0x1ec] sm:$0xf0] }
  0xf5   : > { %v1186_v13 = vadd.f32 %v1185_v2, %v1051_v1  ;;  %v1982_v1 = vld [vmem:[%s2574_s18 + $0x1e8] sm:$0xf]  ;;  %v2326_v2 = vld [vmem:[%s2574_s18 + $0x1f4] sm:$0xf0]  ;;  %v1975_v8 = vor.u32 %v2325_v62, %v1974_v61 }
  0xf6   : > { %v2420_v3 = vpop.eup %2419  ;;  %v1452_v4 = vadd.f32 %v1451_v63, %v1318_v0  ;;  %v2323_v63 = vld [vmem:[%s2574_s18 + $0x1e4] sm:$0xf]  ;;  %v1976_v0 = vld [vmem:[%s2574_s18 + $0x1f0] sm:$0xf0] }
  0xf7   : > { %1613 = vst [vmem:[%s2666_s22 + $0x38] sm:$0xff] %v2420_v3  ;;  %v2324_v3 = vld [vmem:[%s2574_s18 + $0x1ec] sm:$0xf]  ;;  %v1979_v9 = vor.u32 %v2323_v63, %v1976_v0 }
  0xf8   : > { %2421 = vtanh.f32 %v1452_v4  ;;  %v1984_v4 = vld [vmem:[%s2574_s18 + $0x1f8] sm:$0xf0] }
  0xfb   : > { %v1319_v14 = vpop.f32.mrf.mxu2  ;;  %v1054_v19 = vpop.f32.mrf.mxu0 }
  0xfc   : > { %v1453_v15 = vpop.f32.mrf.mxu3  ;;  %v1320_v18 = vadd.f32 %v1319_v14, %v1186_v13  ;;  %v1188_v20 = vpop.f32.mrf.mxu1  ;;  %v1983_v13 = vor.u32 %v2326_v2, %v1982_v1  ;;  %v1987_v14 = vor.u32 %v2324_v3, %v1984_v4 }
  0xfd   : > { %v1189_v25 = vadd.f32 %v1188_v20, %v1054_v19 }
  0xfe   : > { %v2422_v23 = vpop.eup %2421  ;;  %v1454_v24 = vadd.f32 %v1453_v15, %v1320_v18  ;;  %1093 = vmatmul.bf16.gmra.mxu0 %v1943_v16 }
  0xff   : > { %1614 = vst [vmem:[%s2666_s22 + $0x40] sm:$0xff] %v2422_v23  ;;  %1227 = vmatmul.bf16.gmra.mxu1 %v1947_v17 }
 0x100   : > { %2423 = vtanh.f32 %v1454_v24  ;;  %1361 = vmatmul.bf16.gmra.mxu2 %v1951_v21 }
 0x101   : > { %1495 = vmatmul.bf16.gmra.mxu3 %v1955_v22 }
 0x103   : > { %v1322_v26 = vpop.f32.mrf.mxu2  ;;  %v1056_v29 = vpop.f32.mrf.mxu0 }
 0x104   : > { %v1456_v27 = vpop.f32.mrf.mxu3  ;;  %v1323_v28 = vadd.f32 %v1322_v26, %v1189_v25  ;;  %v1190_v30 = vpop.f32.mrf.mxu1  ;;  %v1990_v25 = vld [vmem:[%s2574_s18 + $0x200] sm:$0xf]  ;;  %v2329_v26 = vld [vmem:[%s2574_s18 + $0x20c] sm:$0xf0] }
 0x105   : > { %v1191_v41 = vadd.f32 %v1190_v30, %v1056_v29  ;;  %v1998_v29 = vld [vmem:[%s2574_s18 + $0x208] sm:$0xf]  ;;  %v2330_v30 = vld [vmem:[%s2574_s18 + $0x214] sm:$0xf0]  ;;  %v1991_v36 = vor.u32 %v2329_v26, %v1990_v25 }
 0x106   : > { %v2424_v31 = vpop.eup %2423  ;;  %v1457_v32 = vadd.f32 %v1456_v27, %v1323_v28  ;;  %v2327_v27 = vld [vmem:[%s2574_s18 + $0x204] sm:$0xf]  ;;  %v1992_v28 = vld [vmem:[%s2574_s18 + $0x210] sm:$0xf0] }
 0x107   : > { %1615 = vst [vmem:[%s2666_s22 + $0x48] sm:$0xff] %v2424_v31  ;;  %v2328_v31 = vld [vmem:[%s2574_s18 + $0x20c] sm:$0xf]  ;;  %v1995_v37 = vor.u32 %v2327_v27, %v1992_v28 }
 0x108   : > { %2425 = vtanh.f32 %v1457_v32  ;;  %v2000_v32 = vld [vmem:[%s2574_s18 + $0x218] sm:$0xf0] }
 0x10b   : > { %v1324_v42 = vpop.f32.mrf.mxu2  ;;  %v1059_v47 = vpop.f32.mrf.mxu0 }
 0x10c   : > { %v1458_v43 = vpop.f32.mrf.mxu3  ;;  %v1325_v46 = vadd.f32 %v1324_v42, %v1191_v41  ;;  %v1193_v48 = vpop.f32.mrf.mxu1  ;;  %v1999_v41 = vor.u32 %v2330_v30, %v1998_v29  ;;  %v2003_v42 = vor.u32 %v2328_v31, %v2000_v32 }
 0x10d   : > { %v1194_v53 = vadd.f32 %v1193_v48, %v1059_v47 }
 0x10e   : > { %v2426_v51 = vpop.eup %2425  ;;  %v1459_v52 = vadd.f32 %v1458_v43, %v1325_v46  ;;  %1098 = vmatmul.bf16.gmra.mxu0 %v1959_v44 }
 0x10f   : > { %1616 = vst [vmem:[%s2666_s22 + $0x50] sm:$0xff] %v2426_v51  ;;  %1232 = vmatmul.bf16.gmra.mxu1 %v1963_v45 }
 0x110   : > { %2427 = vtanh.f32 %v1459_v52  ;;  %1366 = vmatmul.bf16.gmra.mxu2 %v1967_v49 }
 0x111   : > { %1500 = vmatmul.bf16.gmra.mxu3 %v1971_v50 }
 0x113   : > { %v1327_v54 = vpop.f32.mrf.mxu2  ;;  %v1061_v57 = vpop.f32.mrf.mxu0 }
 0x114   : > { %v1461_v55 = vpop.f32.mrf.mxu3  ;;  %v1328_v56 = vadd.f32 %v1327_v54, %v1194_v53  ;;  %v1195_v58 = vpop.f32.mrf.mxu1  ;;  %v2006_v53 = vld [vmem:[%s2574_s18 + $0x220] sm:$0xf]  ;;  %v2333_v54 = vld [vmem:[%s2574_s18 + $0x22c] sm:$0xf0] }
 0x115   : > { %v1196_v5 = vadd.f32 %v1195_v58, %v1061_v57  ;;  %v2014_v57 = vld [vmem:[%s2574_s18 + $0x228] sm:$0xf]  ;;  %v2334_v58 = vld [vmem:[%s2574_s18 + $0x234] sm:$0xf0]  ;;  %v2007_v0 = vor.u32 %v2333_v54, %v2006_v53 }
 0x116   : > { %v2428_v59 = vpop.eup %2427  ;;  %v1462_v60 = vadd.f32 %v1461_v55, %v1328_v56  ;;  %v2331_v55 = vld [vmem:[%s2574_s18 + $0x224] sm:$0xf]  ;;  %v2008_v56 = vld [vmem:[%s2574_s18 + $0x230] sm:$0xf0] }
 0x117   : > { %1617 = vst [vmem:[%s2666_s22 + $0x58] sm:$0xff] %v2428_v59  ;;  %v2332_v59 = vld [vmem:[%s2574_s18 + $0x22c] sm:$0xf]  ;;  %v2011_v1 = vor.u32 %v2331_v55, %v2008_v56 }
 0x118   : > { %2429 = vtanh.f32 %v1462_v60  ;;  %v2016_v60 = vld [vmem:[%s2574_s18 + $0x238] sm:$0xf0] }
 0x11b   : > { %v1329_v6 = vpop.f32.mrf.mxu2  ;;  %v1064_v11 = vpop.f32.mrf.mxu0 }
 0x11c   : > { %v1463_v7 = vpop.f32.mrf.mxu3  ;;  %v1330_v10 = vadd.f32 %v1329_v6, %v1196_v5  ;;  %v1198_v12 = vpop.f32.mrf.mxu1  ;;  %v2015_v5 = vor.u32 %v2334_v58, %v2014_v57  ;;  %v2019_v6 = vor.u32 %v2332_v59, %v2016_v60 }
 0x11d   : > { %v1199_v17 = vadd.f32 %v1198_v12, %v1064_v11 }
 0x11e   : > { %v2430_v15 = vpop.eup %2429  ;;  %v1464_v16 = vadd.f32 %v1463_v7, %v1330_v10  ;;  %1103 = vmatmul.bf16.gmra.mxu0 %v1975_v8 }
 0x11f   : > { %1618 = vst [vmem:[%s2666_s22 + $0x60] sm:$0xff] %v2430_v15  ;;  %1237 = vmatmul.bf16.gmra.mxu1 %v1979_v9 }
 0x120   : > { %2431 = vtanh.f32 %v1464_v16  ;;  %1371 = vmatmul.bf16.gmra.mxu2 %v1983_v13 }
 0x121   : > { %1505 = vmatmul.bf16.gmra.mxu3 %v1987_v14 }
 0x123   : > { %v1332_v18 = vpop.f32.mrf.mxu2  ;;  %v1066_v21 = vpop.f32.mrf.mxu0 }
 0x124   : > { %v1466_v19 = vpop.f32.mrf.mxu3  ;;  %v1333_v20 = vadd.f32 %v1332_v18, %v1199_v17  ;;  %v1200_v22 = vpop.f32.mrf.mxu1  ;;  %v2022_v17 = vld [vmem:[%s2574_s18 + $0x240] sm:$0xf]  ;;  %v2337_v18 = vld [vmem:[%s2574_s18 + $0x24c] sm:$0xf0] }
 0x125   : > { %v1201_v33 = vadd.f32 %v1200_v22, %v1066_v21  ;;  %v2030_v21 = vld [vmem:[%s2574_s18 + $0x248] sm:$0xf]  ;;  %v2338_v22 = vld [vmem:[%s2574_s18 + $0x254] sm:$0xf0]  ;;  %v2023_v28 = vor.u32 %v2337_v18, %v2022_v17 }
 0x126   : > { %v2432_v23 = vpop.eup %2431  ;;  %v1467_v24 = vadd.f32 %v1466_v19, %v1333_v20  ;;  %v2335_v19 = vld [vmem:[%s2574_s18 + $0x244] sm:$0xf]  ;;  %v2024_v20 = vld [vmem:[%s2574_s18 + $0x250] sm:$0xf0] }
 0x127   : > { %1619 = vst [vmem:[%s2666_s22 + $0x68] sm:$0xff] %v2432_v23  ;;  %v2336_v23 = vld [vmem:[%s2574_s18 + $0x24c] sm:$0xf]  ;;  %v2027_v29 = vor.u32 %v2335_v19, %v2024_v20 }
 0x128   : > { %2433 = vtanh.f32 %v1467_v24  ;;  %v2032_v24 = vld [vmem:[%s2574_s18 + $0x258] sm:$0xf0] }
 0x12b   : > { %v1334_v34 = vpop.f32.mrf.mxu2  ;;  %v1069_v39 = vpop.f32.mrf.mxu0 }
 0x12c   : > { %v1468_v35 = vpop.f32.mrf.mxu3  ;;  %v1335_v38 = vadd.f32 %v1334_v34, %v1201_v33  ;;  %v1203_v40 = vpop.f32.mrf.mxu1  ;;  %v2031_v33 = vor.u32 %v2338_v22, %v2030_v21  ;;  %v2035_v34 = vor.u32 %v2336_v23, %v2032_v24 }
 0x12d   : > { %v1204_v45 = vadd.f32 %v1203_v40, %v1069_v39 }
 0x12e   : > { %v2434_v43 = vpop.eup %2433  ;;  %v1469_v44 = vadd.f32 %v1468_v35, %v1335_v38  ;;  %1108 = vmatmul.bf16.gmra.mxu0 %v1991_v36 }
 0x12f   : > { %1620 = vst [vmem:[%s2666_s22 + $0x70] sm:$0xff] %v2434_v43  ;;  %1242 = vmatmul.bf16.gmra.mxu1 %v1995_v37 }
 0x130   : > { %2435 = vtanh.f32 %v1469_v44  ;;  %1376 = vmatmul.bf16.gmra.mxu2 %v1999_v41 }
 0x131   : > { %1510 = vmatmul.bf16.gmra.mxu3 %v2003_v42 }
 0x133   : > { %v1337_v46 = vpop.f32.mrf.mxu2  ;;  %v1071_v49 = vpop.f32.mrf.mxu0 }
 0x134   : > { %v1471_v47 = vpop.f32.mrf.mxu3  ;;  %v1338_v48 = vadd.f32 %v1337_v46, %v1204_v45  ;;  %v1205_v50 = vpop.f32.mrf.mxu1  ;;  %v2038_v45 = vld [vmem:[%s2574_s18 + $0x260] sm:$0xf]  ;;  %v2341_v46 = vld [vmem:[%s2574_s18 + $0x26c] sm:$0xf0] }
 0x135   : > { %v1206_v61 = vadd.f32 %v1205_v50, %v1071_v49  ;;  %v2046_v49 = vld [vmem:[%s2574_s18 + $0x268] sm:$0xf]  ;;  %v2342_v50 = vld [vmem:[%s2574_s18 + $0x274] sm:$0xf0]  ;;  %v2039_v56 = vor.u32 %v2341_v46, %v2038_v45 }
 0x136   : > { %v2436_v51 = vpop.eup %2435  ;;  %v1472_v52 = vadd.f32 %v1471_v47, %v1338_v48  ;;  %v2339_v47 = vld [vmem:[%s2574_s18 + $0x264] sm:$0xf]  ;;  %v2040_v48 = vld [vmem:[%s2574_s18 + $0x270] sm:$0xf0] }
 0x137   : > { %1621 = vst [vmem:[%s2666_s22 + $0x78] sm:$0xff] %v2436_v51  ;;  %v2340_v51 = vld [vmem:[%s2574_s18 + $0x26c] sm:$0xf]  ;;  %v2043_v57 = vor.u32 %v2339_v47, %v2040_v48 }
 0x138   : > { %2437 = vtanh.f32 %v1472_v52  ;;  %v2048_v52 = vld [vmem:[%s2574_s18 + $0x278] sm:$0xf0] }
 0x13b   : > { %v1339_v62 = vpop.f32.mrf.mxu2  ;;  %v1074_v3 = vpop.f32.mrf.mxu0 }
 0x13c   : > { %v1473_v63 = vpop.f32.mrf.mxu3  ;;  %v1340_v2 = vadd.f32 %v1339_v62, %v1206_v61  ;;  %v1208_v4 = vpop.f32.mrf.mxu1  ;;  %v2047_v61 = vor.u32 %v2342_v50, %v2046_v49  ;;  %v2051_v62 = vor.u32 %v2340_v51, %v2048_v52 }
 0x13d   : > { %v1209_v9 = vadd.f32 %v1208_v4, %v1074_v3 }
 0x13e   : > { %v2438_v7 = vpop.eup %2437  ;;  %v1474_v8 = vadd.f32 %v1473_v63, %v1340_v2  ;;  %1113 = vmatmul.bf16.gmra.mxu0 %v2007_v0 }
 0x13f   : > { %1622 = vst [vmem:[%s2666_s22 + $0x80] sm:$0xff] %v2438_v7  ;;  %1247 = vmatmul.bf16.gmra.mxu1 %v2011_v1 }
 0x140   : > { %2439 = vtanh.f32 %v1474_v8  ;;  %1381 = vmatmul.bf16.gmra.mxu2 %v2015_v5 }
 0x141   : > { %1515 = vmatmul.bf16.gmra.mxu3 %v2019_v6 }
 0x143   : > { %v1342_v10 = vpop.f32.mrf.mxu2  ;;  %v1076_v13 = vpop.f32.mrf.mxu0 }
 0x144   : > { %v1476_v11 = vpop.f32.mrf.mxu3  ;;  %v1343_v12 = vadd.f32 %v1342_v10, %v1209_v9  ;;  %v1210_v14 = vpop.f32.mrf.mxu1  ;;  %v2054_v9 = vld [vmem:[%s2574_s18 + $0x280] sm:$0xf]  ;;  %v2345_v10 = vld [vmem:[%s2574_s18 + $0x28c] sm:$0xf0] }
 0x145   : > { %v1211_v25 = vadd.f32 %v1210_v14, %v1076_v13  ;;  %v2062_v13 = vld [vmem:[%s2574_s18 + $0x288] sm:$0xf]  ;;  %v2346_v14 = vld [vmem:[%s2574_s18 + $0x294] sm:$0xf0]  ;;  %v2055_v20 = vor.u32 %v2345_v10, %v2054_v9 }
 0x146   : > { %v2440_v15 = vpop.eup %2439  ;;  %v1477_v16 = vadd.f32 %v1476_v11, %v1343_v12  ;;  %v2343_v11 = vld [vmem:[%s2574_s18 + $0x284] sm:$0xf]  ;;  %v2056_v12 = vld [vmem:[%s2574_s18 + $0x290] sm:$0xf0] }
 0x147   : > { %1623 = vst [vmem:[%s2666_s22 + $0x88] sm:$0xff] %v2440_v15  ;;  %v2344_v15 = vld [vmem:[%s2574_s18 + $0x28c] sm:$0xf]  ;;  %v2059_v21 = vor.u32 %v2343_v11, %v2056_v12 }
 0x148   : > { %2441 = vtanh.f32 %v1477_v16  ;;  %v2064_v16 = vld [vmem:[%s2574_s18 + $0x298] sm:$0xf0] }
 0x14b   : > { %v1344_v26 = vpop.f32.mrf.mxu2  ;;  %v1079_v31 = vpop.f32.mrf.mxu0 }
 0x14c   : > { %v1478_v27 = vpop.f32.mrf.mxu3  ;;  %v1345_v30 = vadd.f32 %v1344_v26, %v1211_v25  ;;  %v1213_v32 = vpop.f32.mrf.mxu1  ;;  %v2063_v25 = vor.u32 %v2346_v14, %v2062_v13  ;;  %v2067_v26 = vor.u32 %v2344_v15, %v2064_v16 }
 0x14d   : > { %v1214_v37 = vadd.f32 %v1213_v32, %v1079_v31 }
 0x14e   : > { %v2442_v35 = vpop.eup %2441  ;;  %v1479_v36 = vadd.f32 %v1478_v27, %v1345_v30  ;;  %1118 = vmatmul.bf16.gmra.mxu0 %v2023_v28 }
 0x14f   : > { %1624 = vst [vmem:[%s2666_s22 + $0x90] sm:$0xff] %v2442_v35  ;;  %1252 = vmatmul.bf16.gmra.mxu1 %v2027_v29 }
 0x150   : > { %2443 = vtanh.f32 %v1479_v36  ;;  %1386 = vmatmul.bf16.gmra.mxu2 %v2031_v33 }
 0x151   : > { %1520 = vmatmul.bf16.gmra.mxu3 %v2035_v34 }
 0x153   : > { %v1347_v38 = vpop.f32.mrf.mxu2  ;;  %v1081_v41 = vpop.f32.mrf.mxu0 }
 0x154   : > { %v1481_v39 = vpop.f32.mrf.mxu3  ;;  %v1348_v40 = vadd.f32 %v1347_v38, %v1214_v37  ;;  %v1215_v42 = vpop.f32.mrf.mxu1  ;;  %v2070_v37 = vld [vmem:[%s2574_s18 + $0x2a0] sm:$0xf]  ;;  %v2349_v38 = vld [vmem:[%s2574_s18 + $0x2ac] sm:$0xf0] }
 0x155   : > { %v1216_v53 = vadd.f32 %v1215_v42, %v1081_v41  ;;  %v2078_v41 = vld [vmem:[%s2574_s18 + $0x2a8] sm:$0xf]  ;;  %v2350_v42 = vld [vmem:[%s2574_s18 + $0x2b4] sm:$0xf0]  ;;  %v2071_v48 = vor.u32 %v2349_v38, %v2070_v37 }
 0x156   : > { %v2444_v43 = vpop.eup %2443  ;;  %v1482_v44 = vadd.f32 %v1481_v39, %v1348_v40  ;;  %v2347_v39 = vld [vmem:[%s2574_s18 + $0x2a4] sm:$0xf]  ;;  %v2072_v40 = vld [vmem:[%s2574_s18 + $0x2b0] sm:$0xf0] }
 0x157   : > { %1625 = vst [vmem:[%s2666_s22 + $0x98] sm:$0xff] %v2444_v43  ;;  %v2348_v43 = vld [vmem:[%s2574_s18 + $0x2ac] sm:$0xf]  ;;  %v2075_v49 = vor.u32 %v2347_v39, %v2072_v40 }
 0x158   : > { %2445 = vtanh.f32 %v1482_v44  ;;  %v2080_v44 = vld [vmem:[%s2574_s18 + $0x2b8] sm:$0xf0] }
 0x15b   : > { %v1349_v54 = vpop.f32.mrf.mxu2  ;;  %v1084_v59 = vpop.f32.mrf.mxu0 }
 0x15c   : > { %v1483_v55 = vpop.f32.mrf.mxu3  ;;  %v1350_v58 = vadd.f32 %v1349_v54, %v1216_v53  ;;  %v1218_v60 = vpop.f32.mrf.mxu1  ;;  %v2079_v53 = vor.u32 %v2350_v42, %v2078_v41  ;;  %v2083_v54 = vor.u32 %v2348_v43, %v2080_v44 }
 0x15d   : > { %v1219_v1 = vadd.f32 %v1218_v60, %v1084_v59 }
 0x15e   : > { %v2446_v63 = vpop.eup %2445  ;;  %v1484_v0 = vadd.f32 %v1483_v55, %v1350_v58  ;;  %1123 = vmatmul.bf16.gmra.mxu0 %v2039_v56 }
 0x15f   : > { %1626 = vst [vmem:[%s2666_s22 + $0xa0] sm:$0xff] %v2446_v63  ;;  %1257 = vmatmul.bf16.gmra.mxu1 %v2043_v57 }
 0x160   : > { %2447 = vtanh.f32 %v1484_v0  ;;  %1391 = vmatmul.bf16.gmra.mxu2 %v2047_v61 }
 0x161   : > { %1525 = vmatmul.bf16.gmra.mxu3 %v2051_v62 }
 0x163   : > { %v1352_v2 = vpop.f32.mrf.mxu2  ;;  %v1086_v5 = vpop.f32.mrf.mxu0 }
 0x164   : > { %v1486_v3 = vpop.f32.mrf.mxu3  ;;  %v1353_v4 = vadd.f32 %v1352_v2, %v1219_v1  ;;  %v1220_v6 = vpop.f32.mrf.mxu1  ;;  %v2086_v1 = vld [vmem:[%s2574_s18 + $0x2c0] sm:$0xf]  ;;  %v2353_v2 = vld [vmem:[%s2574_s18 + $0x2cc] sm:$0xf0] }
 0x165   : > { %v1221_v17 = vadd.f32 %v1220_v6, %v1086_v5  ;;  %v2094_v5 = vld [vmem:[%s2574_s18 + $0x2c8] sm:$0xf]  ;;  %v2354_v6 = vld [vmem:[%s2574_s18 + $0x2d4] sm:$0xf0]  ;;  %v2087_v12 = vor.u32 %v2353_v2, %v2086_v1 }
 0x166   : > { %v2448_v7 = vpop.eup %2447  ;;  %v1487_v8 = vadd.f32 %v1486_v3, %v1353_v4  ;;  %v2351_v3 = vld [vmem:[%s2574_s18 + $0x2c4] sm:$0xf]  ;;  %v2088_v4 = vld [vmem:[%s2574_s18 + $0x2d0] sm:$0xf0] }
 0x167   : > { %1627 = vst [vmem:[%s2666_s22 + $0xa8] sm:$0xff] %v2448_v7  ;;  %v2352_v7 = vld [vmem:[%s2574_s18 + $0x2cc] sm:$0xf]  ;;  %v2091_v13 = vor.u32 %v2351_v3, %v2088_v4 }
 0x168   : > { %2449 = vtanh.f32 %v1487_v8  ;;  %v2096_v8 = vld [vmem:[%s2574_s18 + $0x2d8] sm:$0xf0] }
 0x16b   : > { %v1354_v18 = vpop.f32.mrf.mxu2  ;;  %v1089_v23 = vpop.f32.mrf.mxu0 }
 0x16c   : > { %v1488_v19 = vpop.f32.mrf.mxu3  ;;  %v1355_v22 = vadd.f32 %v1354_v18, %v1221_v17  ;;  %v1223_v24 = vpop.f32.mrf.mxu1  ;;  %v2095_v17 = vor.u32 %v2354_v6, %v2094_v5  ;;  %v2099_v18 = vor.u32 %v2352_v7, %v2096_v8 }
 0x16d   : > { %v1224_v29 = vadd.f32 %v1223_v24, %v1089_v23 }
 0x16e   : > { %v2450_v27 = vpop.eup %2449  ;;  %v1489_v28 = vadd.f32 %v1488_v19, %v1355_v22  ;;  %1128 = vmatmul.bf16.gmra.mxu0 %v2055_v20 }
 0x16f   : > { %1628 = vst [vmem:[%s2666_s22 + $0xb0] sm:$0xff] %v2450_v27  ;;  %1262 = vmatmul.bf16.gmra.mxu1 %v2059_v21 }
 0x170   : > { %2451 = vtanh.f32 %v1489_v28  ;;  %1396 = vmatmul.bf16.gmra.mxu2 %v2063_v25 }
 0x171   : > { %1530 = vmatmul.bf16.gmra.mxu3 %v2067_v26 }
 0x173   : > { %v1357_v30 = vpop.f32.mrf.mxu2  ;;  %v1091_v33 = vpop.f32.mrf.mxu0 }
 0x174   : > { %v1491_v31 = vpop.f32.mrf.mxu3  ;;  %v1358_v32 = vadd.f32 %v1357_v30, %v1224_v29  ;;  %v1225_v34 = vpop.f32.mrf.mxu1  ;;  %v2102_v29 = vld [vmem:[%s2574_s18 + $0x2e0] sm:$0xf]  ;;  %v2357_v30 = vld [vmem:[%s2574_s18 + $0x2ec] sm:$0xf0] }
 0x175   : > { %v1226_v45 = vadd.f32 %v1225_v34, %v1091_v33  ;;  %v2110_v33 = vld [vmem:[%s2574_s18 + $0x2e8] sm:$0xf]  ;;  %v2358_v34 = vld [vmem:[%s2574_s18 + $0x2f4] sm:$0xf0]  ;;  %v2103_v40 = vor.u32 %v2357_v30, %v2102_v29 }
 0x176   : > { %v2452_v35 = vpop.eup %2451  ;;  %v1492_v36 = vadd.f32 %v1491_v31, %v1358_v32  ;;  %v2355_v31 = vld [vmem:[%s2574_s18 + $0x2e4] sm:$0xf]  ;;  %v2104_v32 = vld [vmem:[%s2574_s18 + $0x2f0] sm:$0xf0] }
 0x177   : > { %1629 = vst [vmem:[%s2666_s22 + $0xb8] sm:$0xff] %v2452_v35  ;;  %v2356_v35 = vld [vmem:[%s2574_s18 + $0x2ec] sm:$0xf]  ;;  %v2107_v41 = vor.u32 %v2355_v31, %v2104_v32 }
 0x178   : > { %2453 = vtanh.f32 %v1492_v36  ;;  %v2112_v36 = vld [vmem:[%s2574_s18 + $0x2f8] sm:$0xf0] }
 0x17b   : > { %v1359_v46 = vpop.f32.mrf.mxu2  ;;  %v1094_v51 = vpop.f32.mrf.mxu0 }
 0x17c   : > { %v1493_v47 = vpop.f32.mrf.mxu3  ;;  %v1360_v50 = vadd.f32 %v1359_v46, %v1226_v45  ;;  %v1228_v52 = vpop.f32.mrf.mxu1  ;;  %v2111_v45 = vor.u32 %v2358_v34, %v2110_v33  ;;  %v2115_v46 = vor.u32 %v2356_v35, %v2112_v36 }
 0x17d   : > { %v1229_v57 = vadd.f32 %v1228_v52, %v1094_v51 }
 0x17e   : > { %v2454_v55 = vpop.eup %2453  ;;  %v1494_v56 = vadd.f32 %v1493_v47, %v1360_v50  ;;  %1133 = vmatmul.bf16.gmra.mxu0 %v2071_v48 }
 0x17f   : > { %1630 = vst [vmem:[%s2666_s22 + $0xc0] sm:$0xff] %v2454_v55  ;;  %1267 = vmatmul.bf16.gmra.mxu1 %v2075_v49 }
 0x180   : > { %2455 = vtanh.f32 %v1494_v56  ;;  %1401 = vmatmul.bf16.gmra.mxu2 %v2079_v53 }
 0x181   : > { %1535 = vmatmul.bf16.gmra.mxu3 %v2083_v54 }
 0x183   : > { %v1362_v58 = vpop.f32.mrf.mxu2  ;;  %v1096_v61 = vpop.f32.mrf.mxu0 }
 0x184   : > { %v1496_v59 = vpop.f32.mrf.mxu3  ;;  %v1363_v60 = vadd.f32 %v1362_v58, %v1229_v57  ;;  %v1230_v62 = vpop.f32.mrf.mxu1  ;;  %v2118_v57 = vld [vmem:[%s2574_s18 + $0x300] sm:$0xf]  ;;  %v2361_v58 = vld [vmem:[%s2574_s18 + $0x30c] sm:$0xf0] }
 0x185   : > { %v1231_v9 = vadd.f32 %v1230_v62, %v1096_v61  ;;  %v2126_v61 = vld [vmem:[%s2574_s18 + $0x308] sm:$0xf]  ;;  %v2362_v62 = vld [vmem:[%s2574_s18 + $0x314] sm:$0xf0]  ;;  %v2119_v4 = vor.u32 %v2361_v58, %v2118_v57 }
 0x186   : > { %v2456_v63 = vpop.eup %2455  ;;  %v1497_v0 = vadd.f32 %v1496_v59, %v1363_v60  ;;  %v2359_v59 = vld [vmem:[%s2574_s18 + $0x304] sm:$0xf]  ;;  %v2120_v60 = vld [vmem:[%s2574_s18 + $0x310] sm:$0xf0] }
 0x187   : > { %1631 = vst [vmem:[%s2666_s22 + $0xc8] sm:$0xff] %v2456_v63  ;;  %v2360_v63 = vld [vmem:[%s2574_s18 + $0x30c] sm:$0xf]  ;;  %v2123_v5 = vor.u32 %v2359_v59, %v2120_v60 }
 0x188   : > { %2457 = vtanh.f32 %v1497_v0  ;;  %v2128_v0 = vld [vmem:[%s2574_s18 + $0x318] sm:$0xf0] }
 0x18b   : > { %v1364_v10 = vpop.f32.mrf.mxu2  ;;  %v1099_v15 = vpop.f32.mrf.mxu0 }
 0x18c   : > { %v1498_v11 = vpop.f32.mrf.mxu3  ;;  %v1365_v14 = vadd.f32 %v1364_v10, %v1231_v9  ;;  %v1233_v16 = vpop.f32.mrf.mxu1  ;;  %v2127_v9 = vor.u32 %v2362_v62, %v2126_v61  ;;  %v2131_v10 = vor.u32 %v2360_v63, %v2128_v0 }
 0x18d   : > { %v1234_v21 = vadd.f32 %v1233_v16, %v1099_v15 }
 0x18e   : > { %v2458_v19 = vpop.eup %2457  ;;  %v1499_v20 = vadd.f32 %v1498_v11, %v1365_v14  ;;  %1138 = vmatmul.bf16.gmra.mxu0 %v2087_v12 }
 0x18f   : > { %1632 = vst [vmem:[%s2666_s22 + $0xd0] sm:$0xff] %v2458_v19  ;;  %1272 = vmatmul.bf16.gmra.mxu1 %v2091_v13 }
 0x190   : > { %2459 = vtanh.f32 %v1499_v20  ;;  %1406 = vmatmul.bf16.gmra.mxu2 %v2095_v17 }
 0x191   : > { %1540 = vmatmul.bf16.gmra.mxu3 %v2099_v18 }
 0x193   : > { %v1367_v22 = vpop.f32.mrf.mxu2  ;;  %v1101_v25 = vpop.f32.mrf.mxu0 }
 0x194   : > { %v1501_v23 = vpop.f32.mrf.mxu3  ;;  %v1368_v24 = vadd.f32 %v1367_v22, %v1234_v21  ;;  %v1235_v26 = vpop.f32.mrf.mxu1 }
 0x195   : > { %v1236_v37 = vadd.f32 %v1235_v26, %v1101_v25 }
 0x196   : > { %v2460_v27 = vpop.eup %2459  ;;  %v1502_v28 = vadd.f32 %v1501_v23, %v1368_v24 }
 0x197   : > { %1633 = vst [vmem:[%s2666_s22 + $0xd8] sm:$0xff] %v2460_v27 }
 0x198   : > { %2461 = vtanh.f32 %v1502_v28 }
 0x19b   : > { %v1369_v38 = vpop.f32.mrf.mxu2  ;;  %v1104_v43 = vpop.f32.mrf.mxu0 }
 0x19c   : > { %v1503_v39 = vpop.f32.mrf.mxu3  ;;  %v1370_v42 = vadd.f32 %v1369_v38, %v1236_v37  ;;  %v1238_v44 = vpop.f32.mrf.mxu1 }
 0x19d   : > { %v1239_v49 = vadd.f32 %v1238_v44, %v1104_v43 }
 0x19e   : > { %v2462_v47 = vpop.eup %2461  ;;  %v1504_v48 = vadd.f32 %v1503_v39, %v1370_v42  ;;  %1143 = vmatmul.bf16.gmra.mxu0 %v2103_v40 }
 0x19f   : > { %1634 = vst [vmem:[%s2666_s22 + $0xe0] sm:$0xff] %v2462_v47  ;;  %1277 = vmatmul.bf16.gmra.mxu1 %v2107_v41 }
 0x1a0   : > { %2463 = vtanh.f32 %v1504_v48  ;;  %1411 = vmatmul.bf16.gmra.mxu2 %v2111_v45 }
 0x1a1   : > { %1545 = vmatmul.bf16.gmra.mxu3 %v2115_v46 }
 0x1a3   : > { %v1372_v50 = vpop.f32.mrf.mxu2  ;;  %v1106_v53 = vpop.f32.mrf.mxu0 }
 0x1a4   : > { %v1506_v51 = vpop.f32.mrf.mxu3  ;;  %v1373_v52 = vadd.f32 %v1372_v50, %v1239_v49  ;;  %v1240_v54 = vpop.f32.mrf.mxu1 }
 0x1a5   : > { %v1241_v1 = vadd.f32 %v1240_v54, %v1106_v53 }
 0x1a6   : > { %v2464_v55 = vpop.eup %2463  ;;  %v1507_v56 = vadd.f32 %v1506_v51, %v1373_v52 }
 0x1a7   : > { %1635 = vst [vmem:[%s2666_s22 + $0xe8] sm:$0xff] %v2464_v55 }
 0x1a8   : > { %2465 = vtanh.f32 %v1507_v56 }
 0x1ab   : > { %v1374_v2 = vpop.f32.mrf.mxu2  ;;  %v1109_v7 = vpop.f32.mrf.mxu0 }
 0x1ac   : > { %v1508_v3 = vpop.f32.mrf.mxu3  ;;  %v1375_v6 = vadd.f32 %v1374_v2, %v1241_v1  ;;  %v1243_v8 = vpop.f32.mrf.mxu1 }
 0x1ad   : > { %v1244_v13 = vadd.f32 %v1243_v8, %v1109_v7 }
 0x1ae   : > { %v2466_v11 = vpop.eup %2465  ;;  %v1509_v12 = vadd.f32 %v1508_v3, %v1375_v6  ;;  %1148 = vmatmul.bf16.gmra.mxu0 %v2119_v4 }
 0x1af   : > { %1636 = vst [vmem:[%s2666_s22 + $0xf0] sm:$0xff] %v2466_v11  ;;  %1282 = vmatmul.bf16.gmra.mxu1 %v2123_v5 }
 0x1b0   : > { %2467 = vtanh.f32 %v1509_v12  ;;  %1416 = vmatmul.bf16.gmra.mxu2 %v2127_v9 }
 0x1b1   : > { %1550 = vmatmul.bf16.gmra.mxu3 %v2131_v10 }
 0x1b3   : > { %v1377_v14 = vpop.f32.mrf.mxu2  ;;  %v1111_v17 = vpop.f32.mrf.mxu0 }
 0x1b4   : > { %v1511_v15 = vpop.f32.mrf.mxu3  ;;  %v1378_v16 = vadd.f32 %v1377_v14, %v1244_v13  ;;  %v1245_v18 = vpop.f32.mrf.mxu1 }
 0x1b5   : > { %v1246_v21 = vadd.f32 %v1245_v18, %v1111_v17 }
 0x1b6   : > { %v2468_v19 = vpop.eup %2467  ;;  %v1512_v20 = vadd.f32 %v1511_v15, %v1378_v16 }
 0x1b7   : > { %1637 = vst [vmem:[%s2666_s22 + $0xf8] sm:$0xff] %v2468_v19 }
 0x1b8   : > { %2469 = vtanh.f32 %v1512_v20 }
 0x1bb   : > { %v1379_v22 = vpop.f32.mrf.mxu2  ;;  %v1114_v25 = vpop.f32.mrf.mxu0 }
 0x1bc   : > { %v1513_v23 = vpop.f32.mrf.mxu3  ;;  %v1380_v24 = vadd.f32 %v1379_v22, %v1246_v21  ;;  %v1248_v26 = vpop.f32.mrf.mxu1 }
 0x1bd   : > { %v1249_v29 = vadd.f32 %v1248_v26, %v1114_v25 }
 0x1be   : > { %v2470_v27 = vpop.eup %2469  ;;  %v1514_v28 = vadd.f32 %v1513_v23, %v1380_v24 }
 0x1bf   : > { %1638 = vst [vmem:[%s2666_s22 + $0x100] sm:$0xff] %v2470_v27 }
 0x1c0   : > { %2471 = vtanh.f32 %v1514_v28 }
 0x1c3   : > { %v1382_v30 = vpop.f32.mrf.mxu2  ;;  %v1116_v33 = vpop.f32.mrf.mxu0 }
 0x1c4   : > { %v1516_v31 = vpop.f32.mrf.mxu3  ;;  %v1383_v32 = vadd.f32 %v1382_v30, %v1249_v29  ;;  %v1250_v34 = vpop.f32.mrf.mxu1 }
 0x1c5   : > { %v1251_v37 = vadd.f32 %v1250_v34, %v1116_v33 }
 0x1c6   : > { %v2472_v35 = vpop.eup %2471  ;;  %v1517_v36 = vadd.f32 %v1516_v31, %v1383_v32 }
 0x1c7   : > { %1639 = vst [vmem:[%s2666_s22 + $0x108] sm:$0xff] %v2472_v35 }
 0x1c8   : > { %2473 = vtanh.f32 %v1517_v36 }
 0x1cb   : > { %v1384_v38 = vpop.f32.mrf.mxu2  ;;  %v1119_v41 = vpop.f32.mrf.mxu0 }
 0x1cc   : > { %v1518_v39 = vpop.f32.mrf.mxu3  ;;  %v1385_v40 = vadd.f32 %v1384_v38, %v1251_v37  ;;  %v1253_v42 = vpop.f32.mrf.mxu1 }
 0x1cd   : > { %v1254_v45 = vadd.f32 %v1253_v42, %v1119_v41 }
 0x1ce   : > { %v2474_v43 = vpop.eup %2473  ;;  %v1519_v44 = vadd.f32 %v1518_v39, %v1385_v40 }
 0x1cf   : > { %1640 = vst [vmem:[%s2666_s22 + $0x110] sm:$0xff] %v2474_v43 }
 0x1d0   : > { %2475 = vtanh.f32 %v1519_v44 }
 0x1d3   : > { %v1387_v46 = vpop.f32.mrf.mxu2  ;;  %v1121_v49 = vpop.f32.mrf.mxu0 }
 0x1d4   : > { %v1521_v47 = vpop.f32.mrf.mxu3  ;;  %v1388_v48 = vadd.f32 %v1387_v46, %v1254_v45  ;;  %v1255_v50 = vpop.f32.mrf.mxu1 }
 0x1d5   : > { %v1256_v53 = vadd.f32 %v1255_v50, %v1121_v49 }
 0x1d6   : > { %v2476_v51 = vpop.eup %2475  ;;  %v1522_v52 = vadd.f32 %v1521_v47, %v1388_v48 }
 0x1d7   : > { %1641 = vst [vmem:[%s2666_s22 + $0x118] sm:$0xff] %v2476_v51 }
 0x1d8   : > { %2477 = vtanh.f32 %v1522_v52 }
 0x1db   : > { %v1389_v54 = vpop.f32.mrf.mxu2  ;;  %v1124_v57 = vpop.f32.mrf.mxu0 }
 0x1dc   : > { %v1523_v55 = vpop.f32.mrf.mxu3  ;;  %v1390_v56 = vadd.f32 %v1389_v54, %v1256_v53  ;;  %v1258_v58 = vpop.f32.mrf.mxu1 }
 0x1dd   : > { %v1259_v61 = vadd.f32 %v1258_v58, %v1124_v57 }
 0x1de   : > { %v2478_v59 = vpop.eup %2477  ;;  %v1524_v60 = vadd.f32 %v1523_v55, %v1390_v56 }
 0x1df   : > { %1642 = vst [vmem:[%s2666_s22 + $0x120] sm:$0xff] %v2478_v59 }
 0x1e0   : > { %2479 = vtanh.f32 %v1524_v60 }
 0x1e3   : > { %v1392_v62 = vpop.f32.mrf.mxu2  ;;  %v1126_v1 = vpop.f32.mrf.mxu0 }
 0x1e4   : > { %v1526_v63 = vpop.f32.mrf.mxu3  ;;  %v1393_v0 = vadd.f32 %v1392_v62, %v1259_v61  ;;  %v1260_v2 = vpop.f32.mrf.mxu1 }
 0x1e5   : > { %v1261_v5 = vadd.f32 %v1260_v2, %v1126_v1 }
 0x1e6   : > { %v2480_v3 = vpop.eup %2479  ;;  %v1527_v4 = vadd.f32 %v1526_v63, %v1393_v0 }
 0x1e7   : > { %1643 = vst [vmem:[%s2666_s22 + $0x128] sm:$0xff] %v2480_v3 }
 0x1e8   : > { %2481 = vtanh.f32 %v1527_v4 }
 0x1eb   : > { %v1394_v6 = vpop.f32.mrf.mxu2  ;;  %v1129_v9 = vpop.f32.mrf.mxu0 }
 0x1ec   : > { %v1528_v7 = vpop.f32.mrf.mxu3  ;;  %v1395_v8 = vadd.f32 %v1394_v6, %v1261_v5  ;;  %v1263_v10 = vpop.f32.mrf.mxu1 }
 0x1ed   : > { %v1264_v13 = vadd.f32 %v1263_v10, %v1129_v9 }
 0x1ee   : > { %v2482_v11 = vpop.eup %2481  ;;  %v1529_v12 = vadd.f32 %v1528_v7, %v1395_v8 }
 0x1ef   : > { %1644 = vst [vmem:[%s2666_s22 + $0x130] sm:$0xff] %v2482_v11 }
 0x1f0   : > { %2483 = vtanh.f32 %v1529_v12 }
 0x1f3   : > { %v1397_v14 = vpop.f32.mrf.mxu2  ;;  %v1131_v17 = vpop.f32.mrf.mxu0 }
 0x1f4   : > { %v1531_v15 = vpop.f32.mrf.mxu3  ;;  %v1398_v16 = vadd.f32 %v1397_v14, %v1264_v13  ;;  %v1265_v18 = vpop.f32.mrf.mxu1 }
 0x1f5   : > { %v1266_v21 = vadd.f32 %v1265_v18, %v1131_v17 }
 0x1f6   : > { %v2484_v19 = vpop.eup %2483  ;;  %v1532_v20 = vadd.f32 %v1531_v15, %v1398_v16 }
 0x1f7   : > { %1645 = vst [vmem:[%s2666_s22 + $0x138] sm:$0xff] %v2484_v19 }
 0x1f8   : > { %2485 = vtanh.f32 %v1532_v20 }
 0x1fb   : > { %v1399_v22 = vpop.f32.mrf.mxu2  ;;  %v1134_v25 = vpop.f32.mrf.mxu0 }
 0x1fc   : > { %v1533_v23 = vpop.f32.mrf.mxu3  ;;  %v1400_v24 = vadd.f32 %v1399_v22, %v1266_v21  ;;  %v1268_v26 = vpop.f32.mrf.mxu1 }
 0x1fd   : > { %v1269_v29 = vadd.f32 %v1268_v26, %v1134_v25 }
 0x1fe   : > { %v2486_v27 = vpop.eup %2485  ;;  %v1534_v28 = vadd.f32 %v1533_v23, %v1400_v24 }
 0x1ff   : > { %1646 = vst [vmem:[%s2666_s22 + $0x140] sm:$0xff] %v2486_v27 }
 0x200   : > { %2487 = vtanh.f32 %v1534_v28 }
 0x203   : > { %v1402_v30 = vpop.f32.mrf.mxu2  ;;  %v1136_v33 = vpop.f32.mrf.mxu0 }
 0x204   : > { %v1536_v31 = vpop.f32.mrf.mxu3  ;;  %v1403_v32 = vadd.f32 %v1402_v30, %v1269_v29  ;;  %v1270_v34 = vpop.f32.mrf.mxu1 }
 0x205   : > { %v1271_v37 = vadd.f32 %v1270_v34, %v1136_v33 }
 0x206   : > { %v2488_v35 = vpop.eup %2487  ;;  %v1537_v36 = vadd.f32 %v1536_v31, %v1403_v32 }
 0x207   : > { %1647 = vst [vmem:[%s2666_s22 + $0x148] sm:$0xff] %v2488_v35 }
 0x208   : > { %2489 = vtanh.f32 %v1537_v36 }
 0x20b   : > { %v1404_v38 = vpop.f32.mrf.mxu2  ;;  %v1139_v41 = vpop.f32.mrf.mxu0 }
 0x20c   : > { %v1538_v39 = vpop.f32.mrf.mxu3  ;;  %v1405_v40 = vadd.f32 %v1404_v38, %v1271_v37  ;;  %v1273_v42 = vpop.f32.mrf.mxu1 }
 0x20d   : > { %v1274_v45 = vadd.f32 %v1273_v42, %v1139_v41 }
 0x20e   : > { %v2490_v43 = vpop.eup %2489  ;;  %v1539_v44 = vadd.f32 %v1538_v39, %v1405_v40 }
 0x20f   : > { %1648 = vst [vmem:[%s2666_s22 + $0x150] sm:$0xff] %v2490_v43 }
 0x210   : > { %2491 = vtanh.f32 %v1539_v44 }
 0x213   : > { %v1407_v46 = vpop.f32.mrf.mxu2  ;;  %v1141_v49 = vpop.f32.mrf.mxu0 }
 0x214   : > { %v1541_v47 = vpop.f32.mrf.mxu3  ;;  %v1408_v48 = vadd.f32 %v1407_v46, %v1274_v45  ;;  %v1275_v50 = vpop.f32.mrf.mxu1 }
 0x215   : > { %v1276_v53 = vadd.f32 %v1275_v50, %v1141_v49 }
 0x216   : > { %v2492_v51 = vpop.eup %2491  ;;  %v1542_v52 = vadd.f32 %v1541_v47, %v1408_v48 }
 0x217   : > { %1649 = vst [vmem:[%s2666_s22 + $0x158] sm:$0xff] %v2492_v51 }
 0x218   : > { %2493 = vtanh.f32 %v1542_v52 }
 0x21b   : > { %v1409_v54 = vpop.f32.mrf.mxu2  ;;  %v1144_v57 = vpop.f32.mrf.mxu0 }
 0x21c   : > { %v1543_v55 = vpop.f32.mrf.mxu3  ;;  %v1410_v56 = vadd.f32 %v1409_v54, %v1276_v53  ;;  %v1278_v58 = vpop.f32.mrf.mxu1 }
 0x21d   : > { %v1279_v61 = vadd.f32 %v1278_v58, %v1144_v57 }
 0x21e   : > { %v2494_v59 = vpop.eup %2493  ;;  %v1544_v60 = vadd.f32 %v1543_v55, %v1410_v56 }
 0x21f   : > { %1650 = vst [vmem:[%s2666_s22 + $0x160] sm:$0xff] %v2494_v59 }
 0x220   : > { %2495 = vtanh.f32 %v1544_v60 }
 0x223   : > { %v1412_v62 = vpop.f32.mrf.mxu2  ;;  %v1146_v1 = vpop.f32.mrf.mxu0 }
 0x224   : > { %v1546_v63 = vpop.f32.mrf.mxu3  ;;  %v1413_v0 = vadd.f32 %v1412_v62, %v1279_v61  ;;  %v1280_v2 = vpop.f32.mrf.mxu1 }
 0x225   : > { %v1281_v5 = vadd.f32 %v1280_v2, %v1146_v1 }
 0x226   : > { %v2496_v3 = vpop.eup %2495  ;;  %v1547_v4 = vadd.f32 %v1546_v63, %v1413_v0 }
 0x227   : > { %1651 = vst [vmem:[%s2666_s22 + $0x168] sm:$0xff] %v2496_v3 }
 0x228   : > { %2497 = vtanh.f32 %v1547_v4 }
 0x22b   : > { %v1414_v6 = vpop.f32.mrf.mxu2  ;;  %v1149_v9 = vpop.f32.mrf.mxu0 }
 0x22c   : > { %v1548_v7 = vpop.f32.mrf.mxu3  ;;  %v1415_v8 = vadd.f32 %v1414_v6, %v1281_v5  ;;  %v1283_v10 = vpop.f32.mrf.mxu1 }
 0x22d   : > { %v1284_v13 = vadd.f32 %v1283_v10, %v1149_v9 }
 0x22e   : > { %v2498_v11 = vpop.eup %2497  ;;  %v1549_v12 = vadd.f32 %v1548_v7, %v1415_v8 }
 0x22f   : > { %1652 = vst [vmem:[%s2666_s22 + $0x170] sm:$0xff] %v2498_v11 }
 0x230   : > { %2499 = vtanh.f32 %v1549_v12 }
 0x233   : > { %v1417_v14 = vpop.f32.mrf.mxu2  ;;  %v1151_v19 = vpop.f32.mrf.mxu0 }
 0x234   : > { %v1551_v15 = vpop.f32.mrf.mxu3  ;;  %v1418_v16 = vadd.f32 %v1417_v14, %v1284_v13  ;;  %v1285_v20 = vpop.f32.mrf.mxu1 }
 0x235   : > { %v1286_v21 = vadd.f32 %v1285_v20, %v1151_v19 }
 0x236   : > { %v2500_v17 = vpop.eup %2499  ;;  %v1552_v18 = vadd.f32 %v1551_v15, %v1418_v16 }
 0x237   : > { %1653 = vst [vmem:[%s2666_s22 + $0x178] sm:$0xff] %v2500_v17 }
 0x238   : > { %2501 = vtanh.f32 %v1552_v18 }
 0x23b   : > { %v1419_v22 = vpop.f32.mrf.mxu2 }
 0x23c   : > { %v1420_v23 = vadd.f32 %v1419_v22, %v1286_v21  ;;  %v1553_v24 = vpop.f32.mrf.mxu3 }
 0x23e   : > { %v2502_v25 = vpop.eup %2501  ;;  %v1554_v26 = vadd.f32 %v1553_v24, %v1420_v23 }
 0x23f   : > { %1654 = vst [vmem:[%s2666_s22 + $0x180] sm:$0xff] %v2502_v25 }
 0x240   : > { %2503 = vtanh.f32 %v1554_v26 }
 0x246   : > { %v2504_v27 = vpop.eup %2503 }
 0x247   : > { %1655 = vst [vmem:[%s2666_s22 + $0x188] sm:$0xff] %v2504_v27 }
 0x248 PF: > { %s12_s9 = sadd.s32 1, %s2511_s9  }
 0x249   : > { %p9_p4 = scmp.ge.s32.totalorder %s12_s9, 6  }
 0x24b   :  { %11 = sbr.rel (!%p9_p4) target bundleno = 1 (0x1), region = 61 }

</bundles_post_ra>
